<compile_context>
chip_gen: v6e
topology: v6e:2x2x1
jax: 0.10.0
libtpu: 0.0.40
codegen_flags: <defaults>
</compile_context>

<pallas_src>
import jax
import jax.numpy as jnp
from jax.experimental import pallas as pl
from jax.experimental.pallas import tpu as pltpu


_VMEM_LIMIT = 64 * 1024 * 1024


# ----------------------------------------------------------------------------
# In-kernel helpers
# ----------------------------------------------------------------------------
def _conv3x3_from_padded(xp, w_ref, H, W, Cout):
    """3x3 conv over an already zero-padded (H+2, W+2, Cin) bf16 tile.

    Expressed as 9 shifted (H*W, Cin) @ (Cin, Cout) MXU matmuls with f32
    accumulation.  w_ref holds the 9 taps as (9, Cin, Cout) bf16.
    Returns (H*W, Cout) float32 (no bias).
    """
    acc = jnp.zeros((H * W, Cout), jnp.float32)
    for kh in range(3):
        for kw in range(3):
            patch = xp[kh:kh + H, kw:kw + W, :].reshape(H * W, -1)
            acc = acc + jnp.dot(patch, w_ref[kh * 3 + kw],
                                preferred_element_type=jnp.float32)
    return acc


def _write_padded(pad_ref, value_bf16, H, W, C):
    """Zero the (H+2, W+2, C) bf16 scratch and write `value` into its interior."""
    pad_ref[...] = jnp.zeros((H + 2, W + 2, C), jnp.bfloat16)
    pad_ref[1:H + 1, 1:W + 1, :] = value_bf16


# ----------------------------------------------------------------------------
# Kernels
# ----------------------------------------------------------------------------
def _make_input_conv_kernel(H, W, Cin, Cout, neg_slope):
    """Conv2d(k=3, s=1, p=1) + bias + LeakyReLU(neg_slope).  One image / step."""

    def kernel(x_ref, w_ref, b_ref, o_ref, xp_ref):
        _write_padded(xp_ref, x_ref[...].astype(jnp.bfloat16), H, W, Cin)
        acc = _conv3x3_from_padded(xp_ref[...], w_ref, H, W, Cout) + b_ref[...]
        acc = jnp.where(acc >= 0, acc, neg_slope * acc)      # LeakyReLU (f32)
        o_ref[...] = acc.reshape(H, W, Cout).astype(o_ref.dtype)

    return kernel


def _make_chained_res_kernel(H, W, C, res_scale):
    """One grid step = one ResidualBlockNoBN applied to the VMEM-resident
    activation of image n:  out <- out + res_scale * conv2(relu(conv1(out))).

    grid = (N, num_blocks); the output block index only depends on n, so the
    activation never round-trips to HBM between blocks.
    """

    def kernel(x_ref, w1_ref, b1_ref, w2_ref, b2_ref, o_ref, xp_ref, hp_ref):
        j = pl.program_id(1)

        # First block of this image: seed the resident activation from HBM input.
        @pl.when(j == 0)
        def _():
            o_ref[...] = x_ref[...]

        x = o_ref[...]                                        # f32 (H, W, C)

        # conv1 + ReLU; intermediate `h` stays entirely in VMEM.
        _write_padded(xp_ref, x.astype(jnp.bfloat16), H, W, C)
        h = _conv3x3_from_padded(xp_ref[...], w1_ref, H, W, C) + b1_ref[...]
        h = jnp.maximum(h, 0.0)

        # conv2 + residual add (all non-matmul math in f32).
        _write_padded(hp_ref, h.astype(jnp.bfloat16).reshape(H, W, C), H, W, C)
        y = _conv3x3_from_padded(hp_ref[...], w2_ref, H, W, C) + b2_ref[...]
        y = y.reshape(H, W, C)
        if res_scale != 1.0:
            y = y * res_scale
        o_ref[...] = (x + y).astype(o_ref.dtype)

    return kernel


# ----------------------------------------------------------------------------
# Wrappers (pallas_call plumbing)
# ----------------------------------------------------------------------------
def input_conv_leaky(x, w, b, *, neg_slope=0.1):
    """x: (N, H, W, Cin) f32.  w: (3, 3, Cin, Cout).  b: (Cout,)."""
    N, H, W, Cin = x.shape
    Cout = w.shape[-1]
    w9 = w.reshape(9, Cin, Cout).astype(jnp.bfloat16)
    b2 = b.reshape(1, Cout).astype(jnp.float32)
    return pl.pallas_call(
        _make_input_conv_kernel(H, W, Cin, Cout, neg_slope),
        out_shape=jax.ShapeDtypeStruct((N, H, W, Cout), x.dtype),
        grid=(N,),
        in_specs=[
            pl.BlockSpec((None, H, W, Cin), lambda n: (n, 0, 0, 0)),
            pl.BlockSpec((9, Cin, Cout), lambda n: (0, 0, 0)),
            pl.BlockSpec((1, Cout), lambda n: (0, 0)),
        ],
        out_specs=pl.BlockSpec((None, H, W, Cout), lambda n: (n, 0, 0, 0)),
        scratch_shapes=[pltpu.VMEM((H + 2, W + 2, Cin), jnp.bfloat16)],
        compiler_params=pltpu.CompilerParams(
            dimension_semantics=("parallel",),
            vmem_limit_bytes=_VMEM_LIMIT),
    )(x, w9, b2)


def residual_chain(x, w1_all, b1_all, w2_all, b2_all, *, res_scale=1.0):
    """Apply num_blocks fused ResidualBlockNoBN in ONE pallas_call.

    x:      (N, H, W, C) f32
    w*_all: (num_blocks, 9, C, C) bf16 ;  b*_all: (num_blocks, 1, C) f32
    """
    N, H, W, C = x.shape
    num_blocks = w1_all.shape[0]
    if num_blocks == 0:
        return x
    return pl.pallas_call(
        _make_chained_res_kernel(H, W, C, res_scale),
        out_shape=jax.ShapeDtypeStruct((N, H, W, C), x.dtype),
        grid=(N, num_blocks),
        in_specs=[
            pl.BlockSpec((None, H, W, C), lambda n, j: (n, 0, 0, 0)),
            pl.BlockSpec((None, 9, C, C), lambda n, j: (j, 0, 0, 0)),
            pl.BlockSpec((None, 1, C), lambda n, j: (j, 0, 0)),
            pl.BlockSpec((None, 9, C, C), lambda n, j: (j, 0, 0, 0)),
            pl.BlockSpec((None, 1, C), lambda n, j: (j, 0, 0)),
        ],
        out_specs=pl.BlockSpec((None, H, W, C), lambda n, j: (n, 0, 0, 0)),
        scratch_shapes=[pltpu.VMEM((H + 2, W + 2, C), jnp.bfloat16),
                        pltpu.VMEM((H + 2, W + 2, C), jnp.bfloat16)],
        input_output_aliases={0: 0},      # reuse the activation HBM buffer
        compiler_params=pltpu.CompilerParams(
            dimension_semantics=("parallel", "arbitrary"),
            vmem_limit_bytes=_VMEM_LIMIT),
    )(x, w1_all, b1_all, w2_all, b2_all)


# ----------------------------------------------------------------------------
# Parameter construction (deterministic, kaiming-like fan_in init)
# ----------------------------------------------------------------------------
def init_params(key, in_channels, out_channels, num_blocks):
    def conv_init(k, cin, cout, scale=1.0):
        kw_, kb_ = jax.random.split(k)
        fan_in = cin * 3 * 3
        std = (2.0 / fan_in) ** 0.5
        w = jax.random.normal(kw_, (3, 3, cin, cout), jnp.float32) * std * scale
        bval = jax.random.normal(kb_, (cout,), jnp.float32) * 0.01
        return w, bval

    keys = jax.random.split(key, 1 + 2 * num_blocks)
    w0, b0 = conv_init(keys[0], in_channels, out_channels)
    blocks = []
    for i in range(num_blocks):
        w1, b1 = conv_init(keys[1 + 2 * i], out_channels, out_channels, 0.1)
        w2, b2 = conv_init(keys[2 + 2 * i], out_channels, out_channels, 0.1)
        blocks.append({"w1": w1, "b1": b1, "w2": w2, "b2": b2})
    return {"conv0_w": w0, "conv0_b": b0, "blocks": blocks}


# ----------------------------------------------------------------------------
# Forward pass == ResidualBlocksWithInputConv.forward
# ----------------------------------------------------------------------------
def residual_blocks_with_input_conv(feat_nchw, params):
    """feat_nchw: (n, in_channels, h, w) -> (n, out_channels, h, w)."""
    x = jnp.transpose(feat_nchw, (0, 2, 3, 1))                   # NCHW -> NHWC
    x = input_conv_leaky(x, params["conv0_w"], params["conv0_b"])
    blocks = params["blocks"]
    if blocks:
        C = x.shape[-1]
        w1_all = jnp.stack([b["w1"].reshape(9, C, C) for b in blocks]
                           ).astype(jnp.bfloat16)
        w2_all = jnp.stack([b["w2"].reshape(9, C, C) for b in blocks]
                           ).astype(jnp.bfloat16)
        b1_all = jnp.stack([b["b1"].reshape(1, C) for b in blocks]
                           ).astype(jnp.float32)
        b2_all = jnp.stack([b["b2"].reshape(1, C) for b in blocks]
                           ).astype(jnp.float32)
        x = residual_chain(x, w1_all, b1_all, w2_all, b2_all)
    return jnp.transpose(x, (0, 3, 1, 2))                        # NHWC -> NCHW


# ----------------------------------------------------------------------------
# Pure-JAX reference with matching matmul numerics (bf16 operands, f32 accum)
# ----------------------------------------------------------------------------
def _ref_conv(x_nhwc, w, b):
    y = jax.lax.conv_general_dilated(
        x_nhwc.astype(jnp.bfloat16), w.astype(jnp.bfloat16),
        window_strides=(1, 1), padding="SAME",
        dimension_numbers=("NHWC", "HWIO", "NHWC"),
        preferred_element_type=jnp.float32)
    return y + b.reshape(1, 1, 1, -1).astype(jnp.float32)


def _ref_forward(feat_nchw, params):
    x = jnp.transpose(feat_nchw, (0, 2, 3, 1))
    x = _ref_conv(x, params["conv0_w"], params["conv0_b"])
    x = jnp.where(x >= 0, x, 0.1 * x)
    for blk in params["blocks"]:
        identity = x
        h = jnp.maximum(_ref_conv(x, blk["w1"], blk["b1"]), 0.0)
        x = identity + _ref_conv(h, blk["w2"], blk["b2"])
    return jnp.transpose(x, (0, 3, 1, 2))


if __name__ == "__main__":
    key = jax.random.PRNGKey(0)
    k_x, k_p = jax.random.split(key)

    # Small shapes consistent with the module's (n, in_channels, h, w) contract.
    N, IN_C, OUT_C, H, W = 2, 4, 64, 16, 16
    NUM_BLOCKS = 3  # module default is 30; kept small for the demo

    feat = jax.random.normal(k_x, (N, IN_C, H, W), jnp.float32)
    params = init_params(k_p, IN_C, OUT_C, NUM_BLOCKS)

    fwd = jax.jit(residual_blocks_with_input_conv)
    out = jax.block_until_ready(fwd(feat, params))

    assert out.shape == (N, OUT_C, H, W), out.shape

    # Correctness check against a pure-JAX reference using the same bf16-operand
    # matmul numerics (accumulation, bias, activations, skip all in f32).
    ref = jax.block_until_ready(_ref_forward(feat, params))
    max_err = float(jnp.max(jnp.abs(out - ref)))
    assert jnp.allclose(out, ref, rtol=2e-2, atol=2e-2), max_err

    print("KERNEL_OK")
</pallas_src>

<mosaic_0001>
module attributes {stable_mosaic.version = 11 : i64} {
  func.func @kernel(%arg0: i32, %arg1: memref<1x16x16x4xf32, #tpu.memory_space<vmem>>, %arg2: memref<9x4x64xbf16, #tpu.memory_space<vmem>>, %arg3: memref<1x64xf32, #tpu.memory_space<vmem>>, %arg4: memref<1x16x16x64xf32, #tpu.memory_space<vmem>>, %arg5: memref<18x18x4xbf16, #tpu.memory_space<vmem>>) attributes {dimension_semantics = [#tpu.dimension_semantics<parallel>], iteration_bounds = array<i64: 2>, scalar_prefetch = 0 : i64, scratch_operands = 1 : i64, tpu.core_type = #tpu.core_type<tc>, window_params = [{transform_indices = @transform_0, window_bounds = array<i64: 1, 16, 16, 4>}, {pipeline_mode = #tpu.pipeline_mode<synchronous>, transform_indices = @transform_1, window_bounds = array<i64: 9, 4, 64>}, {pipeline_mode = #tpu.pipeline_mode<synchronous>, transform_indices = @transform_2, window_bounds = array<i64: 1, 64>}, {transform_indices = @transform_3, window_bounds = array<i64: 1, 16, 16, 64>}]} {
    %c0 = arith.constant 0 : index
    %c0_0 = arith.constant 0 : index
    %c0_1 = arith.constant 0 : index
    %c0_2 = arith.constant 0 : index
    %0 = vector.load %arg1[%c0, %c0_0, %c0_1, %c0_2] : memref<1x16x16x4xf32, #tpu.memory_space<vmem>>, vector<1x16x16x4xf32>
    %1 = vector.shape_cast %0 : vector<1x16x16x4xf32> to vector<16x16x4xf32>
    %2 = arith.truncf %1 : vector<16x16x4xf32> to vector<16x16x4xbf16>
    %cst = arith.constant 0.000000e+00 : bf16
    %3 = vector.broadcast %cst : bf16 to vector<18x18x4xbf16>
    %c0_3 = arith.constant 0 : index
    %c0_4 = arith.constant 0 : index
    %c0_5 = arith.constant 0 : index
    %4 = vector.load %arg5[%c0_3, %c0_4, %c0_5] : memref<18x18x4xbf16, #tpu.memory_space<vmem>>, vector<18x18x4xbf16>
    tpu.vector_store %arg5[%c0_3, %c0_4, %c0_5], %3 {strides = array<i32>} : memref<18x18x4xbf16, #tpu.memory_space<vmem>>, vector<18x18x4xbf16>,
    %c1 = arith.constant 1 : index
    %c1_6 = arith.constant 1 : index
    %c0_7 = arith.constant 0 : index
    %5 = vector.load %arg5[%c1, %c1_6, %c0_7] : memref<18x18x4xbf16, #tpu.memory_space<vmem>>, vector<16x16x4xbf16>
    tpu.vector_store %arg5[%c1, %c1_6, %c0_7], %2 {strides = array<i32>} : memref<18x18x4xbf16, #tpu.memory_space<vmem>>, vector<16x16x4xbf16>,
    %c0_8 = arith.constant 0 : index
    %c0_9 = arith.constant 0 : index
    %c0_10 = arith.constant 0 : index
    %6 = vector.load %arg5[%c0_8, %c0_9, %c0_10] : memref<18x18x4xbf16, #tpu.memory_space<vmem>>, vector<18x18x4xbf16>
    %cst_11 = arith.constant 0.000000e+00 : f32
    %7 = vector.broadcast %cst_11 : f32 to vector<256x64xf32>
    %8 = vector.extract_strided_slice %6 {offsets = [0, 0, 0], sizes = [16, 16, 4], strides = [1, 1, 1]} : vector<18x18x4xbf16> to vector<16x16x4xbf16>
    %9 = vector.shape_cast %8 : vector<16x16x4xbf16> to vector<256x4xbf16>
    %c0_12 = arith.constant 0 : index
    %c0_13 = arith.constant 0 : index
    %c0_14 = arith.constant 0 : index
    %10 = vector.load %arg2[%c0_12, %c0_13, %c0_14] : memref<9x4x64xbf16, #tpu.memory_space<vmem>>, vector<1x4x64xbf16>
    %11 = vector.shape_cast %10 : vector<1x4x64xbf16> to vector<4x64xbf16>
    %cst_15 = arith.constant dense<0.000000e+00> : vector<256x64xf32>
    %12 = tpu.matmul %9, %11, %cst_15 {dimension_numbers = #tpu.dot_dimension_numbers<[1], [0], [0], [1], [0, 0, 1, 1], [], []>} : vector<256x4xbf16>, vector<4x64xbf16>, vector<256x64xf32> -> vector<256x64xf32>
    %13 = arith.addf %7, %12 : vector<256x64xf32>
    %14 = vector.extract_strided_slice %6 {offsets = [0, 1, 0], sizes = [16, 16, 4], strides = [1, 1, 1]} : vector<18x18x4xbf16> to vector<16x16x4xbf16>
    %15 = vector.shape_cast %14 : vector<16x16x4xbf16> to vector<256x4xbf16>
    %c1_16 = arith.constant 1 : index
    %c0_17 = arith.constant 0 : index
    %c0_18 = arith.constant 0 : index
    %16 = vector.load %arg2[%c1_16, %c0_17, %c0_18] : memref<9x4x64xbf16, #tpu.memory_space<vmem>>, vector<1x4x64xbf16>
    %17 = vector.shape_cast %16 : vector<1x4x64xbf16> to vector<4x64xbf16>
    %cst_19 = arith.constant dense<0.000000e+00> : vector<256x64xf32>
    %18 = tpu.matmul %15, %17, %cst_19 {dimension_numbers = #tpu.dot_dimension_numbers<[1], [0], [0], [1], [0, 0, 1, 1], [], []>} : vector<256x4xbf16>, vector<4x64xbf16>, vector<256x64xf32> -> vector<256x64xf32>
    %19 = arith.addf %13, %18 : vector<256x64xf32>
    %20 = vector.extract_strided_slice %6 {offsets = [0, 2, 0], sizes = [16, 16, 4], strides = [1, 1, 1]} : vector<18x18x4xbf16> to vector<16x16x4xbf16>
    %21 = vector.shape_cast %20 : vector<16x16x4xbf16> to vector<256x4xbf16>
    %c2 = arith.constant 2 : index
    %c0_20 = arith.constant 0 : index
    %c0_21 = arith.constant 0 : index
    %22 = vector.load %arg2[%c2, %c0_20, %c0_21] : memref<9x4x64xbf16, #tpu.memory_space<vmem>>, vector<1x4x64xbf16>
    %23 = vector.shape_cast %22 : vector<1x4x64xbf16> to vector<4x64xbf16>
    %cst_22 = arith.constant dense<0.000000e+00> : vector<256x64xf32>
    %24 = tpu.matmul %21, %23, %cst_22 {dimension_numbers = #tpu.dot_dimension_numbers<[1], [0], [0], [1], [0, 0, 1, 1], [], []>} : vector<256x4xbf16>, vector<4x64xbf16>, vector<256x64xf32> -> vector<256x64xf32>
    %25 = arith.addf %19, %24 : vector<256x64xf32>
    %26 = vector.extract_strided_slice %6 {offsets = [1, 0, 0], sizes = [16, 16, 4], strides = [1, 1, 1]} : vector<18x18x4xbf16> to vector<16x16x4xbf16>
    %27 = vector.shape_cast %26 : vector<16x16x4xbf16> to vector<256x4xbf16>
    %c3 = arith.constant 3 : index
    %c0_23 = arith.constant 0 : index
    %c0_24 = arith.constant 0 : index
    %28 = vector.load %arg2[%c3, %c0_23, %c0_24] : memref<9x4x64xbf16, #tpu.memory_space<vmem>>, vector<1x4x64xbf16>
    %29 = vector.shape_cast %28 : vector<1x4x64xbf16> to vector<4x64xbf16>
    %cst_25 = arith.constant dense<0.000000e+00> : vector<256x64xf32>
    %30 = tpu.matmul %27, %29, %cst_25 {dimension_numbers = #tpu.dot_dimension_numbers<[1], [0], [0], [1], [0, 0, 1, 1], [], []>} : vector<256x4xbf16>, vector<4x64xbf16>, vector<256x64xf32> -> vector<256x64xf32>
    %31 = arith.addf %25, %30 : vector<256x64xf32>
    %32 = vector.extract_strided_slice %6 {offsets = [1, 1, 0], sizes = [16, 16, 4], strides = [1, 1, 1]} : vector<18x18x4xbf16> to vector<16x16x4xbf16>
    %33 = vector.shape_cast %32 : vector<16x16x4xbf16> to vector<256x4xbf16>
    %c4 = arith.constant 4 : index
    %c0_26 = arith.constant 0 : index
    %c0_27 = arith.constant 0 : index
    %34 = vector.load %arg2[%c4, %c0_26, %c0_27] : memref<9x4x64xbf16, #tpu.memory_space<vmem>>, vector<1x4x64xbf16>
    %35 = vector.shape_cast %34 : vector<1x4x64xbf16> to vector<4x64xbf16>
    %cst_28 = arith.constant dense<0.000000e+00> : vector<256x64xf32>
    %36 = tpu.matmul %33, %35, %cst_28 {dimension_numbers = #tpu.dot_dimension_numbers<[1], [0], [0], [1], [0, 0, 1, 1], [], []>} : vector<256x4xbf16>, vector<4x64xbf16>, vector<256x64xf32> -> vector<256x64xf32>
    %37 = arith.addf %31, %36 : vector<256x64xf32>
    %38 = vector.extract_strided_slice %6 {offsets = [1, 2, 0], sizes = [16, 16, 4], strides = [1, 1, 1]} : vector<18x18x4xbf16> to vector<16x16x4xbf16>
    %39 = vector.shape_cast %38 : vector<16x16x4xbf16> to vector<256x4xbf16>
    %c5 = arith.constant 5 : index
    %c0_29 = arith.constant 0 : index
    %c0_30 = arith.constant 0 : index
    %40 = vector.load %arg2[%c5, %c0_29, %c0_30] : memref<9x4x64xbf16, #tpu.memory_space<vmem>>, vector<1x4x64xbf16>
    %41 = vector.shape_cast %40 : vector<1x4x64xbf16> to vector<4x64xbf16>
    %cst_31 = arith.constant dense<0.000000e+00> : vector<256x64xf32>
    %42 = tpu.matmul %39, %41, %cst_31 {dimension_numbers = #tpu.dot_dimension_numbers<[1], [0], [0], [1], [0, 0, 1, 1], [], []>} : vector<256x4xbf16>, vector<4x64xbf16>, vector<256x64xf32> -> vector<256x64xf32>
    %43 = arith.addf %37, %42 : vector<256x64xf32>
    %44 = vector.extract_strided_slice %6 {offsets = [2, 0, 0], sizes = [16, 16, 4], strides = [1, 1, 1]} : vector<18x18x4xbf16> to vector<16x16x4xbf16>
    %45 = vector.shape_cast %44 : vector<16x16x4xbf16> to vector<256x4xbf16>
    %c6 = arith.constant 6 : index
    %c0_32 = arith.constant 0 : index
    %c0_33 = arith.constant 0 : index
    %46 = vector.load %arg2[%c6, %c0_32, %c0_33] : memref<9x4x64xbf16, #tpu.memory_space<vmem>>, vector<1x4x64xbf16>
    %47 = vector.shape_cast %46 : vector<1x4x64xbf16> to vector<4x64xbf16>
    %cst_34 = arith.constant dense<0.000000e+00> : vector<256x64xf32>
    %48 = tpu.matmul %45, %47, %cst_34 {dimension_numbers = #tpu.dot_dimension_numbers<[1], [0], [0], [1], [0, 0, 1, 1], [], []>} : vector<256x4xbf16>, vector<4x64xbf16>, vector<256x64xf32> -> vector<256x64xf32>
    %49 = arith.addf %43, %48 : vector<256x64xf32>
    %50 = vector.extract_strided_slice %6 {offsets = [2, 1, 0], sizes = [16, 16, 4], strides = [1, 1, 1]} : vector<18x18x4xbf16> to vector<16x16x4xbf16>
    %51 = vector.shape_cast %50 : vector<16x16x4xbf16> to vector<256x4xbf16>
    %c7 = arith.constant 7 : index
    %c0_35 = arith.constant 0 : index
    %c0_36 = arith.constant 0 : index
    %52 = vector.load %arg2[%c7, %c0_35, %c0_36] : memref<9x4x64xbf16, #tpu.memory_space<vmem>>, vector<1x4x64xbf16>
    %53 = vector.shape_cast %52 : vector<1x4x64xbf16> to vector<4x64xbf16>
    %cst_37 = arith.constant dense<0.000000e+00> : vector<256x64xf32>
    %54 = tpu.matmul %51, %53, %cst_37 {dimension_numbers = #tpu.dot_dimension_numbers<[1], [0], [0], [1], [0, 0, 1, 1], [], []>} : vector<256x4xbf16>, vector<4x64xbf16>, vector<256x64xf32> -> vector<256x64xf32>
    %55 = arith.addf %49, %54 : vector<256x64xf32>
    %56 = vector.extract_strided_slice %6 {offsets = [2, 2, 0], sizes = [16, 16, 4], strides = [1, 1, 1]} : vector<18x18x4xbf16> to vector<16x16x4xbf16>
    %57 = vector.shape_cast %56 : vector<16x16x4xbf16> to vector<256x4xbf16>
    %c8 = arith.constant 8 : index
    %c0_38 = arith.constant 0 : index
    %c0_39 = arith.constant 0 : index
    %58 = vector.load %arg2[%c8, %c0_38, %c0_39] : memref<9x4x64xbf16, #tpu.memory_space<vmem>>, vector<1x4x64xbf16>
    %59 = vector.shape_cast %58 : vector<1x4x64xbf16> to vector<4x64xbf16>
    %cst_40 = arith.constant dense<0.000000e+00> : vector<256x64xf32>
    %60 = tpu.matmul %57, %59, %cst_40 {dimension_numbers = #tpu.dot_dimension_numbers<[1], [0], [0], [1], [0, 0, 1, 1], [], []>} : vector<256x4xbf16>, vector<4x64xbf16>, vector<256x64xf32> -> vector<256x64xf32>
    %61 = arith.addf %55, %60 : vector<256x64xf32>
    %c0_41 = arith.constant 0 : index
    %c0_42 = arith.constant 0 : index
    %62 = vector.load %arg3[%c0_41, %c0_42] : memref<1x64xf32, #tpu.memory_space<vmem>>, vector<1x64xf32>
    %63 = vector.broadcast %62 : vector<1x64xf32> to vector<256x64xf32>
    %64 = arith.addf %61, %63 : vector<256x64xf32>
    %cst_43 = arith.constant 0.000000e+00 : f32
    %65 = vector.broadcast %cst_43 : f32 to vector<256x64xf32>
    %66 = arith.cmpf oge, %64, %65 : vector<256x64xf32>
    %cst_44 = arith.constant 1.000000e-01 : f32
    %67 = vector.broadcast %cst_44 : f32 to vector<256x64xf32>
    %68 = arith.mulf %67, %64 : vector<256x64xf32>
    %69 = arith.select %66, %64, %68 : vector<256x64xi1>, vector<256x64xf32>
    %70 = vector.shape_cast %69 : vector<256x64xf32> to vector<16x16x64xf32>
    %c0_45 = arith.constant 0 : index
    %c0_46 = arith.constant 0 : index
    %c0_47 = arith.constant 0 : index
    %c0_48 = arith.constant 0 : index
    %71 = vector.load %arg4[%c0_45, %c0_46, %c0_47, %c0_48] : memref<1x16x16x64xf32, #tpu.memory_space<vmem>>, vector<1x16x16x64xf32>
    %72 = vector.shape_cast %71 : vector<1x16x16x64xf32> to vector<16x16x64xf32>
    %73 = vector.shape_cast %70 : vector<16x16x64xf32> to vector<1x16x16x64xf32>
    tpu.vector_store %arg4[%c0_45, %c0_46, %c0_47, %c0_48], %73 {strides = array<i32>} : memref<1x16x16x64xf32, #tpu.memory_space<vmem>>, vector<1x16x16x64xf32>,
    return
  }
  func.func @transform_0(%arg0: i32) -> (i32, i32, i32, i32) {
    %c0_i32 = arith.constant 0 : i32
    %c0_i32_0 = arith.constant 0 : i32
    %c0_i32_1 = arith.constant 0 : i32
    %c0_i32_2 = arith.constant 0 : i32
    return %arg0, %c0_i32, %c0_i32_0, %c0_i32_1 : i32, i32, i32, i32
  }
  func.func @transform_1(%arg0: i32) -> (i32, i32, i32) {
    %c0_i32 = arith.constant 0 : i32
    %c0_i32_0 = arith.constant 0 : i32
    %c0_i32_1 = arith.constant 0 : i32
    %c0_i32_2 = arith.constant 0 : i32
    return %c0_i32, %c0_i32_0, %c0_i32_1 : i32, i32, i32
  }
  func.func @transform_2(%arg0: i32) -> (i32, i32) {
    %c0_i32 = arith.constant 0 : i32
    %c0_i32_0 = arith.constant 0 : i32
    %c0_i32_1 = arith.constant 0 : i32
    return %c0_i32, %c0_i32_0 : i32, i32
  }
  func.func @transform_3(%arg0: i32) -> (i32, i32, i32, i32) {
    %c0_i32 = arith.constant 0 : i32
    %c0_i32_0 = arith.constant 0 : i32
    %c0_i32_1 = arith.constant 0 : i32
    %c0_i32_2 = arith.constant 0 : i32
    return %arg0, %c0_i32, %c0_i32_0, %c0_i32_1 : i32, i32, i32, i32
  }
}

module attributes {stable_mosaic.version = 11 : i64} {
  func.func @kernel(%arg0: i32, %arg1: i32, %arg2: memref<1x16x16x64xf32, #tpu.memory_space<vmem>>, %arg3: memref<1x9x64x64xbf16, #tpu.memory_space<vmem>>, %arg4: memref<1x1x64xf32, #tpu.memory_space<vmem>>, %arg5: memref<1x9x64x64xbf16, #tpu.memory_space<vmem>>, %arg6: memref<1x1x64xf32, #tpu.memory_space<vmem>>, %arg7: memref<1x16x16x64xf32, #tpu.memory_space<vmem>>, %arg8: memref<18x18x64xbf16, #tpu.memory_space<vmem>>, %arg9: memref<18x18x64xbf16, #tpu.memory_space<vmem>>) attributes {dimension_semantics = [#tpu.dimension_semantics<parallel>, #tpu.dimension_semantics<arbitrary>], iteration_bounds = array<i64: 2, 3>, scalar_prefetch = 0 : i64, scratch_operands = 2 : i64, tpu.core_type = #tpu.core_type<tc>, window_params = [{transform_indices = @transform_0, window_bounds = array<i64: 1, 16, 16, 64>}, {transform_indices = @transform_1, window_bounds = array<i64: 1, 9, 64, 64>}, {transform_indices = @transform_2, window_bounds = array<i64: 1, 1, 64>}, {transform_indices = @transform_3, window_bounds = array<i64: 1, 9, 64, 64>}, {transform_indices = @transform_4, window_bounds = array<i64: 1, 1, 64>}, {transform_indices = @transform_5, window_bounds = array<i64: 1, 16, 16, 64>}]} {
    %c0_i32 = arith.constant 0 : i32
    %0 = arith.cmpi eq, %arg1, %c0_i32 : i32
    %1 = arith.extui %0 : i1 to i32
    %c0_i32_0 = arith.constant 0 : i32
    %2 = arith.cmpi ne, %1, %c0_i32_0 : i32
    scf.if %2 {
      %c0_118 = arith.constant 0 : index
      %c0_119 = arith.constant 0 : index
      %c0_120 = arith.constant 0 : index
      %c0_121 = arith.constant 0 : index
      %141 = vector.load %arg2[%c0_118, %c0_119, %c0_120, %c0_121] : memref<1x16x16x64xf32, #tpu.memory_space<vmem>>, vector<1x16x16x64xf32>
      %142 = vector.shape_cast %141 : vector<1x16x16x64xf32> to vector<16x16x64xf32>
      %c0_122 = arith.constant 0 : index
      %c0_123 = arith.constant 0 : index
      %c0_124 = arith.constant 0 : index
      %c0_125 = arith.constant 0 : index
      %143 = vector.load %arg7[%c0_122, %c0_123, %c0_124, %c0_125] : memref<1x16x16x64xf32, #tpu.memory_space<vmem>>, vector<1x16x16x64xf32>
      %144 = vector.shape_cast %143 : vector<1x16x16x64xf32> to vector<16x16x64xf32>
      %145 = vector.shape_cast %142 : vector<16x16x64xf32> to vector<1x16x16x64xf32>
      tpu.vector_store %arg7[%c0_122, %c0_123, %c0_124, %c0_125], %145 {strides = array<i32>} : memref<1x16x16x64xf32, #tpu.memory_space<vmem>>, vector<1x16x16x64xf32>,
    } else {
    }
    %c0 = arith.constant 0 : index
    %c0_1 = arith.constant 0 : index
    %c0_2 = arith.constant 0 : index
    %c0_3 = arith.constant 0 : index
    %3 = vector.load %arg7[%c0, %c0_1, %c0_2, %c0_3] : memref<1x16x16x64xf32, #tpu.memory_space<vmem>>, vector<1x16x16x64xf32>
    %4 = vector.shape_cast %3 : vector<1x16x16x64xf32> to vector<16x16x64xf32>
    %5 = arith.truncf %4 : vector<16x16x64xf32> to vector<16x16x64xbf16>
    %cst = arith.constant 0.000000e+00 : bf16
    %6 = vector.broadcast %cst : bf16 to vector<18x18x64xbf16>
    %c0_4 = arith.constant 0 : index
    %c0_5 = arith.constant 0 : index
    %c0_6 = arith.constant 0 : index
    %7 = vector.load %arg8[%c0_4, %c0_5, %c0_6] : memref<18x18x64xbf16, #tpu.memory_space<vmem>>, vector<18x18x64xbf16>
    tpu.vector_store %arg8[%c0_4, %c0_5, %c0_6], %6 {strides = array<i32>} : memref<18x18x64xbf16, #tpu.memory_space<vmem>>, vector<18x18x64xbf16>,
    %c1 = arith.constant 1 : index
    %c1_7 = arith.constant 1 : index
    %c0_8 = arith.constant 0 : index
    %8 = vector.load %arg8[%c1, %c1_7, %c0_8] : memref<18x18x64xbf16, #tpu.memory_space<vmem>>, vector<16x16x64xbf16>
    tpu.vector_store %arg8[%c1, %c1_7, %c0_8], %5 {strides = array<i32>} : memref<18x18x64xbf16, #tpu.memory_space<vmem>>, vector<16x16x64xbf16>,
    %c0_9 = arith.constant 0 : index
    %c0_10 = arith.constant 0 : index
    %c0_11 = arith.constant 0 : index
    %9 = vector.load %arg8[%c0_9, %c0_10, %c0_11] : memref<18x18x64xbf16, #tpu.memory_space<vmem>>, vector<18x18x64xbf16>
    %cst_12 = arith.constant 0.000000e+00 : f32
    %10 = vector.broadcast %cst_12 : f32 to vector<256x64xf32>
    %11 = vector.extract_strided_slice %9 {offsets = [0, 0, 0], sizes = [16, 16, 64], strides = [1, 1, 1]} : vector<18x18x64xbf16> to vector<16x16x64xbf16>
    %12 = vector.shape_cast %11 : vector<16x16x64xbf16> to vector<256x64xbf16>
    %c0_13 = arith.constant 0 : index
    %c0_14 = arith.constant 0 : index
    %c0_15 = arith.constant 0 : index
    %c0_16 = arith.constant 0 : index
    %13 = vector.load %arg3[%c0_13, %c0_14, %c0_15, %c0_16] : memref<1x9x64x64xbf16, #tpu.memory_space<vmem>>, vector<1x1x64x64xbf16>
    %14 = vector.shape_cast %13 : vector<1x1x64x64xbf16> to vector<64x64xbf16>
    %cst_17 = arith.constant dense<0.000000e+00> : vector<256x64xf32>
    %15 = tpu.matmul %12, %14, %cst_17 {dimension_numbers = #tpu.dot_dimension_numbers<[1], [0], [0], [1], [0, 0, 1, 1], [], []>} : vector<256x64xbf16>, vector<64x64xbf16>, vector<256x64xf32> -> vector<256x64xf32>
    %16 = arith.addf %10, %15 : vector<256x64xf32>
    %17 = vector.extract_strided_slice %9 {offsets = [0, 1, 0], sizes = [16, 16, 64], strides = [1, 1, 1]} : vector<18x18x64xbf16> to vector<16x16x64xbf16>
    %18 = vector.shape_cast %17 : vector<16x16x64xbf16> to vector<256x64xbf16>
    %c0_18 = arith.constant 0 : index
    %c1_19 = arith.constant 1 : index
    %c0_20 = arith.constant 0 : index
    %c0_21 = arith.constant 0 : index
    %19 = vector.load %arg3[%c0_18, %c1_19, %c0_20, %c0_21] : memref<1x9x64x64xbf16, #tpu.memory_space<vmem>>, vector<1x1x64x64xbf16>
    %20 = vector.shape_cast %19 : vector<1x1x64x64xbf16> to vector<64x64xbf16>
    %cst_22 = arith.constant dense<0.000000e+00> : vector<256x64xf32>
    %21 = tpu.matmul %18, %20, %cst_22 {dimension_numbers = #tpu.dot_dimension_numbers<[1], [0], [0], [1], [0, 0, 1, 1], [], []>} : vector<256x64xbf16>, vector<64x64xbf16>, vector<256x64xf32> -> vector<256x64xf32>
    %22 = arith.addf %16, %21 : vector<256x64xf32>
    %23 = vector.extract_strided_slice %9 {offsets = [0, 2, 0], sizes = [16, 16, 64], strides = [1, 1, 1]} : vector<18x18x64xbf16> to vector<16x16x64xbf16>
    %24 = vector.shape_cast %23 : vector<16x16x64xbf16> to vector<256x64xbf16>
    %c0_23 = arith.constant 0 : index
    %c2 = arith.constant 2 : index
    %c0_24 = arith.constant 0 : index
    %c0_25 = arith.constant 0 : index
    %25 = vector.load %arg3[%c0_23, %c2, %c0_24, %c0_25] : memref<1x9x64x64xbf16, #tpu.memory_space<vmem>>, vector<1x1x64x64xbf16>
    %26 = vector.shape_cast %25 : vector<1x1x64x64xbf16> to vector<64x64xbf16>
    %cst_26 = arith.constant dense<0.000000e+00> : vector<256x64xf32>
    %27 = tpu.matmul %24, %26, %cst_26 {dimension_numbers = #tpu.dot_dimension_numbers<[1], [0], [0], [1], [0, 0, 1, 1], [], []>} : vector<256x64xbf16>, vector<64x64xbf16>, vector<256x64xf32> -> vector<256x64xf32>
    %28 = arith.addf %22, %27 : vector<256x64xf32>
    %29 = vector.extract_strided_slice %9 {offsets = [1, 0, 0], sizes = [16, 16, 64], strides = [1, 1, 1]} : vector<18x18x64xbf16> to vector<16x16x64xbf16>
    %30 = vector.shape_cast %29 : vector<16x16x64xbf16> to vector<256x64xbf16>
    %c0_27 = arith.constant 0 : index
    %c3 = arith.constant 3 : index
    %c0_28 = arith.constant 0 : index
    %c0_29 = arith.constant 0 : index
    %31 = vector.load %arg3[%c0_27, %c3, %c0_28, %c0_29] : memref<1x9x64x64xbf16, #tpu.memory_space<vmem>>, vector<1x1x64x64xbf16>
    %32 = vector.shape_cast %31 : vector<1x1x64x64xbf16> to vector<64x64xbf16>
    %cst_30 = arith.constant dense<0.000000e+00> : vector<256x64xf32>
    %33 = tpu.matmul %30, %32, %cst_30 {dimension_numbers = #tpu.dot_dimension_numbers<[1], [0], [0], [1], [0, 0, 1, 1], [], []>} : vector<256x64xbf16>, vector<64x64xbf16>, vector<256x64xf32> -> vector<256x64xf32>
    %34 = arith.addf %28, %33 : vector<256x64xf32>
    %35 = vector.extract_strided_slice %9 {offsets = [1, 1, 0], sizes = [16, 16, 64], strides = [1, 1, 1]} : vector<18x18x64xbf16> to vector<16x16x64xbf16>
    %36 = vector.shape_cast %35 : vector<16x16x64xbf16> to vector<256x64xbf16>
    %c0_31 = arith.constant 0 : index
    %c4 = arith.constant 4 : index
    %c0_32 = arith.constant 0 : index
    %c0_33 = arith.constant 0 : index
    %37 = vector.load %arg3[%c0_31, %c4, %c0_32, %c0_33] : memref<1x9x64x64xbf16, #tpu.memory_space<vmem>>, vector<1x1x64x64xbf16>
    %38 = vector.shape_cast %37 : vector<1x1x64x64xbf16> to vector<64x64xbf16>
    %cst_34 = arith.constant dense<0.000000e+00> : vector<256x64xf32>
    %39 = tpu.matmul %36, %38, %cst_34 {dimension_numbers = #tpu.dot_dimension_numbers<[1], [0], [0], [1], [0, 0, 1, 1], [], []>} : vector<256x64xbf16>, vector<64x64xbf16>, vector<256x64xf32> -> vector<256x64xf32>
    %40 = arith.addf %34, %39 : vector<256x64xf32>
    %41 = vector.extract_strided_slice %9 {offsets = [1, 2, 0], sizes = [16, 16, 64], strides = [1, 1, 1]} : vector<18x18x64xbf16> to vector<16x16x64xbf16>
    %42 = vector.shape_cast %41 : vector<16x16x64xbf16> to vector<256x64xbf16>
    %c0_35 = arith.constant 0 : index
    %c5 = arith.constant 5 : index
    %c0_36 = arith.constant 0 : index
    %c0_37 = arith.constant 0 : index
    %43 = vector.load %arg3[%c0_35, %c5, %c0_36, %c0_37] : memref<1x9x64x64xbf16, #tpu.memory_space<vmem>>, vector<1x1x64x64xbf16>
    %44 = vector.shape_cast %43 : vector<1x1x64x64xbf16> to vector<64x64xbf16>
    %cst_38 = arith.constant dense<0.000000e+00> : vector<256x64xf32>
    %45 = tpu.matmul %42, %44, %cst_38 {dimension_numbers = #tpu.dot_dimension_numbers<[1], [0], [0], [1], [0, 0, 1, 1], [], []>} : vector<256x64xbf16>, vector<64x64xbf16>, vector<256x64xf32> -> vector<256x64xf32>
    %46 = arith.addf %40, %45 : vector<256x64xf32>
    %47 = vector.extract_strided_slice %9 {offsets = [2, 0, 0], sizes = [16, 16, 64], strides = [1, 1, 1]} : vector<18x18x64xbf16> to vector<16x16x64xbf16>
    %48 = vector.shape_cast %47 : vector<16x16x64xbf16> to vector<256x64xbf16>
    %c0_39 = arith.constant 0 : index
    %c6 = arith.constant 6 : index
    %c0_40 = arith.constant 0 : index
    %c0_41 = arith.constant 0 : index
    %49 = vector.load %arg3[%c0_39, %c6, %c0_40, %c0_41] : memref<1x9x64x64xbf16, #tpu.memory_space<vmem>>, vector<1x1x64x64xbf16>
    %50 = vector.shape_cast %49 : vector<1x1x64x64xbf16> to vector<64x64xbf16>
    %cst_42 = arith.constant dense<0.000000e+00> : vector<256x64xf32>
    %51 = tpu.matmul %48, %50, %cst_42 {dimension_numbers = #tpu.dot_dimension_numbers<[1], [0], [0], [1], [0, 0, 1, 1], [], []>} : vector<256x64xbf16>, vector<64x64xbf16>, vector<256x64xf32> -> vector<256x64xf32>
    %52 = arith.addf %46, %51 : vector<256x64xf32>
    %53 = vector.extract_strided_slice %9 {offsets = [2, 1, 0], sizes = [16, 16, 64], strides = [1, 1, 1]} : vector<18x18x64xbf16> to vector<16x16x64xbf16>
    %54 = vector.shape_cast %53 : vector<16x16x64xbf16> to vector<256x64xbf16>
    %c0_43 = arith.constant 0 : index
    %c7 = arith.constant 7 : index
    %c0_44 = arith.constant 0 : index
    %c0_45 = arith.constant 0 : index
    %55 = vector.load %arg3[%c0_43, %c7, %c0_44, %c0_45] : memref<1x9x64x64xbf16, #tpu.memory_space<vmem>>, vector<1x1x64x64xbf16>
    %56 = vector.shape_cast %55 : vector<1x1x64x64xbf16> to vector<64x64xbf16>
    %cst_46 = arith.constant dense<0.000000e+00> : vector<256x64xf32>
    %57 = tpu.matmul %54, %56, %cst_46 {dimension_numbers = #tpu.dot_dimension_numbers<[1], [0], [0], [1], [0, 0, 1, 1], [], []>} : vector<256x64xbf16>, vector<64x64xbf16>, vector<256x64xf32> -> vector<256x64xf32>
    %58 = arith.addf %52, %57 : vector<256x64xf32>
    %59 = vector.extract_strided_slice %9 {offsets = [2, 2, 0], sizes = [16, 16, 64], strides = [1, 1, 1]} : vector<18x18x64xbf16> to vector<16x16x64xbf16>
    %60 = vector.shape_cast %59 : vector<16x16x64xbf16> to vector<256x64xbf16>
    %c0_47 = arith.constant 0 : index
    %c8 = arith.constant 8 : index
    %c0_48 = arith.constant 0 : index
    %c0_49 = arith.constant 0 : index
    %61 = vector.load %arg3[%c0_47, %c8, %c0_48, %c0_49] : memref<1x9x64x64xbf16, #tpu.memory_space<vmem>>, vector<1x1x64x64xbf16>
    %62 = vector.shape_cast %61 : vector<1x1x64x64xbf16> to vector<64x64xbf16>
    %cst_50 = arith.constant dense<0.000000e+00> : vector<256x64xf32>
    %63 = tpu.matmul %60, %62, %cst_50 {dimension_numbers = #tpu.dot_dimension_numbers<[1], [0], [0], [1], [0, 0, 1, 1], [], []>} : vector<256x64xbf16>, vector<64x64xbf16>, vector<256x64xf32> -> vector<256x64xf32>
    %64 = arith.addf %58, %63 : vector<256x64xf32>
    %c0_51 = arith.constant 0 : index
    %c0_52 = arith.constant 0 : index
    %c0_53 = arith.constant 0 : index
    %65 = vector.load %arg4[%c0_51, %c0_52, %c0_53] : memref<1x1x64xf32, #tpu.memory_space<vmem>>, vector<1x1x64xf32>
    %66 = vector.shape_cast %65 : vector<1x1x64xf32> to vector<1x64xf32>
    %67 = vector.broadcast %66 : vector<1x64xf32> to vector<256x64xf32>
    %68 = arith.addf %64, %67 : vector<256x64xf32>
    %cst_54 = arith.constant 0.000000e+00 : f32
    %69 = vector.broadcast %cst_54 : f32 to vector<256x64xf32>
    %70 = arith.maximumf %68, %69 : vector<256x64xf32>
    %71 = arith.truncf %70 : vector<256x64xf32> to vector<256x64xbf16>
    %72 = vector.shape_cast %71 : vector<256x64xbf16> to vector<16x16x64xbf16>
    %cst_55 = arith.constant 0.000000e+00 : bf16
    %73 = vector.broadcast %cst_55 : bf16 to vector<18x18x64xbf16>
    %c0_56 = arith.constant 0 : index
    %c0_57 = arith.constant 0 : index
    %c0_58 = arith.constant 0 : index
    %74 = vector.load %arg9[%c0_56, %c0_57, %c0_58] : memref<18x18x64xbf16, #tpu.memory_space<vmem>>, vector<18x18x64xbf16>
    tpu.vector_store %arg9[%c0_56, %c0_57, %c0_58], %73 {strides = array<i32>} : memref<18x18x64xbf16, #tpu.memory_space<vmem>>, vector<18x18x64xbf16>,
    %c1_59 = arith.constant 1 : index
    %c1_60 = arith.constant 1 : index
    %c0_61 = arith.constant 0 : index
    %75 = vector.load %arg9[%c1_59, %c1_60, %c0_61] : memref<18x18x64xbf16, #tpu.memory_space<vmem>>, vector<16x16x64xbf16>
    tpu.vector_store %arg9[%c1_59, %c1_60, %c0_61], %72 {strides = array<i32>} : memref<18x18x64xbf16, #tpu.memory_space<vmem>>, vector<16x16x64xbf16>,
    %c0_62 = arith.constant 0 : index
    %c0_63 = arith.constant 0 : index
    %c0_64 = arith.constant 0 : index
    %76 = vector.load %arg9[%c0_62, %c0_63, %c0_64] : memref<18x18x64xbf16, #tpu.memory_space<vmem>>, vector<18x18x64xbf16>
    %cst_65 = arith.constant 0.000000e+00 : f32
    %77 = vector.broadcast %cst_65 : f32 to vector<256x64xf32>
    %78 = vector.extract_strided_slice %76 {offsets = [0, 0, 0], sizes = [16, 16, 64], strides = [1, 1, 1]} : vector<18x18x64xbf16> to vector<16x16x64xbf16>
    %79 = vector.shape_cast %78 : vector<16x16x64xbf16> to vector<256x64xbf16>
    %c0_66 = arith.constant 0 : index
    %c0_67 = arith.constant 0 : index
    %c0_68 = arith.constant 0 : index
    %c0_69 = arith.constant 0 : index
    %80 = vector.load %arg5[%c0_66, %c0_67, %c0_68, %c0_69] : memref<1x9x64x64xbf16, #tpu.memory_space<vmem>>, vector<1x1x64x64xbf16>
    %81 = vector.shape_cast %80 : vector<1x1x64x64xbf16> to vector<64x64xbf16>
    %cst_70 = arith.constant dense<0.000000e+00> : vector<256x64xf32>
    %82 = tpu.matmul %79, %81, %cst_70 {dimension_numbers = #tpu.dot_dimension_numbers<[1], [0], [0], [1], [0, 0, 1, 1], [], []>} : vector<256x64xbf16>, vector<64x64xbf16>, vector<256x64xf32> -> vector<256x64xf32>
    %83 = arith.addf %77, %82 : vector<256x64xf32>
    %84 = vector.extract_strided_slice %76 {offsets = [0, 1, 0], sizes = [16, 16, 64], strides = [1, 1, 1]} : vector<18x18x64xbf16> to vector<16x16x64xbf16>
    %85 = vector.shape_cast %84 : vector<16x16x64xbf16> to vector<256x64xbf16>
    %c0_71 = arith.constant 0 : index
    %c1_72 = arith.constant 1 : index
    %c0_73 = arith.constant 0 : index
    %c0_74 = arith.constant 0 : index
    %86 = vector.load %arg5[%c0_71, %c1_72, %c0_73, %c0_74] : memref<1x9x64x64xbf16, #tpu.memory_space<vmem>>, vector<1x1x64x64xbf16>
    %87 = vector.shape_cast %86 : vector<1x1x64x64xbf16> to vector<64x64xbf16>
    %cst_75 = arith.constant dense<0.000000e+00> : vector<256x64xf32>
    %88 = tpu.matmul %85, %87, %cst_75 {dimension_numbers = #tpu.dot_dimension_numbers<[1], [0], [0], [1], [0, 0, 1, 1], [], []>} : vector<256x64xbf16>, vector<64x64xbf16>, vector<256x64xf32> -> vector<256x64xf32>
    %89 = arith.addf %83, %88 : vector<256x64xf32>
    %90 = vector.extract_strided_slice %76 {offsets = [0, 2, 0], sizes = [16, 16, 64], strides = [1, 1, 1]} : vector<18x18x64xbf16> to vector<16x16x64xbf16>
    %91 = vector.shape_cast %90 : vector<16x16x64xbf16> to vector<256x64xbf16>
    %c0_76 = arith.constant 0 : index
    %c2_77 = arith.constant 2 : index
    %c0_78 = arith.constant 0 : index
    %c0_79 = arith.constant 0 : index
    %92 = vector.load %arg5[%c0_76, %c2_77, %c0_78, %c0_79] : memref<1x9x64x64xbf16, #tpu.memory_space<vmem>>, vector<1x1x64x64xbf16>
    %93 = vector.shape_cast %92 : vector<1x1x64x64xbf16> to vector<64x64xbf16>
    %cst_80 = arith.constant dense<0.000000e+00> : vector<256x64xf32>
    %94 = tpu.matmul %91, %93, %cst_80 {dimension_numbers = #tpu.dot_dimension_numbers<[1], [0], [0], [1], [0, 0, 1, 1], [], []>} : vector<256x64xbf16>, vector<64x64xbf16>, vector<256x64xf32> -> vector<256x64xf32>
    %95 = arith.addf %89, %94 : vector<256x64xf32>
    %96 = vector.extract_strided_slice %76 {offsets = [1, 0, 0], sizes = [16, 16, 64], strides = [1, 1, 1]} : vector<18x18x64xbf16> to vector<16x16x64xbf16>
    %97 = vector.shape_cast %96 : vector<16x16x64xbf16> to vector<256x64xbf16>
    %c0_81 = arith.constant 0 : index
    %c3_82 = arith.constant 3 : index
    %c0_83 = arith.constant 0 : index
    %c0_84 = arith.constant 0 : index
    %98 = vector.load %arg5[%c0_81, %c3_82, %c0_83, %c0_84] : memref<1x9x64x64xbf16, #tpu.memory_space<vmem>>, vector<1x1x64x64xbf16>
    %99 = vector.shape_cast %98 : vector<1x1x64x64xbf16> to vector<64x64xbf16>
    %cst_85 = arith.constant dense<0.000000e+00> : vector<256x64xf32>
    %100 = tpu.matmul %97, %99, %cst_85 {dimension_numbers = #tpu.dot_dimension_numbers<[1], [0], [0], [1], [0, 0, 1, 1], [], []>} : vector<256x64xbf16>, vector<64x64xbf16>, vector<256x64xf32> -> vector<256x64xf32>
    %101 = arith.addf %95, %100 : vector<256x64xf32>
    %102 = vector.extract_strided_slice %76 {offsets = [1, 1, 0], sizes = [16, 16, 64], strides = [1, 1, 1]} : vector<18x18x64xbf16> to vector<16x16x64xbf16>
    %103 = vector.shape_cast %102 : vector<16x16x64xbf16> to vector<256x64xbf16>
    %c0_86 = arith.constant 0 : index
    %c4_87 = arith.constant 4 : index
    %c0_88 = arith.constant 0 : index
    %c0_89 = arith.constant 0 : index
    %104 = vector.load %arg5[%c0_86, %c4_87, %c0_88, %c0_89] : memref<1x9x64x64xbf16, #tpu.memory_space<vmem>>, vector<1x1x64x64xbf16>
    %105 = vector.shape_cast %104 : vector<1x1x64x64xbf16> to vector<64x64xbf16>
    %cst_90 = arith.constant dense<0.000000e+00> : vector<256x64xf32>
    %106 = tpu.matmul %103, %105, %cst_90 {dimension_numbers = #tpu.dot_dimension_numbers<[1], [0], [0], [1], [0, 0, 1, 1], [], []>} : vector<256x64xbf16>, vector<64x64xbf16>, vector<256x64xf32> -> vector<256x64xf32>
    %107 = arith.addf %101, %106 : vector<256x64xf32>
    %108 = vector.extract_strided_slice %76 {offsets = [1, 2, 0], sizes = [16, 16, 64], strides = [1, 1, 1]} : vector<18x18x64xbf16> to vector<16x16x64xbf16>
    %109 = vector.shape_cast %108 : vector<16x16x64xbf16> to vector<256x64xbf16>
    %c0_91 = arith.constant 0 : index
    %c5_92 = arith.constant 5 : index
    %c0_93 = arith.constant 0 : index
    %c0_94 = arith.constant 0 : index
    %110 = vector.load %arg5[%c0_91, %c5_92, %c0_93, %c0_94] : memref<1x9x64x64xbf16, #tpu.memory_space<vmem>>, vector<1x1x64x64xbf16>
    %111 = vector.shape_cast %110 : vector<1x1x64x64xbf16> to vector<64x64xbf16>
    %cst_95 = arith.constant dense<0.000000e+00> : vector<256x64xf32>
    %112 = tpu.matmul %109, %111, %cst_95 {dimension_numbers = #tpu.dot_dimension_numbers<[1], [0], [0], [1], [0, 0, 1, 1], [], []>} : vector<256x64xbf16>, vector<64x64xbf16>, vector<256x64xf32> -> vector<256x64xf32>
    %113 = arith.addf %107, %112 : vector<256x64xf32>
    %114 = vector.extract_strided_slice %76 {offsets = [2, 0, 0], sizes = [16, 16, 64], strides = [1, 1, 1]} : vector<18x18x64xbf16> to vector<16x16x64xbf16>
    %115 = vector.shape_cast %114 : vector<16x16x64xbf16> to vector<256x64xbf16>
    %c0_96 = arith.constant 0 : index
    %c6_97 = arith.constant 6 : index
    %c0_98 = arith.constant 0 : index
    %c0_99 = arith.constant 0 : index
    %116 = vector.load %arg5[%c0_96, %c6_97, %c0_98, %c0_99] : memref<1x9x64x64xbf16, #tpu.memory_space<vmem>>, vector<1x1x64x64xbf16>
    %117 = vector.shape_cast %116 : vector<1x1x64x64xbf16> to vector<64x64xbf16>
    %cst_100 = arith.constant dense<0.000000e+00> : vector<256x64xf32>
    %118 = tpu.matmul %115, %117, %cst_100 {dimension_numbers = #tpu.dot_dimension_numbers<[1], [0], [0], [1], [0, 0, 1, 1], [], []>} : vector<256x64xbf16>, vector<64x64xbf16>, vector<256x64xf32> -> vector<256x64xf32>
    %119 = arith.addf %113, %118 : vector<256x64xf32>
    %120 = vector.extract_strided_slice %76 {offsets = [2, 1, 0], sizes = [16, 16, 64], strides = [1, 1, 1]} : vector<18x18x64xbf16> to vector<16x16x64xbf16>
    %121 = vector.shape_cast %120 : vector<16x16x64xbf16> to vector<256x64xbf16>
    %c0_101 = arith.constant 0 : index
    %c7_102 = arith.constant 7 : index
    %c0_103 = arith.constant 0 : index
    %c0_104 = arith.constant 0 : index
    %122 = vector.load %arg5[%c0_101, %c7_102, %c0_103, %c0_104] : memref<1x9x64x64xbf16, #tpu.memory_space<vmem>>, vector<1x1x64x64xbf16>
    %123 = vector.shape_cast %122 : vector<1x1x64x64xbf16> to vector<64x64xbf16>
    %cst_105 = arith.constant dense<0.000000e+00> : vector<256x64xf32>
    %124 = tpu.matmul %121, %123, %cst_105 {dimension_numbers = #tpu.dot_dimension_numbers<[1], [0], [0], [1], [0, 0, 1, 1], [], []>} : vector<256x64xbf16>, vector<64x64xbf16>, vector<256x64xf32> -> vector<256x64xf32>
    %125 = arith.addf %119, %124 : vector<256x64xf32>
    %126 = vector.extract_strided_slice %76 {offsets = [2, 2, 0], sizes = [16, 16, 64], strides = [1, 1, 1]} : vector<18x18x64xbf16> to vector<16x16x64xbf16>
    %127 = vector.shape_cast %126 : vector<16x16x64xbf16> to vector<256x64xbf16>
    %c0_106 = arith.constant 0 : index
    %c8_107 = arith.constant 8 : index
    %c0_108 = arith.constant 0 : index
    %c0_109 = arith.constant 0 : index
    %128 = vector.load %arg5[%c0_106, %c8_107, %c0_108, %c0_109] : memref<1x9x64x64xbf16, #tpu.memory_space<vmem>>, vector<1x1x64x64xbf16>
    %129 = vector.shape_cast %128 : vector<1x1x64x64xbf16> to vector<64x64xbf16>
    %cst_110 = arith.constant dense<0.000000e+00> : vector<256x64xf32>
    %130 = tpu.matmul %127, %129, %cst_110 {dimension_numbers = #tpu.dot_dimension_numbers<[1], [0], [0], [1], [0, 0, 1, 1], [], []>} : vector<256x64xbf16>, vector<64x64xbf16>, vector<256x64xf32> -> vector<256x64xf32>
    %131 = arith.addf %125, %130 : vector<256x64xf32>
    %c0_111 = arith.constant 0 : index
    %c0_112 = arith.constant 0 : index
    %c0_113 = arith.constant 0 : index
    %132 = vector.load %arg6[%c0_111, %c0_112, %c0_113] : memref<1x1x64xf32, #tpu.memory_space<vmem>>, vector<1x1x64xf32>
    %133 = vector.shape_cast %132 : vector<1x1x64xf32> to vector<1x64xf32>
    %134 = vector.broadcast %133 : vector<1x64xf32> to vector<256x64xf32>
    %135 = arith.addf %131, %134 : vector<256x64xf32>
    %136 = vector.shape_cast %135 : vector<256x64xf32> to vector<16x16x64xf32>
    %137 = arith.addf %4, %136 : vector<16x16x64xf32>
    %c0_114 = arith.constant 0 : index
    %c0_115 = arith.constant 0 : index
    %c0_116 = arith.constant 0 : index
    %c0_117 = arith.constant 0 : index
    %138 = vector.load %arg7[%c0_114, %c0_115, %c0_116, %c0_117] : memref<1x16x16x64xf32, #tpu.memory_space<vmem>>, vector<1x16x16x64xf32>
    %139 = vector.shape_cast %138 : vector<1x16x16x64xf32> to vector<16x16x64xf32>
    %140 = vector.shape_cast %137 : vector<16x16x64xf32> to vector<1x16x16x64xf32>
    tpu.vector_store %arg7[%c0_114, %c0_115, %c0_116, %c0_117], %140 {strides = array<i32>} : memref<1x16x16x64xf32, #tpu.memory_space<vmem>>, vector<1x16x16x64xf32>,
    return
  }
  func.func @transform_0(%arg0: i32, %arg1: i32) -> (i32, i32, i32, i32) {
    %c0_i32 = arith.constant 0 : i32
    %c0_i32_0 = arith.constant 0 : i32
    %c0_i32_1 = arith.constant 0 : i32
    %c0_i32_2 = arith.constant 0 : i32
    return %arg0, %c0_i32, %c0_i32_0, %c0_i32_1 : i32, i32, i32, i32
  }
  func.func @transform_1(%arg0: i32, %arg1: i32) -> (i32, i32, i32, i32) {
    %c0_i32 = arith.constant 0 : i32
    %c0_i32_0 = arith.constant 0 : i32
    %c0_i32_1 = arith.constant 0 : i32
    %c0_i32_2 = arith.constant 0 : i32
    return %arg1, %c0_i32, %c0_i32_0, %c0_i32_1 : i32, i32, i32, i32
  }
  func.func @transform_2(%arg0: i32, %arg1: i32) -> (i32, i32, i32) {
    %c0_i32 = arith.constant 0 : i32
    %c0_i32_0 = arith.constant 0 : i32
    %c0_i32_1 = arith.constant 0 : i32
    return %arg1, %c0_i32, %c0_i32_0 : i32, i32, i32
  }
  func.func @transform_3(%arg0: i32, %arg1: i32) -> (i32, i32, i32, i32) {
    %c0_i32 = arith.constant 0 : i32
    %c0_i32_0 = arith.constant 0 : i32
    %c0_i32_1 = arith.constant 0 : i32
    %c0_i32_2 = arith.constant 0 : i32
    return %arg1, %c0_i32, %c0_i32_0, %c0_i32_1 : i32, i32, i32, i32
  }
  func.func @transform_4(%arg0: i32, %arg1: i32) -> (i32, i32, i32) {
    %c0_i32 = arith.constant 0 : i32
    %c0_i32_0 = arith.constant 0 : i32
    %c0_i32_1 = arith.constant 0 : i32
    return %arg1, %c0_i32, %c0_i32_0 : i32, i32, i32
  }
  func.func @transform_5(%arg0: i32, %arg1: i32) -> (i32, i32, i32, i32) {
    %c0_i32 = arith.constant 0 : i32
    %c0_i32_0 = arith.constant 0 : i32
    %c0_i32_1 = arith.constant 0 : i32
    %c0_i32_2 = arith.constant 0 : i32
    return %arg0, %c0_i32, %c0_i32_0, %c0_i32_1 : i32, i32, i32, i32
  }
}

</mosaic_0001>

<bundles_post_ra>
// kernel: residual_blocks_with_input_conv.2
= control target key start
LH: loop header
LB: loop body
LE: loop exit
PB: predicated region body
PF: predicated region fallthrough
CT: control target
= control target key end

     0   :  { %s4569_s12 = smov 0   ;;  %s6388_s0 = inlined_call_operand.vmem [shape: f32[2,16,16,4], index: 0, kind: input, shape index: {}]   ;;  %s6389_s1 = inlined_call_operand.vmem [shape: bf16[9,4,64], index: 1, kind: input, shape index: {}]   ;;  %s6390_s2 = inlined_call_operand.vmem [shape: f32[1,64], index: 2, kind: input, shape index: {}]   ;;  %s6391_s3 = inlined_call_operand.vmem [shape: f32[2,16,16,64], index: 3, kind: output, shape index: {}]  }
   0x1 LB: > { %s3735_s13 = sadd.s32 4294967295, %s4546_s12   ;;  %p3739_p0 = scmp.ge.s32.totalorder %s4546_s12, 1  ;;  %s4546_s12 = sphi %s4569_s12, %s13_s12  }
   0x2   : > { %p137_p1 = scmp.lt.s32.totalorder %s4546_s12, 3 }
   0x4   : > { %p138_p2 = pnand %p3739_p0, %p137_p1 }
   0x6   : > { %141 = sbr.rel (%p138_p2) target bundleno = 638 (0x27e), region = 32 }
   0xb   : > { %v3776_v0 = vld [vmem:[%s6389_s1 + $0x2] sm:$0x3]  ;;  %vm1338_vm0 = vcmask 1041408   ;;  %vm220_vm1 = vcmask 27648   ;;  %vm223_vm2 = vcmask 24576   ;;  %v4548_v2 = vmov 0  }
   0xc   : > { %4498 = vmatprep.subr.msk.bf16.mxu0 %vm1338_vm0, %v3776_v0  ;;  %4499 = vmatprep.subr.msk.bf16.mxu1 %vm1338_vm0, %v3776_v0  ;;  %v1340_v1 = vsel %vm1338_vm0, %v3776_v0, 0  ;;  %221 = vst.msk [vmem:[#allocation2] sm:$0xf] %vm220_vm1, %v4548_v2  ;;  %222 = vst.msk [vmem:[#allocation2 + $0x4] sm:$0xf] %vm220_vm1, %v4548_v2  ;;  %p161_p3 = scmp.lt.s32.totalorder %s3735_s13, 1 }
   0xd   : > { %224 = vst.msk [vmem:[#allocation2 + $0x8] sm:$0x1] %vm223_vm2, %v4548_v2  ;;  %227 = vst.msk [vmem:[#allocation2 + $0x14] sm:$0x1] %vm223_vm2, %v4548_v2  ;;  %4191 = vmatpush3.bf16.msra.mxu0 %v1340_v1  ;;  %4497 = vmatpush3.bf16.msra.mxu1 %v1340_v1  ;;  %v851_v3 = vld [vmem:[%s6389_s1] sm:$0x3] }
   0xe   : > { %225 = vst.msk [vmem:[#allocation2 + $0xc] sm:$0xf] %vm220_vm1, %v4548_v2  ;;  %226 = vst.msk [vmem:[#allocation2 + $0x10] sm:$0xf] %vm220_vm1, %v4548_v2  ;;  %v4645_v4 = vld [vmem:[%s6389_s1 + $0x4] sm:$0x3]  ;;  %4500 = vmatprep.subr.msk.bf16.mxu1 %vm1338_vm0, %v851_v3 }
   0xf   : > { %228 = vst.msk [vmem:[#allocation2 + $0x18] sm:$0xf] %vm220_vm1, %v4548_v2  ;;  %229 = vst.msk [vmem:[#allocation2 + $0x1c] sm:$0xf] %vm220_vm1, %v4548_v2  ;;  %s6591_s13 = smov (!%p161_p3, %s3735_s13), 1  ;;  %4501 = vmatprep.subr.msk.bf16.mxu0 %vm1338_vm0, %v4645_v4  ;;  %vm1289_vm8 = vcmask 31744  }
  0x10   : > { %230 = vst.msk [vmem:[#allocation2 + $0x20] sm:$0x1] %vm223_vm2, %v4548_v2  ;;  %233 = vst.msk [vmem:[#allocation2 + $0x2c] sm:$0x1] %vm223_vm2, %v4548_v2  ;;  %vm852_vm3 = vsmask.f32 3328 }
  0x11   : > { %231 = vst.msk [vmem:[#allocation2 + $0x24] sm:$0xf] %vm220_vm1, %v4548_v2  ;;  %232 = vst.msk [vmem:[#allocation2 + $0x28] sm:$0xf] %vm220_vm1, %v4548_v2  ;;  %vm853_vm4 = vsmask.f32 7440 }
  0x12   : > { %234 = vst.msk [vmem:[#allocation2 + $0x30] sm:$0xf] %vm220_vm1, %v4548_v2  ;;  %235 = vst.msk [vmem:[#allocation2 + $0x34] sm:$0xf] %vm220_vm1, %v4548_v2  ;;  %s4003_s20 = sshll.u32 %s6591_s13, 8  ;;  %v4668_v17 = vsel %vm1338_vm0, %v851_v3, 0 }
  0x13   : > { %236 = vst.msk [vmem:[#allocation2 + $0x38] sm:$0x1] %vm223_vm2, %v4548_v2  ;;  %239 = vst.msk [vmem:[#allocation2 + $0x44] sm:$0x1] %vm223_vm2, %v4548_v2  ;;  %s4660_s23 = scalar_lea.vmem %s6388_s0, %s4003_s20  ;;  %vm356_vm5 = vsmask.f32 256  ;;  %s6163_s17 = scalar_lea.vmem %s6391_s3, %s4003_s20 }
  0x14   : > { %237 = vst.msk [vmem:[#allocation2 + $0x3c] sm:$0xf] %vm220_vm1, %v4548_v2  ;;  %238 = vst.msk [vmem:[#allocation2 + $0x40] sm:$0xf] %vm220_vm1, %v4548_v2  ;;  %vm357_vm6 = vsmask.f32 4368 }
  0x15   : > { %240 = vst.msk [vmem:[#allocation2 + $0x48] sm:$0xf] %vm220_vm1, %v4548_v2  ;;  %241 = vst.msk [vmem:[#allocation2 + $0x4c] sm:$0xf] %vm220_vm1, %v4548_v2  ;;  %vm681_vm7 = vsmask.f32 7938 }
  0x16   : > { %242 = vst.msk [vmem:[#allocation2 + $0x50] sm:$0x1] %vm223_vm2, %v4548_v2  ;;  %245 = vst.msk [vmem:[#allocation2 + $0x5c] sm:$0x1] %vm223_vm2, %v4548_v2  ;;  %v797_v5 = vld [vmem:[#allocation2] sm:$0xf] }
  0x17   : > { %243 = vst.msk [vmem:[#allocation2 + $0x54] sm:$0xf] %vm220_vm1, %v4548_v2  ;;  %244 = vst.msk [vmem:[#allocation2 + $0x58] sm:$0xf] %vm220_vm1, %v4548_v2  ;;  %v798_v6 = vld [vmem:[#allocation2 + $0x4] sm:$0xf] }
  0x18   : > { %246 = vst.msk [vmem:[#allocation2 + $0x60] sm:$0xf] %vm220_vm1, %v4548_v2  ;;  %247 = vst.msk [vmem:[#allocation2 + $0x64] sm:$0xf] %vm220_vm1, %v4548_v2  ;;  %v4662_v7 = vld [vmem:[#allocation2 + $0x8] sm:$0x1] }
  0x19   : > { %248 = vst.msk [vmem:[#allocation2 + $0x68] sm:$0x1] %vm223_vm2, %v4548_v2  ;;  %251 = vst.msk [vmem:[#allocation2 + $0x74] sm:$0x1] %vm223_vm2, %v4548_v2  ;;  %v856_v8 = vshrl.u32 %v797_v5, 16  ;;  %v859_v9 = vshll.u32 %v797_v5, 16 }
  0x1a   : > { %249 = vst.msk [vmem:[#allocation2 + $0x6c] sm:$0xf] %vm220_vm1, %v4548_v2  ;;  %250 = vst.msk [vmem:[#allocation2 + $0x70] sm:$0xf] %vm220_vm1, %v4548_v2  ;;  %v865_v10 = vshll.u32 %v798_v6, 16  ;;  %v869_v11 = vshrl.u32 %v798_v6, 16 }
  0x1b   : > { %252 = vst.msk [vmem:[#allocation2 + $0x78] sm:$0xf] %vm220_vm1, %v4548_v2  ;;  %253 = vst.msk [vmem:[#allocation2 + $0x7c] sm:$0xf] %vm220_vm1, %v4548_v2  ;;  %v172_v12 = vld [vmem:[%s4660_s23] sm:$0xff]  ;;  %v173_v13 = vld [vmem:[%s4660_s23 + $0x8] sm:$0xff] }
  0x1c   : > { %254 = vst.msk [vmem:[#allocation2 + $0x80] sm:$0x1] %vm223_vm2, %v4548_v2  ;;  %257 = vst.msk [vmem:[#allocation2 + $0x8c] sm:$0x1] %vm223_vm2, %v4548_v2  ;;  %v875_v14 = vshll.u32 %v4662_v7, 16  ;;  %v4005_v15 = vpack.c.bf16 %v172_v12, %v172_v12  ;;  %v4006_v16 = vpack.c.bf16 %v173_v13, %v173_v13  ;;  %v858_v18 = vrot.slane %v856_v8, 4 }
  0x1d   : > { %255 = vst.msk [vmem:[#allocation2 + $0x84] sm:$0xf] %vm220_vm1, %v4548_v2  ;;  %256 = vst.msk [vmem:[#allocation2 + $0x88] sm:$0xf] %vm220_vm1, %v4548_v2  ;;  %v861_v19 = vrot.slane %v859_v9, 5  ;;  %v867_v20 = vrot.slane %v865_v10, 5 }
  0x1e   : > { %258 = vst.msk [vmem:[#allocation2 + $0x90] sm:$0xf] %vm220_vm1, %v4548_v2  ;;  %259 = vst.msk [vmem:[#allocation2 + $0x94] sm:$0xf] %vm220_vm1, %v4548_v2  ;;  %v871_v21 = vrot.slane %v869_v11, 4  ;;  %v186_v22 = vld [vmem:[%s4660_s23 + $0x70] sm:$0xff] }
  0x1f   : > { %260 = vst.msk [vmem:[#allocation2 + $0x98] sm:$0x1] %vm223_vm2, %v4548_v2  ;;  %263 = vst.msk [vmem:[#allocation2 + $0xa4] sm:$0x1] %vm223_vm2, %v4548_v2  ;;  %v187_v23 = vld [vmem:[%s4660_s23 + $0x78] sm:$0xff]  ;;  %v877_v25 = vrot.slane %v875_v14, 5  ;;  %v862_v29 = vor.u32 %v861_v19, %v858_v18  ;;  %v4019_v33 = vpack.c.bf16 %v186_v22, %v186_v22 }
  0x20   : > { %261 = vst.msk [vmem:[#allocation2 + $0x9c] sm:$0xf] %vm220_vm1, %v4548_v2  ;;  %262 = vst.msk [vmem:[#allocation2 + $0xa0] sm:$0xf] %vm220_vm1, %v4548_v2  ;;  %v360_v26 = vshrl.u32 %v4005_v15, 16  ;;  %v363_v27 = vshll.u32 %v4005_v15, 16  ;;  %v872_v30 = vor.u32 %v871_v21, %v867_v20  ;;  %v4020_v39 = vpack.c.bf16 %v187_v23, %v187_v23 }
  0x21   : > { %264 = vst.msk [vmem:[#allocation2 + $0xa8] sm:$0xf] %vm220_vm1, %v4548_v2  ;;  %265 = vst.msk [vmem:[#allocation2 + $0xac] sm:$0xf] %vm220_vm1, %v4548_v2  ;;  %v368_v28 = vshrl.u32 %v4006_v16, 16  ;;  %v371_v32 = vshll.u32 %v4006_v16, 16 }
  0x22   : > { %266 = vst.msk [vmem:[#allocation2 + $0xb0] sm:$0x1] %vm223_vm2, %v4548_v2  ;;  %269 = vst.msk [vmem:[#allocation2 + $0xbc] sm:$0x1] %vm223_vm2, %v4548_v2  ;;  %v188_v34 = vld [vmem:[%s4660_s23 + $0x80] sm:$0xff]  ;;  %v362_v35 = vrot.slane %v360_v26, 7 }
  0x23   : > { %267 = vst.msk [vmem:[#allocation2 + $0xb4] sm:$0xf] %vm220_vm1, %v4548_v2  ;;  %268 = vst.msk [vmem:[#allocation2 + $0xb8] sm:$0xf] %vm220_vm1, %v4548_v2  ;;  %v370_v36 = vrot.slane %v368_v28, 7  ;;  %v4021_v40 = vpack.c.bf16 %v188_v34, %v188_v34  ;;  %v863_v41 = vrot.slane %v862_v29, 4 }
  0x24   : > { %270 = vst.msk [vmem:[#allocation2 + $0xc0] sm:$0xf] %vm220_vm1, %v4548_v2  ;;  %271 = vst.msk [vmem:[#allocation2 + $0xc4] sm:$0xf] %vm220_vm1, %v4548_v2  ;;  %v683_v38 = vld [vmem:[#allocation2 + $0xc] sm:$0xf]  ;;  %v365_v47 = vor.u32 %v363_v27, %v362_v35 }
  0x25   : > { %272 = vst.msk [vmem:[#allocation2 + $0xc8] sm:$0x1] %vm223_vm2, %v4548_v2  ;;  %275 = vst.msk [vmem:[#allocation2 + $0xd4] sm:$0x1] %vm223_vm2, %v4548_v2  ;;  %v873_v42 = vrot.slane %v872_v30, 4  ;;  %v479_v45 = vshrl.u32 %v4019_v33, 16  ;;  %v373_v49 = vor.u32 %v371_v32, %v370_v36 }
  0x26   : > { %273 = vst.msk [vmem:[#allocation2 + $0xcc] sm:$0xf] %vm220_vm1, %v4548_v2  ;;  %274 = vst.msk [vmem:[#allocation2 + $0xd0] sm:$0xf] %vm220_vm1, %v4548_v2  ;;  %v689_v44 = vld [vmem:[#allocation2 + $0x14] sm:$0x1] }
  0x27   : > { %vm4674_vm9 = vmor %vm852_vm3, %vm853_vm4  ;;  %v482_v46 = vshll.u32 %v4019_v33, 16  ;;  %v366_v48 = vrot.slane %v362_v35, 4  ;;  %v375_v50 = vrot.slane %v370_v36, 4  ;;  %v481_v53 = vrot.slane %v479_v45, 7  ;;  %v189_v55 = vld [vmem:[%s4660_s23 + $0x88] sm:$0xff]  ;;  %v174_v56 = vld [vmem:[%s4660_s23 + $0x10] sm:$0xff] }
  0x28   : > { %vm4680_vm10 = vmor %vm356_vm5, %vm357_vm6  ;;  %v868_v51 = vsel %vm4674_vm9, %v863_v41, %v867_v20  ;;  %v878_v52 = vsel %vm4674_vm9, %v873_v42, %v877_v25  ;;  %v487_v54 = vshrl.u32 %v4020_v39, 16  ;;  %v734_v61 = vld [vmem:[#allocation2 + $0x60] sm:$0xf]  ;;  %v175_v62 = vld [vmem:[%s4660_s23 + $0x18] sm:$0xff]  ;;  %v490_v2 = vshll.u32 %v4020_v39, 16 }
  0x29   : > { %vm4687_vm11 = vmand %vm220_vm1, %vm681_vm7  ;;  %v3777_v57 = vcombine.low %v868_v51, %v878_v52  ;;  %v374_v58 = vsel %vm4680_vm10, %v366_v48, %v373_v49  ;;  %v484_v63 = vor.u32 %v482_v46, %v481_v53  ;;  %v485_v0 = vrot.slane %v481_v53, 4  ;;  %v738_v3 = vld [vmem:[#allocation2 + $0x68] sm:$0x1]  ;;  %v741_v21 = vld [vmem:[#allocation2 + $0x6c] sm:$0xf] }
  0x2a   : > { %vm4693_vm12 = vmand %vm223_vm2, %vm356_vm5  ;;  %v684_v59 = vsel %vm4687_vm11, %v365_v47, %v683_v38  ;;  %686 = vst.msk [vmem:[#allocation2 + $0x10] sm:$0xf] %vm220_vm1, %v374_v58  ;;  %v489_v1 = vrot.slane %v487_v54, 7  ;;  %v4022_v5 = vpack.c.bf16 %v189_v55, %v189_v55  ;;  %v496_v6 = vshrl.u32 %v4021_v40, 16  ;;  %v176_v25 = vld [vmem:[%s4660_s23 + $0x20] sm:$0xff]  ;;  %v177_v35 = vld [vmem:[%s4660_s23 + $0x28] sm:$0xff] }
  0x2b   : > { %v690_v60 = vsel %vm4693_vm12, %v375_v50, %v689_v44  ;;  %685 = vst [vmem:[#allocation2 + $0xc] sm:$0xf] %v684_v59  ;;  %4192 = vmatprep.mubr.msk.bf16.mxu0 %vm1289_vm8, %v3777_v57  ;;  %v499_v8 = vshll.u32 %v4021_v40, 16  ;;  %v4007_v9 = vpack.c.bf16 %v174_v56, %v174_v56  ;;  %v735_v12 = vsel %vm4687_vm11, %v484_v63, %v734_v61  ;;  %v190_v47 = vld [vmem:[%s4660_s23 + $0x90] sm:$0xff] }
  0x2c   : > { %691 = vst [vmem:[#allocation2 + $0x14] sm:$0x1] %v690_v60  ;;  %v492_v10 = vor.u32 %v490_v2, %v489_v1  ;;  %v494_v11 = vrot.slane %v489_v1, 4  ;;  %v4714_v13 = vpack.c.bf16 %v175_v62, %v175_v62  ;;  %736 = vst [vmem:[#allocation2 + $0x60] sm:$0xf] %v735_v12  ;;  %v498_v14 = vrot.slane %v496_v6, 7 }
  0x2d   : > { %v504_v15 = vshrl.u32 %v4022_v5, 16  ;;  %v507_v16 = vshll.u32 %v4022_v5, 16  ;;  %v377_v18 = vshrl.u32 %v4007_v9, 16  ;;  %v380_v22 = vshll.u32 %v4007_v9, 16  ;;  %v745_v60 = vld [vmem:[#allocation2 + $0x74] sm:$0x1] }
  0x2e   : > { %v493_v19 = vsel %vm4680_vm10, %v485_v0, %v492_v10  ;;  %v739_v20 = vsel %vm4693_vm12, %v494_v11, %v738_v3  ;;  %v385_v23 = vshrl.u32 %v4714_v13, 16  ;;  %v501_v26 = vor.u32 %v499_v8, %v498_v14 }
  0x2f   : > { %737 = vst.msk [vmem:[#allocation2 + $0x64] sm:$0xf] %vm220_vm1, %v493_v19  ;;  %740 = vst [vmem:[#allocation2 + $0x68] sm:$0x1] %v739_v20  ;;  %v502_v27 = vrot.slane %v498_v14, 4  ;;  %v506_v28 = vrot.slane %v504_v15, 7  ;;  %v4738_v42 = vpack.c.bf16 %v176_v25, %v176_v25  ;;  %v4746_v51 = vpack.c.bf16 %v177_v35, %v177_v35 }
  0x30   : > { %v4723_v29 = vrot.slane %v377_v18, 7  ;;  %v4728_v32 = vsel %vm1338_vm0, %v4645_v4, 0  ;;  %v4730_v33 = vrot.slane %v385_v23, 7  ;;  %v388_v34 = vshll.u32 %v4714_v13, 16 }
  0x31   : > { %v4734_v38 = vld [vmem:[#allocation2 + $0x10] sm:$0xf]  ;;  %v509_v40 = vor.u32 %v507_v16, %v506_v28  ;;  %v742_v41 = vsel %vm4687_vm11, %v501_v26, %v741_v21  ;;  %v511_v59 = vrot.slane %v506_v28, 4  ;;  %v4749_v61 = vpack.c.bf16 %v190_v47, %v190_v47 }
  0x32   : > { %v800_v36 = vld [vmem:[#allocation2 + $0xc] sm:$0xf]  ;;  %v889_v4 = vshll.u32 %v4734_v38, 16  ;;  %v893_v46 = vshrl.u32 %v4734_v38, 16  ;;  %743 = vst [vmem:[#allocation2 + $0x6c] sm:$0xf] %v742_v41  ;;  %v382_v50 = vor.u32 %v380_v22, %v4723_v29  ;;  %v390_v13 = vor.u32 %v388_v34, %v4730_v33 }
  0x33   : > { %v802_v39 = vld [vmem:[#allocation2 + $0x14] sm:$0x1]  ;;  %v880_v44 = vshrl.u32 %v800_v36, 16  ;;  %v883_v45 = vshll.u32 %v800_v36, 16  ;;  %v510_v49 = vsel %vm4680_vm10, %v502_v27, %v509_v40  ;;  %v821_v56 = vld [vmem:[#allocation2 + $0x60] sm:$0xf]  ;;  %v746_v18 = vsel %vm4693_vm12, %v511_v59, %v745_v60 }
  0x34   : > { %v899_v48 = vshll.u32 %v802_v39, 16  ;;  %v891_v54 = vrot.slane %v889_v4, 5  ;;  %v895_v55 = vrot.slane %v893_v46, 4  ;;  %744 = vst.msk [vmem:[#allocation2 + $0x70] sm:$0xf] %vm220_vm1, %v510_v49  ;;  %v1048_v57 = vshrl.u32 %v821_v56, 16 }
  0x35   : > { %v882_v52 = vrot.slane %v880_v44, 4  ;;  %v885_v53 = vrot.slane %v883_v45, 5  ;;  %v1051_v58 = vshll.u32 %v821_v56, 16  ;;  %v383_v3 = vrot.slane %v4723_v29, 4  ;;  %747 = vst [vmem:[#allocation2 + $0x74] sm:$0x1] %v746_v18 }
  0x36   : > { %v896_v63 = vor.u32 %v895_v55, %v891_v54  ;;  %v901_v0 = vrot.slane %v899_v48, 5  ;;  %v822_v1 = vld [vmem:[#allocation2 + $0x64] sm:$0xf]  ;;  %v823_v2 = vld [vmem:[#allocation2 + $0x68] sm:$0x1]  ;;  %v1050_v5 = vrot.slane %v1048_v57, 4 }
  0x37   : > { %v886_v62 = vor.u32 %v885_v53, %v882_v52  ;;  %v1053_v6 = vrot.slane %v1051_v58, 5  ;;  %v1057_v8 = vshll.u32 %v822_v1, 16  ;;  %v1061_v9 = vshrl.u32 %v822_v1, 16  ;;  %v692_v34 = vld [vmem:[#allocation2 + $0x18] sm:$0xf] }
  0x38   : > { %v897_v11 = vrot.slane %v896_v63, 4  ;;  %v1067_v12 = vshll.u32 %v823_v2, 16  ;;  %v391_v40 = vsel %vm4680_vm10, %v383_v3, %v390_v13  ;;  %v696_v41 = vld [vmem:[#allocation2 + $0x20] sm:$0x1]  ;;  %v392_v46 = vrot.slane %v4730_v33, 4  ;;  %v191_v53 = vld [vmem:[%s4660_s23 + $0x98] sm:$0xff] }
  0x39   : > { %v887_v10 = vrot.slane %v886_v62, 4  ;;  %v1054_v14 = vor.u32 %v1053_v6, %v1050_v5  ;;  %v1059_v15 = vrot.slane %v1057_v8, 5  ;;  %v1063_v16 = vrot.slane %v1061_v9, 4  ;;  %v824_v19 = vld [vmem:[#allocation2 + $0x6c] sm:$0xf] }
  0x3a   : > { %v902_v21 = vsel %vm4674_vm9, %v897_v11, %v901_v0  ;;  %v1069_v22 = vrot.slane %v1067_v12, 5  ;;  %v1072_v23 = vshrl.u32 %v824_v19, 16  ;;  %v1075_v29 = vshll.u32 %v824_v19, 16  ;;  %695 = vst.msk [vmem:[#allocation2 + $0x1c] sm:$0xf] %vm220_vm1, %v391_v40 }
  0x3b   : > { %v892_v20 = vsel %vm4674_vm9, %v887_v10, %v891_v54  ;;  %v1055_v26 = vrot.slane %v1054_v14, 4  ;;  %v1064_v27 = vor.u32 %v1063_v16, %v1059_v15  ;;  %v825_v28 = vld [vmem:[#allocation2 + $0x70] sm:$0xf]  ;;  %v693_v49 = vsel %vm4687_vm11, %v382_v50, %v692_v34  ;;  %v699_v59 = vld [vmem:[#allocation2 + $0x24] sm:$0xf] }
  0x3c   : > { %v4759_v25 = vcombine.low %v892_v20, %v902_v21  ;;  %v1074_v35 = vrot.slane %v1072_v23, 4  ;;  %v1081_v36 = vshll.u32 %v825_v28, 16  ;;  %v1085_v39 = vshrl.u32 %v825_v28, 16  ;;  %694 = vst [vmem:[#allocation2 + $0x18] sm:$0xf] %v693_v49 }
  0x3d   : > { %v1060_v44 = vsel %vm4674_vm9, %v1055_v26, %v1059_v15  ;;  %v1065_v45 = vrot.slane %v1064_v27, 4  ;;  %v1077_v4 = vrot.slane %v1075_v29, 5  ;;  %v394_v52 = vshrl.u32 %v4738_v42, 16  ;;  %v4785_v60 = vld [vmem:[%s6389_s1 + $0x8] sm:$0x3] }
  0x3e   : > { %6429 = vst [vmem:[#allocation3_spill] sm:$0xff] %v4759_v25  ;;  %4193 = vmatmul.mubr.msk.bf16.vlgmr.msra.gmra.mxu0 %vm1289_vm8, %v4759_v25  ;;  %v1083_v47 = vrot.slane %v1081_v36, 5  ;;  %v1087_v48 = vrot.slane %v1085_v39, 4  ;;  %v697_v33 = vsel %vm4693_vm12, %v392_v46, %v696_v41  ;;  %v397_v56 = vshll.u32 %v4738_v42, 16  ;;  %v826_v62 = vld [vmem:[#allocation2 + $0x74] sm:$0x1] }
  0x3f   : > { %4259 = vmatpush3.bf16.msra.mxu0 %v4728_v32  ;;  %v1070_v54 = vsel %vm4674_vm9, %v1065_v45, %v1069_v22  ;;  %v1078_v55 = vor.u32 %v1077_v4, %v1074_v35  ;;  %698 = vst [vmem:[#allocation2 + $0x20] sm:$0x1] %v697_v33  ;;  %v396_v32 = vrot.slane %v394_v52, 7  ;;  %v402_v50 = vshrl.u32 %v4746_v51, 16  ;;  %v703_v10 = vld [vmem:[#allocation2 + $0x2c] sm:$0x1] }
  0x40   : > { %v4779_v57 = vcombine.low %v1060_v44, %v1070_v54  ;;  %v1088_v58 = vor.u32 %v1087_v48, %v1083_v47  ;;  %v405_v0 = vshll.u32 %v4746_v51, 16  ;;  %v4024_v1 = vpack.c.bf16 %v191_v53, %v191_v53  ;;  %4503 = vmatprep.subr.msk.bf16.mxu0 %vm1338_vm0, %v4785_v60  ;;  %v748_v22 = vld [vmem:[#allocation2 + $0x78] sm:$0xf]  ;;  %v752_v29 = vld [vmem:[#allocation2 + $0x80] sm:$0x1] }
  0x41   : > { %v1079_v63 = vrot.slane %v1078_v55, 4  ;;  %v513_v42 = vshrl.u32 %v4749_v61, 16  ;;  %v1091_v3 = vshll.u32 %v826_v62, 16  ;;  %v399_v5 = vor.u32 %v397_v56, %v396_v32  ;;  %v4796_v13 = vld [vmem:[#allocation2 + $0x1c] sm:$0xf]  ;;  %v192_v41 = vld [vmem:[%s4660_s23 + $0xa0] sm:$0xff] }
  0x42   : > { %6430 = vst [vmem:[#allocation4_spill] sm:$0xff] %v4779_v57  ;;  %4208 = vmatprep.mubr.msk.bf16.mxu1 %vm1289_vm8, %v4779_v57  ;;  %v1089_v2 = vrot.slane %v1088_v58, 4  ;;  %v400_v6 = vrot.slane %v396_v32, 4  ;;  %v404_v9 = vrot.slane %v402_v50, 7  ;;  %v516_v51 = vshll.u32 %v4749_v61, 16  ;;  %v178_v55 = vld [vmem:[%s4660_s23 + $0x30] sm:$0xff] }
  0x43   : > { %v1084_v8 = vsel %vm4674_vm9, %v1079_v63, %v1083_v47  ;;  %v515_v11 = vrot.slane %v513_v42, 7  ;;  %v1093_v12 = vrot.slane %v1091_v3, 5  ;;  %v700_v14 = vsel %vm4687_vm11, %v399_v5, %v699_v59  ;;  %v4804_v23 = vld [vmem:[#allocation2 + $0x18] sm:$0xf]  ;;  %v193_v47 = vld [vmem:[%s4660_s23 + $0xa8] sm:$0xff] }
  0x44   : > { %v521_v15 = vshrl.u32 %v4024_v1, 16  ;;  %v524_v16 = vshll.u32 %v4024_v1, 16  ;;  %v913_v18 = vshll.u32 %v4796_v13, 16  ;;  %v917_v19 = vshrl.u32 %v4796_v13, 16  ;;  %701 = vst [vmem:[#allocation2 + $0x24] sm:$0xf] %v700_v14 }
  0x45   : > { %v407_v20 = vor.u32 %v405_v0, %v404_v9  ;;  %v409_v21 = vrot.slane %v404_v9, 4  ;;  %v1094_v61 = vsel %vm4674_vm9, %v1089_v2, %v1093_v12  ;;  %v518_v26 = vor.u32 %v516_v51, %v515_v11  ;;  %v3890_v48 = vld [vmem:[%s6389_s1 + $0x6] sm:$0x3]  ;;  %v179_v0 = vld [vmem:[%s4660_s23 + $0x38] sm:$0xff] }
  0x46   : > { %v519_v27 = vrot.slane %v515_v11, 4  ;;  %v523_v28 = vrot.slane %v521_v15, 7  ;;  %v4806_v34 = vcombine.low %v1084_v8, %v1094_v61  ;;  %v4808_v35 = vld [vmem:[#allocation2 + $0x20] sm:$0x1]  ;;  %v904_v36 = vshrl.u32 %v4804_v23, 16 }
  0x47   : > { %v907_v39 = vshll.u32 %v4804_v23, 16  ;;  %v915_v40 = vrot.slane %v913_v18, 5  ;;  %v919_v44 = vrot.slane %v917_v19, 4  ;;  %v923_v45 = vshll.u32 %v4808_v35, 16  ;;  %v755_v19 = vld [vmem:[#allocation2 + $0x84] sm:$0xf] }
  0x48   : > { %6431 = vst [vmem:[#allocation5_spill] sm:$0xff] %v4806_v34  ;;  %v408_v4 = vsel %vm4680_vm10, %v400_v6, %v407_v20  ;;  %v704_v46 = vsel %vm4693_vm12, %v409_v21, %v703_v10  ;;  %4209 = vmatmul.mubr.msk.bf16.vlgmr.msra.gmra.mxu1 %vm1289_vm8, %v4806_v34  ;;  %v906_v49 = vrot.slane %v904_v36, 4  ;;  %v526_v53 = vor.u32 %v524_v16, %v523_v28 }
  0x49   : > { %v909_v52 = vrot.slane %v907_v39, 5  ;;  %702 = vst.msk [vmem:[#allocation2 + $0x28] sm:$0xf] %vm220_vm1, %v408_v4  ;;  %705 = vst [vmem:[#allocation2 + $0x2c] sm:$0x1] %v704_v46  ;;  %v528_v54 = vrot.slane %v523_v28, 4  ;;  %4225 = vmatpush3.bf16.msra.mxu1 %v4668_v17  ;;  %v920_v33 = vor.u32 %v919_v44, %v915_v40  ;;  %v749_v58 = vsel %vm4687_vm11, %v518_v26, %v748_v22 }
  0x4a   : > { %v925_v56 = vrot.slane %v923_v45, 5  ;;  %v4025_v32 = vpack.c.bf16 %v192_v41, %v192_v41  ;;  %v527_v59 = vsel %vm4680_vm10, %v519_v27, %v526_v53  ;;  %750 = vst [vmem:[#allocation2 + $0x78] sm:$0xf] %v749_v58  ;;  %v4026_v63 = vpack.c.bf16 %v193_v47, %v193_v47  ;;  %4502 = vmatprep.subr.msk.bf16.mxu1 %vm1338_vm0, %v3890_v48  ;;  %v759_v4 = vld [vmem:[#allocation2 + $0x8c] sm:$0x1] }
  0x4b   : > { %v910_v50 = vor.u32 %v909_v52, %v906_v49  ;;  %v753_v62 = vsel %vm4693_vm12, %v528_v54, %v752_v29  ;;  %v921_v1 = vrot.slane %v920_v33, 4  ;;  %v4835_v17 = vld [vmem:[#allocation2 + $0x24] sm:$0xf]  ;;  %751 = vst.msk [vmem:[#allocation2 + $0x7c] sm:$0xf] %vm220_vm1, %v527_v59  ;;  %v4838_v3 = vpack.c.bf16 %v178_v55, %v178_v55 }
  0x4c   : > { %754 = vst [vmem:[#allocation2 + $0x80] sm:$0x1] %v753_v62  ;;  %v530_v42 = vshrl.u32 %v4025_v32, 16  ;;  %v533_v2 = vshll.u32 %v4025_v32, 16  ;;  %v928_v6 = vshrl.u32 %v4835_v17, 16  ;;  %v931_v8 = vshll.u32 %v4835_v17, 16 }
  0x4d   : > { %v911_v5 = vrot.slane %v910_v50, 4  ;;  %v538_v9 = vshrl.u32 %v4026_v63, 16  ;;  %v926_v10 = vsel %vm4674_vm9, %v921_v1, %v925_v56  ;;  %v541_v51 = vshll.u32 %v4026_v63, 16 }
  0x4e   : > { %v532_v11 = vrot.slane %v530_v42, 7  ;;  %v4844_v12 = vpack.c.bf16 %v179_v0, %v179_v0  ;;  %v930_v15 = vrot.slane %v928_v6, 4  ;;  %v933_v16 = vrot.slane %v931_v8, 5 }
  0x4f   : > { %v916_v14 = vsel %vm4674_vm9, %v911_v5, %v915_v40  ;;  %v540_v18 = vrot.slane %v538_v9, 7  ;;  %v411_v27 = vshrl.u32 %v4838_v3, 16  ;;  %v414_v9 = vshll.u32 %v4838_v3, 16 }
  0x50   : > { %v4848_v20 = vcombine.low %v916_v14, %v926_v10  ;;  %v4850_v21 = vld [vmem:[#allocation2 + $0x28] sm:$0xf]  ;;  %v4852_v22 = vld [vmem:[#allocation2 + $0x2c] sm:$0x1]  ;;  %v535_v61 = vor.u32 %v533_v2, %v532_v11  ;;  %v536_v26 = vrot.slane %v532_v11, 4  ;;  %v934_v28 = vor.u32 %v933_v16, %v930_v15  ;;  %v180_v2 = vld [vmem:[%s4660_s23 + $0x40] sm:$0xff] }
  0x51   : > { %v937_v29 = vshll.u32 %v4850_v21, 16  ;;  %v941_v36 = vshrl.u32 %v4850_v21, 16  ;;  %v947_v39 = vshll.u32 %v4852_v22, 16  ;;  %v4860_v40 = vld [vmem:[#allocation2 + $0x78] sm:$0xf]  ;;  %v543_v41 = vor.u32 %v541_v51, %v540_v18  ;;  %v181_v16 = vld [vmem:[%s4660_s23 + $0x48] sm:$0xff] }
  0x52   : > { %6432 = vst [vmem:[#allocation6_spill] sm:$0xff] %v4848_v20  ;;  %4196 = vmatprep.mubr.msk.bf16.mxu0 %vm1289_vm8, %v4848_v20  ;;  %v545_v44 = vrot.slane %v540_v18, 4  ;;  %v756_v45 = vsel %vm4687_vm11, %v535_v61, %v755_v19  ;;  %v413_v46 = vrot.slane %v411_v27, 7  ;;  %v935_v47 = vrot.slane %v934_v28, 4  ;;  %v4864_v53 = vld [vmem:[#allocation2 + $0x7c] sm:$0xf] }
  0x53   : > { %v939_v48 = vrot.slane %v937_v29, 5  ;;  %v943_v49 = vrot.slane %v941_v36, 4  ;;  %v949_v52 = vrot.slane %v947_v39, 5  ;;  %757 = vst [vmem:[#allocation2 + $0x84] sm:$0xf] %v756_v45  ;;  %v1096_v55 = vshrl.u32 %v4860_v40, 16 }
  0x54   : > { %v4866_v54 = vld [vmem:[#allocation2 + $0x80] sm:$0x1]  ;;  %v1099_v33 = vshll.u32 %v4860_v40, 16  ;;  %v1105_v56 = vshll.u32 %v4864_v53, 16  ;;  %v1109_v58 = vshrl.u32 %v4864_v53, 16  ;;  %v544_v62 = vsel %vm4680_vm10, %v536_v26, %v543_v41 }
  0x55   : > { %v940_v32 = vsel %vm4674_vm9, %v935_v47, %v939_v48  ;;  %v944_v50 = vor.u32 %v943_v49, %v939_v48  ;;  %v1115_v59 = vshll.u32 %v4866_v54, 16  ;;  %v1098_v63 = vrot.slane %v1096_v55, 4  ;;  %758 = vst.msk [vmem:[#allocation2 + $0x88] sm:$0xf] %vm220_vm1, %v544_v62  ;;  %v706_v15 = vld [vmem:[#allocation2 + $0x30] sm:$0xf] }
  0x56   : > { %v1101_v0 = vrot.slane %v1099_v33, 5  ;;  %v1107_v1 = vrot.slane %v1105_v56, 5  ;;  %v1111_v42 = vrot.slane %v1109_v58, 4  ;;  %v760_v8 = vsel %vm4693_vm12, %v545_v44, %v759_v4  ;;  %v710_v45 = vld [vmem:[#allocation2 + $0x38] sm:$0x1]  ;;  %v194_v62 = vld [vmem:[%s4660_s23 + $0xb0] sm:$0xff] }
  0x57   : > { %v945_v5 = vrot.slane %v944_v50, 4  ;;  %v1117_v6 = vrot.slane %v1115_v59, 5  ;;  %761 = vst [vmem:[#allocation2 + $0x8c] sm:$0x1] %v760_v8  ;;  %v417_v51 = vrot.slane %v413_v46, 4  ;;  %v419_v14 = vshrl.u32 %v4844_v12, 16 }
  0x58   : > { %v1102_v10 = vor.u32 %v1101_v0, %v1098_v63  ;;  %v1112_v11 = vor.u32 %v1111_v42, %v1107_v1  ;;  %v416_v19 = vor.u32 %v414_v9, %v413_v46  ;;  %v422_v61 = vshll.u32 %v4844_v12, 16 }
  0x59   : > { %v950_v18 = vsel %vm4674_vm9, %v945_v5, %v949_v52  ;;  %v4013_v26 = vpack.c.bf16 %v180_v2, %v180_v2  ;;  %v421_v36 = vrot.slane %v419_v14, 7  ;;  %v4014_v4 = vpack.c.bf16 %v181_v16, %v181_v16  ;;  %v195_v5 = vld [vmem:[%s4660_s23 + $0xb8] sm:$0xff] }
  0x5a   : > { %v4887_v27 = vcombine.low %v940_v32, %v950_v18  ;;  %v1103_v28 = vrot.slane %v1102_v10, 4  ;;  %v1113_v29 = vrot.slane %v1112_v11, 4  ;;  %v4889_v3 = vld [vmem:[#allocation2 + $0x84] sm:$0xf]  ;;  %v707_v44 = vsel %vm4687_vm11, %v416_v19, %v706_v15  ;;  %v713_v11 = vld [vmem:[#allocation2 + $0x3c] sm:$0xf] }
  0x5b   : > { %v1120_v39 = vshrl.u32 %v4889_v3, 16  ;;  %v1123_v41 = vshll.u32 %v4889_v3, 16  ;;  %v424_v47 = vor.u32 %v422_v61, %v421_v36  ;;  %v426_v48 = vrot.slane %v421_v36, 4  ;;  %708 = vst [vmem:[#allocation2 + $0x30] sm:$0xf] %v707_v44 }
  0x5c   : > { %6433 = vst [vmem:[#allocation7_spill] sm:$0xff] %v4887_v27  ;;  %4197 = vmatmul.mubr.msk.bf16.gmra.mxu0 %vm1289_vm8, %v4887_v27  ;;  %v1108_v12 = vsel %vm4674_vm9, %v1103_v28, %v1107_v1  ;;  %v1118_v46 = vsel %vm4674_vm9, %v1113_v29, %v1117_v6  ;;  %v4903_v52 = vld [vmem:[#allocation2 + $0x88] sm:$0xf]  ;;  %v428_v56 = vshrl.u32 %v4013_v26, 16  ;;  %v431_v42 = vshll.u32 %v4013_v26, 16 }
  0x5d   : > { %v4901_v49 = vcombine.low %v1108_v12, %v1118_v46  ;;  %v1122_v55 = vrot.slane %v1120_v39, 4  ;;  %v1125_v33 = vrot.slane %v1123_v41, 5  ;;  %v1129_v58 = vshll.u32 %v4903_v52, 16  ;;  %v717_v61 = vld [vmem:[#allocation2 + $0x44] sm:$0x1] }
  0x5e   : > { %v1133_v32 = vshrl.u32 %v4903_v52, 16  ;;  %v425_v50 = vsel %vm4680_vm10, %v417_v51, %v424_v47  ;;  %v711_v59 = vsel %vm4693_vm12, %v426_v48, %v710_v45  ;;  %v4914_v63 = vld [vmem:[#allocation2 + $0x8c] sm:$0x1]  ;;  %v430_v1 = vrot.slane %v428_v56, 7  ;;  %v196_v45 = vld [vmem:[%s4660_s23 + $0xc0] sm:$0xff] }
  0x5f   : > { %6434 = vst [vmem:[#allocation8_spill] sm:$0xff] %v4901_v49  ;;  %4212 = vmatprep.mubr.msk.bf16.mxu1 %vm1289_vm8, %v4901_v49  ;;  %v1126_v0 = vor.u32 %v1125_v33, %v1122_v55  ;;  %709 = vst.msk [vmem:[#allocation2 + $0x34] sm:$0xf] %vm220_vm1, %v425_v50  ;;  %v436_v2 = vshrl.u32 %v4014_v4, 16  ;;  %v1131_v6 = vrot.slane %v1129_v58, 5  ;;  %v1139_v9 = vshll.u32 %v4914_v63, 16 }
  0x60   : > { %712 = vst [vmem:[#allocation2 + $0x38] sm:$0x1] %v711_v59  ;;  %v1135_v8 = vrot.slane %v1133_v32, 4  ;;  %v439_v10 = vshll.u32 %v4014_v4, 16  ;;  %v433_v14 = vor.u32 %v431_v42, %v430_v1  ;;  %v434_v15 = vrot.slane %v430_v1, 4  ;;  %v197_v58 = vld [vmem:[%s4660_s23 + $0xc8] sm:$0xff] }
  0x61   : > { %v1127_v51 = vrot.slane %v1126_v0, 4  ;;  %v438_v16 = vrot.slane %v436_v2, 7  ;;  %v1141_v19 = vrot.slane %v1139_v9, 5  ;;  %v4027_v28 = vpack.c.bf16 %v194_v62, %v194_v62 }
  0x62   : > { %v1136_v18 = vor.u32 %v1135_v8, %v1131_v6  ;;  %v4028_v29 = vpack.c.bf16 %v195_v5, %v195_v5  ;;  %v4921_v36 = vld [vmem:[#allocation2 + $0x30] sm:$0xf]  ;;  %v714_v44 = vsel %vm4687_vm11, %v433_v14, %v713_v11  ;;  %v4029_v1 = vpack.c.bf16 %v196_v45, %v196_v45 }
  0x63   : > { %v1132_v26 = vsel %vm4674_vm9, %v1127_v51, %v1131_v6  ;;  %v441_v39 = vor.u32 %v439_v10, %v438_v16  ;;  %v443_v41 = vrot.slane %v438_v16, 4  ;;  %v952_v12 = vshrl.u32 %v4921_v36, 16  ;;  %715 = vst [vmem:[#allocation2 + $0x3c] sm:$0xf] %v714_v44 }
  0x64   : > { %v1137_v4 = vrot.slane %v1136_v18, 4  ;;  %v955_v46 = vshll.u32 %v4921_v36, 16  ;;  %v547_v47 = vshrl.u32 %v4027_v28, 16  ;;  %v550_v33 = vshll.u32 %v4027_v28, 16 }
  0x65   : > { %v442_v48 = vsel %vm4680_vm10, %v434_v15, %v441_v39  ;;  %v718_v55 = vsel %vm4693_vm12, %v443_v41, %v717_v61  ;;  %v555_v56 = vshrl.u32 %v4028_v29, 16  ;;  %v954_v62 = vrot.slane %v952_v12, 4  ;;  %v766_v39 = vld [vmem:[#allocation2 + $0x98] sm:$0x1] }
  0x66   : > { %v1142_v32 = vsel %vm4674_vm9, %v1137_v4, %v1141_v19  ;;  %v4935_v50 = vld [vmem:[#allocation2 + $0x34] sm:$0xf]  ;;  %v957_v0 = vrot.slane %v955_v46, 5  ;;  %716 = vst.msk [vmem:[#allocation2 + $0x40] sm:$0xf] %vm220_vm1, %v442_v48  ;;  %v549_v9 = vrot.slane %v547_v47, 7  ;;  %v4947_v16 = vpack.c.bf16 %v197_v58, %v197_v58 }
  0x67   : > { %v4937_v59 = vld [vmem:[#allocation2 + $0x38] sm:$0x1]  ;;  %719 = vst [vmem:[#allocation2 + $0x44] sm:$0x1] %v718_v55  ;;  %v4940_v42 = vcombine.low %v1132_v26, %v1142_v32  ;;  %v961_v2 = vshll.u32 %v4935_v50, 16  ;;  %v965_v5 = vshrl.u32 %v4935_v50, 16 }
  0x68   : > { %v971_v6 = vshll.u32 %v4937_v59, 16  ;;  %v958_v8 = vor.u32 %v957_v0, %v954_v62  ;;  %v557_v10 = vrot.slane %v555_v56, 7  ;;  %v558_v11 = vshll.u32 %v4028_v29, 16  ;;  %v762_v26 = vld [vmem:[#allocation2 + $0x90] sm:$0xf] }
  0x69   : > { %6435 = vst [vmem:[#allocation9_spill] sm:$0xff] %v4940_v42  ;;  %4213 = vmatmul.mubr.msk.bf16.gmra.mxu1 %vm1289_vm8, %v4940_v42  ;;  %v963_v51 = vrot.slane %v961_v2, 5  ;;  %v967_v14 = vrot.slane %v965_v5, 4  ;;  %v552_v19 = vor.u32 %v550_v33, %v549_v9  ;;  %v553_v61 = vrot.slane %v549_v9, 4 }
  0x6a   : > { %v973_v15 = vrot.slane %v971_v6, 5  ;;  %v959_v18 = vrot.slane %v958_v8, 4  ;;  %v560_v28 = vor.u32 %v558_v11, %v557_v10  ;;  %v4949_v44 = vld [vmem:[#allocation2 + $0x3c] sm:$0xf]  ;;  %v562_v45 = vrot.slane %v557_v10, 4 }
  0x6b   : > { %v968_v41 = vor.u32 %v967_v14, %v963_v51  ;;  %v564_v4 = vshrl.u32 %v4029_v1, 16  ;;  %v567_v29 = vshll.u32 %v4029_v1, 16  ;;  %v976_v46 = vshrl.u32 %v4949_v44, 16  ;;  %v769_v6 = vld [vmem:[#allocation2 + $0x9c] sm:$0xf] }
  0x6c   : > { %v964_v12 = vsel %vm4674_vm9, %v959_v18, %v963_v51  ;;  %v979_v47 = vshll.u32 %v4949_v44, 16  ;;  %v561_v48 = vsel %vm4680_vm10, %v553_v61, %v560_v28  ;;  %v763_v58 = vsel %vm4687_vm11, %v552_v19, %v762_v26  ;;  %v182_v51 = vld [vmem:[%s4660_s23 + $0x50] sm:$0xff]  ;;  %v183_v14 = vld [vmem:[%s4660_s23 + $0x58] sm:$0xff]  ;;  %v184_v26 = vld [vmem:[%s4660_s23 + $0x60] sm:$0xff] }
  0x6d   : > { %v969_v55 = vrot.slane %v968_v41, 4  ;;  %v4957_v33 = vld [vmem:[#allocation2 + $0x40] sm:$0xf]  ;;  %765 = vst.msk [vmem:[#allocation2 + $0x94] sm:$0xf] %vm220_vm1, %v561_v48  ;;  %v767_v32 = vsel %vm4693_vm12, %v562_v45, %v766_v39  ;;  %v566_v62 = vrot.slane %v564_v4, 7  ;;  %v4016_v48 = vpack.c.bf16 %v183_v14, %v183_v14 }
  0x6e   : > { %v4959_v56 = vld [vmem:[#allocation2 + $0x44] sm:$0x1]  ;;  %v978_v0 = vrot.slane %v976_v46, 4  ;;  %v981_v1 = vrot.slane %v979_v47, 5  ;;  %v985_v2 = vshll.u32 %v4957_v33, 16  ;;  %v989_v5 = vshrl.u32 %v4957_v33, 16 }
  0x6f   : > { %764 = vst [vmem:[#allocation2 + $0x90] sm:$0xf] %v763_v58  ;;  %768 = vst [vmem:[#allocation2 + $0x98] sm:$0x1] %v767_v32  ;;  %v974_v8 = vsel %vm4674_vm9, %v969_v55, %v973_v15  ;;  %v995_v9 = vshll.u32 %v4959_v56, 16  ;;  %v569_v10 = vor.u32 %v567_v29, %v566_v62  ;;  %v570_v11 = vrot.slane %v566_v62, 4 }
  0x70   : > { %v4973_v18 = vcombine.low %v964_v12, %v974_v8  ;;  %v982_v19 = vor.u32 %v981_v1, %v978_v0  ;;  %v987_v61 = vrot.slane %v985_v2, 5  ;;  %v991_v28 = vrot.slane %v989_v5, 4  ;;  %v185_v39 = vld [vmem:[%s4660_s23 + $0x68] sm:$0xff]  ;;  %v198_v41 = vld [vmem:[%s4660_s23 + $0xd0] sm:$0xff]  ;;  %v199_v55 = vld [vmem:[%s4660_s23 + $0xd8] sm:$0xff] }
  0x71   : > { %v997_v45 = vrot.slane %v995_v9, 5  ;;  %v572_v4 = vshrl.u32 %v4947_v16, 16  ;;  %v575_v15 = vshll.u32 %v4947_v16, 16  ;;  %v770_v29 = vsel %vm4687_vm11, %v569_v10, %v769_v6 }
  0x72   : > { %6436 = vst [vmem:[#allocation10_spill] sm:$0xff] %v4973_v18  ;;  %4200 = vmatprep.mubr.msk.bf16.mxu0 %vm1289_vm8, %v4973_v18  ;;  %v983_v12 = vrot.slane %v982_v19, 4  ;;  %v992_v46 = vor.u32 %v991_v28, %v987_v61  ;;  %771 = vst [vmem:[#allocation2 + $0x9c] sm:$0xf] %v770_v29  ;;  %v4015_v47 = vpack.c.bf16 %v182_v51, %v182_v51  ;;  %vm1811_vm13 = vcmask 1042432  }
  0x73   : > { %v574_v58 = vrot.slane %v572_v4, 7  ;;  %v4985_v32 = vpack.c.bf16 %v184_v26, %v184_v26  ;;  %v4987_v62 = vpack.c.bf16 %v185_v39, %v185_v39  ;;  %v4989_v0 = vpack.c.bf16 %v198_v41, %v198_v41 }
  0x74   : > { %v988_v16 = vsel %vm4674_vm9, %v983_v12, %v987_v61  ;;  %v993_v1 = vrot.slane %v992_v46, 4  ;;  %v4993_v2 = vld [vmem:[#allocation2 + $0x94] sm:$0xf]  ;;  %v445_v5 = vshrl.u32 %v4015_v47, 16  ;;  %v448_v6 = vshll.u32 %v4015_v47, 16 }
  0x75   : > { %v1153_v10 = vshll.u32 %v4993_v2, 16  ;;  %v1157_v51 = vshrl.u32 %v4993_v2, 16  ;;  %v577_v14 = vor.u32 %v575_v15, %v574_v58  ;;  %v5001_v19 = vpack.c.bf16 %v199_v55, %v199_v55  ;;  %v773_v46 = vld [vmem:[#allocation2 + $0xa4] sm:$0x1] }
  0x76   : > { %v4995_v8 = vld [vmem:[#allocation2 + $0x90] sm:$0xf]  ;;  %v4997_v9 = vld [vmem:[#allocation2 + $0x98] sm:$0x1]  ;;  %v998_v28 = vsel %vm4674_vm9, %v993_v1, %v997_v45  ;;  %v579_v30 = vrot.slane %v574_v58, 4  ;;  %vm1812_vm14 = vcmask 1046532  }
  0x77   : > { %v1144_v61 = vshrl.u32 %v4995_v8, 16  ;;  %v1147_v26 = vshll.u32 %v4995_v8, 16  ;;  %v1163_v39 = vshll.u32 %v4997_v9, 16  ;;  %v5008_v41 = vcombine.low %v988_v16, %v998_v28  ;;  %v720_v58 = vld [vmem:[#allocation2 + $0x48] sm:$0xf]  ;;  %vm5133_vm15 = vmor %vm1811_vm13, %vm1812_vm14 }
  0x78   : > { %v1155_v4 = vrot.slane %v1153_v10, 5  ;;  %v1159_v29 = vrot.slane %v1157_v51, 4  ;;  %v578_v12 = vsel %vm4680_vm10, %v570_v11, %v577_v14  ;;  %v447_v16 = vrot.slane %v445_v5, 7  ;;  %v724_v5 = vld [vmem:[#allocation2 + $0x50] sm:$0x1] }
  0x79   : > { %6437 = vst [vmem:[#allocation11_spill] sm:$0xff] %v5008_v41  ;;  %v1146_v15 = vrot.slane %v1144_v61, 4  ;;  %v1149_v47 = vrot.slane %v1147_v26, 5  ;;  %v1165_v55 = vrot.slane %v1163_v39, 5  ;;  %772 = vst.msk [vmem:[#allocation2 + $0xa0] sm:$0xf] %vm220_vm1, %v578_v12  ;;  %4201 = vmatmul.mubr.msk.bf16.gmra.mxu0 %vm1289_vm8, %v5008_v41  ;;  %v774_v11 = vsel %vm4693_vm12, %v579_v30, %v773_v46 }
  0x7a   : > { %v1160_v45 = vor.u32 %v1159_v29, %v1155_v4  ;;  %v5015_v1 = vld [vmem:[#allocation2 + $0x9c] sm:$0xf]  ;;  %v453_v28 = vshrl.u32 %v4016_v48, 16  ;;  %v456_v10 = vshll.u32 %v4016_v48, 16  ;;  %775 = vst [vmem:[#allocation2 + $0xa4] sm:$0x1] %v774_v11  ;;  %v450_v39 = vor.u32 %v448_v6, %v447_v16 }
  0x7b   : > { %v1150_v51 = vor.u32 %v1149_v47, %v1146_v15  ;;  %v1168_v14 = vshrl.u32 %v5015_v1, 16  ;;  %v1171_v61 = vshll.u32 %v5015_v1, 16  ;;  %v451_v12 = vrot.slane %v447_v16, 4 }
  0x7c   : > { %v1161_v26 = vrot.slane %v1160_v45, 4  ;;  %v455_v42 = vrot.slane %v453_v28, 7  ;;  %v462_v48 = vshrl.u32 %v4985_v32, 16  ;;  %v721_v47 = vsel %vm4687_vm11, %v450_v39, %v720_v58  ;;  %v731_v39 = vld [vmem:[#allocation2 + $0x5c] sm:$0x1] }
  0x7d   : > { %v1151_v29 = vrot.slane %v1150_v51, 4  ;;  %v1170_v49 = vrot.slane %v1168_v14, 4  ;;  %v1173_v34 = vrot.slane %v1171_v61, 5  ;;  %722 = vst [vmem:[#allocation2 + $0x48] sm:$0xf] %v721_v47  ;;  %v465_v28 = vshll.u32 %v4985_v32, 16 }
  0x7e   : > { %v1166_v15 = vsel %vm4674_vm9, %v1161_v26, %v1165_v55  ;;  %v458_v30 = vor.u32 %v456_v10, %v455_v42  ;;  %v460_v46 = vrot.slane %v455_v42, 4  ;;  %v464_v16 = vrot.slane %v462_v48, 7  ;;  %v727_v14 = vld [vmem:[#allocation2 + $0x54] sm:$0xf] }
  0x7f   : > { %v1156_v45 = vsel %vm4674_vm9, %v1151_v29, %v1155_v4  ;;  %v1174_v6 = vor.u32 %v1173_v34, %v1170_v49  ;;  %v470_v10 = vshrl.u32 %v4987_v62, 16  ;;  %v473_v26 = vshll.u32 %v4987_v62, 16 }
  0x80   : > { %v5029_v51 = vcombine.low %v1156_v45, %v1166_v15  ;;  %v5031_v11 = vld [vmem:[#allocation2 + $0xa0] sm:$0xf]  ;;  %v459_v55 = vsel %vm4680_vm10, %v451_v12, %v458_v30  ;;  %v725_v42 = vsel %vm4693_vm12, %v460_v46, %v724_v5  ;;  %v467_v32 = vor.u32 %v465_v28, %v464_v16 }
  0x81   : > { %v1175_v61 = vrot.slane %v1174_v6, 4  ;;  %v1177_v34 = vshll.u32 %v5031_v11, 16  ;;  %v1181_v49 = vshrl.u32 %v5031_v11, 16  ;;  %723 = vst.msk [vmem:[#allocation2 + $0x4c] sm:$0xf] %vm220_vm1, %v459_v55  ;;  %v468_v4 = vrot.slane %v464_v16, 4 }
  0x82   : > { %6438 = vst [vmem:[#allocation12_spill] sm:$0xff] %v5029_v51  ;;  %726 = vst [vmem:[#allocation2 + $0x50] sm:$0x1] %v725_v42  ;;  %4216 = vmatprep.mubr.msk.bf16.mxu1 %vm1289_vm8, %v5029_v51  ;;  %v472_v58 = vrot.slane %v470_v10, 7  ;;  %v581_v12 = vshrl.u32 %v4989_v0, 16  ;;  %v728_v15 = vsel %vm4687_vm11, %v467_v32, %v727_v14  ;;  %v584_v30 = vshll.u32 %v4989_v0, 16 }
  0x83   : > { %v5045_v29 = vld [vmem:[#allocation2 + $0xa4] sm:$0x1]  ;;  %v1179_v5 = vrot.slane %v1177_v34, 5  ;;  %v1183_v48 = vrot.slane %v1181_v49, 4  ;;  %729 = vst [vmem:[#allocation2 + $0x54] sm:$0xf] %v728_v15 }
  0x84   : > { %v1187_v46 = vshll.u32 %v5045_v29, 16  ;;  %v475_v47 = vor.u32 %v473_v26, %v472_v58  ;;  %v477_v45 = vrot.slane %v472_v58, 4  ;;  %v583_v6 = vrot.slane %v581_v12, 7  ;;  %v776_v42 = vld [vmem:[#allocation2 + $0xa8] sm:$0xf]  ;;  %v200_v10 = vld [vmem:[%s4660_s23 + $0xe0] sm:$0xff] }
  0x85   : > { %v1184_v16 = vor.u32 %v1183_v48, %v1179_v5  ;;  %v589_v28 = vshrl.u32 %v5001_v19, 16  ;;  %v592_v55 = vshll.u32 %v5001_v19, 16  ;;  %v5055_v49 = vld [vmem:[#allocation2 + $0x48] sm:$0xf]  ;;  %v1180_v58 = vsel %vm4674_vm9, %v1175_v61, %v1179_v5 }
  0x86   : > { %v1189_v34 = vrot.slane %v1187_v46, 5  ;;  %v476_v0 = vsel %vm4680_vm10, %v468_v4, %v475_v47  ;;  %v732_v14 = vsel %vm4693_vm12, %v477_v45, %v731_v39  ;;  %v586_v32 = vor.u32 %v584_v30, %v583_v6 }
  0x87   : > { %v1185_v26 = vrot.slane %v1184_v16, 4  ;;  %v1000_v12 = vshrl.u32 %v5055_v49, 16  ;;  %v1003_v19 = vshll.u32 %v5055_v49, 16  ;;  %730 = vst.msk [vmem:[#allocation2 + $0x58] sm:$0xf] %vm220_vm1, %v476_v0  ;;  %v587_v4 = vrot.slane %v583_v6, 4 }
  0x88   : > { %733 = vst [vmem:[#allocation2 + $0x5c] sm:$0x1] %v732_v14  ;;  %v5066_v48 = vld [vmem:[#allocation2 + $0x4c] sm:$0xf]  ;;  %v591_v46 = vrot.slane %v589_v28, 7  ;;  %v777_v39 = vsel %vm4687_vm11, %v586_v32, %v776_v42  ;;  %v4033_v30 = vpack.c.bf16 %v200_v10, %v200_v10 }
  0x89   : > { %v5068_v15 = vld [vmem:[#allocation2 + $0x50] sm:$0x1]  ;;  %v1190_v61 = vsel %vm4674_vm9, %v1185_v26, %v1189_v34  ;;  %v1002_v5 = vrot.slane %v1000_v12, 4  ;;  %v1005_v47 = vrot.slane %v1003_v19, 5  ;;  %v1009_v45 = vshll.u32 %v5066_v48, 16 }
  0x8a   : > { %778 = vst [vmem:[#allocation2 + $0xa8] sm:$0xf] %v777_v39  ;;  %v5075_v16 = vcombine.low %v1180_v58, %v1190_v61  ;;  %v1013_v0 = vshrl.u32 %v5066_v48, 16  ;;  %v1019_v6 = vshll.u32 %v5068_v15, 16  ;;  %v594_v28 = vor.u32 %v592_v55, %v591_v46  ;;  %v780_v14 = vld [vmem:[#allocation2 + $0xb0] sm:$0x1] }
  0x8b   : > { %v1006_v62 = vor.u32 %v1005_v47, %v1002_v5  ;;  %v1011_v42 = vrot.slane %v1009_v45, 5  ;;  %v5079_v10 = vld [vmem:[#allocation2 + $0x54] sm:$0xf]  ;;  %v596_v32 = vrot.slane %v591_v46, 4  ;;  %v598_v34 = vshrl.u32 %v4033_v30, 16  ;;  %v201_v39 = vld [vmem:[%s4660_s23 + $0xe8] sm:$0xff] }
  0x8c   : > { %6439 = vst [vmem:[#allocation13_spill] sm:$0xff] %v5075_v16  ;;  %4217 = vmatmul.mubr.msk.bf16.gmra.mxu1 %vm1289_vm8, %v5075_v16  ;;  %v1015_v26 = vrot.slane %v1013_v0, 4  ;;  %v1021_v12 = vrot.slane %v1019_v6, 5  ;;  %v1024_v58 = vshrl.u32 %v5079_v10, 16  ;;  %v1027_v19 = vshll.u32 %v5079_v10, 16 }
  0x8d   : > { %v1007_v61 = vrot.slane %v1006_v62, 4  ;;  %v595_v55 = vsel %vm4680_vm10, %v587_v4, %v594_v28  ;;  %v781_v5 = vsel %vm4693_vm12, %v596_v32, %v780_v14  ;;  %v600_v47 = vrot.slane %v598_v34, 7 }
  0x8e   : > { %v1016_v46 = vor.u32 %v1015_v26, %v1011_v42  ;;  %v5090_v45 = vld [vmem:[#allocation2 + $0x58] sm:$0xf]  ;;  %v1026_v0 = vrot.slane %v1024_v58, 4  ;;  %v1029_v6 = vrot.slane %v1027_v19, 5  ;;  %779 = vst.msk [vmem:[#allocation2 + $0xac] sm:$0xf] %vm220_vm1, %v595_v55  ;;  %v4034_v28 = vpack.c.bf16 %v201_v39, %v201_v39 }
  0x8f   : > { %v5092_v51 = vld [vmem:[#allocation2 + $0x5c] sm:$0x1]  ;;  %782 = vst [vmem:[#allocation2 + $0xb0] sm:$0x1] %v781_v5  ;;  %v1033_v16 = vshll.u32 %v5090_v45, 16  ;;  %v1037_v62 = vshrl.u32 %v5090_v45, 16  ;;  %v1012_v14 = vsel %vm4674_vm9, %v1007_v61, %v1011_v42 }
  0x90   : > { %v1043_v4 = vshll.u32 %v5092_v51, 16  ;;  %v1017_v32 = vrot.slane %v1016_v46, 4  ;;  %v1030_v34 = vor.u32 %v1029_v6, %v1026_v0  ;;  %v601_v57 = vshll.u32 %v4033_v30, 16  ;;  %v783_v5 = vld [vmem:[#allocation2 + $0xb4] sm:$0xf] }
  0x91   : > { %v5100_v26 = vld [vmem:[#allocation2 + $0xa8] sm:$0xf]  ;;  %v1035_v58 = vrot.slane %v1033_v16, 5  ;;  %v1039_v19 = vrot.slane %v1037_v62, 4  ;;  %v606_v46 = vshrl.u32 %v4034_v28, 16  ;;  %v604_v30 = vrot.slane %v600_v47, 4 }
  0x92   : > { %v1045_v41 = vrot.slane %v1043_v4, 5  ;;  %v1192_v55 = vshrl.u32 %v5100_v26, 16  ;;  %v1022_v18 = vsel %vm4674_vm9, %v1017_v32, %v1021_v12  ;;  %v1031_v27 = vrot.slane %v1030_v34, 4  ;;  %v787_v32 = vld [vmem:[#allocation2 + $0xbc] sm:$0x1] }
  0x93   : > { %v1195_v39 = vshll.u32 %v5100_v26, 16  ;;  %v603_v20 = vor.u32 %v601_v57, %v600_v47  ;;  %v5106_v25 = vcombine.low %v1012_v14, %v1022_v18  ;;  %v1040_v42 = vor.u32 %v1039_v19, %v1035_v58 }
  0x94   : > { %v1194_v61 = vrot.slane %v1192_v55, 4  ;;  %v609_v16 = vshll.u32 %v4034_v28, 16  ;;  %v1036_v12 = vsel %vm4674_vm9, %v1031_v27, %v1035_v58  ;;  %v608_v18 = vrot.slane %v606_v46, 7 }
  0x95   : > { %6440 = vst [vmem:[#allocation14_spill] sm:$0xff] %v5106_v25  ;;  %v1197_v0 = vrot.slane %v1195_v39, 5  ;;  %v784_v6 = vsel %vm4687_vm11, %v603_v20, %v783_v5  ;;  %4204 = vmatprep.mubr.msk.bf16.mxu0 %vm1289_vm8, %v5106_v25  ;;  %v1041_v62 = vrot.slane %v1040_v42, 4  ;;  %v5114_v4 = vld [vmem:[#allocation2 + $0xac] sm:$0xf] }
  0x96   : > { %v5116_v57 = vld [vmem:[#allocation2 + $0xb0] sm:$0x1]  ;;  %785 = vst [vmem:[#allocation2 + $0xb4] sm:$0xf] %v784_v6  ;;  %v1201_v47 = vshll.u32 %v5114_v4, 16  ;;  %v1205_v28 = vshrl.u32 %v5114_v4, 16  ;;  %v611_v19 = vor.u32 %v609_v16, %v608_v18 }
  0x97   : > { %6441 = vst [vmem:[#allocation15_spill] sm:$0xff] %v5116_v57  ;;  %v1198_v14 = vor.u32 %v1197_v0, %v1194_v61  ;;  %v1211_v20 = vshll.u32 %v5116_v57, 16  ;;  %v1046_v34 = vsel %vm4674_vm9, %v1041_v62, %v1045_v41  ;;  %v613_v27 = vrot.slane %v608_v18, 4  ;;  %v4520_v42 = vld [vmem:[#allocation2 + $0x14] sm:$0x1] }
  0x98   : > { %v5123_v58 = vcombine.low %v1036_v12, %v1046_v34  ;;  %v1203_v5 = vrot.slane %v1201_v47, 5  ;;  %v1207_v39 = vrot.slane %v1205_v28, 4  ;;  %v1826_v61 = vrot.slane %v4520_v42, 5  ;;  %v5137_v12 = vld [vmem:[#allocation2] sm:$0xf] }
  0x99   : > { %v1199_v55 = vrot.slane %v1198_v14, 4  ;;  %v612_v46 = vsel %vm4680_vm10, %v604_v30, %v611_v19  ;;  %v788_v0 = vsel %vm4693_vm12, %v613_v27, %v787_v32  ;;  %v1213_v16 = vrot.slane %v1211_v20, 5  ;;  %v5140_v62 = vld [vmem:[#allocation2 + $0x4] sm:$0xf]  ;;  %v5145_v47 = vld [vmem:[#allocation2 + $0xc] sm:$0xf] }
  0x9a   : > { %6442 = vst [vmem:[#allocation16_spill] sm:$0xff] %v5123_v58  ;;  %4205 = vmatmul.mubr.msk.bf16.gmra.mxu0 %vm1289_vm8, %v5123_v58  ;;  %v1208_v41 = vor.u32 %v1207_v39, %v1203_v5  ;;  %786 = vst.msk [vmem:[#allocation2 + $0xb8] sm:$0xf] %vm220_vm1, %v612_v46  ;;  %v3841_v30 = vrot.slane %v5137_v12, 9  ;;  %v1816_v18 = vrot.slane %v5140_v62, 5  ;;  %v3842_v28 = vrot.slane %v5145_v47, 9 }
  0x9b   : > { %789 = vst [vmem:[#allocation2 + $0xbc] sm:$0x1] %v788_v0  ;;  %v1204_v14 = vsel %vm4674_vm9, %v1199_v55, %v1203_v5  ;;  %v6445_v20 = vrot.slane %v4734_v38, 5  ;;  %v2459_v34 = vsel %vm1338_vm0, %v4785_v60, 0  ;;  %v3843_v46 = vrot.slane %v4804_v23, 9 }
  0x9c   : > { %v1209_v19 = vrot.slane %v1208_v41, 4  ;;  %v1817_v39 = vsel %vm5133_vm15, %v3841_v30, %v1816_v18  ;;  %v1818_v42 = vrot.slane %v1816_v18, 4  ;;  %v6447_v30 = vrot.slane %v4662_v7, 5 }
  0x9d   : > { %v1825_v32 = vrot.slane %v6445_v20, 4  ;;  %v5152_v27 = vld [vmem:[#allocation2 + $0xb4] sm:$0xf]  ;;  %v6446_v0 = vmov %v6445_v20  ;;  %v1830_v58 = vrot.slane %v4796_v13, 5  ;;  %v3844_v7 = vrot.slane %v4835_v17, 9 }
  0x9e   : > { %v1216_v55 = vshrl.u32 %v5152_v27, 16  ;;  %v1219_v5 = vshll.u32 %v5152_v27, 16  ;;  %v1824_v20 = vsel %vm5133_vm15, %v3842_v28, %v6446_v0  ;;  %v1214_v41 = vsel %vm4674_vm9, %v1209_v19, %v1213_v16  ;;  %v5183_v19 = vld [vmem:[%s6389_s1 + $0xc] sm:$0x3] }
  0x9f   : > { %v1827_v60 = vsel %vm5133_vm15, %v1825_v32, %v1826_v61  ;;  %v1820_v23 = vsel %vm5133_vm15, %v1818_v42, %v6447_v30  ;;  %v5174_v25 = vcombine.low %v1204_v14, %v1214_v41  ;;  %v1831_v61 = vsel %vm5133_vm15, %v3843_v46, %v1830_v58 }
  0xa0   : > { %v5171_v18 = vcombine.low %v1824_v20, %v1827_v60  ;;  %v1218_v38 = vrot.slane %v1216_v55, 4  ;;  %v1221_v57 = vrot.slane %v1219_v5, 5  ;;  %v3858_v28 = vcombine.low %v1817_v39, %v1820_v23 }
  0xa1   : > { %6448 = vst [vmem:[#allocation17_spill] sm:$0xff] %v5174_v25  ;;  %v1832_v32 = vrot.slane %v1830_v58, 4  ;;  %v1833_v16 = vrot.slane %v4808_v35, 5  ;;  %4220 = vmatprep.mubr.msk.bf16.mxu1 %vm1289_vm8, %v5174_v25  ;;  %v5187_v13 = vld [vmem:[#allocation2 + $0xb8] sm:$0xf]  ;;  %v1837_v58 = vrot.slane %v4850_v21, 5 }
  0xa2   : > { %v5189_v14 = vld [vmem:[#allocation2 + $0xbc] sm:$0x1]  ;;  %v1222_v39 = vor.u32 %v1221_v57, %v1218_v38  ;;  %4260 = vmatprep.mubr.msk.bf16.mxu0 %vm1289_vm8, %v3858_v28  ;;  %v1840_v35 = vrot.slane %v4852_v22, 5  ;;  %v1225_v17 = vshll.u32 %v5187_v13, 16  ;;  %v1229_v42 = vshrl.u32 %v5187_v13, 16 }
  0xa3   : > { %v1235_v46 = vshll.u32 %v5189_v14, 16  ;;  %4261 = vmatmul.mubr.msk.bf16.vlgmr.msra.gmra.mxu0 %vm1289_vm8, %v5171_v18  ;;  %v1834_v55 = vsel %vm5133_vm15, %v1832_v32, %v1833_v16  ;;  %v1838_v21 = vsel %vm5133_vm15, %v3844_v7, %v1837_v58  ;;  %v1839_v22 = vrot.slane %v1837_v58, 4 }
  0xa4   : > { %v1223_v5 = vrot.slane %v1222_v39, 4  ;;  %4327 = vmatpush3.bf16.msra.mxu0 %v2459_v34  ;;  %v5201_v57 = vcombine.low %v1831_v61, %v1834_v55  ;;  %v1227_v0 = vrot.slane %v1225_v17, 5  ;;  %v1231_v20 = vrot.slane %v1229_v42, 4 }
  0xa5   : > { %v1237_v60 = vrot.slane %v1235_v46, 5  ;;  %v3845_v41 = vrot.slane %v4921_v36, 9  ;;  %4505 = vmatprep.subr.msk.bf16.mxu0 %vm1338_vm0, %v5183_v19  ;;  %v1841_v34 = vsel %vm5133_vm15, %v1839_v22, %v1840_v35  ;;  %v1844_v30 = vrot.slane %v4935_v50, 5 }
  0xa6   : > { %4264 = vmatprep.mubr.msk.bf16.mxu0 %vm1289_vm8, %v5201_v57  ;;  %v1847_v23 = vrot.slane %v4937_v59, 5  ;;  %v5216_v38 = vcombine.low %v4921_v36, %v4935_v50  ;;  %v1228_v28 = vsel %vm4674_vm9, %v1223_v5, %v1227_v0  ;;  %v1232_v61 = vor.u32 %v1231_v20, %v1227_v0  ;;  %v5259_v20 = vld [vmem:[#allocation2 + $0x64] sm:$0xf] }
  0xa7   : > { %v5220_v32 = vcombine.low %v1838_v21, %v1841_v34  ;;  %v3846_v16 = vrot.slane %v4949_v44, 9  ;;  %v1845_v7 = vsel %vm5133_vm15, %v3845_v41, %v1844_v30  ;;  %v1846_v39 = vrot.slane %v1844_v30, 4 }
  0xa8   : > { %v1851_v58 = vrot.slane %v4957_v33, 5  ;;  %v1854_v59 = vrot.slane %v4959_v56, 5  ;;  %v1233_v35 = vrot.slane %v1232_v61, 4  ;;  %v5229_v36 = vcombine.low %v4949_v44, %v4957_v33  ;;  %v4525_v61 = vld [vmem:[#allocation2 + $0x68] sm:$0x1] }
  0xa9   : > { %v3847_v50 = vrot.slane %v5055_v49, 9  ;;  %v1858_v17 = vrot.slane %v5066_v48, 5  ;;  %v1848_v42 = vsel %vm5133_vm15, %v1846_v39, %v1847_v23  ;;  %v1861_v55 = vrot.slane %v5068_v15, 5 }
  0xaa   : > { %v1853_v46 = vrot.slane %v1851_v58, 4  ;;  %v1238_v5 = vsel %vm4674_vm9, %v1233_v35, %v1237_v60  ;;  %v3809_v56 = vcombine.low %v5137_v12, %v5140_v62  ;;  %v5242_v44 = vcombine.low %v1845_v7, %v1848_v42  ;;  %v5269_v7 = vld [vmem:[#allocation2 + $0x60] sm:$0xf]  ;;  %v4529_v42 = vld [vmem:[#allocation2 + $0x1c] sm:$0xf] }
  0xab   : > { %4265 = vmatmul.mubr.msk.bf16.gmra.mxu0 %vm1289_vm8, %v5220_v32  ;;  %v1860_v33 = vrot.slane %v1858_v17, 4  ;;  %v5244_v21 = vcombine.low %v1228_v28, %v1238_v5  ;;  %v1852_v22 = vsel %vm5133_vm15, %v3846_v16, %v1851_v58  ;;  %v1859_v12 = vsel %vm5133_vm15, %v3847_v50, %v1858_v17  ;;  %v5275_v50 = vld [vmem:[#allocation2 + $0x70] sm:$0xf] }
  0xac   : > { %v1855_v15 = vsel %vm5133_vm15, %v1853_v46, %v1854_v59  ;;  %4268 = vmatprep.mubr.msk.bf16.mxu0 %vm1289_vm8, %v5242_v44  ;;  %v1865_v0 = vrot.slane %v5090_v45, 5  ;;  %v1872_v60 = vrot.slane %v5259_v20, 5  ;;  %v3848_v34 = vrot.slane %v5079_v10, 9  ;;  %v4527_v59 = vld [vmem:[#allocation2 + $0x10] sm:$0xf] }
  0xad   : > { %6449 = vst [vmem:[#allocation18_spill] sm:$0xff] %v5244_v21  ;;  %v1862_v62 = vsel %vm5133_vm15, %v1860_v33, %v1861_v55  ;;  %4221 = vmatmul.mubr.msk.bf16.gmra.mxu1 %vm1289_vm8, %v5244_v21  ;;  %v5263_v41 = vcombine.low %v1852_v22, %v1855_v15  ;;  %v1868_v23 = vrot.slane %v5092_v51, 5  ;;  %v1875_v16 = vrot.slane %v4525_v61, 5  ;;  %v4530_v46 = vld [vmem:[#allocation2 + $0x18] sm:$0xf] }
  0xae   : > { %4226 = vmatprep.mubr.msk.bf16.mxu1 %vm1289_vm8, %v3809_v56  ;;  %v1867_v30 = vrot.slane %v1865_v0, 4  ;;  %v5267_v28 = vcombine.low %v1859_v12, %v1862_v62  ;;  %v3849_v39 = vrot.slane %v5269_v7, 9  ;;  %v1874_v58 = vrot.slane %v1872_v60, 4  ;;  %v5292_v33 = vld [vmem:[#allocation2 + $0x6c] sm:$0xf] }
  0xaf   : > { %v5273_v35 = vcombine.low %v5145_v47, %v4527_v59  ;;  %v1879_v17 = vrot.slane %v5275_v50, 5  ;;  %v5278_v51 = vcombine.low %v4530_v46, %v4529_v42  ;;  %v1866_v55 = vsel %vm5133_vm15, %v3848_v34, %v1865_v0  ;;  %v4531_v47 = vld [vmem:[%s6389_s1 + $0x6] sm:$0x3]  ;;  %v4533_v62 = vld [vmem:[#allocation2 + $0x74] sm:$0x1] }
  0xb0   : > { %v1869_v5 = vsel %vm5133_vm15, %v1867_v30, %v1868_v23  ;;  %v2231_v56 = vsel %vm1338_vm0, %v4531_v47, 0  ;;  %v3850_v22 = vrot.slane %v5292_v33, 9  ;;  %v1873_v15 = vsel %vm5133_vm15, %v3849_v39, %v1872_v60  ;;  %v5303_v30 = vld [vmem:[%s6389_s1 + $0xa] sm:$0x3]  ;;  %v4534_v47 = vld [vmem:[#allocation2 + $0x24] sm:$0xf] }
  0xb1   : > { %v1876_v12 = vsel %vm5133_vm15, %v1874_v58, %v1875_v16  ;;  %v1882_v0 = vrot.slane %v4533_v62, 5  ;;  %v1886_v34 = vrot.slane %v4864_v53, 5  ;;  %v5307_v23 = vcombine.low %v1866_v55, %v1869_v5 }
  0xb2   : > { %v1881_v61 = vrot.slane %v1879_v17, 4  ;;  %v3851_v60 = vrot.slane %v4860_v40, 9  ;;  %v3853_v39 = vrot.slane %v4995_v8, 9  ;;  %v1900_v53 = vrot.slane %v4993_v2, 5 }
  0xb3   : > { %4269 = vmatmul.mubr.msk.bf16.gmra.mxu0 %vm1289_vm8, %v5263_v41  ;;  %v1903_v16 = vrot.slane %v4997_v9, 5  ;;  %v5317_v58 = vcombine.low %v4995_v8, %v4993_v2  ;;  %v3854_v59 = vrot.slane %v5015_v1, 9  ;;  %v5320_v42 = vcombine.low %v1873_v15, %v1876_v12 }
  0xb4   : > { %4272 = vmatprep.mubr.msk.bf16.mxu0 %vm1289_vm8, %v5267_v28  ;;  %v1907_v40 = vrot.slane %v5031_v11, 5  ;;  %v1910_v46 = vrot.slane %v5045_v29, 5  ;;  %v5326_v55 = vcombine.low %v5015_v1, %v5031_v11  ;;  %v1888_v9 = vrot.slane %v1886_v34, 4 }
  0xb5   : > { %4227 = vmatmul.mubr.msk.bf16.vlgmr.msra.gmra.mxu1 %vm1289_vm8, %v5273_v35  ;;  %v1889_v5 = vrot.slane %v4866_v54, 5  ;;  %v1901_v2 = vsel %vm5133_vm15, %v3853_v39, %v1900_v53  ;;  %v1902_v8 = vrot.slane %v1900_v53, 4  ;;  %v1880_v54 = vsel %vm5133_vm15, %v3850_v22, %v1879_v17  ;;  %v202_v22 = vld [vmem:[%s4660_s23 + $0xf0] sm:$0xff] }
  0xb6   : > { %4293 = vmatpush3.bf16.msra.mxu1 %v2231_v56  ;;  %4230 = vmatprep.mubr.msk.bf16.mxu1 %vm1289_vm8, %v5278_v51  ;;  %v4535_v56 = vld [vmem:[#allocation2 + $0x28] sm:$0xf]  ;;  %v1908_v1 = vsel %vm5133_vm15, %v3854_v59, %v1907_v40  ;;  %v1909_v11 = vrot.slane %v1907_v40, 4  ;;  %v5345_v12 = vcombine.low %v5100_v26, %v5114_v4  ;;  %v1883_v62 = vsel %vm5133_vm15, %v1881_v61, %v1882_v0  ;;  %v203_v59 = vld [vmem:[%s4660_s23 + $0xf8] sm:$0xff] }
  0xb7   : > { %4504 = vmatprep.subr.msk.bf16.mxu1 %vm1338_vm0, %v5303_v30  ;;  %v5333_v15 = vcombine.low %v4534_v47, %v4535_v56  ;;  %v1904_v29 = vsel %vm5133_vm15, %v1902_v8, %v1903_v16  ;;  %v1893_v39 = vrot.slane %v4903_v52, 5  ;;  %v1887_v16 = vsel %vm5133_vm15, %v3851_v60, %v1886_v34 }
  0xb8   : > { %v5352_v53 = vcombine.low %v1901_v2, %v1904_v29  ;;  %v1911_v17 = vsel %vm5133_vm15, %v1909_v11, %v1910_v46  ;;  %v1890_v40 = vsel %vm5133_vm15, %v1888_v9, %v1889_v5  ;;  %v5368_v52 = vcombine.low %v5152_v27, %v5187_v13 }
  0xb9   : > { %v5362_v8 = vcombine.low %v1908_v1, %v1911_v17  ;;  %v5372_v0 = vcombine.low %v1880_v54, %v1883_v62  ;;  %v4035_v61 = vpack.c.bf16 %v202_v22, %v202_v22  ;;  %v4036_v46 = vpack.c.bf16 %v203_v59, %v203_v59  ;;  %v790_v17 = vld [vmem:[#allocation2 + $0xc0] sm:$0xf]  ;;  %v794_v22 = vld [vmem:[#allocation2 + $0xc8] sm:$0x1] }
  0xba   : > { %v5374_v34 = vcombine.low %v1887_v16, %v1890_v40  ;;  %v3852_v60 = vrot.slane %v4889_v3, 9  ;;  %v1895_v9 = vrot.slane %v1893_v39, 4  ;;  %v1896_v5 = vrot.slane %v4914_v63, 5 }
  0xbb   : > { %4273 = vmatmul.mubr.msk.bf16.gmra.mxu0 %vm1289_vm8, %v5307_v23  ;;  %v615_v2 = vshrl.u32 %v4035_v61, 16  ;;  %v618_v47 = vshll.u32 %v4035_v61, 16  ;;  %v623_v56 = vshrl.u32 %v4036_v46, 16  ;;  %v626_v1 = vshll.u32 %v4036_v46, 16 }
  0xbc   : > { %4276 = vmatprep.mubr.msk.bf16.mxu0 %vm1289_vm8, %v5320_v42  ;;  %v5380_v11 = vcombine.low %v5055_v49, %v5066_v48  ;;  %v1894_v3 = vsel %vm5133_vm15, %v3852_v60, %v1893_v39  ;;  %v1897_v63 = vsel %vm5133_vm15, %v1895_v9, %v1896_v5  ;;  %v1914_v62 = vrot.slane %v5114_v4, 5  ;;  %v6450_v9 = vld [vmem:[#allocation15_spill] sm:$0xff] }
  0xbd   : > { %4231 = vmatmul.mubr.msk.bf16.gmra.mxu1 %vm1289_vm8, %v5333_v15  ;;  %v617_v54 = vrot.slane %v615_v2, 7  ;;  %v625_v29 = vrot.slane %v623_v56, 7  ;;  %v5395_v40 = vcombine.low %v1894_v3, %v1897_v63  ;;  %v3855_v46 = vrot.slane %v5100_v26, 9  ;;  %v4537_v56 = vld [vmem:[#allocation2 + $0x7c] sm:$0xf] }
  0xbe   : > { %4234 = vmatprep.mubr.msk.bf16.mxu1 %vm1289_vm8, %v5216_v38  ;;  %v1916_v60 = vrot.slane %v1914_v62, 4  ;;  %v1917_v5 = vrot.slane %v6450_v9, 5  ;;  %v5408_v2 = vcombine.low %v5079_v10, %v5090_v45  ;;  %v5412_v31 = vcombine.low %v5269_v7, %v5259_v20  ;;  %v6451_v3 = vld [vmem:[#allocation3_spill] sm:$0xff] }
  0xbf   : > { %v620_v49 = vor.u32 %v618_v47, %v617_v54  ;;  %v621_v48 = vrot.slane %v617_v54, 4  ;;  %v628_v59 = vor.u32 %v626_v1, %v625_v29  ;;  %v630_v16 = vrot.slane %v625_v29, 4  ;;  %v4536_v47 = vld [vmem:[#allocation2 + $0x78] sm:$0xf]  ;;  %v4539_v54 = vld [vmem:[#allocation2 + $0x88] sm:$0xf] }
  0xc0   : > { %v1921_v37 = vrot.slane %v5187_v13, 5  ;;  %v1915_v43 = vsel %vm5133_vm15, %v3855_v46, %v1914_v62  ;;  %v1918_v26 = vsel %vm5133_vm15, %v1916_v60, %v1917_v5  ;;  %v3856_v45 = vrot.slane %v5152_v27, 9  ;;  %v5466_v62 = vld [vmem:[%s6389_s1 + $0x10] sm:$0x3]  ;;  %v6455_v60 = vld [vmem:[#allocation11_spill] sm:$0xff] }
  0xc1   : > { %v629_v39 = vsel %vm4680_vm10, %v621_v48, %v628_v59  ;;  %v791_v4 = vsel %vm4687_vm11, %v620_v49, %v790_v17  ;;  %v795_v61 = vsel %vm4693_vm12, %v630_v16, %v794_v22  ;;  %v5427_v10 = vcombine.low %v1915_v43, %v1918_v26  ;;  %v6452_v17 = vld [vmem:[#allocation6_spill] sm:$0xff]  ;;  %v6453_v22 = vld [vmem:[#allocation7_spill] sm:$0xff]  ;;  %v6457_v26 = vld [vmem:[#allocation16_spill] sm:$0xff] }
  0xc2   : > { %792 = vst [vmem:[#allocation2 + $0xc0] sm:$0xf] %v791_v4  ;;  %793 = vst.msk [vmem:[#allocation2 + $0xc4] sm:$0xf] %vm220_vm1, %v629_v39  ;;  %v1923_v20 = vrot.slane %v1921_v37, 4  ;;  %v1924_v7 = vrot.slane %v5189_v14, 5  ;;  %v5433_v13 = vcombine.low %v5292_v33, %v5275_v50  ;;  %v5435_v1 = vcombine.low %v4536_v47, %v4537_v56 }
  0xc3   : > { %4277 = vmatmul.mubr.msk.bf16.gmra.mxu0 %vm1289_vm8, %v5372_v0  ;;  %796 = vst [vmem:[#allocation2 + $0xc8] sm:$0x1] %v795_v61  ;;  %v1922_v27 = vsel %vm5133_vm15, %v3856_v45, %v1921_v37  ;;  %v4538_v33 = vld [vmem:[#allocation2 + $0x84] sm:$0xf]  ;;  %v2877_v63 = vsel %vm1338_vm0, %v5183_v19, 0  ;;  %v6454_v4 = vld [vmem:[#allocation10_spill] sm:$0xff] }
  0xc4   : > { %4280 = vmatprep.mubr.msk.bf16.mxu0 %vm1289_vm8, %v5374_v34  ;;  %v1925_v14 = vsel %vm5133_vm15, %v1923_v20, %v1924_v7  ;;  %v5451_v29 = vcombine.low %v4538_v33, %v4539_v54  ;;  %v6456_v37 = vld [vmem:[#allocation14_spill] sm:$0xff]  ;;  %v2671_v43 = vsel %vm1338_vm0, %v5303_v30, 0  ;;  %v5507_v45 = vld [vmem:[%s6389_s1 + $0xe] sm:$0x3]  ;;  %v6460_v20 = vld [vmem:[#allocation8_spill] sm:$0xff] }
  0xc5   : > { %4235 = vmatmul.mubr.msk.bf16.gmra.mxu1 %vm1289_vm8, %v5229_v36  ;;  %v5449_v50 = vcombine.low %v1922_v27, %v1925_v14  ;;  %v6459_v30 = vld [vmem:[#allocation5_spill] sm:$0xff]  ;;  %v3105_v24 = vsel %vm1338_vm0, %v5507_v45, 0 }
  0xc6   : > { %4238 = vmatprep.mubr.msk.bf16.mxu1 %vm1289_vm8, %v5380_v11  ;;  %v6461_v7 = vld [vmem:[#allocation9_spill] sm:$0xff] }
  0xc9   : > { %v5476_v49 = vld [vmem:[#allocation2 + $0xc4] sm:$0xf]  ;;  %v5481_v48 = vld [vmem:[#allocation2 + $0xc0] sm:$0xf] }
  0xca   : > { %v2657_v19 = vrot.slane %v5476_v49, 5  ;;  %v3926_v59 = vrot.slane %v5481_v48, 9  ;;  %v847_v16 = vld [vmem:[#allocation2 + $0xc8] sm:$0x1]  ;;  %v2427_v47 = vshrl.u32 %v5481_v48, 16  ;;  %v2430_v56 = vshll.u32 %v5481_v48, 16 }
  0xcb   : > { %4281 = vmatmul.mubr.msk.bf16.gmra.mxu0 %vm1289_vm8, %v5395_v40  ;;  %v2660_v46 = vrot.slane %v847_v16, 5  ;;  %v2436_v27 = vshll.u32 %v5476_v49, 16  ;;  %v2440_v14 = vshrl.u32 %v5476_v49, 16 }
  0xcc   : > { %4284 = vmatprep.mubr.msk.bf16.mxu0 %vm1289_vm8, %v5352_v53  ;;  %v2659_v39 = vrot.slane %v2657_v19, 4  ;;  %v2658_v61 = vsel %vm5133_vm15, %v3926_v59, %v2657_v19  ;;  %v2429_v33 = vrot.slane %v2427_v47, 4  ;;  %v2432_v54 = vrot.slane %v2430_v56, 5  ;;  %v6462_v19 = vld [vmem:[#allocation12_spill] sm:$0xff]  ;;  %v6463_v59 = vld [vmem:[#allocation13_spill] sm:$0xff] }
  0xcd   : > { %4239 = vmatmul.mubr.msk.bf16.gmra.mxu1 %vm1289_vm8, %v5408_v2 }
  0xce   : > { %4242 = vmatprep.mubr.msk.bf16.mxu1 %vm1289_vm8, %v5412_v31  ;;  %v2661_v9 = vsel %vm5133_vm15, %v2659_v39, %v2660_v46  ;;  %v2433_v39 = vor.u32 %v2432_v54, %v2429_v33  ;;  %v2446_v46 = vshll.u32 %v847_v16, 16  ;;  %v5565_v33 = vld [vmem:[#allocation2 + $0xd0] sm:$0xf] }
  0xcf   : > { %v5494_v5 = vcombine.low %v2658_v61, %v2661_v9 }
  0xd0   : > { %v2434_v9 = vrot.slane %v2433_v39, 4  ;;  %v2448_v47 = vrot.slane %v2446_v46, 5  ;;  %v3086_v39 = vshrl.u32 %v5565_v33, 16 }
  0xd3   : > { %4285 = vmatmul.mubr.msk.bf16.gmra.mxu0 %vm1289_vm8, %v5362_v8 }
  0xd4   : > { %4288 = vmatprep.mubr.msk.bf16.mxu0 %vm1289_vm8, %v5427_v10 }
  0xd5   : > { %4243 = vmatmul.mubr.msk.bf16.gmra.mxu1 %vm1289_vm8, %v5433_v13 }
  0xd6   : > { %4246 = vmatprep.mubr.msk.bf16.mxu1 %vm1289_vm8, %v5435_v1 }
  0xdb   : > { %4289 = vmatmul.mubr.msk.bf16.gmra.mxu0 %vm1289_vm8, %v5449_v50 }
  0xdc   : > { %4328 = vmatprep.mubr.msk.bf16.mxu0 %vm1289_vm8, %v6451_v3  ;;  %v2438_v3 = vrot.slane %v2436_v27, 5 }
  0xdd   : > { %4247 = vmatmul.mubr.msk.bf16.gmra.mxu1 %vm1289_vm8, %v5451_v29 }
  0xde   : > { %4250 = vmatprep.mubr.msk.bf16.mxu1 %vm1289_vm8, %v5317_v58  ;;  %v2439_v56 = vsel %vm4674_vm9, %v2434_v9, %v2438_v3 }
  0xe3   : > { %4329 = vmatmul.mubr.msk.bf16.vlgmr.msra.gmra.mxu0 %vm1289_vm8, %v6452_v17 }
  0xe4   : > { %4395 = vmatpush3.bf16.msra.mxu0 %v2877_v63  ;;  %4332 = vmatprep.mubr.msk.bf16.mxu0 %vm1289_vm8, %v6453_v22  ;;  %v2442_v63 = vrot.slane %v2440_v14, 4  ;;  %v5563_v14 = vld [vmem:[#allocation2 + $0xcc] sm:$0xf] }
  0xe5   : > { %4507 = vmatprep.subr.msk.bf16.mxu0 %vm1338_vm0, %v5466_v62  ;;  %4251 = vmatmul.mubr.msk.bf16.gmra.mxu1 %vm1289_vm8, %v5326_v55  ;;  %v3073_v54 = vshrl.u32 %v5563_v14, 16 }
  0xe6   : > { %4254 = vmatprep.mubr.msk.bf16.mxu1 %vm1289_vm8, %v5345_v12  ;;  %v2443_v61 = vor.u32 %v2442_v63, %v2438_v3  ;;  %v3076_v3 = vshll.u32 %v5563_v14, 16  ;;  %v3082_v63 = vshll.u32 %v5565_v33, 16 }
  0xe8   : > { %v3078_v46 = vrot.slane %v3076_v3, 5  ;;  %v3084_v9 = vrot.slane %v3082_v63, 5  ;;  %v3891_v63 = vcombine.low %v5481_v48, %v5476_v49 }
  0xeb   : > { %4333 = vmatmul.mubr.msk.bf16.gmra.mxu0 %vm1289_vm8, %v6454_v4 }
  0xec   : > { %4336 = vmatprep.mubr.msk.bf16.mxu0 %vm1289_vm8, %v6455_v60 }
  0xed   : > { %4255 = vmatmul.mubr.msk.bf16.gmra.mxu1 %vm1289_vm8, %v5368_v52 }
  0xee   : > { %4294 = vmatprep.mubr.msk.bf16.mxu1 %vm1289_vm8, %v5273_v35  ;;  %v6458_v35 = vld [vmem:[#allocation4_spill] sm:$0xff] }
  0xf3   : > { %4337 = vmatmul.mubr.msk.bf16.gmra.mxu0 %vm1289_vm8, %v6456_v37 }
  0xf4   : > { %4340 = vmatprep.mubr.msk.bf16.mxu0 %vm1289_vm8, %v6457_v26 }
  0xf5   : > { %4295 = vmatmul.mubr.msk.bf16.vlgmr.msra.gmra.mxu1 %vm1289_vm8, %v5278_v51 }
  0xf6   : > { %4361 = vmatpush3.bf16.msra.mxu1 %v2671_v43  ;;  %4298 = vmatprep.mubr.msk.bf16.mxu1 %vm1289_vm8, %v5333_v15  ;;  %v2444_v43 = vrot.slane %v2443_v61, 4  ;;  %v3075_v61 = vrot.slane %v3073_v54, 4 }
  0xf7   : > { %4506 = vmatprep.subr.msk.bf16.mxu1 %vm1338_vm0, %v5507_v45 }
  0xf8   : > { %v2449_v16 = vsel %vm4674_vm9, %v2444_v43, %v2448_v47  ;;  %v3088_v43 = vrot.slane %v3086_v39, 4  ;;  %v5581_v47 = vld [vmem:[#allocation2 + $0xd4] sm:$0x1] }
  0xf9   : > { %v5555_v27 = vcombine.low %v2439_v56, %v2449_v16 }
  0xfa   : > { %v3089_v56 = vor.u32 %v3088_v43, %v3084_v9 }
  0xfb   : > { %4341 = vmatmul.mubr.msk.bf16.gmra.mxu0 %vm1289_vm8, %v6458_v35  ;;  %6464 = vst [vmem:[#allocation15_spill] sm:$0xff] %v5555_v27 }
  0xfc   : > { %4344 = vmatprep.mubr.msk.bf16.mxu0 %vm1289_vm8, %v6459_v30  ;;  %v3090_v54 = vrot.slane %v3089_v56, 4  ;;  %v3946_v56 = vcombine.low %v5563_v14, %v5565_v33 }
  0xfd   : > { %4299 = vmatmul.mubr.msk.bf16.gmra.mxu1 %vm1289_vm8, %v5216_v38 }
  0xfe   : > { %4302 = vmatprep.mubr.msk.bf16.mxu1 %vm1289_vm8, %v5229_v36 }
 0x103   : > { %4345 = vmatmul.mubr.msk.bf16.gmra.mxu0 %vm1289_vm8, %v6460_v20 }
 0x104   : > { %4348 = vmatprep.mubr.msk.bf16.mxu0 %vm1289_vm8, %v6461_v7 }
 0x105   : > { %4303 = vmatmul.mubr.msk.bf16.gmra.mxu1 %vm1289_vm8, %v5380_v11 }
 0x106   : > { %4306 = vmatprep.mubr.msk.bf16.mxu1 %vm1289_vm8, %v5408_v2 }
 0x10b   : > { %4349 = vmatmul.mubr.msk.bf16.gmra.mxu0 %vm1289_vm8, %v6462_v19 }
 0x10c   : > { %4352 = vmatprep.mubr.msk.bf16.mxu0 %vm1289_vm8, %v6463_v59 }
 0x10d   : > { %4307 = vmatmul.mubr.msk.bf16.gmra.mxu1 %vm1289_vm8, %v5412_v31 }
 0x10e   : > { %4310 = vmatprep.mubr.msk.bf16.mxu1 %vm1289_vm8, %v5433_v13 }
 0x113   : > { %4353 = vmatmul.mubr.msk.bf16.gmra.mxu0 %vm1289_vm8, %v5174_v25 }
 0x114   : > { %4356 = vmatprep.mubr.msk.bf16.mxu0 %vm1289_vm8, %v5244_v21 }
 0x115   : > { %4311 = vmatmul.mubr.msk.bf16.gmra.mxu1 %vm1289_vm8, %v5435_v1 }
 0x116   : > { %4314 = vmatprep.mubr.msk.bf16.mxu1 %vm1289_vm8, %v5451_v29 }
 0x11b   : > { %4357 = vmatmul.mubr.msk.bf16.gmra.mxu0 %vm1289_vm8, %v5555_v27 }
 0x11c   : > { %4396 = vmatprep.mubr.msk.bf16.mxu0 %vm1289_vm8, %v5278_v51  ;;  %v3317_v51 = vsel %vm1338_vm0, %v5466_v62, 0  ;;  %v3079_v62 = vor.u32 %v3078_v46, %v3075_v61  ;;  %vm3647_vm0 = vcmask 523264  }
 0x11d   : > { %4315 = vmatmul.mubr.msk.bf16.gmra.mxu1 %vm1289_vm8, %v5317_v58 }
 0x11e   : > { %4318 = vmatprep.mubr.msk.bf16.mxu1 %vm1289_vm8, %v5326_v55  ;;  %v3080_v16 = vrot.slane %v3079_v62, 4 }
 0x120   : > { %v3085_v39 = vsel %vm4674_vm9, %v3080_v16, %v3084_v9 }
 0x123   : > { %4397 = vmatmul.mubr.msk.bf16.vlgmr.msra.gmra.mxu0 %vm1289_vm8, %v5333_v15  ;;  %v3092_v15 = vshll.u32 %v5581_v47, 16 }
 0x124   : > { %4463 = vmatpush3.bf16.msra.mxu0 %v3317_v51  ;;  %4400 = vmatprep.mubr.msk.bf16.mxu0 %vm1289_vm8, %v5216_v38  ;;  %v5590_v38 = vpop.f32.mrf.mxu0 }
 0x125   : > { %4319 = vmatmul.mubr.msk.bf16.gmra.mxu1 %vm1289_vm8, %v5345_v12  ;;  %v3094_v3 = vrot.slane %v3092_v15, 5 }
 0x126   : > { %4322 = vmatprep.mubr.msk.bf16.mxu1 %vm1289_vm8, %v5368_v52  ;;  %v5603_v49 = vpop.f32.mrf.mxu0 }
 0x127   : > { %v3095_v51 = vsel %vm4674_vm9, %v3090_v54, %v3094_v3 }
 0x128   : > { %v5598_v61 = vcombine.low %v3085_v39, %v3095_v51 }
 0x12a   : > { %6465 = vst [vmem:[#allocation3_spill] sm:$0xff] %v5598_v61 }
 0x12b   : > { %4401 = vmatmul.mubr.msk.bf16.gmra.mxu0 %vm1289_vm8, %v5229_v36  ;;  %v5607_v36 = vpop.f32.mrf.mxu0 }
 0x12c   : > { %4404 = vmatprep.mubr.msk.bf16.mxu0 %vm1289_vm8, %v5380_v11 }
 0x12d   : > { %4323 = vmatmul.mubr.msk.bf16.gmra.mxu1 %vm1289_vm8, %v3891_v63 }
 0x12e   : > { %4362 = vmatprep.mubr.msk.bf16.mxu1 %vm1289_vm8, %v5171_v18  ;;  %v5617_v18 = vpop.f32.mrf.mxu0 }
 0x130   : > { %v5621_v11 = vpop.f32.mrf.mxu0 }
 0x133   : > { %4405 = vmatmul.mubr.msk.bf16.gmra.mxu0 %vm1289_vm8, %v5408_v2  ;;  %v5627_v2 = vpop.f32.mrf.mxu1 }
 0x134   : > { %4408 = vmatprep.mubr.msk.bf16.mxu0 %vm1289_vm8, %v5412_v31  ;;  %v5631_v31 = vpop.f32.mrf.mxu0 }
 0x135   : > { %4363 = vmatmul.mubr.msk.bf16.vlgmr.msra.gmra.mxu1 %vm1289_vm8, %v5201_v57  ;;  %v5633_v48 = vpop.f32.mrf.mxu1 }
 0x136   : > { %4429 = vmatpush3.bf16.msra.mxu1 %v3105_v24  ;;  %4366 = vmatprep.mubr.msk.bf16.mxu1 %vm1289_vm8, %v5220_v32 }
 0x13b   : > { %4409 = vmatmul.mubr.msk.bf16.gmra.mxu0 %vm1289_vm8, %v5433_v13  ;;  %v5637_v13 = vpop.f32.mrf.mxu0 }
 0x13c   : > { %4412 = vmatprep.mubr.msk.bf16.mxu0 %vm1289_vm8, %v5435_v1  ;;  %v5643_v1 = vpop.f32.mrf.mxu1 }
 0x13d   : > { %4367 = vmatmul.mubr.msk.bf16.gmra.mxu1 %vm1289_vm8, %v5242_v44  ;;  %v5647_v45 = vpop.f32.mrf.mxu0 }
 0x13e   : > { %4370 = vmatprep.mubr.msk.bf16.mxu1 %vm1289_vm8, %v5263_v41  ;;  %v5649_v46 = vpop.f32.mrf.mxu1 }
 0x143   : > { %4413 = vmatmul.mubr.msk.bf16.gmra.mxu0 %vm1289_vm8, %v5451_v29  ;;  %v5653_v29 = vpop.f32.mrf.mxu0 }
 0x144   : > { %4416 = vmatprep.mubr.msk.bf16.mxu0 %vm1289_vm8, %v5317_v58  ;;  %v5659_v58 = vpop.f32.mrf.mxu1 }
 0x145   : > { %4371 = vmatmul.mubr.msk.bf16.gmra.mxu1 %vm1289_vm8, %v5267_v28  ;;  %v5663_v9 = vpop.f32.mrf.mxu0 }
 0x146   : > { %4374 = vmatprep.mubr.msk.bf16.mxu1 %vm1289_vm8, %v5307_v23  ;;  %v5665_v43 = vpop.f32.mrf.mxu1 }
 0x147   : > { %6466 = vst [vmem:[#allocation6_spill] sm:$0xff] %v5665_v43 }
 0x14b   : > { %4417 = vmatmul.mubr.msk.bf16.gmra.mxu0 %vm1289_vm8, %v5326_v55  ;;  %v5669_v55 = vpop.f32.mrf.mxu0 }
 0x14c   : > { %4420 = vmatprep.mubr.msk.bf16.mxu0 %vm1289_vm8, %v5345_v12  ;;  %v5674_v12 = vpop.f32.mrf.mxu1 }
 0x14d   : > { %4375 = vmatmul.mubr.msk.bf16.gmra.mxu1 %vm1289_vm8, %v5320_v42  ;;  %6467 = vst [vmem:[#allocation7_spill] sm:$0xff] %v5674_v12  ;;  %v5678_v62 = vpop.f32.mrf.mxu0 }
 0x14e   : > { %4378 = vmatprep.mubr.msk.bf16.mxu1 %vm1289_vm8, %v5372_v0  ;;  %v5682_v15 = vpop.f32.mrf.mxu1 }
 0x14f   : > { %6468 = vst [vmem:[#allocation10_spill] sm:$0xff] %v5682_v15 }
 0x150   : > { %v5693_v54 = vpop.f32.mrf.mxu1 }
 0x151   : > { %6469 = vst [vmem:[#allocation11_spill] sm:$0xff] %v5693_v54 }
 0x152   : > { %v5701_v39 = vpop.f32.mrf.mxu1 }
 0x153   : > { %4421 = vmatmul.mubr.msk.bf16.gmra.mxu0 %vm1289_vm8, %v5368_v52  ;;  %6470 = vst [vmem:[#allocation14_spill] sm:$0xff] %v5701_v39 }
 0x154   : > { %4424 = vmatprep.mubr.msk.bf16.mxu0 %vm1289_vm8, %v3891_v63  ;;  %v5709_v24 = vpop.f32.mrf.mxu1 }
 0x155   : > { %4379 = vmatmul.mubr.msk.bf16.gmra.mxu1 %vm1289_vm8, %v5374_v34  ;;  %6471 = vst [vmem:[#allocation16_spill] sm:$0xff] %v5709_v24 }
 0x156   : > { %4382 = vmatprep.mubr.msk.bf16.mxu1 %vm1289_vm8, %v5395_v40  ;;  %v5713_v27 = vpop.f32.mrf.mxu1 }
 0x157   : > { %6472 = vst [vmem:[#allocation4_spill] sm:$0xff] %v5713_v27 }
 0x15a   : > { %v5684_v52 = vpop.f32.mrf.mxu0 }
 0x15b   : > { %4425 = vmatmul.mubr.msk.bf16.gmra.mxu0 %vm1289_vm8, %v3946_v56 }
 0x15c   : > { %4464 = vmatprep.mubr.msk.bf16.mxu0 %vm1289_vm8, %v5201_v57  ;;  %v5689_v16 = vpop.f32.mrf.mxu0 }
 0x15d   : > { %4383 = vmatmul.mubr.msk.bf16.gmra.mxu1 %vm1289_vm8, %v5352_v53 }
 0x15e   : > { %4386 = vmatprep.mubr.msk.bf16.mxu1 %vm1289_vm8, %v5362_v8  ;;  %v5697_v3 = vpop.f32.mrf.mxu0 }
 0x160   : > { %v5699_v63 = vpop.f32.mrf.mxu0 }
 0x163   : > { %v4262_v51 = vpop.f32.mrf.mxu0  ;;  %4465 = vmatmul.mubr.msk.bf16.vlgmr.msra.gmra.mxu0 %vm1289_vm8, %v5220_v32 }
 0x164   : > { %4468 = vmatprep.mubr.msk.bf16.mxu0 %vm1289_vm8, %v5242_v44 }
 0x165   : > { %v2061_v57 = vpop.f32.mrf.mxu0  ;;  %4387 = vmatmul.mubr.msk.bf16.gmra.mxu1 %vm1289_vm8, %v5427_v10 }
 0x166   : > { %4390 = vmatprep.mubr.msk.bf16.mxu1 %vm1289_vm8, %v5449_v50 }
 0x167   : > { %v4263_v56 = vpop.f32.mrf.mxu0 }
 0x169   : > { %v2064_v61 = vpop.f32.mrf.mxu0 }
 0x16b   : > { %v4266_v39 = vpop.f32.mrf.mxu0  ;;  %4469 = vmatmul.mubr.msk.bf16.gmra.mxu0 %vm1289_vm8, %v5263_v41 }
 0x16c   : > { %4472 = vmatprep.mubr.msk.bf16.mxu0 %vm1289_vm8, %v5267_v28 }
 0x16d   : > { %v2077_v32 = vpop.f32.mrf.mxu0  ;;  %v5719_v44 = vpop.f32.mrf.mxu1  ;;  %4391 = vmatmul.mubr.msk.bf16.gmra.mxu1 %vm1289_vm8, %v5494_v5 }
 0x16e   : > { %6473 = vst [vmem:[#allocation5_spill] sm:$0xff] %v5719_v44  ;;  %4430 = vmatprep.mubr.msk.bf16.mxu1 %vm1289_vm8, %v6452_v17 }
 0x16f   : > { %v4267_v24 = vpop.f32.mrf.mxu0  ;;  %v5725_v54 = vpop.f32.mrf.mxu1 }
 0x170   : > { %6474 = vst [vmem:[#allocation8_spill] sm:$0xff] %v5725_v54 }
 0x171   : > { %v2080_v27 = vpop.f32.mrf.mxu0  ;;  %v5727_v21 = vpop.f32.mrf.mxu1 }
 0x172   : > { %6475 = vst [vmem:[#allocation9_spill] sm:$0xff] %v5727_v21 }
 0x173   : > { %v4270_v15 = vpop.f32.mrf.mxu0  ;;  %4473 = vmatmul.mubr.msk.bf16.gmra.mxu0 %vm1289_vm8, %v5307_v23  ;;  %v5731_v41 = vpop.f32.mrf.mxu1 }
 0x174   : > { %6476 = vst [vmem:[#allocation12_spill] sm:$0xff] %v5731_v41  ;;  %4476 = vmatprep.mubr.msk.bf16.mxu0 %vm1289_vm8, %v5320_v42 }
 0x175   : > { %v2093_v28 = vpop.f32.mrf.mxu0  ;;  %v4228_v44 = vpop.f32.mrf.mxu1  ;;  %4431 = vmatmul.mubr.msk.bf16.vlgmr.msra.gmra.mxu1 %vm1289_vm8, %v6453_v22 }
 0x176   : > { %v1677_v17 = vadd.f32 %v4228_v44, %v5590_v38  ;;  %4434 = vmatprep.mubr.msk.bf16.mxu1 %vm1289_vm8, %v6454_v4 }
 0x177   : > { %v4271_v21 = vpop.f32.mrf.mxu0  ;;  %v1668_v54 = vpop.f32.mrf.mxu1 }
 0x178   : > { %v1669_v12 = vadd.f32 %v1668_v54, %v5603_v49  ;;  %v5741_v43 = vadd.f32 %v4262_v51, %v1677_v17 }
 0x179   : > { %v2096_v23 = vpop.f32.mrf.mxu0  ;;  %v4229_v41 = vpop.f32.mrf.mxu1 }
 0x17a   : > { %v1680_v42 = vadd.f32 %v4229_v41, %v5607_v36  ;;  %v5746_v22 = vadd.f32 %v2061_v57, %v1669_v12 }
 0x17b   : > { %v4274_v25 = vpop.f32.mrf.mxu0  ;;  %4477 = vmatmul.mubr.msk.bf16.gmra.mxu0 %vm1289_vm8, %v5372_v0  ;;  %v1671_v38 = vpop.f32.mrf.mxu1 }
 0x17c   : > { %4480 = vmatprep.mubr.msk.bf16.mxu0 %vm1289_vm8, %v5374_v34  ;;  %v1672_v4 = vadd.f32 %v1671_v38, %v5617_v18  ;;  %v5751_v49 = vadd.f32 %v4263_v56, %v1680_v42 }
 0x17d   : > { %v2109_v44 = vpop.f32.mrf.mxu0  ;;  %v4232_v54 = vpop.f32.mrf.mxu1  ;;  %4435 = vmatmul.mubr.msk.bf16.gmra.mxu1 %vm1289_vm8, %v6455_v60 }
 0x17e   : > { %v1693_v36 = vadd.f32 %v4232_v54, %v5621_v11  ;;  %4438 = vmatprep.mubr.msk.bf16.mxu1 %vm1289_vm8, %v6456_v37  ;;  %v5758_v12 = vadd.f32 %v2064_v61, %v1672_v4 }
 0x17f   : > { %v4275_v0 = vpop.f32.mrf.mxu0  ;;  %v1684_v51 = vpop.f32.mrf.mxu1 }
 0x180   : > { %v1685_v34 = vadd.f32 %v1684_v51, %v5631_v31  ;;  %v5763_v18 = vadd.f32 %v4266_v39, %v1693_v36 }
 0x181   : > { %v5761_v57 = vpop.f32.mrf.mxu0  ;;  %v4233_v56 = vpop.f32.mrf.mxu1 }
 0x182   : > { %v1696_v41 = vadd.f32 %v4233_v56, %v5637_v13  ;;  %v5770_v60 = vadd.f32 %v2077_v32, %v1685_v34 }
 0x183   : > { %v5766_v17 = vpop.f32.mrf.mxu0  ;;  %4481 = vmatmul.mubr.msk.bf16.gmra.mxu0 %vm1289_vm8, %v5395_v40  ;;  %v1687_v37 = vpop.f32.mrf.mxu1 }
 0x184   : > { %4484 = vmatprep.mubr.msk.bf16.mxu0 %vm1289_vm8, %v5352_v53  ;;  %v1688_v61 = vadd.f32 %v1687_v37, %v5647_v45  ;;  %v5777_v31 = vadd.f32 %v4267_v24, %v1696_v41 }
 0x185   : > { %v5775_v11 = vpop.f32.mrf.mxu0  ;;  %v4236_v39 = vpop.f32.mrf.mxu1  ;;  %4439 = vmatmul.mubr.msk.bf16.gmra.mxu1 %vm1289_vm8, %v6457_v26 }
 0x186   : > { %v1709_v13 = vadd.f32 %v4236_v39, %v5653_v29  ;;  %4442 = vmatprep.mubr.msk.bf16.mxu1 %vm1289_vm8, %v6458_v35  ;;  %v5784_v32 = vadd.f32 %v2080_v27, %v1688_v61  ;;  %v3303_v35 = vrot.slane %v5565_v33, 5 }
 0x187   : > { %v4279_v40 = vpop.f32.mrf.mxu0  ;;  %v1700_v42 = vpop.f32.mrf.mxu1 }
 0x188   : > { %v1701_v53 = vadd.f32 %v1700_v42, %v5663_v9  ;;  %v5789_v38 = vadd.f32 %v4270_v15, %v1709_v13  ;;  %v3305_v51 = vrot.slane %v3303_v35, 4 }
 0x189   : > { %v5787_v45 = vpop.f32.mrf.mxu0  ;;  %v4237_v24 = vpop.f32.mrf.mxu1 }
 0x18a   : > { %v1712_v4 = vadd.f32 %v4237_v24, %v5669_v55  ;;  %v5796_v26 = vadd.f32 %v2093_v28, %v1701_v53  ;;  %v3981_v28 = vrot.slane %v5563_v14, 9 }
 0x18b   : > { %v5792_v54 = vpop.f32.mrf.mxu0  ;;  %4485 = vmatmul.mubr.msk.bf16.gmra.mxu0 %vm1289_vm8, %v5362_v8  ;;  %v1703_v27 = vpop.f32.mrf.mxu1 }
 0x18c   : > { %4488 = vmatprep.mubr.msk.bf16.mxu0 %vm1289_vm8, %v5427_v10  ;;  %v1704_v29 = vadd.f32 %v1703_v27, %v5678_v62  ;;  %v5802_v15 = vadd.f32 %v4271_v21, %v1712_v4  ;;  %v3306_v62 = vrot.slane %v5581_v47, 5  ;;  %v3304_v14 = vsel %vm5133_vm15, %v3981_v28, %v3303_v35  ;;  %v6477_v4 = vld [vmem:[#allocation17_spill] sm:$0xff]  ;;  %v6478_v27 = vld [vmem:[#allocation6_spill] sm:$0xff] }
 0x18d   : > { %v2141_v9 = vpop.f32.mrf.mxu0  ;;  %v4240_v36 = vpop.f32.mrf.mxu1  ;;  %4443 = vmatmul.mubr.msk.bf16.gmra.mxu1 %vm1289_vm8, %v6459_v30 }
 0x18e   : > { %v1725_v55 = vadd.f32 %v4240_v36, %v5684_v52  ;;  %4446 = vmatprep.mubr.msk.bf16.mxu1 %vm1289_vm8, %v6460_v20  ;;  %v5809_v33 = vadd.f32 %v2096_v23, %v1704_v29 }
 0x18f   : > { %v4283_v8 = vpop.f32.mrf.mxu0  ;;  %v1716_v10 = vpop.f32.mrf.mxu1 }
 0x190   : > { %v1717_v21 = vadd.f32 %v1716_v10, %v5689_v16  ;;  %v5814_v56 = vadd.f32 %v4274_v25, %v1725_v55  ;;  %v3307_v25 = vsel %vm5133_vm15, %v3305_v51, %v3306_v62  ;;  %v6479_v55 = vld [vmem:[#allocation7_spill] sm:$0xff]  ;;  %v6480_v51 = vld [vmem:[#allocation10_spill] sm:$0xff] }
 0x191   : > { %v2144_v34 = vpop.f32.mrf.mxu0  ;;  %v4241_v30 = vpop.f32.mrf.mxu1 }
 0x192   : > { %v1728_v52 = vadd.f32 %v4241_v30, %v5697_v3  ;;  %v5819_v20 = vadd.f32 %v2109_v44, %v1717_v21  ;;  %v3983_v44 = vcombine.low %v3304_v14, %v3307_v25 }
 0x193   : > { %v4286_v41 = vpop.f32.mrf.mxu0  ;;  %4489 = vmatmul.mubr.msk.bf16.gmra.mxu0 %vm1289_vm8, %v5449_v50  ;;  %v1719_v23 = vpop.f32.mrf.mxu1 }
 0x194   : > { %4492 = vmatprep.mubr.msk.bf16.mxu0 %vm1289_vm8, %v5494_v5  ;;  %v1720_v47 = vadd.f32 %v1719_v23, %v5699_v63  ;;  %v5828_v3 = vadd.f32 %v4275_v0, %v1728_v52  ;;  %v6481_v52 = vld [vmem:[#allocation18_spill] sm:$0xff]  ;;  %v6482_v23 = vld [vmem:[#allocation11_spill] sm:$0xff] }
 0x195   : > { %v2157_v16 = vpop.f32.mrf.mxu0  ;;  %v4244_v37 = vpop.f32.mrf.mxu1  ;;  %4447 = vmatmul.mubr.msk.bf16.gmra.mxu1 %vm1289_vm8, %v6461_v7 }
 0x196   : > { %v1741_v50 = vadd.f32 %v4244_v37, %v5627_v2  ;;  %4450 = vmatprep.mubr.msk.bf16.mxu1 %vm1289_vm8, %v6462_v19  ;;  %v5836_v61 = vadd.f32 %v5761_v57, %v1720_v47  ;;  %v6484_v37 = vld [vmem:[#allocation14_spill] sm:$0xff] }
 0x197   : > { %v4287_v5 = vpop.f32.mrf.mxu0  ;;  %v1732_v6 = vpop.f32.mrf.mxu1 }
 0x198   : > { %v1733_v63 = vadd.f32 %v1732_v6, %v5633_v48  ;;  %v5840_v0 = vadd.f32 %v5766_v17, %v1741_v50 }
 0x199   : > { %v2160_v39 = vpop.f32.mrf.mxu0  ;;  %v4245_v13 = vpop.f32.mrf.mxu1 }
 0x19a   : > { %v1744_v7 = vadd.f32 %v4245_v13, %v5643_v1  ;;  %v5845_v19 = vadd.f32 %v5775_v11, %v1733_v63  ;;  %v6485_v63 = vld [vmem:[#allocation16_spill] sm:$0xff] }
 0x19b   : > { %v4290_v42 = vpop.f32.mrf.mxu0  ;;  %4493 = vmatmul.mubr.msk.bf16.gmra.mxu0 %vm1289_vm8, %v3983_v44  ;;  %v1735_v2 = vpop.f32.mrf.mxu1 }
 0x19c   : > { %v1736_v57 = vadd.f32 %v1735_v2, %v5649_v46  ;;  %v5848_v24 = vadd.f32 %v4279_v40, %v1744_v7 }
 0x19d   : > { %v2173_v53 = vpop.f32.mrf.mxu0  ;;  %v4248_v48 = vpop.f32.mrf.mxu1  ;;  %4451 = vmatmul.mubr.msk.bf16.gmra.mxu1 %vm1289_vm8, %v6463_v59 }
 0x19e   : > { %v1757_v17 = vadd.f32 %v4248_v48, %v5659_v58  ;;  %4454 = vmatprep.mubr.msk.bf16.mxu1 %vm1289_vm8, %v6477_v4  ;;  %v5856_v35 = vadd.f32 %v5787_v45, %v1736_v57  ;;  %v6486_v48 = vld [vmem:[#allocation4_spill] sm:$0xff] }
 0x19f   : > { %v4291_v1 = vpop.f32.mrf.mxu0  ;;  %v1748_v11 = vpop.f32.mrf.mxu1 }
 0x1a0   : > { %v1749_v29 = vadd.f32 %v1748_v11, %v6478_v27  ;;  %v5860_v40 = vadd.f32 %v5792_v54, %v1757_v17  ;;  %v6483_v54 = vld [vmem:[#allocation15_spill] sm:$0xff] }
 0x1a1   : > { %v2176_v46 = vpop.f32.mrf.mxu0  ;;  %v4249_v36 = vpop.f32.mrf.mxu1  ;;  %v6487_v27 = vld [vmem:[#allocation3_spill] sm:$0xff] }
 0x1a2   : > { %v1760_v28 = vadd.f32 %v4249_v36, %v6479_v55  ;;  %v5863_v10 = vadd.f32 %v2141_v9, %v1749_v29  ;;  %v6488_v29 = vld [vmem:[#allocation5_spill] sm:$0xff] }
 0x1a3   : > { %v4330_v59 = vpop.f32.mrf.mxu0  ;;  %v1751_v58 = vpop.f32.mrf.mxu1 }
 0x1a4   : > { %v1752_v62 = vadd.f32 %v1751_v58, %v6480_v51  ;;  %v5866_v30 = vadd.f32 %v4283_v8, %v1760_v28  ;;  %v6489_v58 = vld [vmem:[#allocation8_spill] sm:$0xff] }
 0x1a5   : > { %v2495_v21 = vpop.f32.mrf.mxu0  ;;  %v4252_v45 = vpop.f32.mrf.mxu1  ;;  %4455 = vmatmul.mubr.msk.bf16.gmra.mxu1 %vm1289_vm8, %v6481_v52  ;;  %v6490_v52 = vld [vmem:[#allocation9_spill] sm:$0xff] }
 0x1a6   : > { %v1773_v14 = vadd.f32 %v4252_v45, %v6482_v23  ;;  %4458 = vmatprep.mubr.msk.bf16.mxu1 %vm1289_vm8, %v6483_v54  ;;  %v5873_v47 = vadd.f32 %v2144_v34, %v1752_v62 }
 0x1a7   : > { %v4331_v25 = vpop.f32.mrf.mxu0  ;;  %v1764_v9 = vpop.f32.mrf.mxu1 }
 0x1a8   : > { %v1765_v50 = vadd.f32 %v1764_v9, %v6484_v37  ;;  %v5876_v6 = vadd.f32 %v4286_v41, %v1773_v14  ;;  %v6491_v9 = vld [vmem:[#allocation12_spill] sm:$0xff] }
 0x1a9   : > { %v2498_v44 = vpop.f32.mrf.mxu0  ;;  %v4253_v8 = vpop.f32.mrf.mxu1 }
 0x1aa   : > { %v1776_v13 = vadd.f32 %v4253_v8, %v6485_v63  ;;  %v5879_v2 = vadd.f32 %v2157_v16, %v1765_v50 }
 0x1ab   : > { %v4334_v7 = vpop.f32.mrf.mxu0  ;;  %v1767_v57 = vpop.f32.mrf.mxu1 }
 0x1ac   : > { %v1768_v17 = vadd.f32 %v1767_v57, %v6486_v48  ;;  %v5882_v11 = vadd.f32 %v4287_v5, %v1776_v13 }
 0x1ad   : > { %v2511_v4 = vpop.f32.mrf.mxu0  ;;  %v4256_v34 = vpop.f32.mrf.mxu1  ;;  %4459 = vmatmul.mubr.msk.bf16.gmra.mxu1 %vm1289_vm8, %v6487_v27 }
 0x1ae   : > { %v1789_v36 = vadd.f32 %v4256_v34, %v6488_v29  ;;  %v5887_v55 = vadd.f32 %v2160_v39, %v1768_v17 }
 0x1af   : > { %v4335_v41 = vpop.f32.mrf.mxu0  ;;  %v1780_v28 = vpop.f32.mrf.mxu1 }
 0x1b0   : > { %v1781_v51 = vadd.f32 %v1780_v28, %v6489_v58  ;;  %v5890_v62 = vadd.f32 %v4290_v42, %v1789_v36 }
 0x1b1   : > { %v2514_v16 = vpop.f32.mrf.mxu0  ;;  %v4257_v45 = vpop.f32.mrf.mxu1 }
 0x1b2   : > { %v1792_v23 = vadd.f32 %v4257_v45, %v6490_v52  ;;  %v5893_v14 = vadd.f32 %v2173_v53, %v1781_v51 }
 0x1b3   : > { %v4338_v5 = vpop.f32.mrf.mxu0  ;;  %v1783_v54 = vpop.f32.mrf.mxu1 }
 0x1b4   : > { %v1784_v37 = vadd.f32 %v1783_v54, %v6491_v9  ;;  %v5896_v8 = vadd.f32 %v4291_v1, %v1792_v23 }
 0x1b5   : > { %v2527_v50 = vpop.f32.mrf.mxu0  ;;  %v4296_v39 = vpop.f32.mrf.mxu1 }
 0x1b6   : > { %v2396_v63 = vadd.f32 %v4296_v39, %v5741_v43  ;;  %v5899_v57 = vadd.f32 %v2176_v46, %v1784_v37 }
 0x1b7   : > { %v4339_v13 = vpop.f32.mrf.mxu0  ;;  %v2267_v42 = vpop.f32.mrf.mxu1 }
 0x1b8   : > { %v2394_v48 = vadd.f32 %v2267_v42, %v5746_v22  ;;  %v5902_v34 = vadd.f32 %v4330_v59, %v2396_v63 }
 0x1b9   : > { %v2530_v17 = vpop.f32.mrf.mxu0  ;;  %v4297_v53 = vpop.f32.mrf.mxu1 }
 0x1ba   : > { %v2397_v27 = vadd.f32 %v4297_v53, %v5751_v49  ;;  %v5905_v36 = vadd.f32 %v2495_v21, %v2394_v48 }
 0x1bb   : > { %v4342_v29 = vpop.f32.mrf.mxu0  ;;  %v2270_v1 = vpop.f32.mrf.mxu1 }
 0x1bc   : > { %v2395_v28 = vadd.f32 %v2270_v1, %v5758_v12  ;;  %v5908_v43 = vadd.f32 %v4331_v25, %v2397_v27 }
 0x1bd   : > { %v2543_v58 = vpop.f32.mrf.mxu0  ;;  %v4300_v46 = vpop.f32.mrf.mxu1 }
 0x1be   : > { %v2400_v51 = vadd.f32 %v4300_v46, %v5763_v18  ;;  %v5911_v22 = vadd.f32 %v2498_v44, %v2395_v28 }
 0x1bf   : > { %v4343_v45 = vpop.f32.mrf.mxu0  ;;  %v2283_v59 = vpop.f32.mrf.mxu1 }
 0x1c0   : > { %v2398_v52 = vadd.f32 %v2283_v59, %v5770_v60  ;;  %v5914_v49 = vadd.f32 %v4334_v7, %v2400_v51 }
 0x1c1   : > { %v2546_v23 = vpop.f32.mrf.mxu0  ;;  %v4301_v21 = vpop.f32.mrf.mxu1 }
 0x1c2   : > { %v2401_v54 = vadd.f32 %v4301_v21, %v5777_v31  ;;  %v5917_v12 = vadd.f32 %v2511_v4, %v2398_v52 }
 0x1c3   : > { %v4346_v9 = vpop.f32.mrf.mxu0  ;;  %v2286_v25 = vpop.f32.mrf.mxu1 }
 0x1c4   : > { %v2399_v37 = vadd.f32 %v2286_v25, %v5784_v32  ;;  %v5920_v18 = vadd.f32 %v4335_v41, %v2401_v54 }
 0x1c5   : > { %v2559_v39 = vpop.f32.mrf.mxu0  ;;  %v4304_v44 = vpop.f32.mrf.mxu1 }
 0x1c6   : > { %v2404_v63 = vadd.f32 %v4304_v44, %v5789_v38  ;;  %v5923_v60 = vadd.f32 %v2514_v16, %v2399_v37 }
 0x1c7   : > { %v4347_v42 = vpop.f32.mrf.mxu0  ;;  %v2299_v7 = vpop.f32.mrf.mxu1 }
 0x1c8   : > { %v2402_v48 = vadd.f32 %v2299_v7, %v5796_v26  ;;  %v5926_v31 = vadd.f32 %v4338_v5, %v2404_v63 }
 0x1c9   : > { %v2562_v53 = vpop.f32.mrf.mxu0  ;;  %v4305_v4 = vpop.f32.mrf.mxu1 }
 0x1ca   : > { %v2405_v27 = vadd.f32 %v4305_v4, %v5802_v15  ;;  %v5929_v32 = vadd.f32 %v2527_v50, %v2402_v48 }
 0x1cb   : > { %v4350_v1 = vpop.f32.mrf.mxu0  ;;  %v2302_v41 = vpop.f32.mrf.mxu1 }
 0x1cc   : > { %v2403_v28 = vadd.f32 %v2302_v41, %v5809_v33  ;;  %v5932_v38 = vadd.f32 %v4339_v13, %v2405_v27 }
 0x1cd   : > { %v2575_v46 = vpop.f32.mrf.mxu0  ;;  %v4308_v16 = vpop.f32.mrf.mxu1 }
 0x1ce   : > { %v2408_v51 = vadd.f32 %v4308_v16, %v5814_v56  ;;  %v5935_v26 = vadd.f32 %v2530_v17, %v2403_v28 }
 0x1cf   : > { %v4351_v59 = vpop.f32.mrf.mxu0  ;;  %v2315_v5 = vpop.f32.mrf.mxu1 }
 0x1d0   : > { %v2406_v52 = vadd.f32 %v2315_v5, %v5819_v20  ;;  %v5938_v15 = vadd.f32 %v4342_v29, %v2408_v51 }
 0x1d1   : > { %v2578_v21 = vpop.f32.mrf.mxu0  ;;  %v4309_v50 = vpop.f32.mrf.mxu1 }
 0x1d2   : > { %v2409_v54 = vadd.f32 %v4309_v50, %v5828_v3  ;;  %v5941_v33 = vadd.f32 %v2543_v58, %v2406_v52 }
 0x1d3   : > { %v4354_v25 = vpop.f32.mrf.mxu0  ;;  %v2318_v13 = vpop.f32.mrf.mxu1 }
 0x1d4   : > { %v2407_v37 = vadd.f32 %v2318_v13, %v5836_v61  ;;  %v5944_v56 = vadd.f32 %v4343_v45, %v2409_v54 }
 0x1d5   : > { %v2591_v44 = vpop.f32.mrf.mxu0  ;;  %v4312_v17 = vpop.f32.mrf.mxu1 }
 0x1d6   : > { %v2412_v63 = vadd.f32 %v4312_v17, %v5840_v0  ;;  %v5947_v20 = vadd.f32 %v2546_v23, %v2407_v37 }
 0x1d7   : > { %v4355_v7 = vpop.f32.mrf.mxu0  ;;  %v2331_v29 = vpop.f32.mrf.mxu1 }
 0x1d8   : > { %v2410_v48 = vadd.f32 %v2331_v29, %v5845_v19  ;;  %v5950_v3 = vadd.f32 %v4346_v9, %v2412_v63 }
 0x1d9   : > { %v2594_v4 = vpop.f32.mrf.mxu0  ;;  %v4313_v58 = vpop.f32.mrf.mxu1 }
 0x1da   : > { %6492 = vst [vmem:[#allocation13_spill] sm:$0xff] %v5950_v3  ;;  %v2413_v27 = vadd.f32 %v4313_v58, %v5848_v24  ;;  %v5953_v61 = vadd.f32 %v2559_v39, %v2410_v48 }
 0x1db   : > { %v4358_v41 = vpop.f32.mrf.mxu0  ;;  %v2334_v45 = vpop.f32.mrf.mxu1 }
 0x1dc   : > { %6493 = vst [vmem:[#allocation17_spill] sm:$0xff] %v5953_v61  ;;  %v2411_v28 = vadd.f32 %v2334_v45, %v5856_v35  ;;  %v5956_v0 = vadd.f32 %v4347_v42, %v2413_v27 }
 0x1dd   : > { %v2607_v16 = vpop.f32.mrf.mxu0  ;;  %v4316_v23 = vpop.f32.mrf.mxu1 }
 0x1de   : > { %6494 = vst [vmem:[#allocation6_spill] sm:$0xff] %v5956_v0  ;;  %v2416_v51 = vadd.f32 %v4316_v23, %v5860_v40  ;;  %v5959_v19 = vadd.f32 %v2562_v53, %v2411_v28 }
 0x1df   : > { %v4359_v5 = vpop.f32.mrf.mxu0  ;;  %v2347_v9 = vpop.f32.mrf.mxu1 }
 0x1e0   : > { %6495 = vst [vmem:[#allocation7_spill] sm:$0xff] %v5959_v19  ;;  %v2414_v52 = vadd.f32 %v2347_v9, %v5863_v10  ;;  %v5962_v24 = vadd.f32 %v4350_v1, %v2416_v51 }
 0x1e1   : > { %v2610_v50 = vpop.f32.mrf.mxu0  ;;  %v4317_v39 = vpop.f32.mrf.mxu1 }
 0x1e2   : > { %6496 = vst [vmem:[#allocation10_spill] sm:$0xff] %v5962_v24  ;;  %v2417_v54 = vadd.f32 %v4317_v39, %v5866_v30  ;;  %v5967_v35 = vadd.f32 %v2575_v46, %v2414_v52 }
 0x1e3   : > { %v5965_v13 = vpop.f32.mrf.mxu0  ;;  %v2350_v42 = vpop.f32.mrf.mxu1 }
 0x1e4   : > { %6497 = vst [vmem:[#allocation18_spill] sm:$0xff] %v5967_v35  ;;  %v2415_v37 = vadd.f32 %v2350_v42, %v5873_v47  ;;  %v5972_v53 = vadd.f32 %v4351_v59, %v2417_v54 }
 0x1e5   : > { %v5970_v40 = vpop.f32.mrf.mxu0  ;;  %v4320_v17 = vpop.f32.mrf.mxu1 }
 0x1e6   : > { %6498 = vst [vmem:[#allocation11_spill] sm:$0xff] %v5972_v53  ;;  %v2420_v10 = vadd.f32 %v4320_v17, %v5876_v6  ;;  %v5977_v1 = vadd.f32 %v2578_v21, %v2415_v37 }
 0x1e7   : > { %v5975_v63 = vpop.f32.mrf.mxu0  ;;  %v2363_v29 = vpop.f32.mrf.mxu1 }
 0x1e8   : > { %6499 = vst [vmem:[#allocation15_spill] sm:$0xff] %v5977_v1  ;;  %v2418_v30 = vadd.f32 %v2363_v29, %v5879_v2  ;;  %v5982_v46 = vadd.f32 %v4354_v25, %v2420_v10 }
 0x1e9   : > { %v5980_v48 = vpop.f32.mrf.mxu0  ;;  %v4321_v58 = vpop.f32.mrf.mxu1 }
 0x1ea   : > { %6500 = vst [vmem:[#allocation14_spill] sm:$0xff] %v5982_v46  ;;  %v2421_v47 = vadd.f32 %v4321_v58, %v5882_v11  ;;  %v5987_v59 = vadd.f32 %v2591_v44, %v2418_v30 }
 0x1eb   : > { %v5985_v27 = vpop.f32.mrf.mxu0  ;;  %v2366_v45 = vpop.f32.mrf.mxu1 }
 0x1ec   : > { %6501 = vst [vmem:[#allocation16_spill] sm:$0xff] %v5987_v59  ;;  %v2419_v6 = vadd.f32 %v2366_v45, %v5887_v55  ;;  %v5992_v21 = vadd.f32 %v4355_v7, %v2421_v47 }
 0x1ed   : > { %v5990_v28 = vpop.f32.mrf.mxu0  ;;  %v4324_v23 = vpop.f32.mrf.mxu1 }
 0x1ee   : > { %6502 = vst [vmem:[#allocation4_spill] sm:$0xff] %v5992_v21  ;;  %v2424_v2 = vadd.f32 %v4324_v23, %v5890_v62  ;;  %v5997_v25 = vadd.f32 %v2594_v4, %v2419_v6 }
 0x1ef   : > { %v5995_v51 = vpop.f32.mrf.mxu0  ;;  %v2379_v9 = vpop.f32.mrf.mxu1 }
 0x1f0   : > { %6503 = vst [vmem:[#allocation3_spill] sm:$0xff] %v5997_v25  ;;  %v2422_v11 = vadd.f32 %v2379_v9, %v5893_v14  ;;  %v6002_v44 = vadd.f32 %v4358_v41, %v2424_v2 }
 0x1f1   : > { %v6000_v52 = vpop.f32.mrf.mxu0  ;;  %v4325_v39 = vpop.f32.mrf.mxu1 }
 0x1f2   : > { %6504 = vst [vmem:[#allocation5_spill] sm:$0xff] %v6002_v44  ;;  %v2425_v55 = vadd.f32 %v4325_v39, %v5896_v8  ;;  %v6007_v7 = vadd.f32 %v2607_v16, %v2422_v11 }
 0x1f3   : > { %v6005_v54 = vpop.f32.mrf.mxu0  ;;  %v2382_v42 = vpop.f32.mrf.mxu1 }
 0x1f4   : > { %6505 = vst [vmem:[#allocation8_spill] sm:$0xff] %v6007_v7  ;;  %v2423_v62 = vadd.f32 %v2382_v42, %v5899_v57  ;;  %v6012_v4 = vadd.f32 %v4359_v5, %v2425_v55 }
 0x1f5   : > { %v6010_v37 = vpop.f32.mrf.mxu0  ;;  %v4364_v17 = vpop.f32.mrf.mxu1 }
 0x1f6   : > { %6506 = vst [vmem:[#allocation9_spill] sm:$0xff] %v6012_v4  ;;  %v6016_v10 = vadd.f32 %v2610_v50, %v2423_v62 }
 0x1f7   : > { %v6014_v14 = vpop.f32.mrf.mxu0  ;;  %v2707_v41 = vpop.f32.mrf.mxu1 }
 0x1f8   : > { %6507 = vst [vmem:[#allocation12_spill] sm:$0xff] %v6016_v10 }
 0x1f9   : > { %v6018_v29 = vpop.f32.mrf.mxu0  ;;  %v4365_v8 = vpop.f32.mrf.mxu1 }
 0x1fb   : > { %v6020_v30 = vpop.f32.mrf.mxu0  ;;  %v6022_v16 = vpop.f32.mrf.mxu1 }
 0x1fd   : > { %v6024_v58 = vpop.f32.mrf.mxu0  ;;  %v6026_v57 = vpop.f32.mrf.mxu1 }
 0x1ff   : > { %v6028_v47 = vpop.f32.mrf.mxu0  ;;  %v6030_v5 = vpop.f32.mrf.mxu1 }
 0x200   : > { %6508 = vst [vmem:[#allocation19_spill] sm:$0xff] %v6028_v47 }
 0x201   : > { %v6032_v45 = vpop.f32.mrf.mxu0  ;;  %v6034_v50 = vpop.f32.mrf.mxu1 }
 0x202   : > { %6509 = vst [vmem:[#allocation20_spill] sm:$0xff] %v6032_v45 }
 0x203   : > { %v6036_v6 = vpop.f32.mrf.mxu0  ;;  %v6038_v23 = vpop.f32.mrf.mxu1 }
 0x204   : > { %6510 = vst [vmem:[#allocation21_spill] sm:$0xff] %v6036_v6 }
 0x205   : > { %v6040_v2 = vpop.f32.mrf.mxu0  ;;  %v6042_v9 = vpop.f32.mrf.mxu1 }
 0x206   : > { %6511 = vst [vmem:[#allocation22_spill] sm:$0xff] %v6040_v2 }
 0x207   : > { %v6044_v11 = vpop.f32.mrf.mxu0  ;;  %v6046_v39 = vpop.f32.mrf.mxu1 }
 0x208   : > { %6512 = vst [vmem:[#allocation23_spill] sm:$0xff] %v6044_v11 }
 0x209   : > { %v6048_v55 = vpop.f32.mrf.mxu0  ;;  %v6050_v42 = vpop.f32.mrf.mxu1 }
 0x20a   : > { %6513 = vst [vmem:[#allocation24_spill] sm:$0xff] %v6048_v55 }
 0x20b   : > { %v6052_v62 = vpop.f32.mrf.mxu0  ;;  %v6054_v10 = vpop.f32.mrf.mxu1 }
 0x20c   : > { %6514 = vst [vmem:[#allocation25_spill] sm:$0xff] %v6052_v62 }
 0x20d   : > { %v6056_v4 = vpop.f32.mrf.mxu0  ;;  %v6058_v7 = vpop.f32.mrf.mxu1 }
 0x20e   : > { %6515 = vst [vmem:[#allocation26_spill] sm:$0xff] %v6056_v4 }
 0x20f   : > { %v6060_v44 = vpop.f32.mrf.mxu0  ;;  %v6062_v25 = vpop.f32.mrf.mxu1 }
 0x210   : > { %6516 = vst [vmem:[#allocation27_spill] sm:$0xff] %v6060_v44 }
 0x211   : > { %v6064_v21 = vpop.f32.mrf.mxu0  ;;  %v6066_v59 = vpop.f32.mrf.mxu1 }
 0x212   : > { %6517 = vst [vmem:[#allocation28_spill] sm:$0xff] %v6064_v21 }
 0x213   : > { %v6068_v46 = vpop.f32.mrf.mxu0  ;;  %v6070_v1 = vpop.f32.mrf.mxu1 }
 0x214   : > { %6518 = vst [vmem:[#allocation29_spill] sm:$0xff] %v6068_v46 }
 0x215   : > { %v6072_v53 = vpop.f32.mrf.mxu0  ;;  %v6074_v62 = vpop.f32.mrf.mxu1 }
 0x216   : > { %6519 = vst [vmem:[#allocation30_spill] sm:$0xff] %v6072_v53  ;;  %6520 = vst [vmem:[#allocation31_spill] sm:$0xff] %v6074_v62 }
 0x217   : > { %v6076_v35 = vpop.f32.mrf.mxu0  ;;  %v6078_v4 = vpop.f32.mrf.mxu1 }
 0x218   : > { %6521 = vst [vmem:[#allocation32_spill] sm:$0xff] %v6076_v35  ;;  %6522 = vst [vmem:[#allocation33_spill] sm:$0xff] %v6078_v4 }
 0x219   : > { %v6080_v55 = vpop.f32.mrf.mxu0  ;;  %v6082_v44 = vpop.f32.mrf.mxu1 }
 0x21a   : > { %6523 = vst [vmem:[#allocation34_spill] sm:$0xff] %v6080_v55  ;;  %6524 = vst [vmem:[#allocation35_spill] sm:$0xff] %v6082_v44 }
 0x21b   : > { %v6084_v11 = vpop.f32.mrf.mxu0  ;;  %v6086_v21 = vpop.f32.mrf.mxu1 }
 0x21c   : > { %6525 = vst [vmem:[#allocation36_spill] sm:$0xff] %v6084_v11  ;;  %6526 = vst [vmem:[#allocation37_spill] sm:$0xff] %v6086_v21 }
 0x21d   : > { %v6088_v2 = vpop.f32.mrf.mxu0  ;;  %v6090_v46 = vpop.f32.mrf.mxu1 }
 0x21e   : > { %6527 = vst [vmem:[#allocation38_spill] sm:$0xff] %v6088_v2  ;;  %6528 = vst [vmem:[#allocation39_spill] sm:$0xff] %v6090_v46 }
 0x21f   : > { %v6092_v24 = vpop.f32.mrf.mxu0  ;;  %v6094_v53 = vpop.f32.mrf.mxu1 }
 0x220   : > { %6529 = vst [vmem:[#allocation40_spill] sm:$0xff] %v6092_v24  ;;  %6530 = vst [vmem:[#allocation41_spill] sm:$0xff] %v6094_v53 }
 0x221   : > { %v6096_v6 = vpop.f32.mrf.mxu0  ;;  %v6098_v35 = vpop.f32.mrf.mxu1 }
 0x222   : > { %6531 = vst [vmem:[#allocation42_spill] sm:$0xff] %v6096_v6  ;;  %6532 = vst [vmem:[#allocation43_spill] sm:$0xff] %v6098_v35 }
 0x223   : > { %v4466_v19 = vpop.f32.mrf.mxu0  ;;  %v6100_v55 = vpop.f32.mrf.mxu1 }
 0x224   : > { %6533 = vst [vmem:[#allocation44_spill] sm:$0xff] %v6100_v55 }
 0x225   : > { %v3353_v44 = vpop.f32.mrf.mxu0  ;;  %v6102_v0 = vpop.f32.mrf.mxu1 }
 0x226   : > { %6534 = vst [vmem:[#allocation45_spill] sm:$0xff] %v6102_v0  ;;  %v2836_v0 = vadd.f32 %v4364_v17, %v5902_v34 }
 0x227   : > { %v4467_v11 = vpop.f32.mrf.mxu0  ;;  %v6104_v21 = vpop.f32.mrf.mxu1 }
 0x228   : > { %6535 = vst [vmem:[#allocation46_spill] sm:$0xff] %v6104_v21 }
 0x229   : > { %v3356_v2 = vpop.f32.mrf.mxu0  ;;  %v6106_v4 = vpop.f32.mrf.mxu1 }
 0x22a   : > { %6536 = vst [vmem:[#allocation47_spill] sm:$0xff] %v6106_v4  ;;  %v2834_v4 = vadd.f32 %v2707_v41, %v5905_v36  ;;  %v2840_v36 = vadd.f32 %v6026_v57, %v5914_v49 }
 0x22b   : > { %v6108_v46 = vpop.f32.mrf.mxu0  ;;  %v6110_v24 = vpop.f32.mrf.mxu1 }
 0x22c   : > { %6537 = vst [vmem:[#allocation48_spill] sm:$0xff] %v6110_v24  ;;  %v2837_v24 = vadd.f32 %v4365_v8, %v5908_v43  ;;  %v3040_v34 = vadd.f32 %v5970_v40, %v2834_v4  ;;  %v6144_v43 = vld [vmem:[%s6390_s2] ss:$0 sm:$0xff]  ;;  %v2838_v4 = vadd.f32 %v6030_v5, %v5917_v12 }
 0x22d   : > { %v6112_v53 = vpop.f32.mrf.mxu0  ;;  %v6114_v6 = vpop.f32.mrf.mxu1 }
 0x22e   : > { %6538 = vst [vmem:[#allocation49_spill] sm:$0xff] %v6114_v6  ;;  %v3042_v6 = vadd.f32 %v5965_v13, %v2836_v0  ;;  %v3043_v8 = vadd.f32 %v5975_v63, %v2837_v24  ;;  %v3046_v24 = vadd.f32 %v5985_v27, %v2840_v36 }
 0x22f   : > { %v6116_v35 = vpop.f32.mrf.mxu0  ;;  %v6118_v55 = vpop.f32.mrf.mxu1 }
 0x230   : > { %6539 = vst [vmem:[#allocation50_spill] sm:$0xff] %v6118_v55 }
 0x231   : > { %v6121_v61 = vpop.f32.mrf.mxu0  ;;  %v6123_v21 = vpop.f32.mrf.mxu1 }
 0x232   : > { %6540 = vst [vmem:[#allocation51_spill] sm:$0xff] %v6123_v21  ;;  %v2835_v21 = vadd.f32 %v6022_v16, %v5911_v22 }
 0x233   : > { %v6126_v45 = vpop.f32.mrf.mxu0  ;;  %v6128_v62 = vpop.f32.mrf.mxu1 }
 0x235   : > { %v6132_v3 = vpop.f32.mrf.mxu0  ;;  %v4432_v47 = vpop.f32.mrf.mxu1 }
 0x236   : > { %v3270_v55 = vadd.f32 %v4432_v47, %v3042_v6  ;;  %v2841_v6 = vadd.f32 %v6034_v50, %v5920_v18  ;;  %v2839_v18 = vadd.f32 %v6038_v23, %v5923_v60  ;;  %v3044_v50 = vadd.f32 %v5990_v28, %v2838_v4 }
 0x237   : > { %v6135_v17 = vpop.f32.mrf.mxu0  ;;  %v3141_v0 = vpop.f32.mrf.mxu1 }
 0x238   : > { %v3482_v13 = vadd.f32 %v4466_v19, %v3270_v55  ;;  %v3268_v41 = vadd.f32 %v3141_v0, %v3040_v34  ;;  %v3041_v19 = vadd.f32 %v5980_v48, %v2835_v21  ;;  %v2844_v48 = vadd.f32 %v6042_v9, %v5926_v31 }
 0x239   : > { %v6147_v40 = vpop.f32.mrf.mxu0  ;;  %v4433_v22 = vpop.f32.mrf.mxu1  ;;  %v3047_v9 = vadd.f32 %v5995_v51, %v2841_v6 }
 0x23a   : > { %v3521_v16 = vadd.f32 %v6144_v43, %v3482_v13  ;;  %v3480_v49 = vadd.f32 %v3353_v44, %v3268_v41  ;;  %v3271_v57 = vadd.f32 %v4433_v22, %v3043_v8  ;;  %v2845_v22 = vadd.f32 %v6050_v42, %v5932_v38 }
 0x23b   : > { %v6152_v47 = vpop.f32.mrf.mxu0  ;;  %v3144_v55 = vpop.f32.mrf.mxu1  ;;  %v3050_v6 = vadd.f32 %v6005_v54, %v2844_v48 }
 0x23c   : > { %vm3553_vm1 = vcmp.ge.f32.partialorder %v3521_v16, 0.0  ;;  %v3585_v12 = vmul.f32 0.1, %v3521_v16  ;;  %v3519_v63 = vadd.f32 %v6144_v43, %v3480_v49  ;;  %v3483_v44 = vadd.f32 %v4467_v11, %v3271_v57 }
 0x23d   : > { %v6166_v5 = vpop.f32.mrf.mxu0  ;;  %v3269_v27 = vadd.f32 %v3144_v55, %v3041_v19  ;;  %v4436_v21 = vpop.f32.mrf.mxu1  ;;  %v2842_v11 = vadd.f32 %v6046_v39, %v5929_v32  ;;  %v3051_v48 = vadd.f32 %v6014_v14, %v2845_v22 }
 0x23e   : > { %v3617_v34 = vsel %vm3553_vm1, %v3521_v16, %v3585_v12  ;;  %vm3551_vm2 = vcmp.ge.f32.partialorder %v3519_v63, 0.0  ;;  %v3583_v36 = vmul.f32 0.1, %v3519_v63  ;;  %v3522_v0 = vadd.f32 %v6144_v43, %v3483_v44 }
 0x23f   : > { %v6174_v13 = vpop.f32.mrf.mxu0  ;;  %3650 = vst.msk [vmem:[%s6163_s17 + $0x10] sm:$0xff] %vm3647_vm0, %v3617_v34  ;;  %v3481_v60 = vadd.f32 %v3356_v2, %v3269_v27  ;;  %v3274_v23 = vadd.f32 %v4436_v21, %v3046_v24  ;;  %v3157_v31 = vpop.f32.mrf.mxu1  ;;  %v3045_v16 = vadd.f32 %v6000_v52, %v2839_v18  ;;  %v2843_v52 = vadd.f32 %v6054_v10, %v5935_v26 }
 0x240   : > { %v3615_v41 = vsel %vm3551_vm2, %v3519_v63, %v3583_v36  ;;  %vm3554_vm3 = vcmp.ge.f32.partialorder %v3522_v0, 0.0  ;;  %v3586_v28 = vmul.f32 0.1, %v3522_v0  ;;  %v3272_v8 = vadd.f32 %v3157_v31, %v3044_v50 }
 0x241   : > { %v6181_v4 = vpop.f32.mrf.mxu0  ;;  %3648 = vst.msk [vmem:[%s6163_s17] sm:$0xff] %vm3647_vm0, %v3615_v41  ;;  %v3520_v32 = vadd.f32 %v6144_v43, %v3481_v60  ;;  %v3486_v2 = vadd.f32 %v6108_v46, %v3274_v23  ;;  %v4437_v39 = vpop.f32.mrf.mxu1  ;;  %v3048_v46 = vadd.f32 %v6010_v37, %v2842_v11  ;;  %v2848_v27 = vadd.f32 %v6058_v7, %v5938_v15 }
 0x242   : > { %v3618_v51 = vsel %vm3554_vm3, %v3522_v0, %v3586_v28  ;;  %v3484_v49 = vadd.f32 %v6112_v53, %v3272_v8  ;;  %v3275_v57 = vadd.f32 %v4437_v39, %v3047_v9  ;;  %v2846_v21 = vadd.f32 %v6062_v25, %v5941_v33 }
 0x243   : > { %v6192_v19 = vpop.f32.mrf.mxu0  ;;  %3651 = vst.msk [vmem:[%s6163_s17 + $0x18] sm:$0xff] %vm3647_vm0, %v3618_v51  ;;  %vm3552_vm4 = vcmp.ge.f32.partialorder %v3520_v32, 0.0  ;;  %v3584_v38 = vmul.f32 0.1, %v3520_v32  ;;  %v3525_v42 = vadd.f32 %v6144_v43, %v3486_v2  ;;  %v3160_v55 = vpop.f32.mrf.mxu1  ;;  %v2849_v60 = vadd.f32 %v6066_v59, %v5944_v56 }
 0x244   : > { %v3523_v53 = vadd.f32 %v6144_v43, %v3484_v49  ;;  %v3487_v24 = vadd.f32 %v6116_v35, %v3275_v57  ;;  %v3273_v54 = vadd.f32 %v3160_v55, %v3045_v16  ;;  %v3049_v7 = vadd.f32 %v6018_v29, %v2843_v52  ;;  %v6541_v16 = vld [vmem:[#allocation19_spill] sm:$0xff]  ;;  %v6542_v49 = vld [vmem:[#allocation13_spill] sm:$0xff] }
 0x245   : > { %v6202_v12 = vpop.f32.mrf.mxu0  ;;  %v3616_v63 = vsel %vm3552_vm4, %v3520_v32, %v3584_v38  ;;  %vm3557_vm5 = vcmp.ge.f32.partialorder %v3525_v42, 0.0  ;;  %v3589_v44 = vmul.f32 0.1, %v3525_v42  ;;  %v4440_v18 = vpop.f32.mrf.mxu1  ;;  %v2847_v28 = vadd.f32 %v6070_v1, %v5947_v20 }
 0x246   : > { %3649 = vst.msk [vmem:[%s6163_s17 + $0x8] sm:$0xff] %vm3647_vm0, %v3616_v63  ;;  %vm3555_vm6 = vcmp.ge.f32.partialorder %v3523_v53, 0.0  ;;  %v3587_v37 = vmul.f32 0.1, %v3523_v53  ;;  %v3526_v26 = vadd.f32 %v6144_v43, %v3487_v24  ;;  %v3485_v10 = vadd.f32 %v6121_v61, %v3273_v54  ;;  %v6545_v63 = vld [vmem:[#allocation17_spill] sm:$0xff] }
 0x247   : > { %v6209_v35 = vpop.f32.mrf.mxu0  ;;  %v3621_v50 = vsel %vm3557_vm5, %v3525_v42, %v3589_v44  ;;  %v3278_v34 = vadd.f32 %v4440_v18, %v3050_v6  ;;  %v3173_v14 = vpop.f32.mrf.mxu1  ;;  %v3054_v8 = vadd.f32 %v6020_v30, %v2848_v27  ;;  %v3052_v2 = vadd.f32 %v6024_v58, %v2846_v21  ;;  %v6543_v30 = vld [vmem:[#allocation31_spill] sm:$0xff]  ;;  %v6546_v44 = vld [vmem:[#allocation33_spill] sm:$0xff]  ;;  %v6547_v18 = vld [vmem:[#allocation6_spill] sm:$0xff] }
 0x248   : > { %3654 = vst.msk [vmem:[%s6163_s17 + $0x30] sm:$0xff] %vm3647_vm0, %v3621_v50  ;;  %v3619_v36 = vsel %vm3555_vm6, %v3523_v53, %v3587_v37  ;;  %vm3558_vm7 = vcmp.ge.f32.partialorder %v3526_v26, 0.0  ;;  %v3590_v0 = vmul.f32 0.1, %v3526_v26  ;;  %v3524_v11 = vadd.f32 %v6144_v43, %v3485_v10 }
 0x249   : > { %v6218_v61 = vpop.f32.mrf.mxu0  ;;  %3652 = vst.msk [vmem:[%s6163_s17 + $0x20] sm:$0xff] %vm3647_vm0, %v3619_v36  ;;  %v3490_v15 = vadd.f32 %v6126_v45, %v3278_v34  ;;  %v3276_v33 = vadd.f32 %v3173_v14, %v3048_v46  ;;  %v4441_v25 = vpop.f32.mrf.mxu1  ;;  %v3055_v51 = vadd.f32 %v6541_v16, %v2849_v60  ;;  %v2852_v57 = vadd.f32 %v6543_v30, %v6542_v49  ;;  %v6544_v46 = vld [vmem:[#allocation20_spill] sm:$0xff]  ;;  %v6550_v36 = vld [vmem:[#allocation37_spill] sm:$0xff] }
 0x24a   : > { %v3622_v23 = vsel %vm3558_vm7, %v3526_v26, %v3590_v0  ;;  %vm3556_vm8 = vcmp.ge.f32.partialorder %v3524_v11, 0.0  ;;  %v3588_v31 = vmul.f32 0.1, %v3524_v11  ;;  %v3279_v9 = vadd.f32 %v4441_v25, %v3051_v48  ;;  %v6548_v48 = vld [vmem:[#allocation35_spill] sm:$0xff] }
 0x24b   : > { %v6226_v41 = vpop.f32.mrf.mxu0  ;;  %3655 = vst.msk [vmem:[%s6163_s17 + $0x38] sm:$0xff] %vm3647_vm0, %v3622_v23  ;;  %v3529_v56 = vadd.f32 %v6144_v43, %v3490_v15  ;;  %v3488_v59 = vadd.f32 %v6132_v3, %v3276_v33  ;;  %v3176_v45 = vpop.f32.mrf.mxu1  ;;  %v3053_v52 = vadd.f32 %v6544_v46, %v2847_v28  ;;  %v2853_v37 = vadd.f32 %v6548_v48, %v6547_v18  ;;  %v6551_v33 = vld [vmem:[#allocation21_spill] sm:$0xff]  ;;  %v6553_v28 = vld [vmem:[#allocation39_spill] sm:$0xff] }
 0x24c   : > { %v3620_v29 = vsel %vm3556_vm8, %v3524_v11, %v3588_v31  ;;  %v3491_v22 = vadd.f32 %v6135_v17, %v3279_v9  ;;  %v3277_v32 = vadd.f32 %v3176_v45, %v3049_v7  ;;  %v3058_v25 = vadd.f32 %v6551_v33, %v2852_v57  ;;  %v6552_v9 = vld [vmem:[#allocation10_spill] sm:$0xff]  ;;  %v6562_v48 = vld [vmem:[#allocation15_spill] sm:$0xff] }
 0x24d   : > { %3653 = vst.msk [vmem:[%s6163_s17 + $0x28] sm:$0xff] %vm3647_vm0, %v3620_v29  ;;  %vm3561_vm9 = vcmp.ge.f32.partialorder %v3529_v56, 0.0  ;;  %v3593_v20 = vmul.f32 0.1, %v3529_v56  ;;  %v3527_v1 = vadd.f32 %v6144_v43, %v3488_v59  ;;  %v4444_v39 = vpop.f32.mrf.mxu1  ;;  %v6241_v3 = vpop.f32.mrf.mxu0  ;;  %v6557_v57 = vld [vmem:[#allocation18_spill] sm:$0xff] }
 0x24e   : > { %v3530_v17 = vadd.f32 %v6144_v43, %v3491_v22  ;;  %v3489_v6 = vadd.f32 %v6147_v40, %v3277_v32  ;;  %v3282_v58 = vadd.f32 %v4444_v39, %v3054_v8  ;;  %v2850_v40 = vadd.f32 %v6546_v44, %v6545_v63  ;;  %v6566_v33 = vld [vmem:[#allocation26_spill] sm:$0xff] }
 0x24f   : > { %v3625_v38 = vsel %vm3561_vm9, %v3529_v56, %v3593_v20  ;;  %vm3559_vm10 = vcmp.ge.f32.partialorder %v3527_v1, 0.0  ;;  %v3591_v42 = vmul.f32 0.1, %v3527_v1  ;;  %v3189_v55 = vpop.f32.mrf.mxu1  ;;  %v6256_v21 = vpop.f32.mrf.mxu0  ;;  %v2856_v56 = vadd.f32 %v6553_v28, %v6552_v9 }
 0x250   : > { %3658 = vst.msk [vmem:[%s6163_s17 + $0x50] sm:$0xff] %vm3647_vm0, %v3625_v38  ;;  %vm3562_vm11 = vcmp.ge.f32.partialorder %v3530_v17, 0.0  ;;  %v3594_v53 = vmul.f32 0.1, %v3530_v17  ;;  %v3528_v24 = vadd.f32 %v6144_v43, %v3489_v6  ;;  %v3494_v54 = vadd.f32 %v6152_v47, %v3282_v58  ;;  %v6549_v47 = vld [vmem:[#allocation7_spill] sm:$0xff] }
 0x251   : > { %v3623_v26 = vsel %vm3559_vm10, %v3527_v1, %v3591_v42  ;;  %v3280_v10 = vadd.f32 %v3189_v55, %v3052_v2  ;;  %v4445_v27 = vpop.f32.mrf.mxu1  ;;  %v2851_v0 = vadd.f32 %v6550_v36, %v6549_v47  ;;  %v6274_v22 = vpop.f32.mrf.mxu0  ;;  %v6555_v1 = vld [vmem:[#allocation23_spill] sm:$0xff]  ;;  %v6564_v36 = vld [vmem:[#allocation14_spill] sm:$0xff] }
 0x252   : > { %3656 = vst.msk [vmem:[%s6163_s17 + $0x40] sm:$0xff] %vm3647_vm0, %v3623_v26  ;;  %v3626_v50 = vsel %vm3562_vm11, %v3530_v17, %v3594_v53  ;;  %vm3560_vm12 = vcmp.ge.f32.partialorder %v3528_v24, 0.0  ;;  %v3592_v34 = vmul.f32 0.1, %v3528_v24  ;;  %v3533_v14 = vadd.f32 %v6144_v43, %v3494_v54  ;;  %v6558_v17 = vld [vmem:[#allocation41_spill] sm:$0xff] }
 0x253   : > { %3659 = vst.msk [vmem:[%s6163_s17 + $0x58] sm:$0xff] %vm3647_vm0, %v3626_v50  ;;  %v3492_v11 = vadd.f32 %v6166_v5, %v3280_v10  ;;  %v3283_v60 = vadd.f32 %v4445_v27, %v3055_v51  ;;  %v3192_v15 = vpop.f32.mrf.mxu1  ;;  %v6554_v5 = vld [vmem:[#allocation22_spill] sm:$0xff]  ;;  %v3059_v39 = vadd.f32 %v6555_v1, %v2853_v37  ;;  %v2854_v6 = vadd.f32 %v6558_v17, %v6557_v57  ;;  %v6563_v37 = vld [vmem:[#allocation44_spill] sm:$0xff]  ;;  %v6571_v57 = vld [vmem:[#allocation29_spill] sm:$0xff] }
 0x254   : > { %v3624_v7 = vsel %vm3560_vm12, %v3528_v24, %v3592_v34  ;;  %vm3565_vm13 = vcmp.ge.f32.partialorder %v3533_v14, 0.0  ;;  %v3597_v23 = vmul.f32 0.1, %v3533_v14  ;;  %v3281_v31 = vadd.f32 %v3192_v15, %v3053_v52  ;;  %v6559_v52 = vld [vmem:[#allocation25_spill] sm:$0xff]  ;;  %v6287_v24 = vpop.f32.mrf.mxu0  ;;  %v6570_v1 = vld [vmem:[#allocation46_spill] sm:$0xff] }
 0x255   : > { %3657 = vst.msk [vmem:[%s6163_s17 + $0x48] sm:$0xff] %vm3647_vm0, %v3624_v7  ;;  %v3531_v59 = vadd.f32 %v6144_v43, %v3492_v11  ;;  %v3495_v45 = vadd.f32 %v6174_v13, %v3283_v60  ;;  %v4448_v8 = vpop.f32.mrf.mxu1  ;;  %v3056_v29 = vadd.f32 %v6554_v5, %v2850_v40  ;;  %v6556_v13 = vld [vmem:[#allocation24_spill] sm:$0xff]  ;;  %v3062_v53 = vadd.f32 %v6559_v52, %v2856_v56  ;;  %v6561_v40 = vld [vmem:[#allocation43_spill] sm:$0xff] }
 0x256   : > { %v3629_v32 = vsel %vm3565_vm13, %v3533_v14, %v3597_v23  ;;  %v3493_v2 = vadd.f32 %v6181_v4, %v3281_v31  ;;  %v3286_v20 = vadd.f32 %v4448_v8, %v3058_v25  ;;  %v3057_v30 = vadd.f32 %v6556_v13, %v2851_v0  ;;  %v6565_v0 = vld [vmem:[#allocation45_spill] sm:$0xff]  ;;  %v6306_v7 = vpop.f32.mrf.mxu0 }
 0x257   : > { %3662 = vst.msk [vmem:[%s6163_s17 + $0x70] sm:$0xff] %vm3647_vm0, %v3629_v32  ;;  %vm3563_vm14 = vcmp.ge.f32.partialorder %v3531_v59, 0.0  ;;  %v3595_v16 = vmul.f32 0.1, %v3531_v59  ;;  %v3534_v51 = vadd.f32 %v6144_v43, %v3495_v45  ;;  %v3205_v49 = vpop.f32.mrf.mxu1  ;;  %v2855_v26 = vadd.f32 %v6563_v37, %v6562_v48  ;;  %v6567_v45 = vld [vmem:[#allocation27_spill] sm:$0xff]  ;;  %v6568_v32 = vld [vmem:[#allocation28_spill] sm:$0xff] }
 0x258   : > { %v3532_v58 = vadd.f32 %v6144_v43, %v3493_v2  ;;  %v3498_v4 = vadd.f32 %v6192_v19, %v3286_v20  ;;  %v3284_v38 = vadd.f32 %v3205_v49, %v3056_v29  ;;  %v6560_v19 = vld [vmem:[#allocation11_spill] sm:$0xff]  ;;  %v3060_v25 = vadd.f32 %v6566_v33, %v2854_v6  ;;  %v6569_v20 = vld [vmem:[#allocation16_spill] sm:$0xff]  ;;  %v4491_v49 = vpop.f32.mrf.mxu0 }
 0x259   : > { %v3627_v42 = vsel %vm3563_vm14, %v3531_v59, %v3595_v16  ;;  %vm3566_vm15 = vcmp.ge.f32.partialorder %v3534_v51, 0.0  ;;  %v3598_v55 = vmul.f32 0.1, %v3534_v51  ;;  %v4449_v46 = vpop.f32.mrf.mxu1  ;;  %v2857_v18 = vadd.f32 %v6561_v40, %v6560_v19  ;;  %v6572_v6 = vld [vmem:[#allocation4_spill] sm:$0xff] }
 0x25a   : > { %3660 = vst.msk [vmem:[%s6163_s17 + $0x60] sm:$0xff] %vm3647_vm0, %v3627_v42  ;;  %vm3564_vm1 = vcmp.ge.f32.partialorder %v3532_v58, 0.0  ;;  %v3596_v54 = vmul.f32 0.1, %v3532_v58  ;;  %v3537_v63 = vadd.f32 %v6144_v43, %v3498_v4  ;;  %v3496_v44 = vadd.f32 %v6202_v12, %v3284_v38  ;;  %v3452_v37 = vpop.f32.mrf.mxu0 }
 0x25b   : > { %v3630_v10 = vsel %vm3566_vm15, %v3534_v51, %v3598_v55  ;;  %v3287_v27 = vadd.f32 %v4449_v46, %v3059_v39  ;;  %v3208_v50 = vpop.f32.mrf.mxu1  ;;  %v2860_v12 = vadd.f32 %v6565_v0, %v6564_v36  ;;  %v3061_v2 = vadd.f32 %v6568_v32, %v2855_v26  ;;  %v6579_v0 = vld [vmem:[#allocation32_spill] sm:$0xff] }
 0x25c   : > { %3663 = vst.msk [vmem:[%s6163_s17 + $0x78] sm:$0xff] %vm3647_vm0, %v3630_v10  ;;  %v3628_v34 = vsel %vm3564_vm1, %v3532_v58, %v3596_v54  ;;  %vm3569_vm2 = vcmp.ge.f32.partialorder %v3537_v63, 0.0  ;;  %v3601_v14 = vmul.f32 0.1, %v3537_v63  ;;  %v3535_v47 = vadd.f32 %v6144_v43, %v3496_v44  ;;  %v6573_v58 = vld [vmem:[#allocation47_spill] sm:$0xff]  ;;  %v6575_v54 = vld [vmem:[#allocation48_spill] sm:$0xff] }
 0x25d   : > { %3661 = vst.msk [vmem:[%s6163_s17 + $0x68] sm:$0xff] %vm3647_vm0, %v3628_v34  ;;  %v3499_v11 = vadd.f32 %v6209_v35, %v3287_v27  ;;  %v3285_v60 = vadd.f32 %v3208_v50, %v3057_v30  ;;  %v4452_v15 = vpop.f32.mrf.mxu1  ;;  %v3063_v35 = vadd.f32 %v6567_v45, %v2857_v18  ;;  %v2858_v39 = vadd.f32 %v6570_v1, %v6569_v20  ;;  %v6576_v18 = vld [vmem:[#allocation30_spill] sm:$0xff]  ;;  %v6577_v50 = vld [vmem:[#allocation5_spill] sm:$0xff] }
 0x25e   : > { %v3633_v23 = vsel %vm3569_vm2, %v3537_v63, %v3601_v14  ;;  %vm3567_vm3 = vcmp.ge.f32.partialorder %v3535_v47, 0.0  ;;  %v3599_v31 = vmul.f32 0.1, %v3535_v47  ;;  %v3290_v9 = vadd.f32 %v4452_v15, %v3062_v53  ;;  %v6574_v53 = vld [vmem:[#allocation3_spill] sm:$0xff]  ;;  %v6578_v34 = vld [vmem:[#allocation49_spill] sm:$0xff] }
 0x25f   : > { %3666 = vst.msk [vmem:[%s6163_s17 + $0x90] sm:$0xff] %vm3647_vm0, %v3633_v23  ;;  %v3538_v28 = vadd.f32 %v6144_v43, %v3499_v11  ;;  %v3497_v56 = vadd.f32 %v6218_v61, %v3285_v60  ;;  %v3221_v59 = vpop.f32.mrf.mxu1  ;;  %v3066_v17 = vadd.f32 %v6571_v57, %v2860_v12  ;;  %v2861_v4 = vadd.f32 %v6573_v58, %v6572_v6 }
 0x260   : > { %v3631_v8 = vsel %vm3567_vm3, %v3535_v47, %v3599_v31  ;;  %v3502_v5 = vadd.f32 %v6226_v41, %v3290_v9  ;;  %v3288_v29 = vadd.f32 %v3221_v59, %v3060_v25  ;;  %v2859_v63 = vadd.f32 %v6575_v54, %v6574_v53  ;;  %v6580_v31 = vld [vmem:[#allocation34_spill] sm:$0xff] }
 0x261   : > { %3664 = vst.msk [vmem:[%s6163_s17 + $0x80] sm:$0xff] %vm3647_vm0, %v3631_v8  ;;  %vm3570_vm4 = vcmp.ge.f32.partialorder %v3538_v28, 0.0  ;;  %v3602_v16 = vmul.f32 0.1, %v3538_v28  ;;  %v3536_v51 = vadd.f32 %v6144_v43, %v3497_v56  ;;  %v4453_v61 = vpop.f32.mrf.mxu1  ;;  %v3064_v48 = vadd.f32 %v6576_v18, %v2858_v39  ;;  %v6582_v56 = vld [vmem:[#allocation50_spill] sm:$0xff] }
 0x262   : > { %v3541_v13 = vadd.f32 %v6144_v43, %v3502_v5  ;;  %v3500_v30 = vadd.f32 %v6241_v3, %v3288_v29  ;;  %v3291_v41 = vadd.f32 %v4453_v61, %v3063_v35  ;;  %v3067_v12 = vadd.f32 %v6579_v0, %v2861_v4  ;;  %v6583_v5 = vld [vmem:[#allocation9_spill] sm:$0xff]  ;;  %v6584_v29 = vld [vmem:[#allocation51_spill] sm:$0xff]  ;;  %v6589_v18 = vld [vmem:[#allocation42_spill] sm:$0xff] }
 0x263   : > { %v3634_v38 = vsel %vm3570_vm4, %v3538_v28, %v3602_v16  ;;  %vm3568_vm5 = vcmp.ge.f32.partialorder %v3536_v51, 0.0  ;;  %v3600_v42 = vmul.f32 0.1, %v3536_v51  ;;  %v3224_v55 = vpop.f32.mrf.mxu1  ;;  %v3065_v9 = vadd.f32 %v6580_v31, %v2859_v63  ;;  %v4494_v28 = vpop.f32.mrf.mxu0 }
 0x264   : > { %3667 = vst.msk [vmem:[%s6163_s17 + $0x98] sm:$0xff] %vm3647_vm0, %v3634_v38  ;;  %vm3573_vm6 = vcmp.ge.f32.partialorder %v3541_v13, 0.0  ;;  %v3605_v46 = vmul.f32 0.1, %v3541_v13  ;;  %v3539_v52 = vadd.f32 %v6144_v43, %v3500_v30  ;;  %v3503_v3 = vadd.f32 %v6256_v21, %v3291_v41 }
 0x265   : > { %v3632_v44 = vsel %vm3568_vm5, %v3536_v51, %v3600_v42  ;;  %v3289_v19 = vadd.f32 %v3224_v55, %v3061_v2  ;;  %v4456_v40 = vpop.f32.mrf.mxu1  ;;  %v2864_v21 = vadd.f32 %v6578_v34, %v6577_v50  ;;  %v2865_v32 = vadd.f32 %v6584_v29, %v6583_v5  ;;  %v6585_v51 = vld [vmem:[#allocation36_spill] sm:$0xff]  ;;  %v6587_v42 = vld [vmem:[#allocation38_spill] sm:$0xff] }
 0x266   : > { %3665 = vst.msk [vmem:[%s6163_s17 + $0x88] sm:$0xff] %vm3647_vm0, %v3632_v44  ;;  %v3637_v26 = vsel %vm3573_vm6, %v3541_v13, %v3605_v46  ;;  %vm3571_vm7 = vcmp.ge.f32.partialorder %v3539_v52, 0.0  ;;  %v3603_v10 = vmul.f32 0.1, %v3539_v52  ;;  %v3542_v27 = vadd.f32 %v6144_v43, %v3503_v3  ;;  %v6586_v13 = vld [vmem:[#allocation12_spill] sm:$0xff] }
 0x267   : > { %3670 = vst.msk [vmem:[%s6163_s17 + $0xb0] sm:$0xff] %vm3647_vm0, %v3637_v26  ;;  %v3501_v14 = vadd.f32 %v6274_v22, %v3289_v19  ;;  %v3294_v47 = vadd.f32 %v4456_v40, %v3066_v17  ;;  %v3237_v36 = vpop.f32.mrf.mxu1  ;;  %v6581_v22 = vld [vmem:[#allocation8_spill] sm:$0xff]  ;;  %v3070_v61 = vadd.f32 %v6585_v51, %v2864_v21  ;;  %v3465_v17 = vpop.f32.mrf.mxu0 }
 0x268   : > { %v3635_v11 = vsel %vm3571_vm7, %v3539_v52, %v3603_v10  ;;  %vm3574_vm8 = vcmp.ge.f32.partialorder %v3542_v27, 0.0  ;;  %v3606_v60 = vmul.f32 0.1, %v3542_v27  ;;  %v3292_v15 = vadd.f32 %v3237_v36, %v3064_v48 }
 0x269   : > { %3668 = vst.msk [vmem:[%s6163_s17 + $0xa0] sm:$0xff] %vm3647_vm0, %v3635_v11  ;;  %v3540_v33 = vadd.f32 %v6144_v43, %v3501_v14  ;;  %v3506_v25 = vadd.f32 %v6287_v24, %v3294_v47  ;;  %v4457_v23 = vpop.f32.mrf.mxu1  ;;  %v2862_v59 = vadd.f32 %v6582_v56, %v6581_v22  ;;  %v4495_v19 = vpop.f32.mrf.mxu0 }
 0x26a   : > { %v3638_v45 = vsel %vm3574_vm8, %v3542_v27, %v3606_v60  ;;  %v3504_v35 = vadd.f32 %v6306_v7, %v3292_v15  ;;  %v3295_v8 = vadd.f32 %v4457_v23, %v3067_v12  ;;  %v2863_v7 = vadd.f32 %v6128_v62, %v6586_v13  ;;  %v6588_v62 = vld [vmem:[#allocation40_spill] sm:$0xff] }
 0x26b   : > { %3671 = vst.msk [vmem:[%s6163_s17 + $0xb8] sm:$0xff] %vm3647_vm0, %v3638_v45  ;;  %vm3572_vm9 = vcmp.ge.f32.partialorder %v3540_v33, 0.0  ;;  %v3604_v2 = vmul.f32 0.1, %v3540_v33  ;;  %v3545_v24 = vadd.f32 %v6144_v43, %v3506_v25  ;;  %v3240_v20 = vpop.f32.mrf.mxu1  ;;  %v3068_v55 = vadd.f32 %v6587_v42, %v2862_v59  ;;  %v3468_v12 = vpop.f32.mrf.mxu0 }
 0x26c   : > { %v3543_v1 = vadd.f32 %v6144_v43, %v3504_v35  ;;  %v3507_v39 = vadd.f32 %v4491_v49, %v3295_v8  ;;  %v3293_v16 = vadd.f32 %v3240_v20, %v3065_v9  ;;  %v3071_v52 = vadd.f32 %v6588_v62, %v2865_v32 }
 0x26d   : > { %v3636_v30 = vsel %vm3572_vm9, %v3540_v33, %v3604_v2  ;;  %vm3577_vm10 = vcmp.ge.f32.partialorder %v3545_v24, 0.0  ;;  %v3609_v41 = vmul.f32 0.1, %v3545_v24  ;;  %v4460_v57 = vpop.f32.mrf.mxu1  ;;  %v3069_v48 = vadd.f32 %v6589_v18, %v2863_v7 }
 0x26e   : > { %3669 = vst.msk [vmem:[%s6163_s17 + $0xa8] sm:$0xff] %vm3647_vm0, %v3636_v30  ;;  %vm3575_vm11 = vcmp.ge.f32.partialorder %v3543_v1, 0.0  ;;  %v3607_v6 = vmul.f32 0.1, %v3543_v1  ;;  %v3546_v58 = vadd.f32 %v6144_v43, %v3507_v39  ;;  %v3505_v49 = vadd.f32 %v3452_v37, %v3293_v16 }
 0x26f   : > { %v3641_v4 = vsel %vm3577_vm10, %v3545_v24, %v3609_v41  ;;  %v3298_v38 = vadd.f32 %v4460_v57, %v3070_v61  ;;  %v3253_v46 = vpop.f32.mrf.mxu1 }
 0x270   : > { %3674 = vst.msk [vmem:[%s6163_s17 + $0xd0] sm:$0xff] %vm3647_vm0, %v3641_v4  ;;  %v3639_v3 = vsel %vm3575_vm11, %v3543_v1, %v3607_v6  ;;  %vm3578_vm12 = vcmp.ge.f32.partialorder %v3546_v58, 0.0  ;;  %v3610_v53 = vmul.f32 0.1, %v3546_v58  ;;  %v3544_v54 = vadd.f32 %v6144_v43, %v3505_v49 }
 0x271   : > { %3672 = vst.msk [vmem:[%s6163_s17 + $0xc0] sm:$0xff] %vm3647_vm0, %v3639_v3  ;;  %v3510_v63 = vadd.f32 %v4494_v28, %v3298_v38  ;;  %v3296_v44 = vadd.f32 %v3253_v46, %v3068_v55  ;;  %v4461_v40 = vpop.f32.mrf.mxu1 }
 0x272   : > { %v3642_v37 = vsel %vm3578_vm12, %v3546_v58, %v3610_v53  ;;  %vm3576_vm13 = vcmp.ge.f32.partialorder %v3544_v54, 0.0  ;;  %v3608_v26 = vmul.f32 0.1, %v3544_v54  ;;  %v3299_v10 = vadd.f32 %v4461_v40, %v3071_v52 }
 0x273   : > { %3675 = vst.msk [vmem:[%s6163_s17 + $0xd8] sm:$0xff] %vm3647_vm0, %v3642_v37  ;;  %v3549_v27 = vadd.f32 %v6144_v43, %v3510_v63  ;;  %v3508_v50 = vadd.f32 %v3465_v17, %v3296_v44  ;;  %v3256_v34 = vpop.f32.mrf.mxu1 }
 0x274   : > { %v3640_v21 = vsel %vm3576_vm13, %v3544_v54, %v3608_v26  ;;  %v3511_v14 = vadd.f32 %v4495_v19, %v3299_v10  ;;  %v3297_v47 = vadd.f32 %v3256_v34, %v3069_v48 }
 0x275   : > { %3673 = vst.msk [vmem:[%s6163_s17 + $0xc8] sm:$0xff] %vm3647_vm0, %v3640_v21  ;;  %vm3581_vm14 = vcmp.ge.f32.partialorder %v3549_v27, 0.0  ;;  %v3613_v36 = vmul.f32 0.1, %v3549_v27  ;;  %v3547_v0 = vadd.f32 %v6144_v43, %v3508_v50 }
 0x276   : > { %v3550_v11 = vadd.f32 %v6144_v43, %v3511_v14  ;;  %v3509_v60 = vadd.f32 %v3468_v12, %v3297_v47 }
 0x277   : > { %v3645_v15 = vsel %vm3581_vm14, %v3549_v27, %v3613_v36  ;;  %vm3579_vm15 = vcmp.ge.f32.partialorder %v3547_v0, 0.0  ;;  %v3611_v33 = vmul.f32 0.1, %v3547_v0 }
 0x278   : > { %3678 = vst.msk [vmem:[%s6163_s17 + $0xf0] sm:$0xff] %vm3647_vm0, %v3645_v15  ;;  %vm3582_vm1 = vcmp.ge.f32.partialorder %v3550_v11, 0.0  ;;  %v3614_v25 = vmul.f32 0.1, %v3550_v11  ;;  %v3548_v23 = vadd.f32 %v6144_v43, %v3509_v60 }
 0x279   : > { %v3643_v31 = vsel %vm3579_vm15, %v3547_v0, %v3611_v33 }
 0x27a   : > { %3676 = vst.msk [vmem:[%s6163_s17 + $0xe0] sm:$0xff] %vm3647_vm0, %v3643_v31  ;;  %v3646_v9 = vsel %vm3582_vm1, %v3550_v11, %v3614_v25  ;;  %vm3580_vm2 = vcmp.ge.f32.partialorder %v3548_v23, 0.0  ;;  %v3612_v28 = vmul.f32 0.1, %v3548_v23 }
 0x27b   : > { %3679 = vst.msk [vmem:[%s6163_s17 + $0xf8] sm:$0xff] %vm3647_vm0, %v3646_v9 }
 0x27c   : > { %v3644_v22 = vsel %vm3580_vm2, %v3548_v23, %v3612_v28 }
 0x27d   : > { %3677 = vst.msk [vmem:[%s6163_s17 + $0xe8] sm:$0xff] %vm3647_vm0, %v3644_v22 }
 0x27e PF: > { %s13_s12 = sadd.s32 1, %s4546_s12  }
 0x27f   : > { %p10_p4 = scmp.ge.s32.totalorder %s13_s12, 4  }
 0x281   :  { %12 = sbr.rel (!%p10_p4) target bundleno = 1 (0x1), region = 71 }

// kernel: residual_blocks_with_input_conv.3
= control target key start
LH: loop header
LB: loop body
LE: loop exit
PB: predicated region body
PF: predicated region fallthrough
CT: control target
= control target key end

     0   :  { %s9942_s18 = smov 0   ;;  %s9944_s19 = smov 0   ;;  %s13744_s0 = inlined_call_operand.vmem [shape: f32[2,16,16,64], index: 0, kind: input, shape index: {}, may-alias: {0,5}]   ;;  %s13745_s1 = inlined_call_operand.vmem [shape: bf16[3,9,64,64], index: 1, kind: input, shape index: {}]   ;;  %s13746_s2 = inlined_call_operand.vmem [shape: f32[3,1,64], index: 2, kind: input, shape index: {}]   ;;  %s13747_s3 = inlined_call_operand.vmem [shape: bf16[3,9,64,64], index: 3, kind: input, shape index: {}]   ;;  %s13748_s4 = inlined_call_operand.vmem [shape: f32[3,1,64], index: 4, kind: input, shape index: {}]   ;;  %s13749_s5 = inlined_call_operand.vmem [shape: f32[2,16,16,64], index: 5, kind: output, shape index: {}, may-alias: {0,5}]  }
   0x1   :  { %s9946_s20 = smov 0   ;;  %s9948_s21 = smov 0  }
   0x2   :  { %s9950_s22 = smov 0  }
   0x3 LB: > { %s24_s23 = sadd.s32 1, %s9901_s20  ;;  %s27_s24 = sadd.s32 1, %s9905_s21  ;;  %s9909_s22 = sphi %s9950_s22, %s15_s22   ;;  %s9905_s21 = sphi %s9948_s21, %s14243_s21   ;;  %s9901_s20 = sphi %s9946_s20, %s14242_s20   ;;  %s9897_s19 = sphi %s9944_s19, %s14241_s19   ;;  %s9893_s18 = sphi %s9942_s18, %s14240_s18  }
   0x4   : > { %p25_p0 = scmp.ge.s32.totalorder %s24_s23, 3  ;;  %p7794_p1 = scmp.ge.s32.totalorder %s9909_s22, 1 }
   0x5   : > { %p235_p2 = scmp.lt.s32.totalorder %s9909_s22, 7 }
   0x6   : > { %s14245_s23 = smov (%p25_p0, %s24_s23), 0  ;;  %s14247_s24 = smov (!%p25_p0, %s27_s24), %s9905_s21 }
   0x7   : > { %p236_p3 = pnand %p7794_p1, %p235_p2  ;;  %p29_p4 = scmp.ge.s32.totalorder %s14247_s24, 2 }
   0x9   : > { %s14249_s24 = smov (%p29_p4, %s14247_s24), 0  ;;  %239 = sbr.rel (%p236_p3) target bundleno = 1263 (0x4ef), region = 40 }
   0xe   : > { %p279_p5 = scmp.lt.s32.totalorder %s9897_s19, 1  ;;  %p284_p6 = scmp.lt.s32.totalorder %s9893_s18, 2 }
   0xf   : > { %p7801_p7 = scmp.ne.s32.totalorder %s9893_s18, 0 }
  0x10   : > { %s14251_s19 = smov (!%p279_p5, %s9897_s19), 1 }
  0x11   : > { %s9972_s25 = scalar_select %p284_p6, %s9893_s18, 2 }
  0x12   : > { %s8502_s26 = sshll.u32 %s14251_s19, 8  ;;  %309 = sbr.rel (%p7801_p7) target bundleno = 50 (0x32), region = 44 }
  0x13   : > { %s9977_s29 = scalar_lea.vmem %s13744_s0, %s8502_s26  ;;  %s9648_s30 = smul.u32 288, %s9972_s25 }
  0x14   : > { %s9984_s8 = scalar_lea.vmem %s13746_s2, %s9972_s25  ;;  %s299_s11 = scalar_lea.vmem %s13748_s4, %s9972_s25 }
  0x15   : > { %s9993_s14 = scalar_lea.vmem %s13745_s1, %s9648_s30  ;;  %s9998_s17 = scalar_lea.vmem %s13747_s3, %s9648_s30 }
  0x16   : > { %s10003_s28 = scalar_lea.vmem %s13749_s5, %s8502_s26 }
  0x17   : > { %v310_v0 = vld [vmem:[%s9977_s29] sm:$0xff]  ;;  %v311_v1 = vld [vmem:[%s9977_s29 + $0x8] sm:$0xff]  ;;  %v312_v2 = vld [vmem:[%s9977_s29 + $0x10] sm:$0xff]  ;;  %vm342_vm0 = vcmask 523264  }
  0x18   : > { %v313_v3 = vld [vmem:[%s9977_s29 + $0x18] sm:$0xff]  ;;  %v314_v4 = vld [vmem:[%s9977_s29 + $0x20] sm:$0xff]  ;;  %v315_v5 = vld [vmem:[%s9977_s29 + $0x28] sm:$0xff] }
  0x19   : > { %v316_v6 = vld [vmem:[%s9977_s29 + $0x30] sm:$0xff]  ;;  %v317_v7 = vld [vmem:[%s9977_s29 + $0x38] sm:$0xff]  ;;  %v318_v8 = vld [vmem:[%s9977_s29 + $0x40] sm:$0xff] }
  0x1a   : > { %v319_v9 = vld [vmem:[%s9977_s29 + $0x48] sm:$0xff]  ;;  %v320_v10 = vld [vmem:[%s9977_s29 + $0x50] sm:$0xff]  ;;  %v321_v11 = vld [vmem:[%s9977_s29 + $0x58] sm:$0xff] }
  0x1b   : > { %v322_v12 = vld [vmem:[%s9977_s29 + $0x60] sm:$0xff]  ;;  %v323_v13 = vld [vmem:[%s9977_s29 + $0x68] sm:$0xff]  ;;  %v324_v14 = vld [vmem:[%s9977_s29 + $0x70] sm:$0xff] }
  0x1c   : > { %v325_v15 = vld [vmem:[%s9977_s29 + $0x78] sm:$0xff]  ;;  %v326_v16 = vld [vmem:[%s9977_s29 + $0x80] sm:$0xff]  ;;  %v327_v17 = vld [vmem:[%s9977_s29 + $0x88] sm:$0xff] }
  0x1d   : > { %v328_v18 = vld [vmem:[%s9977_s29 + $0x90] sm:$0xff]  ;;  %v329_v19 = vld [vmem:[%s9977_s29 + $0x98] sm:$0xff]  ;;  %v330_v20 = vld [vmem:[%s9977_s29 + $0xa0] sm:$0xff] }
  0x1e   : > { %v331_v21 = vld [vmem:[%s9977_s29 + $0xa8] sm:$0xff]  ;;  %v332_v22 = vld [vmem:[%s9977_s29 + $0xb0] sm:$0xff]  ;;  %v333_v23 = vld [vmem:[%s9977_s29 + $0xb8] sm:$0xff] }
  0x1f   : > { %v334_v24 = vld [vmem:[%s9977_s29 + $0xc0] sm:$0xff]  ;;  %v335_v25 = vld [vmem:[%s9977_s29 + $0xc8] sm:$0xff]  ;;  %v336_v26 = vld [vmem:[%s9977_s29 + $0xd0] sm:$0xff] }
  0x20   : > { %v337_v27 = vld [vmem:[%s9977_s29 + $0xd8] sm:$0xff]  ;;  %v338_v28 = vld [vmem:[%s9977_s29 + $0xe0] sm:$0xff]  ;;  %v339_v29 = vld [vmem:[%s9977_s29 + $0xe8] sm:$0xff] }
  0x21   : > { %v340_v30 = vld [vmem:[%s9977_s29 + $0xf0] sm:$0xff]  ;;  %v341_v31 = vld [vmem:[%s9977_s29 + $0xf8] sm:$0xff] }
  0x22   : > { %343 = vst.msk [vmem:[%s10003_s28] sm:$0xff] %vm342_vm0, %v310_v0  ;;  %344 = vst.msk [vmem:[%s10003_s28 + $0x8] sm:$0xff] %vm342_vm0, %v311_v1 }
  0x23   : > { %345 = vst.msk [vmem:[%s10003_s28 + $0x10] sm:$0xff] %vm342_vm0, %v312_v2  ;;  %346 = vst.msk [vmem:[%s10003_s28 + $0x18] sm:$0xff] %vm342_vm0, %v313_v3 }
  0x24   : > { %347 = vst.msk [vmem:[%s10003_s28 + $0x20] sm:$0xff] %vm342_vm0, %v314_v4  ;;  %348 = vst.msk [vmem:[%s10003_s28 + $0x28] sm:$0xff] %vm342_vm0, %v315_v5 }
  0x25   : > { %349 = vst.msk [vmem:[%s10003_s28 + $0x30] sm:$0xff] %vm342_vm0, %v316_v6  ;;  %350 = vst.msk [vmem:[%s10003_s28 + $0x38] sm:$0xff] %vm342_vm0, %v317_v7 }
  0x26   : > { %351 = vst.msk [vmem:[%s10003_s28 + $0x40] sm:$0xff] %vm342_vm0, %v318_v8  ;;  %352 = vst.msk [vmem:[%s10003_s28 + $0x48] sm:$0xff] %vm342_vm0, %v319_v9 }
  0x27   : > { %353 = vst.msk [vmem:[%s10003_s28 + $0x50] sm:$0xff] %vm342_vm0, %v320_v10  ;;  %354 = vst.msk [vmem:[%s10003_s28 + $0x58] sm:$0xff] %vm342_vm0, %v321_v11 }
  0x28   : > { %355 = vst.msk [vmem:[%s10003_s28 + $0x60] sm:$0xff] %vm342_vm0, %v322_v12  ;;  %356 = vst.msk [vmem:[%s10003_s28 + $0x68] sm:$0xff] %vm342_vm0, %v323_v13 }
  0x29   : > { %357 = vst.msk [vmem:[%s10003_s28 + $0x70] sm:$0xff] %vm342_vm0, %v324_v14  ;;  %358 = vst.msk [vmem:[%s10003_s28 + $0x78] sm:$0xff] %vm342_vm0, %v325_v15 }
  0x2a   : > { %359 = vst.msk [vmem:[%s10003_s28 + $0x80] sm:$0xff] %vm342_vm0, %v326_v16  ;;  %360 = vst.msk [vmem:[%s10003_s28 + $0x88] sm:$0xff] %vm342_vm0, %v327_v17 }
  0x2b   : > { %361 = vst.msk [vmem:[%s10003_s28 + $0x90] sm:$0xff] %vm342_vm0, %v328_v18  ;;  %362 = vst.msk [vmem:[%s10003_s28 + $0x98] sm:$0xff] %vm342_vm0, %v329_v19 }
  0x2c   : > { %363 = vst.msk [vmem:[%s10003_s28 + $0xa0] sm:$0xff] %vm342_vm0, %v330_v20  ;;  %364 = vst.msk [vmem:[%s10003_s28 + $0xa8] sm:$0xff] %vm342_vm0, %v331_v21 }
  0x2d   : > { %365 = vst.msk [vmem:[%s10003_s28 + $0xb0] sm:$0xff] %vm342_vm0, %v332_v22  ;;  %366 = vst.msk [vmem:[%s10003_s28 + $0xb8] sm:$0xff] %vm342_vm0, %v333_v23 }
  0x2e   : > { %367 = vst.msk [vmem:[%s10003_s28 + $0xc0] sm:$0xff] %vm342_vm0, %v334_v24  ;;  %368 = vst.msk [vmem:[%s10003_s28 + $0xc8] sm:$0xff] %vm342_vm0, %v335_v25 }
  0x2f   : > { %369 = vst.msk [vmem:[%s10003_s28 + $0xd0] sm:$0xff] %vm342_vm0, %v336_v26  ;;  %370 = vst.msk [vmem:[%s10003_s28 + $0xd8] sm:$0xff] %vm342_vm0, %v337_v27 }
  0x30   : > { %371 = vst.msk [vmem:[%s10003_s28 + $0xe0] sm:$0xff] %vm342_vm0, %v338_v28  ;;  %372 = vst.msk [vmem:[%s10003_s28 + $0xe8] sm:$0xff] %vm342_vm0, %v339_v29 }
  0x31   : > { %373 = vst.msk [vmem:[%s10003_s28 + $0xf0] sm:$0xff] %vm342_vm0, %v340_v30  ;;  %374 = vst.msk [vmem:[%s10003_s28 + $0xf8] sm:$0xff] %vm342_vm0, %v341_v31 }
  0x32 PF: > { %v10102_v32 = vld [vmem:[%s9993_s14 + $0x38] sm:$0xff]   ;;  %vm423_vm1 = vcmask 519168   ;;  %v10109_v34 = vld [vmem:[%s9993_s14 + $0x30] sm:$0xff]   ;;  %v9911_v35 = vmov 0   ;;  %vm426_vm2 = vcmask 516096   ;;  %v9694_v37 = vld [vmem:[%s9993_s14 + $0x28] sm:$0xff]  }
  0x33   : > { %v10105_v33 = vld [vmem:[%s9993_s14 + $0x18] sm:$0xff]   ;;  %8928 = vmatprep.subr.bf16.mxu0 %v10102_v32  ;;  %424 = vst.msk [vmem:[#allocation2] sm:$0xf] %vm423_vm1, %v9911_v35  ;;  %425 = vst.msk [vmem:[#allocation2 + $0x4] sm:$0xf] %vm423_vm1, %v9911_v35  ;;  %v9693_v36 = vld [vmem:[%s9993_s14 + $0x10] sm:$0xff]  }
  0x34   : > { %428 = vst.msk [vmem:[#allocation2 + $0xc] sm:$0xf] %vm423_vm1, %v9911_v35  ;;  %429 = vst.msk [vmem:[#allocation2 + $0x10] sm:$0xf] %vm423_vm1, %v9911_v35  ;;  %8929 = vmatpush3.bf16.msra.mxu0 %v10102_v32  ;;  %8968 = vmatprep.subr.bf16.mxu1 %v10105_v33  ;;  %v9695_v38 = vld [vmem:[%s9993_s14 + $0x8] sm:$0xff]   ;;  %v9696_v39 = vld [vmem:[%s9993_s14 + $0x20] sm:$0xff]  }
  0x35   : > { %431 = vst.msk [vmem:[#allocation2 + $0x18] sm:$0xf] %vm423_vm1, %v9911_v35  ;;  %432 = vst.msk [vmem:[#allocation2 + $0x1c] sm:$0xf] %vm423_vm1, %v9911_v35  ;;  %8969 = vmatpush3.bf16.msra.mxu1 %v10105_v33  ;;  %8930 = vmatprep.subr.bf16.mxu0 %v10109_v34  ;;  %v9697_v40 = vld [vmem:[%s9993_s14] sm:$0xff]   ;;  %vm1530_vm3 = vcmask 523264  }
  0x36   : > { %434 = vst.msk [vmem:[#allocation2 + $0x24] sm:$0xf] %vm423_vm1, %v9911_v35  ;;  %435 = vst.msk [vmem:[#allocation2 + $0x28] sm:$0xf] %vm423_vm1, %v9911_v35  ;;  %8970 = vmatprep.subr.bf16.mxu1 %v9693_v36  ;;  %vm1062_vm4 = vsmask.f32 3328 }
  0x37   : > { %437 = vst.msk [vmem:[#allocation2 + $0x30] sm:$0xf] %vm423_vm1, %v9911_v35  ;;  %438 = vst.msk [vmem:[#allocation2 + $0x34] sm:$0xf] %vm423_vm1, %v9911_v35  ;;  %vm1063_vm5 = vsmask.f32 7440 }
  0x38   : > { %440 = vst.msk [vmem:[#allocation2 + $0x3c] sm:$0xf] %vm423_vm1, %v9911_v35  ;;  %441 = vst.msk [vmem:[#allocation2 + $0x40] sm:$0xf] %vm423_vm1, %v9911_v35  ;;  %8931 = vmatpush3.bf16.msra.mxu0 %v10109_v34  ;;  %vm559_vm6 = vsmask.f32 256 }
  0x39   : > { %443 = vst.msk [vmem:[#allocation2 + $0x48] sm:$0xf] %vm423_vm1, %v9911_v35  ;;  %444 = vst.msk [vmem:[#allocation2 + $0x4c] sm:$0xf] %vm423_vm1, %v9911_v35  ;;  %8971 = vmatpush3.bf16.msra.mxu1 %v9693_v36  ;;  %8932 = vmatprep.subr.bf16.mxu0 %v9694_v37  ;;  %v10338_v50 = vld [vmem:[%s9993_s14 + $0x58] sm:$0xff]   ;;  %v375_v51 = vld [vmem:[%s10003_s28] sm:$0xff] }
  0x3a   : > { %446 = vst.msk [vmem:[#allocation2 + $0x54] sm:$0xf] %vm423_vm1, %v9911_v35  ;;  %447 = vst.msk [vmem:[#allocation2 + $0x58] sm:$0xf] %vm423_vm1, %v9911_v35  ;;  %8972 = vmatprep.subr.bf16.mxu1 %v9695_v38  ;;  %v1000_v41 = vld [vmem:[#allocation2] sm:$0xf]  ;;  %v8504_v59 = vpack.c.bf16 %v375_v51, %v375_v51 }
  0x3b   : > { %449 = vst.msk [vmem:[#allocation2 + $0x60] sm:$0xf] %vm423_vm1, %v9911_v35  ;;  %450 = vst.msk [vmem:[#allocation2 + $0x64] sm:$0xf] %vm423_vm1, %v9911_v35  ;;  %v1001_v42 = vld [vmem:[#allocation2 + $0x4] sm:$0xf] }
  0x3c   : > { %452 = vst.msk [vmem:[#allocation2 + $0x6c] sm:$0xf] %vm423_vm1, %v9911_v35  ;;  %453 = vst.msk [vmem:[#allocation2 + $0x70] sm:$0xf] %vm423_vm1, %v9911_v35  ;;  %v1066_v44 = vshrl.u32 %v1000_v41, 16  ;;  %v1069_v45 = vshll.u32 %v1000_v41, 16  ;;  %8933 = vmatpush3.bf16.msra.mxu0 %v9694_v37  ;;  %v7878_v49 = vcombine.low %v1000_v41, %v1001_v42 }
  0x3d   : > { %455 = vst.msk [vmem:[#allocation2 + $0x78] sm:$0xf] %vm423_vm1, %v9911_v35  ;;  %456 = vst.msk [vmem:[#allocation2 + $0x7c] sm:$0xf] %vm423_vm1, %v9911_v35  ;;  %v1075_v46 = vshll.u32 %v1001_v42, 16  ;;  %v1079_v47 = vshrl.u32 %v1001_v42, 16  ;;  %8973 = vmatpush3.bf16.msra.mxu1 %v9695_v38  ;;  %8934 = vmatprep.subr.bf16.mxu0 %v9696_v39 }
  0x3e   : > { %458 = vst.msk [vmem:[#allocation2 + $0x84] sm:$0xf] %vm423_vm1, %v9911_v35  ;;  %459 = vst.msk [vmem:[#allocation2 + $0x88] sm:$0xf] %vm423_vm1, %v9911_v35  ;;  %v1068_v52 = vrot.slane %v1066_v44, 4  ;;  %v1071_v53 = vrot.slane %v1069_v45, 5  ;;  %8974 = vmatprep.subr.bf16.mxu1 %v9697_v40  ;;  %8976 = vmatprep.mubr.msk.bf16.mxu1 %vm1530_vm3, %v7878_v49 }
  0x3f   : > { %461 = vst.msk [vmem:[#allocation2 + $0x90] sm:$0xf] %vm423_vm1, %v9911_v35  ;;  %462 = vst.msk [vmem:[#allocation2 + $0x94] sm:$0xf] %vm423_vm1, %v9911_v35  ;;  %v1077_v54 = vrot.slane %v1075_v46, 5  ;;  %v1081_v55 = vrot.slane %v1079_v47, 4 }
  0x40   : > { %464 = vst.msk [vmem:[#allocation2 + $0x9c] sm:$0xf] %vm423_vm1, %v9911_v35  ;;  %465 = vst.msk [vmem:[#allocation2 + $0xa0] sm:$0xf] %vm423_vm1, %v9911_v35  ;;  %v376_v56 = vld [vmem:[%s10003_s28 + $0x8] sm:$0xff]  ;;  %v377_v57 = vld [vmem:[%s10003_s28 + $0x10] sm:$0xff]  ;;  %v1072_v62 = vor.u32 %v1071_v53, %v1068_v52  ;;  %8935 = vmatpush3.bf16.msra.mxu0 %v9696_v39 }
  0x41   : > { %467 = vst.msk [vmem:[#allocation2 + $0xa8] sm:$0xf] %vm423_vm1, %v9911_v35  ;;  %468 = vst.msk [vmem:[#allocation2 + $0xac] sm:$0xf] %vm423_vm1, %v9911_v35  ;;  %v8505_v60 = vpack.c.bf16 %v376_v56, %v376_v56  ;;  %vm560_vm7 = vsmask.f32 4368  ;;  %v1082_v63 = vor.u32 %v1081_v55, %v1077_v54  ;;  %v8506_v0 = vpack.c.bf16 %v377_v57, %v377_v57  ;;  %8975 = vmatpush3.bf16.msra.mxu1 %v9697_v40 }
  0x42   : > { %470 = vst.msk [vmem:[#allocation2 + $0xb4] sm:$0xf] %vm423_vm1, %v9911_v35  ;;  %471 = vst.msk [vmem:[#allocation2 + $0xb8] sm:$0xf] %vm423_vm1, %v9911_v35  ;;  %v378_v61 = vld [vmem:[%s10003_s28 + $0x18] sm:$0xff]  ;;  %v13860_v1 = vmov 0  ;;  %9008 = vmatprep.subr.bf16.mxu0 %v10338_v50 }
  0x43   : > { %473 = vst.msk [vmem:[#allocation2 + $0xc0] sm:$0xf] %vm423_vm1, %v9911_v35  ;;  %474 = vst.msk [vmem:[#allocation2 + $0xc4] sm:$0xf] %vm423_vm1, %v9911_v35  ;;  %vm884_vm8 = vsmask.f32 7938  ;;  %v8507_v8 = vpack.c.bf16 %v378_v61, %v378_v61 }
  0x44   : > { %476 = vst.msk [vmem:[#allocation2 + $0xcc] sm:$0xf] %vm423_vm1, %v9911_v35  ;;  %477 = vst.msk [vmem:[#allocation2 + $0xd0] sm:$0xf] %vm423_vm1, %v9911_v35  ;;  %v563_v2 = vshrl.u32 %v8504_v59, 16  ;;  %v566_v3 = vshll.u32 %v8504_v59, 16 }
  0x45   : > { %4053 = vst.msk [vmem:[#allocation3] sm:$0xf] %vm423_vm1, %v9911_v35  ;;  %4054 = vst.msk [vmem:[#allocation3 + $0x4] sm:$0xf] %vm423_vm1, %v9911_v35  ;;  %v571_v4 = vshrl.u32 %v8505_v60, 16  ;;  %v574_v5 = vshll.u32 %v8505_v60, 16 }
  0x46   : > { %4056 = vst.msk [vmem:[#allocation3 + $0xc] sm:$0xf] %vm423_vm1, %v9911_v35  ;;  %4057 = vst.msk [vmem:[#allocation3 + $0x10] sm:$0xf] %vm423_vm1, %v9911_v35  ;;  %v1073_v6 = vrot.slane %v1072_v62, 4  ;;  %v1083_v7 = vrot.slane %v1082_v63, 4 }
  0x47   : > { %4059 = vst.msk [vmem:[#allocation3 + $0x18] sm:$0xf] %vm423_vm1, %v9911_v35  ;;  %4060 = vst.msk [vmem:[#allocation3 + $0x1c] sm:$0xf] %vm423_vm1, %v9911_v35  ;;  %v580_v9 = vshrl.u32 %v8506_v0, 16  ;;  %v379_v10 = vld [vmem:[%s10003_s28 + $0x20] sm:$0xff] }
  0x48   : > { %4062 = vst.msk [vmem:[#allocation3 + $0x24] sm:$0xf] %vm423_vm1, %v9911_v35  ;;  %4063 = vst.msk [vmem:[#allocation3 + $0x28] sm:$0xf] %vm423_vm1, %v9911_v35  ;;  %v13863_v11 = vmov 0  ;;  %v565_v12 = vrot.slane %v563_v2, 7  ;;  %v8508_v16 = vpack.c.bf16 %v379_v10, %v379_v10 }
  0x49   : > { %4065 = vst.msk [vmem:[#allocation3 + $0x30] sm:$0xf] %vm423_vm1, %v9911_v35  ;;  %4066 = vst.msk [vmem:[#allocation3 + $0x34] sm:$0xf] %vm423_vm1, %v9911_v35  ;;  %v573_v13 = vrot.slane %v571_v4, 7  ;;  %v583_v15 = vshll.u32 %v8506_v0, 16 }
  0x4a   : > { %4068 = vst.msk [vmem:[#allocation3 + $0x3c] sm:$0xf] %vm423_vm1, %v9911_v35  ;;  %4069 = vst.msk [vmem:[#allocation3 + $0x40] sm:$0xf] %vm423_vm1, %v9911_v35  ;;  %v886_v14 = vld [vmem:[#allocation2 + $0xc] sm:$0xf]  ;;  %v568_v25 = vor.u32 %v566_v3, %v565_v12 }
  0x4b   : > { %4071 = vst.msk [vmem:[#allocation3 + $0x48] sm:$0xf] %vm423_vm1, %v9911_v35  ;;  %4072 = vst.msk [vmem:[#allocation3 + $0x4c] sm:$0xf] %vm423_vm1, %v9911_v35  ;;  %v13866_v19 = vmov 0  ;;  %v582_v21 = vrot.slane %v580_v9, 7  ;;  %v576_v27 = vor.u32 %v574_v5, %v573_v13 }
  0x4c   : > { %4074 = vst.msk [vmem:[#allocation3 + $0x54] sm:$0xf] %vm423_vm1, %v9911_v35  ;;  %4075 = vst.msk [vmem:[#allocation3 + $0x58] sm:$0xf] %vm423_vm1, %v9911_v35  ;;  %v588_v22 = vshrl.u32 %v8507_v8, 16  ;;  %v380_v23 = vld [vmem:[%s10003_s28 + $0x28] sm:$0xff] }
  0x4d   : > { %4077 = vst.msk [vmem:[#allocation3 + $0x60] sm:$0xf] %vm423_vm1, %v9911_v35  ;;  %4078 = vst.msk [vmem:[#allocation3 + $0x64] sm:$0xf] %vm423_vm1, %v9911_v35  ;;  %v569_v26 = vrot.slane %v565_v12, 4  ;;  %v13869_v28 = vmov 0  ;;  %v585_v31 = vor.u32 %v583_v15, %v582_v21  ;;  %v8509_v38 = vpack.c.bf16 %v380_v23, %v380_v23 }
  0x4e   : > { %4080 = vst.msk [vmem:[#allocation3 + $0x6c] sm:$0xf] %vm423_vm1, %v9911_v35  ;;  %4081 = vst.msk [vmem:[#allocation3 + $0x70] sm:$0xf] %vm423_vm1, %v9911_v35  ;;  %v895_v29 = vld [vmem:[#allocation2 + $0x18] sm:$0xf] }
  0x4f   : > { %4083 = vst.msk [vmem:[#allocation3 + $0x78] sm:$0xf] %vm423_vm1, %v9911_v35  ;;  %4084 = vst.msk [vmem:[#allocation3 + $0x7c] sm:$0xf] %vm423_vm1, %v9911_v35  ;;  %v578_v30 = vrot.slane %v573_v13, 4  ;;  %v586_v32 = vrot.slane %v582_v21, 4 }
  0x50   : > { %4086 = vst.msk [vmem:[#allocation3 + $0x84] sm:$0xf] %vm423_vm1, %v9911_v35  ;;  %4087 = vst.msk [vmem:[#allocation3 + $0x88] sm:$0xf] %vm423_vm1, %v9911_v35  ;;  %v590_v33 = vrot.slane %v588_v22, 7  ;;  %v591_v36 = vshll.u32 %v8507_v8, 16 }
  0x51   : > { %4089 = vst.msk [vmem:[#allocation3 + $0x90] sm:$0xf] %vm423_vm1, %v9911_v35  ;;  %4090 = vst.msk [vmem:[#allocation3 + $0x94] sm:$0xf] %vm423_vm1, %v9911_v35  ;;  %v381_v39 = vld [vmem:[%s10003_s28 + $0x30] sm:$0xff]  ;;  %v382_v40 = vld [vmem:[%s10003_s28 + $0x38] sm:$0xff] }
  0x52   : > { %4092 = vst.msk [vmem:[#allocation3 + $0x9c] sm:$0xf] %vm423_vm1, %v9911_v35  ;;  %4093 = vst.msk [vmem:[#allocation3 + $0xa0] sm:$0xf] %vm423_vm1, %v9911_v35  ;;  %v595_v42 = vrot.slane %v590_v33, 4  ;;  %v597_v44 = vshrl.u32 %v8508_v16, 16  ;;  %v593_v46 = vor.u32 %v591_v36, %v590_v33  ;;  %v10391_v53 = vpack.c.bf16 %v381_v39, %v381_v39 }
  0x53   : > { %4095 = vst.msk [vmem:[#allocation3 + $0xa8] sm:$0xf] %vm423_vm1, %v9911_v35  ;;  %4096 = vst.msk [vmem:[#allocation3 + $0xac] sm:$0xf] %vm423_vm1, %v9911_v35  ;;  %v383_v45 = vld [vmem:[%s10003_s28 + $0x40] sm:$0xff]  ;;  %v600_v47 = vshll.u32 %v8508_v16, 16 }
  0x54   : > { %4098 = vst.msk [vmem:[#allocation3 + $0xb4] sm:$0xf] %vm423_vm1, %v9911_v35  ;;  %4099 = vst.msk [vmem:[#allocation3 + $0xb8] sm:$0xf] %vm423_vm1, %v9911_v35  ;;  %v608_v49 = vshll.u32 %v8509_v38, 16  ;;  %v599_v52 = vrot.slane %v597_v44, 7  ;;  %v10398_v59 = vpack.c.bf16 %v383_v45, %v383_v45 }
  0x55   : > { %4101 = vst.msk [vmem:[#allocation3 + $0xc0] sm:$0xf] %vm423_vm1, %v9911_v35  ;;  %4102 = vst.msk [vmem:[#allocation3 + $0xc4] sm:$0xf] %vm423_vm1, %v9911_v35  ;;  %v384_v55 = vld [vmem:[%s10003_s28 + $0x48] sm:$0xff]  ;;  %v614_v63 = vshrl.u32 %v10391_v53, 16 }
  0x56   : > { %4104 = vst.msk [vmem:[#allocation3 + $0xcc] sm:$0xf] %vm423_vm1, %v9911_v35  ;;  %4105 = vst.msk [vmem:[#allocation3 + $0xd0] sm:$0xf] %vm423_vm1, %v9911_v35  ;;  %v602_v60 = vor.u32 %v600_v47, %v599_v52  ;;  %v603_v61 = vrot.slane %v599_v52, 4  ;;  %v10403_v4 = vpack.c.bf16 %v384_v55, %v384_v55  ;;  %v634_v15 = vshll.u32 %v10398_v59, 16 }
  0x57   : > { %427 = vst.msk [vmem:[#allocation2 + $0x8] sm:$0x1] %vm426_vm2, %v9911_v35  ;;  %430 = vst.msk [vmem:[#allocation2 + $0x14] sm:$0x1] %vm426_vm2, %v9911_v35  ;;  %vm2069_vm13 = vcmask 1042432   ;;  %vm2070_vm14 = vcmask 1046532  }
  0x58   : > { %433 = vst.msk [vmem:[#allocation2 + $0x20] sm:$0x1] %vm426_vm2, %v9911_v35  ;;  %436 = vst.msk [vmem:[#allocation2 + $0x2c] sm:$0x1] %vm426_vm2, %v9911_v35 }
  0x59   : > { %439 = vst.msk [vmem:[#allocation2 + $0x38] sm:$0x1] %vm426_vm2, %v9911_v35  ;;  %442 = vst.msk [vmem:[#allocation2 + $0x44] sm:$0x1] %vm426_vm2, %v9911_v35 }
  0x5a   : > { %445 = vst.msk [vmem:[#allocation2 + $0x50] sm:$0x1] %vm426_vm2, %v9911_v35  ;;  %448 = vst.msk [vmem:[#allocation2 + $0x5c] sm:$0x1] %vm426_vm2, %v9911_v35 }
  0x5b   : > { %451 = vst.msk [vmem:[#allocation2 + $0x68] sm:$0x1] %vm426_vm2, %v9911_v35  ;;  %454 = vst.msk [vmem:[#allocation2 + $0x74] sm:$0x1] %vm426_vm2, %v9911_v35 }
  0x5c   : > { %457 = vst.msk [vmem:[#allocation2 + $0x80] sm:$0x1] %vm426_vm2, %v9911_v35  ;;  %460 = vst.msk [vmem:[#allocation2 + $0x8c] sm:$0x1] %vm426_vm2, %v9911_v35 }
  0x5d   : > { %463 = vst.msk [vmem:[#allocation2 + $0x98] sm:$0x1] %vm426_vm2, %v9911_v35  ;;  %466 = vst.msk [vmem:[#allocation2 + $0xa4] sm:$0x1] %vm426_vm2, %v9911_v35 }
  0x5e   : > { %469 = vst.msk [vmem:[#allocation2 + $0xb0] sm:$0x1] %vm426_vm2, %v9911_v35  ;;  %472 = vst.msk [vmem:[#allocation2 + $0xbc] sm:$0x1] %vm426_vm2, %v9911_v35  ;;  %v1002_v43 = vld [vmem:[#allocation2 + $0x8] sm:$0x1] }
  0x5f   : > { %475 = vst.msk [vmem:[#allocation2 + $0xc8] sm:$0x1] %vm426_vm2, %v9911_v35  ;;  %478 = vst.msk [vmem:[#allocation2 + $0xd4] sm:$0x1] %vm426_vm2, %v9911_v35  ;;  %v1085_v48 = vshll.u32 %v1002_v43, 16 }
  0x60   : > { %4055 = vst.msk [vmem:[#allocation3 + $0x8] sm:$0x1] %vm426_vm2, %v9911_v35  ;;  %4058 = vst.msk [vmem:[#allocation3 + $0x14] sm:$0x1] %vm426_vm2, %v9911_v35  ;;  %v892_v20 = vld [vmem:[#allocation2 + $0x14] sm:$0x1] }
  0x61   : > { %4061 = vst.msk [vmem:[#allocation3 + $0x20] sm:$0x1] %vm426_vm2, %v9911_v35  ;;  %4064 = vst.msk [vmem:[#allocation3 + $0x2c] sm:$0x1] %vm426_vm2, %v9911_v35  ;;  %v1087_v58 = vrot.slane %v1085_v48, 5  ;;  %v605_v48 = vshrl.u32 %v8509_v38, 16 }
  0x62   : > { %4067 = vst.msk [vmem:[#allocation3 + $0x38] sm:$0x1] %vm426_vm2, %v9911_v35  ;;  %4070 = vst.msk [vmem:[#allocation3 + $0x44] sm:$0x1] %vm426_vm2, %v9911_v35  ;;  %v899_v37 = vld [vmem:[#allocation2 + $0x20] sm:$0x1] }
  0x63   : > { %4073 = vst.msk [vmem:[#allocation3 + $0x50] sm:$0x1] %vm426_vm2, %v9911_v35  ;;  %4076 = vst.msk [vmem:[#allocation3 + $0x5c] sm:$0x1] %vm426_vm2, %v9911_v35  ;;  %v607_v57 = vrot.slane %v605_v48, 7 }
  0x64   : > { %4079 = vst.msk [vmem:[#allocation3 + $0x68] sm:$0x1] %vm426_vm2, %v9911_v35  ;;  %4082 = vst.msk [vmem:[#allocation3 + $0x74] sm:$0x1] %vm426_vm2, %v9911_v35  ;;  %v906_v62 = vld [vmem:[#allocation2 + $0x2c] sm:$0x1] }
  0x65   : > { %4085 = vst.msk [vmem:[#allocation3 + $0x80] sm:$0x1] %vm426_vm2, %v9911_v35  ;;  %4088 = vst.msk [vmem:[#allocation3 + $0x8c] sm:$0x1] %vm426_vm2, %v9911_v35  ;;  %v610_v0 = vor.u32 %v608_v49, %v607_v57  ;;  %v612_v2 = vrot.slane %v607_v57, 4 }
  0x66   : > { %4091 = vst.msk [vmem:[#allocation3 + $0x98] sm:$0x1] %vm426_vm2, %v9911_v35  ;;  %4094 = vst.msk [vmem:[#allocation3 + $0xa4] sm:$0x1] %vm426_vm2, %v9911_v35 }
  0x67   : > { %4097 = vst.msk [vmem:[#allocation3 + $0xb0] sm:$0x1] %vm426_vm2, %v9911_v35  ;;  %4100 = vst.msk [vmem:[#allocation3 + $0xbc] sm:$0x1] %vm426_vm2, %v9911_v35 }
  0x68   : > { %4103 = vst.msk [vmem:[#allocation3 + $0xc8] sm:$0x1] %vm426_vm2, %v9911_v35  ;;  %4106 = vst.msk [vmem:[#allocation3 + $0xd4] sm:$0x1] %vm426_vm2, %v9911_v35 }
  0x69   : > { %vm10347_vm9 = vmor %vm1062_vm4, %vm1063_vm5 }
  0x6a   : > { %v13861_v1 = vsel %vm10347_vm9, 4294967295, %v13860_v1  ;;  %vm10355_vm10 = vmor %vm559_vm6, %vm560_vm7  ;;  %v1078_v17 = vsel %vm10347_vm9, %v1073_v6, %v1077_v54  ;;  %v1088_v18 = vsel %vm10347_vm9, %v1083_v7, %v1087_v58  ;;  %v10393_v54 = vpack.c.bf16 %v382_v40, %v382_v40  ;;  %v902_v58 = vld [vmem:[#allocation2 + $0x24] sm:$0xf] }
  0x6b   : > { %13862 = vst [vmem:[#allocation4_spill] sm:$0xff] %v13861_v1  ;;  %v13864_v11 = vsel %vm10355_vm10, 4294967295, %v13863_v11  ;;  %vm10365_vm11 = vmand %vm423_vm1, %vm884_vm8  ;;  %v7842_v24 = vcombine.low %v1078_v17, %v1088_v18  ;;  %v577_v34 = vsel %vm10355_vm10, %v569_v26, %v576_v27  ;;  %v594_v56 = vsel %vm10355_vm10, %v586_v32, %v593_v46 }
  0x6c   : > { %13865 = vst [vmem:[#allocation5_spill] sm:$0xff] %v13864_v11  ;;  %v13867_v19 = vsel %vm10365_vm11, 4294967295, %v13866_v19  ;;  %vm10372_vm12 = vmand %vm426_vm2, %vm559_vm6  ;;  %v887_v35 = vsel %vm10365_vm11, %v568_v25, %v886_v14  ;;  %v896_v43 = vsel %vm10365_vm11, %v585_v31, %v895_v29  ;;  %v622_v3 = vshrl.u32 %v10393_v54, 16 }
  0x6d   : > { %13868 = vst [vmem:[#allocation6_spill] sm:$0xff] %v13867_v19  ;;  %v13870_v28 = vsel %vm10372_vm12, 4294967295, %v13869_v28  ;;  %8936 = vmatprep.mubr.msk.bf16.mxu0 %vm1530_vm3, %v7842_v24  ;;  %888 = vst [vmem:[#allocation2 + $0xc] sm:$0xf] %v887_v35  ;;  %v893_v41 = vsel %vm10372_vm12, %v578_v30, %v892_v20  ;;  %v900_v51 = vsel %vm10372_vm12, %v595_v42, %v899_v37  ;;  %v10407_v6 = vrot.slane %v614_v63, 7 }
  0x6e   : > { %13871 = vst [vmem:[#allocation7_spill] sm:$0xff] %v13870_v28  ;;  %889 = vst.msk [vmem:[#allocation2 + $0x10] sm:$0xf] %vm423_vm1, %v577_v34  ;;  %v903_v5 = vsel %vm10365_vm11, %v602_v60, %v902_v58  ;;  %v617_v7 = vshll.u32 %v10391_v53, 16  ;;  %v625_v8 = vshll.u32 %v10393_v54, 16  ;;  %v611_v12 = vsel %vm10355_vm10, %v603_v61, %v610_v0 }
  0x6f   : > { %894 = vst [vmem:[#allocation2 + $0x14] sm:$0x1] %v893_v41  ;;  %897 = vst [vmem:[#allocation2 + $0x18] sm:$0xf] %v896_v43  ;;  %v907_v13 = vsel %vm10372_vm12, %v612_v2, %v906_v62  ;;  %v631_v14 = vshrl.u32 %v10398_v59, 16  ;;  %v10420_v25 = vrot.slane %v622_v3, 7 }
  0x70   : > { %901 = vst [vmem:[#allocation2 + $0x20] sm:$0x1] %v900_v51  ;;  %898 = vst.msk [vmem:[#allocation2 + $0x1c] sm:$0xf] %vm423_vm1, %v594_v56  ;;  %v639_v26 = vshrl.u32 %v10403_v4, 16  ;;  %v619_v58 = vor.u32 %v617_v7, %v10407_v6 }
  0x71   : > { %904 = vst [vmem:[#allocation2 + $0x24] sm:$0xf] %v903_v5  ;;  %905 = vst.msk [vmem:[#allocation2 + $0x28] sm:$0xf] %vm423_vm1, %v611_v12  ;;  %v909_v7 = vld [vmem:[#allocation2 + $0x30] sm:$0xf] }
  0x72   : > { %908 = vst [vmem:[#allocation2 + $0x2c] sm:$0x1] %v907_v13  ;;  %vm10812_vm15 = vmor %vm2069_vm13, %vm2070_vm14 }
  0x74   : > { %v1003_v9 = vld [vmem:[#allocation2 + $0xc] sm:$0xf] }
  0x75   : > { %v1004_v10 = vld [vmem:[#allocation2 + $0x10] sm:$0xf]  ;;  %v1090_v17 = vshrl.u32 %v1003_v9, 16  ;;  %v1093_v18 = vshll.u32 %v1003_v9, 16 }
  0x76   : > { %v1005_v16 = vld [vmem:[#allocation2 + $0x14] sm:$0x1]  ;;  %v1099_v20 = vshll.u32 %v1004_v10, 16  ;;  %v1103_v21 = vshrl.u32 %v1004_v10, 16  ;;  %v10418_v23 = vcombine.low %v1003_v9, %v1004_v10  ;;  %v1006_v24 = vld [vmem:[#allocation2 + $0x18] sm:$0xf] }
  0x77   : > { %v1109_v22 = vshll.u32 %v1005_v16, 16  ;;  %v1092_v27 = vrot.slane %v1090_v17, 4  ;;  %v1095_v29 = vrot.slane %v1093_v18, 5  ;;  %v1008_v32 = vld [vmem:[#allocation2 + $0x20] sm:$0x1]  ;;  %v1114_v35 = vshrl.u32 %v1006_v24, 16 }
  0x78   : > { %v1101_v30 = vrot.slane %v1099_v20, 5  ;;  %v1105_v31 = vrot.slane %v1103_v21, 4  ;;  %8977 = vmatmul.mubr.msk.bf16.vlgmr.msra.gmra.mxu1 %vm1530_vm3, %v10418_v23  ;;  %v1007_v34 = vld [vmem:[#allocation2 + $0x1c] sm:$0xf]  ;;  %v1117_v36 = vshll.u32 %v1006_v24, 16  ;;  %v1133_v37 = vshll.u32 %v1008_v32, 16 }
  0x79   : > { %v1111_v33 = vrot.slane %v1109_v22, 5  ;;  %v1096_v38 = vor.u32 %v1095_v29, %v1092_v27  ;;  %v1123_v40 = vshll.u32 %v1007_v34, 16  ;;  %v1127_v41 = vshrl.u32 %v1007_v34, 16  ;;  %v1009_v51 = vld [vmem:[#allocation2 + $0x24] sm:$0xf]  ;;  %v9703_v9 = vld [vmem:[%s9993_s14 + $0x50] sm:$0xff]  }
  0x7a   : > { %v1106_v39 = vor.u32 %v1105_v31, %v1101_v30  ;;  %v1116_v42 = vrot.slane %v1114_v35, 4  ;;  %v1119_v43 = vrot.slane %v1117_v36, 5  ;;  %v1135_v44 = vrot.slane %v1133_v37, 5  ;;  %v1010_v53 = vld [vmem:[#allocation2 + $0x28] sm:$0xf] }
  0x7b   : > { %v10425_v45 = vcombine.low %v1006_v24, %v1007_v34  ;;  %v1097_v46 = vrot.slane %v1096_v38, 4  ;;  %v1125_v48 = vrot.slane %v1123_v40, 5  ;;  %v1129_v49 = vrot.slane %v1127_v41, 4  ;;  %v1011_v55 = vld [vmem:[#allocation2 + $0x2c] sm:$0x1]  ;;  %v385_v24 = vld [vmem:[%s10003_s28 + $0x50] sm:$0xff] }
  0x7c   : > { %v1107_v47 = vrot.slane %v1106_v39, 4  ;;  %v1120_v52 = vor.u32 %v1119_v43, %v1116_v42  ;;  %v1138_v56 = vshrl.u32 %v1009_v51, 16  ;;  %v1141_v57 = vshll.u32 %v1009_v51, 16  ;;  %v913_v22 = vld [vmem:[#allocation2 + $0x38] sm:$0x1]  ;;  %v9708_v35 = vld [vmem:[%s9993_s14 + $0x48] sm:$0xff]  }
  0x7d   : > { %8980 = vmatprep.mubr.msk.bf16.mxu1 %vm1530_vm3, %v10425_v45  ;;  %v1102_v60 = vsel %vm10347_vm9, %v1097_v46, %v1101_v30  ;;  %v1130_v62 = vor.u32 %v1129_v49, %v1125_v48  ;;  %v1147_v63 = vshll.u32 %v1010_v53, 16  ;;  %v1151_v13 = vshrl.u32 %v1010_v53, 16  ;;  %v916_v34 = vld [vmem:[#allocation2 + $0x3c] sm:$0xf]  ;;  %v920_v38 = vld [vmem:[#allocation2 + $0x44] sm:$0x1] }
  0x7e   : > { %v1112_v61 = vsel %vm10347_vm9, %v1107_v47, %v1111_v33  ;;  %v1121_v2 = vrot.slane %v1120_v52, 4  ;;  %v1140_v3 = vrot.slane %v1138_v56, 4  ;;  %v1143_v5 = vrot.slane %v1141_v57, 5  ;;  %v387_v39 = vld [vmem:[%s10003_s28 + $0x60] sm:$0xff]  ;;  %v9715_v42 = vld [vmem:[%s9993_s14 + $0x78] sm:$0xff]  }
  0x7f   : > { %v10434_v0 = vcombine.low %v1102_v60, %v1112_v61  ;;  %v1131_v10 = vrot.slane %v1130_v62, 4  ;;  %v1149_v12 = vrot.slane %v1147_v63, 5  ;;  %v1157_v16 = vshll.u32 %v1011_v55, 16  ;;  %v388_v55 = vld [vmem:[%s10003_s28 + $0x68] sm:$0xff]  ;;  %9048 = vmatprep.subr.bf16.mxu1 %v9715_v42 }
  0x80   : > { %v1126_v17 = vsel %vm10347_vm9, %v1121_v2, %v1125_v48  ;;  %v1144_v18 = vor.u32 %v1143_v5, %v1140_v3  ;;  %v10441_v20 = vcombine.low %v1009_v51, %v1010_v53  ;;  %v620_v21 = vrot.slane %v10407_v6, 4  ;;  %v9716_v48 = vld [vmem:[%s9993_s14 + $0x70] sm:$0xff]   ;;  %9049 = vmatpush3.bf16.msra.mxu1 %v9715_v42  ;;  %v9719_v2 = vld [vmem:[%s9993_s14 + $0x68] sm:$0xff]  }
  0x81   : > { %13872 = vst [vmem:[#allocation8_spill] sm:$0xff] %v10434_v0  ;;  %8937 = vmatmul.mubr.msk.bf16.vlgmr.msra.gmra.mxu0 %vm1530_vm3, %v10434_v0  ;;  %v1136_v27 = vsel %vm10347_vm9, %v1131_v10, %v1135_v44  ;;  %v1153_v29 = vrot.slane %v1151_v13, 4  ;;  %v1159_v30 = vrot.slane %v1157_v16, 5  ;;  %v627_v31 = vor.u32 %v625_v8, %v10420_v25  ;;  %9050 = vmatprep.subr.bf16.mxu1 %v9716_v48  ;;  %v923_v5 = vld [vmem:[#allocation2 + $0x48] sm:$0xf] }
  0x82   : > { %9009 = vmatpush3.bf16.msra.mxu0 %v10338_v50  ;;  %v10451_v32 = vcombine.low %v1126_v17, %v1136_v27  ;;  %v1145_v33 = vrot.slane %v1144_v18, 4  ;;  %8981 = vmatmul.mubr.msk.bf16.gmra.mxu1 %vm1530_vm3, %v10441_v20  ;;  %v629_v6 = vrot.slane %v10420_v25, 4  ;;  %v910_v50 = vsel %vm10365_vm11, %v619_v58, %v909_v7  ;;  %v386_v25 = vld [vmem:[%s10003_s28 + $0x58] sm:$0xff]  ;;  %v389_v58 = vld [vmem:[%s10003_s28 + $0x70] sm:$0xff] }
  0x83   : > { %9010 = vmatprep.subr.bf16.mxu0 %v9703_v9  ;;  %v1154_v36 = vor.u32 %v1153_v29, %v1149_v12  ;;  %v628_v54 = vsel %vm10355_vm10, %v620_v21, %v627_v31  ;;  %911 = vst [vmem:[#allocation2 + $0x30] sm:$0xf] %v910_v50  ;;  %v633_v8 = vrot.slane %v631_v14, 7  ;;  %v641_v37 = vrot.slane %v639_v26, 7  ;;  %v927_v18 = vld [vmem:[#allocation2 + $0x50] sm:$0x1] }
  0x84   : > { %13873 = vst [vmem:[#allocation9_spill] sm:$0xff] %v10451_v32  ;;  %8940 = vmatprep.mubr.msk.bf16.mxu0 %vm1530_vm3, %v10451_v32  ;;  %v1150_v40 = vsel %vm10347_vm9, %v1145_v33, %v1149_v12  ;;  %912 = vst.msk [vmem:[#allocation2 + $0x34] sm:$0xf] %vm423_vm1, %v628_v54  ;;  %v914_v41 = vsel %vm10372_vm12, %v629_v6, %v913_v22  ;;  %v642_v14 = vshll.u32 %v10403_v4, 16  ;;  %v9713_v4 = vld [vmem:[%s9993_s14 + $0x40] sm:$0xff]   ;;  %9051 = vmatpush3.bf16.msra.mxu1 %v9716_v48 }
  0x85   : > { %v8514_v26 = vpack.c.bf16 %v385_v24, %v385_v24  ;;  %v1155_v43 = vrot.slane %v1154_v36, 4  ;;  %915 = vst [vmem:[#allocation2 + $0x38] sm:$0x1] %v914_v41  ;;  %v636_v44 = vor.u32 %v634_v15, %v633_v8  ;;  %v637_v46 = vrot.slane %v633_v8, 4  ;;  %v9720_v22 = vld [vmem:[%s9993_s14 + $0x60] sm:$0xff]   ;;  %9052 = vmatprep.subr.bf16.mxu1 %v9719_v2 }
  0x86   : > { %v646_v47 = vrot.slane %v641_v37, 4  ;;  %9011 = vmatpush3.bf16.msra.mxu0 %v9703_v9  ;;  %v644_v49 = vor.u32 %v642_v14, %v641_v37  ;;  %v8515_v51 = vpack.c.bf16 %v386_v25, %v386_v25  ;;  %v8516_v57 = vpack.c.bf16 %v387_v39, %v387_v39  ;;  %v9806_v32 = vld [vmem:[#allocation2 + $0x20] sm:$0x1] }
  0x87   : > { %v648_v52 = vshrl.u32 %v8514_v26, 16  ;;  %v651_v53 = vshll.u32 %v8514_v26, 16  ;;  %9012 = vmatprep.subr.bf16.mxu0 %v9708_v35  ;;  %v1160_v56 = vsel %vm10347_vm9, %v1155_v43, %v1159_v30  ;;  %v917_v59 = vsel %vm10365_vm11, %v636_v44, %v916_v34 }
  0x88   : > { %v921_v15 = vsel %vm10372_vm12, %v646_v47, %v920_v38  ;;  %v10488_v60 = vcombine.low %v1150_v40, %v1160_v56  ;;  %v645_v61 = vsel %vm10355_vm10, %v637_v46, %v644_v49  ;;  %918 = vst [vmem:[#allocation2 + $0x3c] sm:$0xf] %v917_v59  ;;  %v656_v63 = vshrl.u32 %v8515_v51, 16  ;;  %9053 = vmatpush3.bf16.msra.mxu1 %v9719_v2  ;;  %v9721_v46 = vld [vmem:[%s9993_s14 + $0x98] sm:$0xff]  }
  0x89   : > { %922 = vst [vmem:[#allocation2 + $0x44] sm:$0x1] %v921_v15  ;;  %v650_v62 = vrot.slane %v648_v52, 7  ;;  %919 = vst.msk [vmem:[#allocation2 + $0x40] sm:$0xf] %vm423_vm1, %v645_v61  ;;  %v659_v3 = vshll.u32 %v8515_v51, 16  ;;  %v10494_v9 = vpack.c.bf16 %v388_v55, %v388_v55  ;;  %v10498_v21 = vpack.c.bf16 %v389_v58, %v389_v58  ;;  %9054 = vmatprep.subr.bf16.mxu1 %v9720_v22 }
  0x8a   : > { %13874 = vst [vmem:[#allocation10_spill] sm:$0xff] %v10488_v60  ;;  %v665_v10 = vshrl.u32 %v8516_v57, 16  ;;  %v668_v12 = vshll.u32 %v8516_v57, 16  ;;  %9013 = vmatpush3.bf16.msra.mxu0 %v9708_v35  ;;  %v1012_v13 = vld [vmem:[#allocation2 + $0x30] sm:$0xf]  ;;  %v658_v17 = vrot.slane %v656_v63, 7 }
  0x8b   : > { %8941 = vmatmul.mubr.msk.bf16.gmra.mxu0 %vm1530_vm3, %v10488_v60  ;;  %v653_v16 = vor.u32 %v651_v53, %v650_v62  ;;  %v654_v7 = vrot.slane %v650_v62, 4  ;;  %9014 = vmatprep.subr.bf16.mxu0 %v9713_v4  ;;  %v1013_v24 = vld [vmem:[#allocation2 + $0x34] sm:$0xf]  ;;  %v1162_v27 = vshrl.u32 %v1012_v13, 16  ;;  %v1165_v29 = vshll.u32 %v1012_v13, 16  ;;  %v390_v15 = vld [vmem:[%s10003_s28 + $0x78] sm:$0xff] }
  0x8c   : > { %v10501_v30 = vrot.slane %v665_v10, 7  ;;  %v673_v31 = vshrl.u32 %v10494_v9, 16  ;;  %v1014_v33 = vld [vmem:[#allocation2 + $0x38] sm:$0x1]  ;;  %v1171_v6 = vshll.u32 %v1013_v24, 16  ;;  %v1175_v50 = vshrl.u32 %v1013_v24, 16  ;;  %9055 = vmatpush3.bf16.msra.mxu1 %v9720_v22 }
  0x8d   : > { %v10504_v34 = vcombine.low %v1012_v13, %v1013_v24  ;;  %v661_v35 = vor.u32 %v659_v3, %v658_v17  ;;  %v1164_v36 = vrot.slane %v1162_v27, 4  ;;  %v1167_v54 = vrot.slane %v1165_v29, 5  ;;  %v930_v53 = vld [vmem:[#allocation2 + $0x54] sm:$0xf]  ;;  %v391_v10 = vld [vmem:[%s10003_s28 + $0x80] sm:$0xff] }
  0x8e   : > { %v1181_v8 = vshll.u32 %v1014_v33, 16  ;;  %v663_v37 = vrot.slane %v658_v17, 4  ;;  %9015 = vmatpush3.bf16.msra.mxu0 %v9713_v4  ;;  %v1173_v38 = vrot.slane %v1171_v6, 5  ;;  %v1177_v25 = vrot.slane %v1175_v50, 4 }
  0x8f   : > { %8984 = vmatprep.mubr.msk.bf16.mxu1 %vm1530_vm3, %v10504_v34  ;;  %v662_v39 = vsel %vm10355_vm10, %v654_v7, %v661_v35  ;;  %v924_v40 = vsel %vm10365_vm11, %v653_v16, %v923_v5  ;;  %v1168_v41 = vor.u32 %v1167_v54, %v1164_v36  ;;  %v1015_v26 = vld [vmem:[#allocation2 + $0x3c] sm:$0xf]  ;;  %v670_v44 = vor.u32 %v668_v12, %v10501_v30 }
  0x90   : > { %v1183_v14 = vrot.slane %v1181_v8, 5  ;;  %v1017_v42 = vld [vmem:[#allocation2 + $0x44] sm:$0x1]  ;;  %925 = vst [vmem:[#allocation2 + $0x48] sm:$0xf] %v924_v40  ;;  %v928_v43 = vsel %vm10372_vm12, %v663_v37, %v927_v18  ;;  %v1178_v47 = vor.u32 %v1177_v25, %v1173_v38  ;;  %v1186_v49 = vshrl.u32 %v1015_v26, 16  ;;  %9088 = vmatprep.subr.bf16.mxu0 %v9721_v46 }
  0x91   : > { %926 = vst.msk [vmem:[#allocation2 + $0x4c] sm:$0xf] %vm423_vm1, %v662_v39  ;;  %v1016_v48 = vld [vmem:[#allocation2 + $0x40] sm:$0xf]  ;;  %v1189_v51 = vshll.u32 %v1015_v26, 16  ;;  %v1205_v52 = vshll.u32 %v1017_v42, 16  ;;  %v931_v24 = vsel %vm10365_vm11, %v670_v44, %v930_v53  ;;  %v8519_v27 = vpack.c.bf16 %v390_v15, %v390_v15 }
  0x92   : > { %929 = vst [vmem:[#allocation2 + $0x50] sm:$0x1] %v928_v43  ;;  %v1169_v55 = vrot.slane %v1168_v41, 4  ;;  %v1195_v4 = vshll.u32 %v1016_v48, 16  ;;  %v1199_v56 = vshrl.u32 %v1016_v48, 16  ;;  %v10517_v59 = vcombine.low %v1015_v26, %v1016_v48  ;;  %v392_v42 = vld [vmem:[%s10003_s28 + $0x88] sm:$0xff] }
  0x93   : > { %v1179_v57 = vrot.slane %v1178_v47, 4  ;;  %v1188_v58 = vrot.slane %v1186_v49, 4  ;;  %v1191_v61 = vrot.slane %v1189_v51, 5  ;;  %v1207_v62 = vrot.slane %v1205_v52, 5  ;;  %932 = vst [vmem:[#allocation2 + $0x54] sm:$0xf] %v931_v24 }
  0x94   : > { %v1174_v63 = vsel %vm10347_vm9, %v1169_v55, %v1173_v38  ;;  %v1197_v2 = vrot.slane %v1195_v4, 5  ;;  %v1201_v3 = vrot.slane %v1199_v56, 4  ;;  %8985 = vmatmul.mubr.msk.bf16.gmra.mxu1 %vm1530_vm3, %v10517_v59  ;;  %v671_v5 = vrot.slane %v10501_v30, 4  ;;  %v934_v35 = vld [vmem:[#allocation2 + $0x5c] sm:$0x1] }
  0x95   : > { %v1184_v12 = vsel %vm10347_vm9, %v1179_v57, %v1183_v14  ;;  %v1192_v13 = vor.u32 %v1191_v61, %v1188_v58  ;;  %v675_v16 = vrot.slane %v673_v31, 7  ;;  %v676_v7 = vshll.u32 %v10494_v9, 16  ;;  %v937_v56 = vld [vmem:[#allocation2 + $0x60] sm:$0xf] }
  0x96   : > { %v10529_v17 = vcombine.low %v1174_v63, %v1184_v12  ;;  %v1202_v18 = vor.u32 %v1201_v3, %v1197_v2  ;;  %v8520_v36 = vpack.c.bf16 %v391_v10, %v391_v10  ;;  %v682_v51 = vshrl.u32 %v10498_v21, 16 }
  0x97   : > { %v1193_v29 = vrot.slane %v1192_v13, 4  ;;  %v1018_v33 = vld [vmem:[#allocation2 + $0x48] sm:$0xf]  ;;  %v678_v30 = vor.u32 %v676_v7, %v675_v16  ;;  %v680_v50 = vrot.slane %v675_v16, 4  ;;  %v685_v52 = vshll.u32 %v10498_v21, 16 }
  0x98   : > { %13875 = vst [vmem:[#allocation11_spill] sm:$0xff] %v10529_v17  ;;  %v1019_v6 = vld [vmem:[#allocation2 + $0x4c] sm:$0xf]  ;;  %8944 = vmatprep.mubr.msk.bf16.mxu0 %vm1530_vm3, %v10529_v17  ;;  %v1203_v9 = vrot.slane %v1202_v18, 4  ;;  %v1210_v31 = vshrl.u32 %v1018_v33, 16  ;;  %v1213_v54 = vshll.u32 %v1018_v33, 16  ;;  %v8521_v15 = vpack.c.bf16 %v392_v42, %v392_v42 }
  0x99   : > { %v1020_v22 = vld [vmem:[#allocation2 + $0x50] sm:$0x1]  ;;  %v1219_v8 = vshll.u32 %v1019_v6, 16  ;;  %v1198_v37 = vsel %vm10347_vm9, %v1193_v29, %v1197_v2  ;;  %v1223_v38 = vshrl.u32 %v1019_v6, 16  ;;  %v10537_v39 = vcombine.low %v1018_v33, %v1019_v6  ;;  %v941_v16 = vld [vmem:[#allocation2 + $0x68] sm:$0x1] }
  0x9a   : > { %v1229_v25 = vshll.u32 %v1020_v22, 16  ;;  %v1208_v40 = vsel %vm10347_vm9, %v1203_v9, %v1207_v62  ;;  %v1212_v41 = vrot.slane %v1210_v31, 4  ;;  %v1215_v14 = vrot.slane %v1213_v54, 5  ;;  %v1021_v58 = vld [vmem:[#allocation2 + $0x54] sm:$0xf] }
  0x9b   : > { %v1221_v26 = vrot.slane %v1219_v8, 5  ;;  %v10542_v43 = vcombine.low %v1198_v37, %v1208_v40  ;;  %v1225_v44 = vrot.slane %v1223_v38, 4  ;;  %8988 = vmatprep.mubr.msk.bf16.mxu1 %vm1530_vm3, %v10537_v39  ;;  %v679_v47 = vsel %vm10355_vm10, %v671_v5, %v678_v30  ;;  %v944_v33 = vld [vmem:[#allocation2 + $0x6c] sm:$0xf]  ;;  %v393_v8 = vld [vmem:[%s10003_s28 + $0x90] sm:$0xff]  ;;  %v394_v37 = vld [vmem:[%s10003_s28 + $0x98] sm:$0xff] }
  0x9c   : > { %v1231_v46 = vrot.slane %v1229_v25, 5  ;;  %v1216_v48 = vor.u32 %v1215_v14, %v1212_v41  ;;  %933 = vst.msk [vmem:[#allocation2 + $0x58] sm:$0xf] %vm423_vm1, %v679_v47  ;;  %v935_v49 = vsel %vm10372_vm12, %v680_v50, %v934_v35  ;;  %v690_v55 = vshrl.u32 %v8519_v27, 16 }
  0x9d   : > { %13876 = vst [vmem:[#allocation12_spill] sm:$0xff] %v10542_v43  ;;  %8945 = vmatmul.mubr.msk.bf16.gmra.mxu0 %vm1530_vm3, %v10542_v43  ;;  %v1226_v53 = vor.u32 %v1225_v44, %v1221_v26  ;;  %936 = vst [vmem:[#allocation2 + $0x5c] sm:$0x1] %v935_v49  ;;  %v693_v4 = vshll.u32 %v8519_v27, 16  ;;  %v684_v61 = vrot.slane %v682_v51, 7  ;;  %v699_v62 = vshrl.u32 %v8520_v36, 16 }
  0x9e   : > { %v1217_v57 = vrot.slane %v1216_v48, 4  ;;  %v702_v63 = vshll.u32 %v8520_v36, 16  ;;  %v1234_v3 = vshrl.u32 %v1021_v58, 16  ;;  %v1237_v5 = vshll.u32 %v1021_v58, 16  ;;  %v395_v48 = vld [vmem:[%s10003_s28 + $0xa0] sm:$0xff]  ;;  %v396_v49 = vld [vmem:[%s10003_s28 + $0xa8] sm:$0xff] }
  0x9f   : > { %v1227_v2 = vrot.slane %v1226_v53, 4  ;;  %v692_v10 = vrot.slane %v690_v55, 7  ;;  %v687_v12 = vor.u32 %v685_v52, %v684_v61  ;;  %v688_v13 = vrot.slane %v684_v61, 4 }
  0xa0   : > { %v1222_v21 = vsel %vm10347_vm9, %v1217_v57, %v1221_v26  ;;  %v701_v7 = vrot.slane %v699_v62, 7  ;;  %v1236_v24 = vrot.slane %v1234_v3, 4  ;;  %v1239_v27 = vrot.slane %v1237_v5, 5  ;;  %v948_v26 = vld [vmem:[#allocation2 + $0x74] sm:$0x1] }
  0xa1   : > { %v1232_v18 = vsel %vm10347_vm9, %v1227_v2, %v1231_v46  ;;  %v695_v29 = vor.u32 %v693_v4, %v692_v10  ;;  %v697_v30 = vrot.slane %v692_v10, 4  ;;  %v938_v50 = vsel %vm10365_vm11, %v687_v12, %v937_v56  ;;  %v397_v2 = vld [vmem:[%s10003_s28 + $0xb0] sm:$0xff] }
  0xa2   : > { %v10559_v6 = vcombine.low %v1222_v21, %v1232_v18  ;;  %v704_v35 = vor.u32 %v702_v63, %v701_v7  ;;  %v1240_v9 = vor.u32 %v1239_v27, %v1236_v24  ;;  %939 = vst [vmem:[#allocation2 + $0x60] sm:$0xf] %v938_v50  ;;  %v705_v31 = vrot.slane %v701_v7, 4  ;;  %v10593_v24 = vld [vmem:[%s9993_s14 + $0xb8] sm:$0xff]  }
  0xa3   : > { %v1022_v36 = vld [vmem:[#allocation2 + $0x58] sm:$0xf]  ;;  %v696_v22 = vsel %vm10355_vm10, %v688_v13, %v695_v29  ;;  %v707_v54 = vshrl.u32 %v8521_v15, 16  ;;  %v942_v14 = vsel %vm10372_vm12, %v697_v30, %v941_v16  ;;  %v710_v47 = vshll.u32 %v8521_v15, 16  ;;  %9128 = vmatprep.subr.bf16.mxu1 %v10593_v24 }
  0xa4   : > { %13877 = vst [vmem:[#allocation13_spill] sm:$0xff] %v10559_v6  ;;  %8948 = vmatprep.mubr.msk.bf16.mxu0 %vm1530_vm3, %v10559_v6  ;;  %v1023_v38 = vld [vmem:[#allocation2 + $0x5c] sm:$0x1]  ;;  %v1243_v25 = vshll.u32 %v1022_v36, 16  ;;  %v1247_v40 = vshrl.u32 %v1022_v36, 16  ;;  %v10569_v41 = vcombine.low %v1021_v58, %v1022_v36  ;;  %v1241_v42 = vrot.slane %v1240_v9, 4 }
  0xa5   : > { %940 = vst.msk [vmem:[#allocation2 + $0x64] sm:$0xf] %vm423_vm1, %v696_v22  ;;  %v1253_v44 = vshll.u32 %v1023_v38, 16  ;;  %943 = vst [vmem:[#allocation2 + $0x68] sm:$0x1] %v942_v14  ;;  %v709_v46 = vrot.slane %v707_v54, 7  ;;  %v945_v53 = vsel %vm10365_vm11, %v704_v35, %v944_v33  ;;  %v8522_v55 = vpack.c.bf16 %v393_v8, %v393_v8 }
  0xa6   : > { %v1245_v51 = vrot.slane %v1243_v25, 5  ;;  %v1249_v52 = vrot.slane %v1247_v40, 4  ;;  %8989 = vmatmul.mubr.msk.bf16.gmra.mxu1 %vm1530_vm3, %v10569_v41  ;;  %946 = vst [vmem:[#allocation2 + $0x6c] sm:$0xf] %v945_v53  ;;  %v8523_v58 = vpack.c.bf16 %v394_v37, %v394_v37  ;;  %v10588_v7 = vpack.c.bf16 %v395_v48, %v395_v48  ;;  %v951_v50 = vld [vmem:[#allocation2 + $0x78] sm:$0xf] }
  0xa7   : > { %v1255_v4 = vrot.slane %v1253_v44, 5  ;;  %v712_v56 = vor.u32 %v710_v47, %v709_v46  ;;  %v714_v57 = vrot.slane %v709_v46, 4  ;;  %v716_v62 = vshrl.u32 %v8522_v55, 16  ;;  %v398_v40 = vld [vmem:[%s10003_s28 + $0xb8] sm:$0xff]  ;;  %v399_v47 = vld [vmem:[%s10003_s28 + $0xc0] sm:$0xff] }
  0xa8   : > { %v1246_v15 = vsel %vm10347_vm9, %v1241_v42, %v1245_v51  ;;  %v1250_v61 = vor.u32 %v1249_v52, %v1245_v51  ;;  %v719_v63 = vshll.u32 %v8522_v55, 16  ;;  %v724_v10 = vshrl.u32 %v8523_v58, 16 }
  0xa9   : > { %v713_v3 = vsel %vm10355_vm10, %v705_v31, %v712_v56  ;;  %v949_v5 = vsel %vm10372_vm12, %v714_v57, %v948_v26  ;;  %v727_v21 = vshll.u32 %v8523_v58, 16  ;;  %v1024_v13 = vld [vmem:[#allocation2 + $0x60] sm:$0xf]  ;;  %v718_v16 = vrot.slane %v716_v62, 7 }
  0xaa   : > { %v1251_v12 = vrot.slane %v1250_v61, 4  ;;  %947 = vst.msk [vmem:[#allocation2 + $0x70] sm:$0xf] %vm423_vm1, %v713_v3  ;;  %950 = vst [vmem:[#allocation2 + $0x74] sm:$0x1] %v949_v5  ;;  %v10590_v18 = vpack.c.bf16 %v396_v49, %v396_v49  ;;  %v1258_v29 = vshrl.u32 %v1024_v13, 16  ;;  %v10595_v35 = vpack.c.bf16 %v397_v2, %v397_v2 }
  0xab   : > { %v1261_v33 = vshll.u32 %v1024_v13, 16  ;;  %v726_v30 = vrot.slane %v724_v10, 7  ;;  %v721_v44 = vor.u32 %v719_v63, %v718_v16  ;;  %v722_v46 = vrot.slane %v718_v16, 4 }
  0xac   : > { %v1025_v27 = vld [vmem:[#allocation2 + $0x64] sm:$0xf]  ;;  %v1256_v36 = vsel %vm10347_vm9, %v1251_v12, %v1255_v4  ;;  %v1026_v9 = vld [vmem:[#allocation2 + $0x68] sm:$0x1]  ;;  %v1260_v37 = vrot.slane %v1258_v29, 4  ;;  %v10620_v62 = vpack.c.bf16 %v398_v40, %v398_v40  ;;  %v10622_v63 = vpack.c.bf16 %v399_v47, %v399_v47 }
  0xad   : > { %v1267_v22 = vshll.u32 %v1025_v27, 16  ;;  %v1271_v31 = vshrl.u32 %v1025_v27, 16  ;;  %v10599_v54 = vcombine.low %v1024_v13, %v1025_v27  ;;  %v10602_v8 = vcombine.low %v1246_v15, %v1256_v36  ;;  %v10607_v42 = vld [vmem:[#allocation2 + $0x6c] sm:$0xf] }
  0xae   : > { %v1263_v38 = vrot.slane %v1261_v33, 5  ;;  %v1277_v25 = vshll.u32 %v1026_v9, 16  ;;  %v1282_v51 = vshrl.u32 %v10607_v42, 16  ;;  %v1285_v52 = vshll.u32 %v10607_v42, 16 }
  0xaf   : > { %13878 = vst [vmem:[#allocation14_spill] sm:$0xff] %v10599_v54  ;;  %13879 = vst [vmem:[#allocation15_spill] sm:$0xff] %v10602_v8  ;;  %v1269_v14 = vrot.slane %v1267_v22, 5  ;;  %v1273_v26 = vrot.slane %v1271_v31, 4  ;;  %8992 = vmatprep.mubr.msk.bf16.mxu1 %vm1530_vm3, %v10599_v54  ;;  %8949 = vmatmul.mubr.msk.bf16.gmra.mxu0 %vm1530_vm3, %v10602_v8  ;;  %v729_v55 = vor.u32 %v727_v21, %v726_v30  ;;  %v731_v4 = vrot.slane %v726_v30, 4 }
  0xb0   : > { %v1264_v48 = vor.u32 %v1263_v38, %v1260_v37  ;;  %v1279_v49 = vrot.slane %v1277_v25, 5  ;;  %v952_v56 = vsel %vm10365_vm11, %v721_v44, %v951_v50  ;;  %v1284_v61 = vrot.slane %v1282_v51, 4  ;;  %v955_v21 = vld [vmem:[#allocation2 + $0x80] sm:$0x1] }
  0xb1   : > { %v1274_v53 = vor.u32 %v1273_v26, %v1269_v14  ;;  %v10616_v58 = vld [vmem:[#allocation2 + $0x70] sm:$0xf]  ;;  %v10618_v15 = vld [vmem:[#allocation2 + $0x74] sm:$0x1]  ;;  %953 = vst [vmem:[#allocation2 + $0x78] sm:$0xf] %v952_v56  ;;  %v730_v27 = vsel %vm10355_vm10, %v722_v46, %v729_v55  ;;  %v956_v22 = vsel %vm10372_vm12, %v731_v4, %v955_v21 }
  0xb2   : > { %v1265_v57 = vrot.slane %v1264_v48, 4  ;;  %v1287_v3 = vrot.slane %v1285_v52, 5  ;;  %v1291_v5 = vshll.u32 %v10616_v58, 16  ;;  %v1295_v10 = vshrl.u32 %v10616_v58, 16  ;;  %954 = vst.msk [vmem:[#allocation2 + $0x7c] sm:$0xf] %vm423_vm1, %v730_v27 }
  0xb3   : > { %v1275_v2 = vrot.slane %v1274_v53, 4  ;;  %v1301_v13 = vshll.u32 %v10618_v15, 16  ;;  %v10631_v16 = vcombine.low %v10607_v42, %v10616_v58  ;;  %v733_v31 = vshrl.u32 %v10588_v7, 16  ;;  %957 = vst [vmem:[#allocation2 + $0x80] sm:$0x1] %v956_v22 }
  0xb4   : > { %v1270_v12 = vsel %vm10347_vm9, %v1265_v57, %v1269_v14  ;;  %v1288_v33 = vor.u32 %v1287_v3, %v1284_v61  ;;  %v1293_v30 = vrot.slane %v1291_v5, 5  ;;  %v1297_v50 = vrot.slane %v1295_v10, 4  ;;  %v958_v14 = vld [vmem:[#allocation2 + $0x84] sm:$0xf]  ;;  %v962_v52 = vld [vmem:[#allocation2 + $0x8c] sm:$0x1] }
  0xb5   : > { %13880 = vst [vmem:[#allocation16_spill] sm:$0xff] %v10631_v16  ;;  %v1280_v29 = vsel %vm10347_vm9, %v1275_v2, %v1279_v49  ;;  %v1303_v9 = vrot.slane %v1301_v13, 5  ;;  %8993 = vmatmul.mubr.msk.bf16.gmra.mxu1 %vm1530_vm3, %v10631_v16  ;;  %v736_v25 = vshll.u32 %v10588_v7, 16  ;;  %v741_v40 = vshrl.u32 %v10590_v18, 16  ;;  %v965_v3 = vld [vmem:[#allocation2 + $0x90] sm:$0xf] }
  0xb6   : > { %v10638_v36 = vcombine.low %v1270_v12, %v1280_v29  ;;  %v1289_v37 = vrot.slane %v1288_v33, 4  ;;  %v1298_v38 = vor.u32 %v1297_v50, %v1293_v30  ;;  %v735_v26 = vrot.slane %v733_v31, 7  ;;  %v400_v5 = vld [vmem:[%s10003_s28 + $0xc8] sm:$0xff] }
  0xb7   : > { %v744_v44 = vshll.u32 %v10590_v18, 16  ;;  %v750_v46 = vshrl.u32 %v10595_v35, 16  ;;  %v753_v47 = vshll.u32 %v10595_v35, 16  ;;  %v743_v7 = vrot.slane %v741_v40, 7 }
  0xb8   : > { %13881 = vst [vmem:[#allocation17_spill] sm:$0xff] %v10638_v36  ;;  %8952 = vmatprep.mubr.msk.bf16.mxu0 %vm1530_vm3, %v10638_v36  ;;  %v1294_v48 = vsel %vm10347_vm9, %v1289_v37, %v1293_v30  ;;  %v1299_v49 = vrot.slane %v1298_v38, 4  ;;  %v10654_v51 = vld [vmem:[#allocation2 + $0x78] sm:$0xf]  ;;  %v758_v53 = vshrl.u32 %v10620_v62, 16  ;;  %v738_v18 = vor.u32 %v736_v25, %v735_v26 }
  0xb9   : > { %v1306_v55 = vshrl.u32 %v10654_v51, 16  ;;  %v1309_v4 = vshll.u32 %v10654_v51, 16  ;;  %v739_v56 = vrot.slane %v735_v26, 4  ;;  %v746_v57 = vor.u32 %v744_v44, %v743_v7  ;;  %v10664_v21 = vld [vmem:[#allocation2 + $0x7c] sm:$0xf] }
  0xba   : > { %v1304_v35 = vsel %vm10347_vm9, %v1299_v49, %v1303_v9  ;;  %v748_v61 = vrot.slane %v743_v7, 4  ;;  %v752_v2 = vrot.slane %v750_v46, 7  ;;  %v959_v27 = vsel %vm10365_vm11, %v738_v18, %v958_v14  ;;  %v10678_v9 = vld [vmem:[#allocation2 + $0x80] sm:$0x1]  ;;  %v969_v25 = vld [vmem:[#allocation2 + $0x98] sm:$0x1] }
  0xbb   : > { %v10662_v10 = vcombine.low %v1294_v48, %v1304_v35  ;;  %v1308_v12 = vrot.slane %v1306_v55, 4  ;;  %v1311_v13 = vrot.slane %v1309_v4, 5  ;;  %v1315_v29 = vshll.u32 %v10664_v21, 16  ;;  %960 = vst [vmem:[#allocation2 + $0x84] sm:$0xf] %v959_v27  ;;  %v401_v46 = vld [vmem:[%s10003_s28 + $0xd0] sm:$0xff] }
  0xbc   : > { %v1319_v33 = vshrl.u32 %v10664_v21, 16  ;;  %v10672_v30 = vcombine.low %v10654_v51, %v10664_v21  ;;  %v747_v50 = vsel %vm10355_vm10, %v739_v56, %v746_v57  ;;  %v963_v31 = vsel %vm10372_vm12, %v748_v61, %v962_v52  ;;  %v402_v56 = vld [vmem:[%s10003_s28 + $0xd8] sm:$0xff] }
  0xbd   : > { %13882 = vst [vmem:[#allocation18_spill] sm:$0xff] %v10662_v10  ;;  %8953 = vmatmul.mubr.msk.bf16.gmra.mxu0 %vm1530_vm3, %v10662_v10  ;;  %v1312_v22 = vor.u32 %v1311_v13, %v1308_v12  ;;  %961 = vst.msk [vmem:[#allocation2 + $0x88] sm:$0xf] %vm423_vm1, %v747_v50  ;;  %v755_v37 = vor.u32 %v753_v47, %v752_v2  ;;  %v756_v38 = vrot.slane %v752_v2, 4  ;;  %v1317_v40 = vrot.slane %v1315_v29, 5 }
  0xbe   : > { %13883 = vst [vmem:[#allocation19_spill] sm:$0xff] %v10672_v30  ;;  %v1321_v14 = vrot.slane %v1319_v33, 4  ;;  %v1325_v26 = vshll.u32 %v10678_v9, 16  ;;  %8996 = vmatprep.mubr.msk.bf16.mxu1 %vm1530_vm3, %v10672_v30  ;;  %964 = vst [vmem:[#allocation2 + $0x8c] sm:$0x1] %v963_v31  ;;  %v760_v44 = vrot.slane %v758_v53, 7  ;;  %v8529_v47 = vpack.c.bf16 %v400_v5, %v400_v5 }
  0xbf   : > { %v1313_v48 = vrot.slane %v1312_v22, 4  ;;  %v761_v49 = vshll.u32 %v10620_v62, 16  ;;  %v966_v7 = vsel %vm10365_vm11, %v755_v37, %v965_v3  ;;  %v767_v18 = vshrl.u32 %v10622_v63, 16  ;;  %v406_v30 = vld [vmem:[%s10003_s28 + $0xf8] sm:$0xff] }
  0xc0   : > { %v1322_v52 = vor.u32 %v1321_v14, %v1317_v40  ;;  %v1327_v55 = vrot.slane %v1325_v26, 5  ;;  %v765_v4 = vrot.slane %v760_v44, 4  ;;  %967 = vst [vmem:[#allocation2 + $0x90] sm:$0xf] %v966_v7  ;;  %v770_v53 = vshll.u32 %v10622_v63, 16 }
  0xc1   : > { %v1318_v35 = vsel %vm10347_vm9, %v1313_v48, %v1317_v40  ;;  %v763_v57 = vor.u32 %v761_v49, %v760_v44  ;;  %v775_v61 = vshrl.u32 %v8529_v47, 16  ;;  %v769_v3 = vrot.slane %v767_v18, 7 }
  0xc2   : > { %v1323_v2 = vrot.slane %v1322_v52, 4  ;;  %v970_v62 = vsel %vm10372_vm12, %v765_v4, %v969_v25  ;;  %v778_v5 = vshll.u32 %v8529_v47, 16  ;;  %v10697_v12 = vld [vmem:[#allocation2 + $0x84] sm:$0xf]  ;;  %v10701_v29 = vpack.c.bf16 %v401_v46, %v401_v46  ;;  %v972_v25 = vld [vmem:[#allocation2 + $0x9c] sm:$0xf] }
  0xc3   : > { %v764_v13 = vsel %vm10355_vm10, %v756_v38, %v763_v57  ;;  %971 = vst [vmem:[#allocation2 + $0x98] sm:$0x1] %v970_v62  ;;  %v777_v27 = vrot.slane %v775_v61, 7  ;;  %v10703_v33 = vpack.c.bf16 %v402_v56, %v402_v56  ;;  %v1330_v22 = vshrl.u32 %v10697_v12, 16  ;;  %v976_v38 = vld [vmem:[#allocation2 + $0xa4] sm:$0x1] }
  0xc4   : > { %v1328_v63 = vsel %vm10347_vm9, %v1323_v2, %v1327_v55  ;;  %v10707_v50 = vld [vmem:[#allocation2 + $0x88] sm:$0xf]  ;;  %v1333_v31 = vshll.u32 %v10697_v12, 16  ;;  %968 = vst.msk [vmem:[#allocation2 + $0x94] sm:$0xf] %vm423_vm1, %v764_v13  ;;  %v772_v37 = vor.u32 %v770_v53, %v769_v3  ;;  %v773_v47 = vrot.slane %v769_v3, 4 }
  0xc5   : > { %v10712_v40 = vcombine.low %v1318_v35, %v1328_v63  ;;  %v10714_v14 = vld [vmem:[#allocation2 + $0x8c] sm:$0x1]  ;;  %v1339_v26 = vshll.u32 %v10707_v50, 16  ;;  %v1343_v44 = vshrl.u32 %v10707_v50, 16  ;;  %v10720_v46 = vcombine.low %v10697_v12, %v10707_v50 }
  0xc6   : > { %v1332_v48 = vrot.slane %v1330_v22, 4  ;;  %v1335_v49 = vrot.slane %v1333_v31, 5  ;;  %v1349_v7 = vshll.u32 %v10714_v14, 16  ;;  %v780_v18 = vor.u32 %v778_v5, %v777_v27 }
  0xc7   : > { %13884 = vst [vmem:[#allocation20_spill] sm:$0xff] %v10712_v40  ;;  %13885 = vst [vmem:[#allocation21_spill] sm:$0xff] %v10720_v46  ;;  %8956 = vmatprep.mubr.msk.bf16.mxu0 %vm1530_vm3, %v10712_v40  ;;  %v1341_v52 = vrot.slane %v1339_v26, 5  ;;  %v1345_v55 = vrot.slane %v1343_v44, 4  ;;  %8997 = vmatmul.mubr.msk.bf16.gmra.mxu1 %vm1530_vm3, %v10720_v46  ;;  %v10727_v4 = vld [vmem:[#allocation2 + $0x90] sm:$0xf]  ;;  %v973_v3 = vsel %vm10365_vm11, %v772_v37, %v972_v25 }
  0xc8   : > { %v782_v56 = vrot.slane %v777_v27, 4  ;;  %v1336_v35 = vor.u32 %v1335_v49, %v1332_v48  ;;  %v1351_v57 = vrot.slane %v1349_v7, 5  ;;  %v1354_v53 = vshrl.u32 %v10727_v4, 16  ;;  %974 = vst [vmem:[#allocation2 + $0x9c] sm:$0xf] %v973_v3  ;;  %v404_v3 = vld [vmem:[%s10003_s28 + $0xe8] sm:$0xff] }
  0xc9   : > { %v1357_v61 = vshll.u32 %v10727_v4, 16  ;;  %v1346_v2 = vor.u32 %v1345_v55, %v1341_v52  ;;  %v781_v62 = vsel %vm10355_vm10, %v773_v47, %v780_v18  ;;  %v784_v31 = vshrl.u32 %v10701_v29, 16  ;;  %v979_v55 = vld [vmem:[#allocation2 + $0xa8] sm:$0xf]  ;;  %v403_v18 = vld [vmem:[%s10003_s28 + $0xe0] sm:$0xff] }
  0xca   : > { %v977_v13 = vsel %vm10372_vm12, %v782_v56, %v976_v38  ;;  %v1337_v63 = vrot.slane %v1336_v35, 4  ;;  %v10737_v22 = vld [vmem:[#allocation2 + $0x98] sm:$0x1]  ;;  %v1356_v5 = vrot.slane %v1354_v53, 4  ;;  %975 = vst.msk [vmem:[#allocation2 + $0xa0] sm:$0xf] %vm423_vm1, %v781_v62 }
  0xcb   : > { %v1359_v27 = vrot.slane %v1357_v61, 5  ;;  %978 = vst [vmem:[#allocation2 + $0xa4] sm:$0x1] %v977_v13  ;;  %v1347_v26 = vrot.slane %v1346_v2, 4  ;;  %v10741_v44 = vld [vmem:[#allocation2 + $0x94] sm:$0xf] }
  0xcc   : > { %v1373_v37 = vshll.u32 %v10737_v22, 16  ;;  %v787_v25 = vshll.u32 %v10701_v29, 16  ;;  %v792_v38 = vshrl.u32 %v10703_v33, 16  ;;  %v1342_v48 = vsel %vm10347_vm9, %v1337_v63, %v1341_v52 }
  0xcd   : > { %v1360_v49 = vor.u32 %v1359_v27, %v1356_v5  ;;  %v1363_v7 = vshll.u32 %v10741_v44, 16  ;;  %v1367_v47 = vshrl.u32 %v10741_v44, 16  ;;  %v1352_v56 = vsel %vm10347_vm9, %v1347_v26, %v1351_v57 }
  0xce   : > { %v1375_v35 = vrot.slane %v1373_v37, 5  ;;  %v10755_v29 = vcombine.low %v10727_v4, %v10741_v44  ;;  %v786_v53 = vrot.slane %v784_v31, 7  ;;  %v10757_v61 = vcombine.low %v1342_v48, %v1352_v56 }
  0xcf   : > { %v1361_v2 = vrot.slane %v1360_v49, 4  ;;  %v1365_v52 = vrot.slane %v1363_v7, 5  ;;  %v1369_v62 = vrot.slane %v1367_v47, 4  ;;  %v794_v5 = vrot.slane %v792_v38, 7  ;;  %v10767_v26 = vld [vmem:[#allocation2 + $0x9c] sm:$0xf] }
  0xd0   : > { %13886 = vst [vmem:[#allocation22_spill] sm:$0xff] %v10755_v29  ;;  %13887 = vst [vmem:[#allocation23_spill] sm:$0xff] %v10757_v61  ;;  %9000 = vmatprep.mubr.msk.bf16.mxu1 %vm1530_vm3, %v10755_v29  ;;  %v789_v13 = vor.u32 %v787_v25, %v786_v53  ;;  %v790_v63 = vrot.slane %v786_v53, 4  ;;  %v795_v57 = vshll.u32 %v10703_v33, 16  ;;  %8957 = vmatmul.mubr.msk.bf16.gmra.mxu0 %vm1530_vm3, %v10757_v61  ;;  %v1378_v47 = vshrl.u32 %v10767_v26, 16 }
  0xd1   : > { %v1366_v27 = vsel %vm10347_vm9, %v1361_v2, %v1365_v52  ;;  %v1370_v31 = vor.u32 %v1369_v62, %v1365_v52  ;;  %v10769_v37 = vld [vmem:[#allocation2 + $0xa0] sm:$0xf]  ;;  %v8532_v38 = vpack.c.bf16 %v403_v18, %v403_v18  ;;  %v8533_v7 = vpack.c.bf16 %v404_v3, %v404_v3  ;;  %v983_v18 = vld [vmem:[#allocation2 + $0xb0] sm:$0x1] }
  0xd2   : > { %v10771_v48 = vld [vmem:[#allocation2 + $0xa4] sm:$0x1]  ;;  %v797_v49 = vor.u32 %v795_v57, %v794_v5  ;;  %v980_v25 = vsel %vm10365_vm11, %v789_v13, %v979_v55  ;;  %v1381_v56 = vshll.u32 %v10767_v26, 16  ;;  %v1387_v53 = vshll.u32 %v10769_v37, 16 }
  0xd3   : > { %v1371_v33 = vrot.slane %v1370_v31, 4  ;;  %981 = vst [vmem:[#allocation2 + $0xa8] sm:$0xf] %v980_v25  ;;  %v1391_v2 = vshrl.u32 %v10769_v37, 16  ;;  %v1397_v52 = vshll.u32 %v10771_v48, 16  ;;  %v10782_v62 = vcombine.low %v10767_v26, %v10769_v37 }
  0xd4   : > { %v798_v55 = vsel %vm10355_vm10, %v790_v63, %v797_v49  ;;  %v1380_v13 = vrot.slane %v1378_v47, 4  ;;  %v1383_v57 = vrot.slane %v1381_v56, 5  ;;  %v1389_v31 = vrot.slane %v1387_v53, 5  ;;  %v9797_v25 = vld [vmem:[#allocation2 + $0x10] sm:$0xf] }
  0xd5   : > { %13888 = vst [vmem:[#allocation24_spill] sm:$0xff] %v10782_v62  ;;  %v1376_v3 = vsel %vm10347_vm9, %v1371_v33, %v1375_v35  ;;  %982 = vst.msk [vmem:[#allocation2 + $0xac] sm:$0xf] %vm423_vm1, %v798_v55  ;;  %v2081_v61 = vrot.slane %v9797_v25, 5  ;;  %v1393_v10 = vrot.slane %v1391_v2, 4  ;;  %9001 = vmatmul.mubr.msk.bf16.gmra.mxu1 %vm1530_vm3, %v10782_v62  ;;  %v799_v36 = vrot.slane %v794_v5, 4 }
  0xd6   : > { %v10789_v40 = vcombine.low %v1366_v27, %v1376_v3  ;;  %v1384_v8 = vor.u32 %v1383_v57, %v1380_v13  ;;  %v801_v63 = vshrl.u32 %v8532_v38, 16  ;;  %v804_v49 = vshll.u32 %v8532_v38, 16  ;;  %v9798_v27 = vld [vmem:[#allocation2 + $0x14] sm:$0x1]  ;;  %v990_v38 = vld [vmem:[#allocation2 + $0xbc] sm:$0x1] }
  0xd7   : > { %v809_v6 = vshrl.u32 %v8533_v7, 16  ;;  %v1394_v35 = vor.u32 %v1393_v10, %v1389_v31  ;;  %v1399_v33 = vrot.slane %v1397_v52, 5  ;;  %v984_v47 = vsel %vm10372_vm12, %v799_v36, %v983_v18  ;;  %v986_v5 = vld [vmem:[#allocation2 + $0xb4] sm:$0xf]  ;;  %v9799_v25 = vld [vmem:[#allocation2 + $0xc] sm:$0xf] }
  0xd8   : > { %13889 = vst [vmem:[#allocation25_spill] sm:$0xff] %v10789_v40  ;;  %8960 = vmatprep.mubr.msk.bf16.mxu0 %vm1530_vm3, %v10789_v40  ;;  %v812_v56 = vshll.u32 %v8533_v7, 16  ;;  %v2084_v53 = vrot.slane %v9798_v27, 5  ;;  %v1385_v2 = vrot.slane %v1384_v8, 4  ;;  %985 = vst [vmem:[#allocation2 + $0xb0] sm:$0x1] %v984_v47 }
  0xd9   : > { %v803_v55 = vrot.slane %v801_v63, 7  ;;  %v811_v3 = vrot.slane %v809_v6, 7  ;;  %v1395_v13 = vrot.slane %v1394_v35, 4  ;;  %v7915_v10 = vrot.slane %v9799_v25, 9 }
  0xda   : > { %v10797_v57 = vld [vmem:[#allocation2 + $0xa8] sm:$0xf]  ;;  %v1390_v52 = vsel %vm10347_vm9, %v1385_v2, %v1389_v31  ;;  %v13891_v31 = vmov 0  ;;  %v2091_v0 = vrot.slane %v9806_v32, 5 }
  0xdb   : > { %v1402_v36 = vshrl.u32 %v10797_v57, 16  ;;  %v1405_v7 = vshll.u32 %v10797_v57, 16  ;;  %v806_v8 = vor.u32 %v804_v49, %v803_v55  ;;  %v1400_v6 = vsel %vm10347_vm9, %v1395_v13, %v1399_v33 }
  0xdc   : > { %v10805_v18 = vld [vmem:[#allocation2 + $0xac] sm:$0xf]  ;;  %v807_v63 = vrot.slane %v803_v55, 4  ;;  %v814_v35 = vor.u32 %v812_v56, %v811_v3  ;;  %v816_v47 = vrot.slane %v811_v3, 4  ;;  %v10807_v27 = vcombine.low %v1390_v52, %v1400_v6 }
  0xdd   : > { %v1404_v40 = vrot.slane %v1402_v36, 4  ;;  %v1407_v25 = vrot.slane %v1405_v7, 5  ;;  %v1411_v43 = vshll.u32 %v10805_v18, 16  ;;  %v13892_v31 = vsel %vm10812_vm15, 4294967295, %v13891_v31 }
  0xde   : > { %13890 = vst [vmem:[#allocation26_spill] sm:$0xff] %v10807_v27  ;;  %13893 = vst [vmem:[#allocation27_spill] sm:$0xff] %v13892_v31  ;;  %v1415_v49 = vshrl.u32 %v10805_v18, 16  ;;  %v10819_v33 = vcombine.low %v10797_v57, %v10805_v18  ;;  %v815_v56 = vsel %vm10355_vm10, %v807_v63, %v814_v35  ;;  %v987_v2 = vsel %vm10365_vm11, %v806_v8, %v986_v5 }
  0xdf   : > { %8961 = vmatmul.mubr.msk.bf16.gmra.mxu0 %vm1530_vm3, %v10807_v27  ;;  %v1408_v55 = vor.u32 %v1407_v25, %v1404_v40  ;;  %v1413_v3 = vrot.slane %v1411_v43, 5  ;;  %988 = vst [vmem:[#allocation2 + $0xb4] sm:$0xf] %v987_v2  ;;  %989 = vst.msk [vmem:[#allocation2 + $0xb8] sm:$0xf] %vm423_vm1, %v815_v56  ;;  %v991_v13 = vsel %vm10372_vm12, %v816_v47, %v990_v38  ;;  %v2083_v7 = vrot.slane %v2081_v61, 4 }
  0xe0   : > { %13894 = vst [vmem:[#allocation28_spill] sm:$0xff] %v10819_v33  ;;  %v10830_v52 = vld [vmem:[#allocation2 + $0xb0] sm:$0x1]  ;;  %v1417_v36 = vrot.slane %v1415_v49, 4  ;;  %9004 = vmatprep.mubr.msk.bf16.mxu1 %vm1530_vm3, %v10819_v33  ;;  %992 = vst [vmem:[#allocation2 + $0xbc] sm:$0x1] %v991_v13  ;;  %v2082_v5 = vsel %vm10812_vm15, %v7915_v10, %v2081_v61 }
  0xe1   : > { %v1409_v8 = vrot.slane %v1408_v55, 4  ;;  %v1421_v43 = vshll.u32 %v10830_v52, 16  ;;  %v9800_v40 = vld [vmem:[#allocation2 + $0x4] sm:$0xf]  ;;  %v2085_v38 = vsel %vm10812_vm15, %v2083_v7, %v2084_v53  ;;  %v9801_v56 = vld [vmem:[#allocation2 + $0x8] sm:$0x1] }
  0xe2   : > { %v2074_v6 = vrot.slane %v9800_v40, 5  ;;  %v1418_v63 = vor.u32 %v1417_v36, %v1413_v3  ;;  %v10839_v47 = vcombine.low %v2082_v5, %v2085_v38  ;;  %v2077_v2 = vrot.slane %v9801_v56, 5  ;;  %v9802_v10 = vld [vmem:[#allocation2] sm:$0xf]  ;;  %v9803_v53 = vld [vmem:[#allocation2 + $0x18] sm:$0xf] }
  0xe3   : > { %v1423_v35 = vrot.slane %v1421_v43, 5  ;;  %v1414_v25 = vsel %vm10347_vm9, %v1409_v8, %v1413_v3  ;;  %v7914_v61 = vrot.slane %v9802_v10, 9  ;;  %v7916_v7 = vrot.slane %v9803_v53, 9  ;;  %v9804_v5 = vld [vmem:[#allocation2 + $0x1c] sm:$0xf] }
  0xe4   : > { %v1419_v49 = vrot.slane %v1418_v63, 4  ;;  %v2076_v55 = vrot.slane %v2074_v6, 4  ;;  %v2088_v43 = vrot.slane %v9804_v5, 5  ;;  %v9805_v5 = vld [vmem:[#allocation2 + $0x28] sm:$0xf] }
  0xe5   : > { %v2095_v27 = vrot.slane %v9805_v5, 5  ;;  %v9807_v33 = vld [vmem:[#allocation2 + $0x34] sm:$0xf]  ;;  %v9810_v5 = vld [vmem:[#allocation2 + $0x30] sm:$0xf]  ;;  %v2075_v32 = vsel %vm10812_vm15, %v7914_v61, %v2074_v6 }
  0xe6   : > { %v1424_v13 = vsel %vm10347_vm9, %v1419_v49, %v1423_v35  ;;  %v10845_v40 = vld [vmem:[#allocation2 + $0xb4] sm:$0xf]  ;;  %v10847_v36 = vld [vmem:[#allocation2 + $0xb8] sm:$0xf]  ;;  %v2090_v60 = vrot.slane %v2088_v43, 4  ;;  %v2102_v62 = vrot.slane %v9807_v33, 5  ;;  %v2078_v33 = vsel %vm10812_vm15, %v2076_v55, %v2077_v2 }
  0xe7   : > { %v10849_v38 = vcombine.low %v1414_v25, %v1424_v13  ;;  %v10851_v3 = vld [vmem:[#allocation2 + $0xbc] sm:$0x1]  ;;  %v1426_v8 = vshrl.u32 %v10845_v40, 16  ;;  %v1429_v63 = vshll.u32 %v10845_v40, 16  ;;  %v1435_v56 = vshll.u32 %v10847_v36, 16 }
  0xe8   : > { %v1439_v35 = vshrl.u32 %v10847_v36, 16  ;;  %v1445_v49 = vshll.u32 %v10851_v3, 16  ;;  %v10860_v10 = vcombine.low %v10845_v40, %v10847_v36  ;;  %v7918_v46 = vrot.slane %v9810_v5, 9 }
  0xe9   : > { %13895 = vst [vmem:[#allocation29_spill] sm:$0xff] %v10849_v38  ;;  %8964 = vmatprep.mubr.msk.bf16.mxu0 %vm1530_vm3, %v10849_v38  ;;  %v1428_v25 = vrot.slane %v1426_v8, 4  ;;  %v1431_v13 = vrot.slane %v1429_v63, 5  ;;  %v1437_v53 = vrot.slane %v1435_v56, 5  ;;  %v9808_v8 = vld [vmem:[#allocation2 + $0x24] sm:$0xf]  ;;  %v7938_v6 = vcombine.low %v2075_v32, %v2078_v33 }
  0xea   : > { %13896 = vst [vmem:[#allocation30_spill] sm:$0xff] %v10860_v10  ;;  %v1441_v17 = vrot.slane %v1439_v35, 4  ;;  %9005 = vmatmul.mubr.msk.bf16.gmra.mxu1 %vm1530_vm3, %v10860_v10  ;;  %v7917_v63 = vrot.slane %v9808_v8, 9  ;;  %v9809_v56 = vld [vmem:[#allocation2 + $0x2c] sm:$0x1]  ;;  %v405_v35 = vld [vmem:[%s10003_s28 + $0xf0] sm:$0xff]  ;;  %v10884_v2 = vpack.c.bf16 %v406_v30, %v406_v30  ;;  %v2103_v30 = vsel %vm10812_vm15, %v7918_v46, %v2102_v62 }
  0xeb   : > { %v1432_v29 = vor.u32 %v1431_v13, %v1428_v25  ;;  %9056 = vmatprep.mubr.msk.bf16.mxu1 %vm1530_vm3, %v10418_v23  ;;  %v2098_v38 = vrot.slane %v9809_v56, 5  ;;  %v1447_v54 = vrot.slane %v1445_v49, 5  ;;  %v9811_v10 = vld [vmem:[#allocation2 + $0x38] sm:$0x1]  ;;  %v2097_v23 = vrot.slane %v2095_v27, 4 }
  0xec   : > { %v1442_v16 = vor.u32 %v1441_v17, %v1437_v53  ;;  %v2105_v28 = vrot.slane %v9811_v10, 5  ;;  %v2104_v13 = vrot.slane %v2102_v62, 4  ;;  %v2089_v17 = vsel %vm10812_vm15, %v7916_v7, %v2088_v43  ;;  %v10892_v7 = vld [vmem:[#allocation2 + $0x3c] sm:$0xf]  ;;  %v10911_v10 = vld [vmem:[#allocation2 + $0x4c] sm:$0xf] }
  0xed   : > { %v1433_v19 = vrot.slane %v1432_v29, 4  ;;  %v2092_v49 = vsel %vm10812_vm15, %v2090_v60, %v2091_v0  ;;  %v10882_v61 = vpack.c.bf16 %v405_v35, %v405_v35  ;;  %v7919_v0 = vrot.slane %v10892_v7, 9  ;;  %v9726_v60 = vld [vmem:[%s9993_s14 + $0xb0] sm:$0xff]   ;;  %v10920_v56 = vld [vmem:[#allocation2 + $0x44] sm:$0x1] }
  0xee   : > { %v1443_v25 = vrot.slane %v1442_v16, 4  ;;  %v2096_v16 = vsel %vm10812_vm15, %v7917_v63, %v2095_v27  ;;  %v2106_v43 = vsel %vm10812_vm15, %v2104_v13, %v2105_v28  ;;  %v10904_v27 = vld [vmem:[#allocation2 + $0x40] sm:$0xf]  ;;  %v7923_v63 = vrot.slane %v10607_v42, 9  ;;  %v10923_v35 = vld [vmem:[#allocation2 + $0x48] sm:$0xf] }
  0xef   : > { %v1438_v8 = vsel %vm10347_vm9, %v1433_v19, %v1437_v53  ;;  %v2099_v19 = vsel %vm10812_vm15, %v2097_v23, %v2098_v38  ;;  %v2109_v38 = vrot.slane %v10904_v27, 5  ;;  %v2116_v53 = vrot.slane %v10911_v10, 5 }
  0xf0   : > { %v1448_v29 = vsel %vm10347_vm9, %v1443_v25, %v1447_v54  ;;  %v10898_v54 = vcombine.low %v2089_v17, %v2092_v49  ;;  %v2137_v46 = vrot.slane %v10616_v58, 5  ;;  %v2140_v28 = vrot.slane %v10618_v15, 5  ;;  %v9728_v25 = vld [vmem:[%s9993_s14 + $0xa8] sm:$0xff]  }
  0xf1   : > { %v10886_v55 = vcombine.low %v1438_v8, %v1448_v29  ;;  %v10918_v62 = vcombine.low %v2096_v16, %v2099_v19  ;;  %v2112_v5 = vrot.slane %v10920_v56, 5  ;;  %v7920_v32 = vrot.slane %v10923_v35, 9  ;;  %v9722_v16 = vld [vmem:[%s9993_s14 + $0x90] sm:$0xff]  }
  0xf2   : > { %9057 = vmatmul.mubr.msk.bf16.vlgmr.msra.gmra.mxu1 %vm1530_vm3, %v10425_v45  ;;  %v7924_v33 = vrot.slane %v10654_v51, 9  ;;  %v10928_v42 = vcombine.low %v2103_v30, %v2106_v43  ;;  %v2138_v58 = vsel %vm10812_vm15, %v7923_v63, %v2137_v46  ;;  %v2139_v15 = vrot.slane %v2137_v46, 4 }
  0xf3   : > { %8965 = vmatmul.mubr.msk.bf16.gmra.mxu0 %vm1530_vm3, %v10886_v55  ;;  %9060 = vmatprep.mubr.msk.bf16.mxu1 %vm1530_vm3, %v10441_v20  ;;  %v2144_v23 = vrot.slane %v10664_v21, 5  ;;  %v10936_v13 = vrot.slane %v2109_v38, 4  ;;  %v2147_v8 = vrot.slane %v10678_v9, 5  ;;  %v7925_v51 = vrot.slane %v10697_v12, 9 }
  0xf4   : > { %9016 = vmatprep.mubr.msk.bf16.mxu0 %vm1530_vm3, %v7938_v6  ;;  %9129 = vmatpush3.bf16.msra.mxu1 %v10593_v24  ;;  %v2151_v24 = vrot.slane %v10707_v50, 5  ;;  %v10943_v17 = vrot.slane %v2116_v53, 4  ;;  %v2141_v21 = vsel %vm10812_vm15, %v2139_v15, %v2140_v28  ;;  %v2154_v50 = vrot.slane %v10714_v14, 5  ;;  %v9817_v15 = vld [vmem:[%s9993_s14 + $0x98] sm:$0xff]  }
  0xf5   : > { %9130 = vmatprep.subr.bf16.mxu1 %v9726_v60  ;;  %v2145_v49 = vsel %vm10812_vm15, %v7924_v33, %v2144_v23  ;;  %v2146_v29 = vrot.slane %v2144_v23, 4  ;;  %v10949_v6 = vcombine.low %v2138_v58, %v2141_v21  ;;  %v7926_v30 = vrot.slane %v10727_v4, 9  ;;  %v9729_v4 = vld [vmem:[%s9993_s14 + $0xa0] sm:$0xff]  }
  0xf6   : > { %v2152_v9 = vsel %vm10812_vm15, %v7925_v51, %v2151_v24  ;;  %v2153_v12 = vrot.slane %v2151_v24, 4  ;;  %v2158_v43 = vrot.slane %v10741_v44, 5  ;;  %v2161_v63 = vrot.slane %v10737_v22, 5  ;;  %v9723_v51 = vld [vmem:[%s9993_s14 + $0x88] sm:$0xff]  }
  0xf7   : > { %v2148_v19 = vsel %vm10812_vm15, %v2146_v29, %v2147_v8  ;;  %v2165_v28 = vrot.slane %v10769_v37, 5  ;;  %v2168_v58 = vrot.slane %v10771_v48, 5  ;;  %v7928_v23 = vrot.slane %v10797_v57, 9 }
  0xf8   : > { %9131 = vmatpush3.bf16.msra.mxu1 %v9726_v60  ;;  %v10962_v46 = vcombine.low %v2145_v49, %v2148_v19  ;;  %v2155_v14 = vsel %vm10812_vm15, %v2153_v12, %v2154_v50  ;;  %v7927_v60 = vrot.slane %v10767_v26, 9  ;;  %v2159_v44 = vsel %vm10812_vm15, %v7926_v30, %v2158_v43  ;;  %v10998_v12 = vld [vmem:[%s9993_s14 + $0xf8] sm:$0xff]  }
  0xf9   : > { %9132 = vmatprep.subr.bf16.mxu1 %v9728_v25  ;;  %v10973_v22 = vcombine.low %v2152_v9, %v2155_v14  ;;  %v2160_v33 = vrot.slane %v2158_v43, 4  ;;  %v2167_v37 = vrot.slane %v2165_v28, 4  ;;  %v2172_v8 = vrot.slane %v10805_v18, 5 }
  0xfa   : > { %9061 = vmatmul.mubr.msk.bf16.gmra.mxu1 %vm1530_vm3, %v10504_v34  ;;  %v2166_v26 = vsel %vm10812_vm15, %v7927_v60, %v2165_v28  ;;  %v2175_v48 = vrot.slane %v10830_v52, 5  ;;  %v7929_v21 = vrot.slane %v10845_v40, 9  ;;  %v2179_v49 = vrot.slane %v10847_v36, 5  ;;  %v9724_v60 = vld [vmem:[%s9993_s14 + $0x80] sm:$0xff]  }
  0xfb   : > { %9017 = vmatmul.mubr.msk.bf16.vlgmr.msra.gmra.mxu0 %vm1530_vm3, %v10839_v47  ;;  %9064 = vmatprep.mubr.msk.bf16.mxu1 %vm1530_vm3, %v10517_v59  ;;  %v2162_v24 = vsel %vm10812_vm15, %v2160_v33, %v2161_v63  ;;  %v2169_v9 = vsel %vm10812_vm15, %v2167_v37, %v2168_v58  ;;  %v2173_v57 = vsel %vm10812_vm15, %v7928_v23, %v2172_v8  ;;  %v2174_v18 = vrot.slane %v2172_v8, 4  ;;  %v9818_v63 = vld [vmem:[#allocation2 + $0x50] sm:$0x1]  ;;  %v9819_v58 = vld [vmem:[#allocation2 + $0x58] sm:$0xf] }
  0xfc   : > { %9089 = vmatpush3.bf16.msra.mxu0 %v9817_v15  ;;  %9020 = vmatprep.mubr.msk.bf16.mxu0 %vm1530_vm3, %v10898_v54  ;;  %v10991_v29 = vcombine.low %v2159_v44, %v2162_v24  ;;  %v11000_v50 = vcombine.low %v2166_v26, %v2169_v9  ;;  %v2180_v52 = vsel %vm10812_vm15, %v7929_v21, %v2179_v49  ;;  %v2181_v40 = vrot.slane %v2179_v49, 4  ;;  %v993_v26 = vld [vmem:[#allocation2 + $0xc0] sm:$0xf]  ;;  %v997_v37 = vld [vmem:[#allocation2 + $0xc8] sm:$0x1]  ;;  %v11048_v8 = vld [vmem:[%s9993_s14 + $0xd8] sm:$0xff]  }
  0xfd   : > { %9090 = vmatprep.subr.bf16.mxu0 %v9722_v16  ;;  %9133 = vmatpush3.bf16.msra.mxu1 %v9728_v25  ;;  %v2182_v36 = vrot.slane %v10851_v3, 5  ;;  %v2176_v25 = vsel %vm10812_vm15, %v2174_v18, %v2175_v48  ;;  %v818_v19 = vshrl.u32 %v10882_v61, 16  ;;  %v821_v30 = vshll.u32 %v10882_v61, 16  ;;  %v9822_v9 = vld [vmem:[#allocation2 + $0x5c] sm:$0x1] }
  0xfe   : > { %9134 = vmatprep.subr.bf16.mxu1 %v9729_v4  ;;  %13897 = vst [vmem:[#allocation31_spill] sm:$0xff] %v11000_v50  ;;  %v826_v43 = vshrl.u32 %v10884_v2, 16  ;;  %v2119_v14 = vrot.slane %v9818_v63, 5  ;;  %v11011_v28 = vcombine.low %v2173_v57, %v2176_v25  ;;  %v829_v3 = vshll.u32 %v10884_v2, 16  ;;  %v9823_v18 = vld [vmem:[#allocation2 + $0x60] sm:$0xf] }
  0xff   : > { %v2183_v44 = vsel %vm10812_vm15, %v2181_v40, %v2182_v36  ;;  %v820_v61 = vrot.slane %v818_v19, 7  ;;  %v2110_v2 = vsel %vm10812_vm15, %v7919_v0, %v2109_v38  ;;  %v2123_v15 = vrot.slane %v9819_v58, 5  ;;  %v9824_v36 = vld [vmem:[#allocation2 + $0x68] sm:$0x1]  ;;  %v13902_v19 = vld [vmem:[#allocation14_spill] sm:$0xff] }
 0x100   : > { %9091 = vmatpush3.bf16.msra.mxu0 %v9722_v16  ;;  %13898 = vst [vmem:[#allocation32_spill] sm:$0xff] %v11011_v28  ;;  %v11018_v16 = vcombine.low %v2180_v52, %v2183_v44  ;;  %v828_v33 = vrot.slane %v826_v43, 7  ;;  %v2117_v56 = vsel %vm10812_vm15, %v7920_v32, %v2116_v53  ;;  %v9821_v32 = vld [vmem:[#allocation2 + $0x54] sm:$0xf]  ;;  %v2126_v57 = vrot.slane %v9822_v9, 5  ;;  %v13906_v9 = vld [vmem:[#allocation22_spill] sm:$0xff] }
 0x101   : > { %9092 = vmatprep.subr.bf16.mxu0 %v9723_v51  ;;  %9135 = vmatpush3.bf16.msra.mxu1 %v9729_v4  ;;  %v2113_v4 = vsel %vm10812_vm15, %v10936_v13, %v2112_v5  ;;  %v823_v7 = vor.u32 %v821_v30, %v820_v61  ;;  %v824_v0 = vrot.slane %v820_v61, 4  ;;  %v2120_v5 = vsel %vm10812_vm15, %v10943_v17, %v2119_v14  ;;  %v9820_v13 = vld [vmem:[#allocation2 + $0x64] sm:$0xf]  ;;  %v13903_v30 = vld [vmem:[#allocation16_spill] sm:$0xff] }
 0x102   : > { %9065 = vmatmul.mubr.msk.bf16.gmra.mxu1 %vm1530_vm3, %v10537_v39  ;;  %13899 = vst [vmem:[#allocation33_spill] sm:$0xff] %v11018_v16  ;;  %9208 = vmatprep.subr.bf16.mxu1 %v10998_v12  ;;  %v831_v27 = vor.u32 %v829_v3, %v828_v33  ;;  %v833_v38 = vrot.slane %v828_v33, 4  ;;  %v2130_v23 = vrot.slane %v9820_v13, 5  ;;  %v11056_v21 = vcombine.low %v2110_v2, %v2113_v4 }
 0x103   : > { %9021 = vmatmul.mubr.msk.bf16.gmra.mxu0 %vm1530_vm3, %v10918_v62  ;;  %9068 = vmatprep.mubr.msk.bf16.mxu1 %vm1530_vm3, %v10569_v41  ;;  %v994_v10 = vsel %vm10365_vm11, %v823_v7, %v993_v26  ;;  %v11059_v53 = vcombine.low %v2117_v56, %v2120_v5  ;;  %v7921_v17 = vrot.slane %v9821_v32, 9  ;;  %v2125_v49 = vrot.slane %v2123_v15, 4  ;;  %v13905_v5 = vld [vmem:[#allocation21_spill] sm:$0xff] }
 0x104   : > { %9024 = vmatprep.mubr.msk.bf16.mxu0 %vm1530_vm3, %v10928_v42  ;;  %9093 = vmatpush3.bf16.msra.mxu0 %v9723_v51  ;;  %v832_v51 = vsel %vm10355_vm10, %v824_v0, %v831_v27  ;;  %v998_v35 = vsel %vm10372_vm12, %v833_v38, %v997_v37  ;;  %995 = vst [vmem:[#allocation2 + $0xc0] sm:$0xf] %v994_v10  ;;  %v7922_v52 = vrot.slane %v9823_v18, 9  ;;  %v2132_v40 = vrot.slane %v2130_v23, 4  ;;  %v13904_v38 = vld [vmem:[#allocation19_spill] sm:$0xff]  ;;  %v13908_v18 = vld [vmem:[#allocation28_spill] sm:$0xff] }
 0x105   : > { %9094 = vmatprep.subr.bf16.mxu0 %v9724_v60  ;;  %996 = vst.msk [vmem:[#allocation2 + $0xc4] sm:$0xf] %vm423_vm1, %v832_v51  ;;  %999 = vst [vmem:[#allocation2 + $0xc8] sm:$0x1] %v998_v35  ;;  %v2133_v25 = vrot.slane %v9824_v36, 5  ;;  %v2124_v43 = vsel %vm10812_vm15, %v7921_v17, %v2123_v15  ;;  %v2127_v63 = vsel %vm10812_vm15, %v2125_v49, %v2126_v57  ;;  %v13907_v57 = vld [vmem:[#allocation24_spill] sm:$0xff] }
 0x106   : > { %v2131_v14 = vsel %vm10812_vm15, %v7922_v52, %v2130_v23  ;;  %v11084_v33 = vcombine.low %v2124_v43, %v2127_v63  ;;  %v13909_v52 = vld [vmem:[#allocation30_spill] sm:$0xff]  ;;  %v9735_v36 = vld [vmem:[%s9993_s14 + $0xf0] sm:$0xff]  }
 0x107   : > { %v9731_v43 = vld [vmem:[%s9993_s14 + $0xd0] sm:$0xff]   ;;  %v9737_v63 = vld [vmem:[%s9993_s14 + $0xe0] sm:$0xff]  }
 0x108   : > { %9095 = vmatpush3.bf16.msra.mxu0 %v9724_v60  ;;  %v2134_v60 = vsel %vm10812_vm15, %v2132_v40, %v2133_v25  ;;  %v13910_v25 = vld [vmem:[#allocation8_spill] sm:$0xff] }
 0x109   : > { %9168 = vmatprep.subr.bf16.mxu0 %v11048_v8  ;;  %v11089_v15 = vcombine.low %v2131_v14, %v2134_v60  ;;  %v13911_v60 = vld [vmem:[#allocation9_spill] sm:$0xff] }
 0x10a   : > { %9069 = vmatmul.mubr.msk.bf16.gmra.mxu1 %vm1530_vm3, %v13902_v19 }
 0x10b   : > { %9025 = vmatmul.mubr.msk.bf16.gmra.mxu0 %vm1530_vm3, %v11056_v21  ;;  %9072 = vmatprep.mubr.msk.bf16.mxu1 %vm1530_vm3, %v13903_v30  ;;  %v11078_v44 = vld [vmem:[#allocation2 + $0xc0] sm:$0xf] }
 0x10c   : > { %9028 = vmatprep.mubr.msk.bf16.mxu0 %vm1530_vm3, %v11059_v53  ;;  %v11080_v3 = vld [vmem:[#allocation2 + $0xc4] sm:$0xf]  ;;  %v11082_v61 = vld [vmem:[#allocation2 + $0xc8] sm:$0x1]  ;;  %v2741_v2 = vshrl.u32 %v11078_v44, 16  ;;  %v2744_v4 = vshll.u32 %v11078_v44, 16 }
 0x10d   : > { %v2754_v58 = vshrl.u32 %v11080_v3, 16  ;;  %v2750_v26 = vshll.u32 %v11080_v3, 16  ;;  %v2760_v37 = vshll.u32 %v11082_v61, 16  ;;  %v11125_v40 = vcombine.low %v11078_v44, %v11080_v3 }
 0x10e   : > { %v2743_v7 = vrot.slane %v2741_v2, 4  ;;  %v2746_v0 = vrot.slane %v2744_v4, 5  ;;  %v9732_v4 = vld [vmem:[%s9993_s14 + $0xc8] sm:$0xff]   ;;  %v8032_v48 = vrot.slane %v11078_v44, 9  ;;  %v3002_v24 = vrot.slane %v11082_v61, 5 }
 0x10f   : > { %v2756_v27 = vrot.slane %v2754_v58, 4  ;;  %v2752_v56 = vrot.slane %v2750_v26, 5  ;;  %v2762_v51 = vrot.slane %v2760_v37, 5  ;;  %v9733_v26 = vld [vmem:[%s9993_s14 + $0xc0] sm:$0xff]  }
 0x110   : > { %v2747_v13 = vor.u32 %v2746_v0, %v2743_v7 }
 0x111   : > { %v2757_v23 = vor.u32 %v2756_v27, %v2752_v56  ;;  %v13915_v27 = vld [vmem:[#allocation12_spill] sm:$0xff] }
 0x112   : > { %9073 = vmatmul.mubr.msk.bf16.gmra.mxu1 %vm1530_vm3, %v13904_v38  ;;  %v2748_v10 = vrot.slane %v2747_v13, 4  ;;  %v11172_v13 = vld [vmem:[%s9993_s14 + $0x118] sm:$0xff]  }
 0x113   : > { %9029 = vmatmul.mubr.msk.bf16.gmra.mxu0 %vm1530_vm3, %v11084_v33  ;;  %9076 = vmatprep.mubr.msk.bf16.mxu1 %vm1530_vm3, %v13905_v5  ;;  %v2758_v35 = vrot.slane %v2757_v23, 4 }
 0x114   : > { %9032 = vmatprep.mubr.msk.bf16.mxu0 %vm1530_vm3, %v11089_v15  ;;  %v2753_v32 = vsel %vm10347_vm9, %v2748_v10, %v2752_v56 }
 0x115   : > { %v2763_v17 = vsel %vm10347_vm9, %v2758_v35, %v2762_v51 }
 0x116   : > { %v11105_v49 = vcombine.low %v2753_v32, %v2763_v17 }
 0x11a   : > { %9077 = vmatmul.mubr.msk.bf16.gmra.mxu1 %vm1530_vm3, %v13906_v9 }
 0x11b   : > { %9033 = vmatmul.mubr.msk.bf16.gmra.mxu0 %vm1530_vm3, %v10949_v6  ;;  %9080 = vmatprep.mubr.msk.bf16.mxu1 %vm1530_vm3, %v13907_v57 }
 0x11c   : > { %9036 = vmatprep.mubr.msk.bf16.mxu0 %vm1530_vm3, %v10962_v46 }
 0x122   : > { %9081 = vmatmul.mubr.msk.bf16.gmra.mxu1 %vm1530_vm3, %v13908_v18 }
 0x123   : > { %9037 = vmatmul.mubr.msk.bf16.gmra.mxu0 %vm1530_vm3, %v10973_v22  ;;  %9084 = vmatprep.mubr.msk.bf16.mxu1 %vm1530_vm3, %v13909_v52 }
 0x124   : > { %9040 = vmatprep.mubr.msk.bf16.mxu0 %vm1530_vm3, %v10991_v29 }
 0x12a   : > { %9085 = vmatmul.mubr.msk.bf16.gmra.mxu1 %vm1530_vm3, %v11125_v40 }
 0x12b   : > { %9041 = vmatmul.mubr.msk.bf16.gmra.mxu0 %vm1530_vm3, %v11000_v50  ;;  %9136 = vmatprep.mubr.msk.bf16.mxu1 %vm1530_vm3, %v10839_v47  ;;  %v9736_v47 = vld [vmem:[%s9993_s14 + $0xe8] sm:$0xff]  }
 0x12c   : > { %9044 = vmatprep.mubr.msk.bf16.mxu0 %vm1530_vm3, %v11011_v28 }
 0x132   : > { %9137 = vmatmul.mubr.msk.bf16.vlgmr.msra.gmra.mxu1 %vm1530_vm3, %v10898_v54 }
 0x133   : > { %9045 = vmatmul.mubr.msk.bf16.gmra.mxu0 %vm1530_vm3, %v11018_v16  ;;  %9140 = vmatprep.mubr.msk.bf16.mxu1 %vm1530_vm3, %v10918_v62 }
 0x134   : > { %9096 = vmatprep.mubr.msk.bf16.mxu0 %vm1530_vm3, %v13910_v25  ;;  %9209 = vmatpush3.bf16.msra.mxu1 %v10998_v12  ;;  %v13912_v12 = vld [vmem:[#allocation10_spill] sm:$0xff]  ;;  %v13918_v25 = vld [vmem:[#allocation15_spill] sm:$0xff] }
 0x135   : > { %9210 = vmatprep.subr.bf16.mxu1 %v9735_v36 }
 0x138   : > { %9211 = vmatpush3.bf16.msra.mxu1 %v9735_v36  ;;  %v8978_v14 = vpop.f32.mrf.mxu1  ;;  %v13917_v36 = vld [vmem:[#allocation13_spill] sm:$0xff] }
 0x139   : > { %9212 = vmatprep.subr.bf16.mxu1 %v9736_v47 }
 0x13a   : > { %9141 = vmatmul.mubr.msk.bf16.gmra.mxu1 %vm1530_vm3, %v10928_v42  ;;  %v1926_v2 = vpop.f32.mrf.mxu1 }
 0x13b   : > { %9097 = vmatmul.mubr.msk.bf16.vlgmr.msra.gmra.mxu0 %vm1530_vm3, %v13911_v60  ;;  %9144 = vmatprep.mubr.msk.bf16.mxu1 %vm1530_vm3, %v11056_v21 }
 0x13c   : > { %9169 = vmatpush3.bf16.msra.mxu0 %v11048_v8  ;;  %9100 = vmatprep.mubr.msk.bf16.mxu0 %vm1530_vm3, %v13912_v12  ;;  %v8979_v58 = vpop.f32.mrf.mxu1  ;;  %v13914_v8 = vld [vmem:[#allocation11_spill] sm:$0xff] }
 0x13d   : > { %9170 = vmatprep.subr.bf16.mxu0 %v9731_v43  ;;  %9213 = vmatpush3.bf16.msra.mxu1 %v9736_v47 }
 0x13e   : > { %9214 = vmatprep.subr.bf16.mxu1 %v9737_v63  ;;  %v11161_v7 = vpop.f32.mrf.mxu1 }
 0x13f   : > { %13913 = vst [vmem:[#allocation14_spill] sm:$0xff] %v11161_v7 }
 0x140   : > { %9171 = vmatpush3.bf16.msra.mxu0 %v9731_v43 }
 0x141   : > { %9172 = vmatprep.subr.bf16.mxu0 %v9732_v4  ;;  %9215 = vmatpush3.bf16.msra.mxu1 %v9737_v63  ;;  %v8938_v37 = vpop.f32.mrf.mxu0 }
 0x142   : > { %9145 = vmatmul.mubr.msk.bf16.gmra.mxu1 %vm1530_vm3, %v11059_v53  ;;  %v11167_v0 = vadd.f32 %v8978_v14, %v8938_v37  ;;  %v8982_v10 = vpop.f32.mrf.mxu1  ;;  %v13920_v37 = vld [vmem:[#allocation18_spill] sm:$0xff] }
 0x143   : > { %9101 = vmatmul.mubr.msk.bf16.gmra.mxu0 %vm1530_vm3, %v13914_v8  ;;  %9148 = vmatprep.mubr.msk.bf16.mxu1 %vm1530_vm3, %v11084_v33  ;;  %v1613_v56 = vpop.f32.mrf.mxu0 }
 0x144   : > { %9104 = vmatprep.mubr.msk.bf16.mxu0 %vm1530_vm3, %v13915_v27  ;;  %9173 = vmatpush3.bf16.msra.mxu0 %v9732_v4  ;;  %v11174_v23 = vadd.f32 %v1926_v2, %v1613_v56  ;;  %v1942_v17 = vpop.f32.mrf.mxu1 }
 0x145   : > { %9174 = vmatprep.subr.bf16.mxu0 %v9733_v26  ;;  %v8939_v51 = vpop.f32.mrf.mxu0 }
 0x146   : > { %v11176_v35 = vadd.f32 %v8979_v58, %v8939_v51  ;;  %v8983_v14 = vpop.f32.mrf.mxu1 }
 0x147   : > { %v11178_v32 = vpop.f32.mrf.mxu0 }
 0x148   : > { %9175 = vmatpush3.bf16.msra.mxu0 %v9733_v26  ;;  %13916 = vst [vmem:[#allocation16_spill] sm:$0xff] %v11178_v32  ;;  %v13919_v26 = vld [vmem:[#allocation17_spill] sm:$0xff]  ;;  %v11203_v56 = vpop.f32.mrf.mxu1 }
 0x149   : > { %9248 = vmatprep.subr.bf16.mxu0 %v11172_v13  ;;  %13921 = vst [vmem:[#allocation19_spill] sm:$0xff] %v11203_v56 }
 0x14a   : > { %9149 = vmatmul.mubr.msk.bf16.gmra.mxu1 %vm1530_vm3, %v11089_v15 }
 0x14b   : > { %9105 = vmatmul.mubr.msk.bf16.gmra.mxu0 %vm1530_vm3, %v13917_v36  ;;  %9152 = vmatprep.mubr.msk.bf16.mxu1 %vm1530_vm3, %v10949_v6  ;;  %v8942_v47 = vpop.f32.mrf.mxu0 }
 0x14c   : > { %9108 = vmatprep.mubr.msk.bf16.mxu0 %vm1530_vm3, %v13918_v25  ;;  %v11189_v43 = vadd.f32 %v8982_v10, %v8942_v47  ;;  %v2999_v47 = vrot.slane %v11080_v3, 5 }
 0x14d   : > { %v1629_v63 = vpop.f32.mrf.mxu0 }
 0x14e   : > { %v11191_v2 = vadd.f32 %v1942_v17, %v1629_v63  ;;  %v13923_v17 = vld [vmem:[#allocation20_spill] sm:$0xff]  ;;  %v13924_v63 = vld [vmem:[#allocation23_spill] sm:$0xff]  ;;  %v3001_v11 = vrot.slane %v2999_v47, 4  ;;  %v3000_v44 = vsel %vm10812_vm15, %v8032_v48, %v2999_v47 }
 0x14f   : > { %v8943_v4 = vpop.f32.mrf.mxu0 }
 0x150   : > { %v11193_v58 = vadd.f32 %v8983_v14, %v8943_v4  ;;  %v3003_v61 = vsel %vm10812_vm15, %v3001_v11, %v3002_v24 }
 0x151   : > { %v11207_v10 = vpop.f32.mrf.mxu0 }
 0x152   : > { %9153 = vmatmul.mubr.msk.bf16.gmra.mxu1 %vm1530_vm3, %v10962_v46  ;;  %13922 = vst [vmem:[#allocation21_spill] sm:$0xff] %v11207_v10 }
 0x153   : > { %9109 = vmatmul.mubr.msk.bf16.gmra.mxu0 %vm1530_vm3, %v13919_v26  ;;  %9156 = vmatprep.mubr.msk.bf16.mxu1 %vm1530_vm3, %v10973_v22 }
 0x154   : > { %9112 = vmatprep.mubr.msk.bf16.mxu0 %vm1530_vm3, %v13920_v37  ;;  %v8986_v51 = vpop.f32.mrf.mxu1 }
 0x156   : > { %v1958_v14 = vpop.f32.mrf.mxu1 }
 0x158   : > { %v8987_v7 = vpop.f32.mrf.mxu1 }
 0x15a   : > { %9157 = vmatmul.mubr.msk.bf16.gmra.mxu1 %vm1530_vm3, %v10991_v29 }
 0x15b   : > { %9113 = vmatmul.mubr.msk.bf16.gmra.mxu0 %vm1530_vm3, %v13923_v17  ;;  %9160 = vmatprep.mubr.msk.bf16.mxu1 %vm1530_vm3, %v11000_v50  ;;  %v13925_v50 = vld [vmem:[#allocation25_spill] sm:$0xff] }
 0x15c   : > { %9116 = vmatprep.mubr.msk.bf16.mxu0 %vm1530_vm3, %v13924_v63 }
 0x15d   : > { %v8946_v4 = vpop.f32.mrf.mxu0 }
 0x15e   : > { %v11218_v56 = vadd.f32 %v8986_v51, %v8946_v4  ;;  %v11238_v4 = vcombine.low %v3000_v44, %v3003_v61 }
 0x15f   : > { %v1645_v10 = vpop.f32.mrf.mxu0 }
 0x160   : > { %v11220_v32 = vadd.f32 %v1958_v14, %v1645_v10  ;;  %v13926_v10 = vld [vmem:[#allocation26_spill] sm:$0xff]  ;;  %v11236_v14 = vpop.f32.mrf.mxu1  ;;  %13927 = vst [vmem:[#allocation22_spill] sm:$0xff] %v11238_v4 }
 0x161   : > { %v8947_v3 = vpop.f32.mrf.mxu0 }
 0x162   : > { %9161 = vmatmul.mubr.msk.bf16.gmra.mxu1 %vm1530_vm3, %v11011_v28  ;;  %v11232_v51 = vadd.f32 %v8987_v7, %v8947_v3 }
 0x163   : > { %9117 = vmatmul.mubr.msk.bf16.gmra.mxu0 %vm1530_vm3, %v13925_v50  ;;  %9164 = vmatprep.mubr.msk.bf16.mxu1 %vm1530_vm3, %v11018_v16  ;;  %v13928_v16 = vld [vmem:[#allocation29_spill] sm:$0xff]  ;;  %v11248_v11 = vpop.f32.mrf.mxu0 }
 0x164   : > { %9120 = vmatprep.mubr.msk.bf16.mxu0 %vm1530_vm3, %v13926_v10 }
 0x166   : > { %v8990_v28 = vpop.f32.mrf.mxu1 }
 0x168   : > { %v1974_v24 = vpop.f32.mrf.mxu1 }
 0x16a   : > { %9165 = vmatmul.mubr.msk.bf16.gmra.mxu1 %vm1530_vm3, %v11238_v4  ;;  %v8991_v7 = vpop.f32.mrf.mxu1  ;;  %v9739_v4 = vld [vmem:[%s9993_s14 + $0x110] sm:$0xff]  }
 0x16b   : > { %9121 = vmatmul.mubr.msk.bf16.gmra.mxu0 %vm1530_vm3, %v13928_v16  ;;  %9216 = vmatprep.mubr.msk.bf16.mxu1 %vm1530_vm3, %v13911_v60 }
 0x16c   : > { %9124 = vmatprep.mubr.msk.bf16.mxu0 %vm1530_vm3, %v10886_v55  ;;  %v1977_v61 = vpop.f32.mrf.mxu1 }
 0x16f   : > { %v8950_v48 = vpop.f32.mrf.mxu0 }
 0x170   : > { %v11250_v47 = vadd.f32 %v8990_v28, %v8950_v48 }
 0x171   : > { %v1661_v3 = vpop.f32.mrf.mxu0 }
 0x172   : > { %9217 = vmatmul.mubr.msk.bf16.vlgmr.msra.gmra.mxu1 %vm1530_vm3, %v13912_v12  ;;  %v11258_v60 = vadd.f32 %v1974_v24, %v1661_v3 }
 0x173   : > { %9125 = vmatmul.mubr.msk.bf16.gmra.mxu0 %vm1530_vm3, %v11105_v49  ;;  %9220 = vmatprep.mubr.msk.bf16.mxu1 %vm1530_vm3, %v13914_v8  ;;  %v8951_v44 = vpop.f32.mrf.mxu0  ;;  %v9740_v8 = vld [vmem:[%s9993_s14 + $0x108] sm:$0xff]  }
 0x174   : > { %9176 = vmatprep.mubr.msk.bf16.mxu0 %vm1530_vm3, %v10425_v45  ;;  %v11262_v28 = vadd.f32 %v8991_v7, %v8951_v44 }
 0x175   : > { %v1664_v48 = vpop.f32.mrf.mxu0  ;;  %v8994_v12 = vpop.f32.mrf.mxu1 }
 0x176   : > { %v11264_v31 = vadd.f32 %v1977_v61, %v1664_v48 }
 0x177   : > { %v1990_v45 = vpop.f32.mrf.mxu1 }
 0x17a   : > { %9221 = vmatmul.mubr.msk.bf16.gmra.mxu1 %vm1530_vm3, %v13915_v27  ;;  %v8995_v27 = vpop.f32.mrf.mxu1 }
 0x17b   : > { %9177 = vmatmul.mubr.msk.bf16.vlgmr.msra.gmra.mxu0 %vm1530_vm3, %v10441_v20  ;;  %9224 = vmatprep.mubr.msk.bf16.mxu1 %vm1530_vm3, %v13917_v36  ;;  %v9741_v20 = vld [vmem:[%s9993_s14 + $0x100] sm:$0xff]  }
 0x17c   : > { %9249 = vmatpush3.bf16.msra.mxu0 %v11172_v13  ;;  %9180 = vmatprep.mubr.msk.bf16.mxu0 %vm1530_vm3, %v10504_v34  ;;  %v11292_v36 = vpop.f32.mrf.mxu1 }
 0x17d   : > { %9250 = vmatprep.subr.bf16.mxu0 %v9739_v4  ;;  %v8954_v24 = vpop.f32.mrf.mxu0 }
 0x17e   : > { %v11277_v7 = vadd.f32 %v8994_v12, %v8954_v24 }
 0x17f   : > { %v1677_v3 = vpop.f32.mrf.mxu0 }
 0x180   : > { %9251 = vmatpush3.bf16.msra.mxu0 %v9739_v4  ;;  %v11279_v44 = vadd.f32 %v1990_v45, %v1677_v3 }
 0x181   : > { %9252 = vmatprep.subr.bf16.mxu0 %v9740_v8  ;;  %v8955_v13 = vpop.f32.mrf.mxu0 }
 0x182   : > { %9225 = vmatmul.mubr.msk.bf16.gmra.mxu1 %vm1530_vm3, %v13918_v25  ;;  %v11288_v34 = vadd.f32 %v8995_v27, %v8955_v13  ;;  %v11304_v25 = vld [vmem:[#allocation2 + $0xcc] sm:$0xf]  ;;  %v11328_v13 = vld [vmem:[#allocation2 + $0xd4] sm:$0x1] }
 0x183   : > { %9181 = vmatmul.mubr.msk.bf16.gmra.mxu0 %vm1530_vm3, %v10517_v59  ;;  %9228 = vmatprep.mubr.msk.bf16.mxu1 %vm1530_vm3, %v13919_v26  ;;  %v11302_v59 = vpop.f32.mrf.mxu0  ;;  %v11306_v26 = vld [vmem:[#allocation2 + $0xd0] sm:$0xf] }
 0x184   : > { %9184 = vmatprep.mubr.msk.bf16.mxu0 %vm1530_vm3, %v10537_v39  ;;  %9253 = vmatpush3.bf16.msra.mxu0 %v9740_v8  ;;  %v3484_v12 = vshrl.u32 %v11306_v26, 16  ;;  %v3480_v45 = vshll.u32 %v11306_v26, 16 }
 0x185   : > { %9254 = vmatprep.subr.bf16.mxu0 %v9741_v20 }
 0x186   : > { %v3482_v27 = vrot.slane %v3480_v45, 5 }
 0x187   : > { %v8998_v4 = vpop.f32.mrf.mxu1 }
 0x188   : > { %9255 = vmatpush3.bf16.msra.mxu0 %v9741_v20  ;;  %v3486_v20 = vrot.slane %v3484_v12, 4 }
 0x189   : > { %v2006_v39 = vpop.f32.mrf.mxu1 }
 0x18a   : > { %9229 = vmatmul.mubr.msk.bf16.gmra.mxu1 %vm1530_vm3, %v13920_v37 }
 0x18b   : > { %9185 = vmatmul.mubr.msk.bf16.gmra.mxu0 %vm1530_vm3, %v10569_v41  ;;  %9232 = vmatprep.mubr.msk.bf16.mxu1 %vm1530_vm3, %v13923_v17  ;;  %v8999_v48 = vpop.f32.mrf.mxu1  ;;  %v3474_v17 = vshll.u32 %v11304_v25, 16 }
 0x18c   : > { %9188 = vmatprep.mubr.msk.bf16.mxu0 %vm1530_vm3, %v13902_v19  ;;  %v3471_v19 = vshrl.u32 %v11304_v25, 16 }
 0x18d   : > { %v11324_v24 = vpop.f32.mrf.mxu1  ;;  %v3476_v3 = vrot.slane %v3474_v17, 5 }
 0x18e   : > { %13929 = vst [vmem:[#allocation24_spill] sm:$0xff] %v11324_v24 }
 0x190   : > { %v8958_v61 = vpop.f32.mrf.mxu0 }
 0x191   : > { %v11310_v37 = vadd.f32 %v8998_v4, %v8958_v61  ;;  %v3487_v61 = vor.u32 %v3486_v20, %v3482_v27 }
 0x192   : > { %9233 = vmatmul.mubr.msk.bf16.gmra.mxu1 %vm1530_vm3, %v13924_v63  ;;  %v1693_v41 = vpop.f32.mrf.mxu0 }
 0x193   : > { %9189 = vmatmul.mubr.msk.bf16.gmra.mxu0 %vm1530_vm3, %v13903_v30  ;;  %9236 = vmatprep.mubr.msk.bf16.mxu1 %vm1530_vm3, %v13925_v50  ;;  %v11322_v63 = vadd.f32 %v2006_v39, %v1693_v41  ;;  %v3473_v50 = vrot.slane %v3471_v19, 4  ;;  %v3488_v12 = vrot.slane %v3487_v61, 4 }
 0x194   : > { %9192 = vmatprep.mubr.msk.bf16.mxu0 %vm1530_vm3, %v13904_v38  ;;  %v8959_v8 = vpop.f32.mrf.mxu0 }
 0x195   : > { %v11326_v30 = vadd.f32 %v8999_v48, %v8959_v8  ;;  %v9002_v4 = vpop.f32.mrf.mxu1  ;;  %v3477_v39 = vor.u32 %v3476_v3, %v3473_v50  ;;  %v3490_v48 = vshll.u32 %v11328_v13, 16 }
 0x196   : > { %v11334_v38 = vpop.f32.mrf.mxu0 }
 0x197   : > { %v2022_v41 = vpop.f32.mrf.mxu1  ;;  %v3478_v17 = vrot.slane %v3477_v39, 4 }
 0x199   : > { %v9003_v8 = vpop.f32.mrf.mxu1 }
 0x19a   : > { %9237 = vmatmul.mubr.msk.bf16.gmra.mxu1 %vm1530_vm3, %v13926_v10  ;;  %v3492_v10 = vrot.slane %v3490_v48, 5 }
 0x19b   : > { %9193 = vmatmul.mubr.msk.bf16.gmra.mxu0 %vm1530_vm3, %v13905_v5  ;;  %9240 = vmatprep.mubr.msk.bf16.mxu1 %vm1530_vm3, %v13928_v16  ;;  %v11359_v20 = vpop.f32.mrf.mxu1 }
 0x19c   : > { %9196 = vmatprep.mubr.msk.bf16.mxu0 %vm1530_vm3, %v13906_v9  ;;  %v3483_v9 = vsel %vm10347_vm9, %v3478_v17, %v3482_v27  ;;  %v3493_v50 = vsel %vm10347_vm9, %v3488_v12, %v3492_v10 }
 0x19f   : > { %v8962_v19 = vpop.f32.mrf.mxu0 }
 0x1a0   : > { %v11341_v45 = vadd.f32 %v9002_v4, %v8962_v19 }
 0x1a1   : > { %v1709_v5 = vpop.f32.mrf.mxu0 }
 0x1a2   : > { %v11343_v24 = vadd.f32 %v2022_v41, %v1709_v5  ;;  %9241 = vmatmul.mubr.msk.bf16.gmra.mxu1 %vm1530_vm3, %v10886_v55  ;;  %v8099_v55 = vcombine.low %v3483_v9, %v3493_v50 }
 0x1a3   : > { %9197 = vmatmul.mubr.msk.bf16.gmra.mxu0 %vm1530_vm3, %v13907_v57  ;;  %v8963_v16 = vpop.f32.mrf.mxu0  ;;  %9244 = vmatprep.mubr.msk.bf16.mxu1 %vm1530_vm3, %v11105_v49 }
 0x1a4   : > { %9200 = vmatprep.mubr.msk.bf16.mxu0 %vm1530_vm3, %v13908_v18  ;;  %v11357_v3 = vadd.f32 %v9003_v8, %v8963_v16  ;;  %v8070_v18 = vcombine.low %v11304_v25, %v11306_v26 }
 0x1a5   : > { %v11366_v27 = vpop.f32.mrf.mxu0 }
 0x1aa   : > { %v9006_v4 = vpop.f32.mrf.mxu1  ;;  %9245 = vmatmul.mubr.msk.bf16.gmra.mxu1 %vm1530_vm3, %v8099_v55 }
 0x1ab   : > { %9201 = vmatmul.mubr.msk.bf16.gmra.mxu0 %vm1530_vm3, %v13909_v52 }
 0x1ac   : > { %9204 = vmatprep.mubr.msk.bf16.mxu0 %vm1530_vm3, %v11125_v40  ;;  %v2038_v49 = vpop.f32.mrf.mxu1 }
 0x1ae   : > { %v9007_v57 = vpop.f32.mrf.mxu1 }
 0x1b0   : > { %v11370_v39 = vpop.f32.mrf.mxu1 }
 0x1b2   : > { %v9058_v61 = vpop.f32.mrf.mxu1 }
 0x1b3   : > { %v8966_v48 = vpop.f32.mrf.mxu0  ;;  %9205 = vmatmul.mubr.msk.bf16.gmra.mxu0 %vm1530_vm3, %v8070_v18 }
 0x1b4   : > { %v11373_v41 = vadd.f32 %v9006_v4, %v8966_v48  ;;  %9256 = vmatprep.mubr.msk.bf16.mxu0 %vm1530_vm3, %v10898_v54  ;;  %v2581_v52 = vpop.f32.mrf.mxu1 }
 0x1b5   : > { %v1725_v40 = vpop.f32.mrf.mxu0 }
 0x1b6   : > { %v11377_v19 = vadd.f32 %v2038_v49, %v1725_v40  ;;  %v9059_v17 = vpop.f32.mrf.mxu1 }
 0x1b7   : > { %v8967_v12 = vpop.f32.mrf.mxu0 }
 0x1b8   : > { %v11379_v10 = vadd.f32 %v9007_v57, %v8967_v12  ;;  %v11381_v5 = vpop.f32.mrf.mxu1 }
 0x1b9   : > { %v11383_v8 = vpop.f32.mrf.mxu0 }
 0x1ba   : > { %v9062_v16 = vpop.f32.mrf.mxu1 }
 0x1bb   : > { %v9018_v9 = vpop.f32.mrf.mxu0  ;;  %9257 = vmatmul.mubr.msk.bf16.vlgmr.msra.gmra.mxu0 %vm1530_vm3, %v10918_v62 }
 0x1bc   : > { %v2476_v50 = vadd.f32 %v9018_v9, %v11167_v0  ;;  %9260 = vmatprep.mubr.msk.bf16.mxu0 %vm1530_vm3, %v10928_v42  ;;  %v2597_v54 = vpop.f32.mrf.mxu1 }
 0x1bd   : > { %v2347_v55 = vpop.f32.mrf.mxu0 }
 0x1be   : > { %v2474_v4 = vadd.f32 %v2347_v55, %v11174_v23  ;;  %v11391_v49 = vadd.f32 %v9058_v61, %v2476_v50  ;;  %v9063_v57 = vpop.f32.mrf.mxu1 }
 0x1bf   : > { %v9019_v18 = vpop.f32.mrf.mxu0 }
 0x1c0   : > { %v2477_v48 = vadd.f32 %v9019_v18, %v11176_v35  ;;  %v11394_v40 = vadd.f32 %v2581_v52, %v2474_v4  ;;  %v11396_v12 = vpop.f32.mrf.mxu1 }
 0x1c1   : > { %v11398_v62 = vpop.f32.mrf.mxu0 }
 0x1c2   : > { %v11400_v0 = vadd.f32 %v9059_v17, %v2477_v48  ;;  %v9066_v9 = vpop.f32.mrf.mxu1 }
 0x1c3   : > { %v9022_v42 = vpop.f32.mrf.mxu0  ;;  %9261 = vmatmul.mubr.msk.bf16.gmra.mxu0 %vm1530_vm3, %v11056_v21 }
 0x1c4   : > { %v2480_v23 = vadd.f32 %v9022_v42, %v11189_v43  ;;  %9264 = vmatprep.mubr.msk.bf16.mxu0 %vm1530_vm3, %v11059_v53  ;;  %v2613_v61 = vpop.f32.mrf.mxu1 }
 0x1c5   : > { %v2363_v35 = vpop.f32.mrf.mxu0 }
 0x1c6   : > { %v2478_v52 = vadd.f32 %v2363_v35, %v11191_v2  ;;  %v11408_v50 = vadd.f32 %v9062_v16, %v2480_v23  ;;  %v9067_v55 = vpop.f32.mrf.mxu1 }
 0x1c7   : > { %v9023_v4 = vpop.f32.mrf.mxu0 }
 0x1c8   : > { %v2481_v17 = vadd.f32 %v9023_v4, %v11193_v58  ;;  %v11411_v18 = vadd.f32 %v2597_v54, %v2478_v52  ;;  %v11413_v48 = vpop.f32.mrf.mxu1 }
 0x1c9   : > { %13930 = vst [vmem:[#allocation28_spill] sm:$0xff] %v11413_v48  ;;  %v11415_v21 = vpop.f32.mrf.mxu0 }
 0x1ca   : > { %v11417_v43 = vadd.f32 %v9063_v57, %v2481_v17  ;;  %v9070_v42 = vpop.f32.mrf.mxu1  ;;  %v1962_v57 = vadd.f32 %v11236_v14, %v11248_v11 }
 0x1cb   : > { %v9026_v53 = vpop.f32.mrf.mxu0  ;;  %9265 = vmatmul.mubr.msk.bf16.gmra.mxu0 %vm1530_vm3, %v11084_v33 }
 0x1cc   : > { %v2484_v2 = vadd.f32 %v9026_v53, %v11218_v56  ;;  %9268 = vmatprep.mubr.msk.bf16.mxu0 %vm1530_vm3, %v11089_v15  ;;  %v2629_v16 = vpop.f32.mrf.mxu1 }
 0x1cd   : > { %v2379_v58 = vpop.f32.mrf.mxu0 }
 0x1ce   : > { %v2482_v54 = vadd.f32 %v2379_v58, %v11220_v32  ;;  %v11425_v23 = vadd.f32 %v9066_v9, %v2484_v2  ;;  %v9071_v35 = vpop.f32.mrf.mxu1 }
 0x1cf   : > { %v9027_v52 = vpop.f32.mrf.mxu0 }
 0x1d0   : > { %v2485_v4 = vadd.f32 %v9027_v52, %v11232_v51  ;;  %v11430_v17 = vadd.f32 %v2613_v61, %v2482_v54  ;;  %v11432_v33 = vpop.f32.mrf.mxu1 }
 0x1d1   : > { %13931 = vst [vmem:[#allocation30_spill] sm:$0xff] %v11432_v33  ;;  %v2382_v56 = vpop.f32.mrf.mxu0 }
 0x1d2   : > { %v11434_v53 = vadd.f32 %v2382_v56, %v1962_v57  ;;  %v11436_v15 = vadd.f32 %v9067_v55, %v2485_v4  ;;  %v9074_v48 = vpop.f32.mrf.mxu1 }
 0x1d3   : > { %v9030_v32 = vpop.f32.mrf.mxu0  ;;  %9269 = vmatmul.mubr.msk.bf16.gmra.mxu0 %vm1530_vm3, %v10949_v6 }
 0x1d4   : > { %v2488_v9 = vadd.f32 %v9030_v32, %v11250_v47  ;;  %9272 = vmatprep.mubr.msk.bf16.mxu0 %vm1530_vm3, %v10962_v46  ;;  %v2645_v51 = vpop.f32.mrf.mxu1 }
 0x1d5   : > { %v2395_v14 = vpop.f32.mrf.mxu0 }
 0x1d6   : > { %v2486_v11 = vadd.f32 %v2395_v14, %v11258_v60  ;;  %v11444_v61 = vadd.f32 %v9070_v42, %v2488_v9  ;;  %v9075_v2 = vpop.f32.mrf.mxu1 }
 0x1d7   : > { %v9031_v58 = vpop.f32.mrf.mxu0 }
 0x1d8   : > { %v2489_v55 = vadd.f32 %v9031_v58, %v11262_v28  ;;  %v11447_v54 = vadd.f32 %v2629_v16, %v2486_v11  ;;  %v11449_v52 = vpop.f32.mrf.mxu1  ;;  %v13934_v58 = vld [vmem:[#allocation31_spill] sm:$0xff] }
 0x1d9   : > { %13932 = vst [vmem:[#allocation8_spill] sm:$0xff] %v11449_v52  ;;  %v2398_v6 = vpop.f32.mrf.mxu0 }
 0x1da   : > { %v11452_v47 = vadd.f32 %v2398_v6, %v11264_v31  ;;  %v11454_v57 = vadd.f32 %v9071_v35, %v2489_v55  ;;  %v9078_v46 = vpop.f32.mrf.mxu1 }
 0x1db   : > { %v9034_v4 = vpop.f32.mrf.mxu0  ;;  %9273 = vmatmul.mubr.msk.bf16.gmra.mxu0 %vm1530_vm3, %v10973_v22 }
 0x1dc   : > { %v2492_v60 = vadd.f32 %v9034_v4, %v11277_v7  ;;  %9276 = vmatprep.mubr.msk.bf16.mxu0 %vm1530_vm3, %v10991_v29  ;;  %v2661_v28 = vpop.f32.mrf.mxu1 }
 0x1dd   : > { %v2411_v42 = vpop.f32.mrf.mxu0 }
 0x1de   : > { %v2490_v16 = vadd.f32 %v2411_v42, %v11279_v44  ;;  %v11462_v56 = vadd.f32 %v9074_v48, %v2492_v60  ;;  %v9079_v31 = vpop.f32.mrf.mxu1  ;;  %v13935_v48 = vld [vmem:[#allocation32_spill] sm:$0xff] }
 0x1df   : > { %v9035_v35 = vpop.f32.mrf.mxu0 }
 0x1e0   : > { %v2493_v32 = vadd.f32 %v9035_v35, %v11288_v34  ;;  %v11465_v9 = vadd.f32 %v2645_v51, %v2490_v16  ;;  %v11467_v14 = vpop.f32.mrf.mxu1  ;;  %v3729_v34 = vrot.slane %v11306_v26, 5  ;;  %v9743_v51 = vld [vmem:[%s9998_s17 + $0x38] sm:$0xff]   ;;  %v8120_v16 = vrot.slane %v11304_v25, 9 }
 0x1e1   : > { %13933 = vst [vmem:[#allocation9_spill] sm:$0xff] %v11467_v14  ;;  %v11469_v22 = vpop.f32.mrf.mxu0  ;;  %9288 = vmatprep.subr.bf16.mxu1 %v9743_v51  ;;  %v3732_v26 = vrot.slane %v11328_v13, 5 }
 0x1e2   : > { %v11471_v7 = vadd.f32 %v9075_v2, %v2493_v32  ;;  %v9082_v29 = vpop.f32.mrf.mxu1  ;;  %9289 = vmatpush3.bf16.msra.mxu1 %v9743_v51  ;;  %v13938_v51 = vld [vmem:[#allocation22_spill] sm:$0xff] }
 0x1e3   : > { %v9038_v11 = vpop.f32.mrf.mxu0  ;;  %9277 = vmatmul.mubr.msk.bf16.gmra.mxu0 %vm1530_vm3, %v13934_v58 }
 0x1e4   : > { %v2496_v44 = vadd.f32 %v9038_v11, %v11310_v37  ;;  %9280 = vmatprep.mubr.msk.bf16.mxu0 %vm1530_vm3, %v13935_v48  ;;  %v2677_v55 = vpop.f32.mrf.mxu1  ;;  %v3731_v11 = vrot.slane %v3729_v34, 4  ;;  %v13937_v48 = vld [vmem:[#allocation33_spill] sm:$0xff] }
 0x1e5   : > { %v2427_v6 = vpop.f32.mrf.mxu0 }
 0x1e6   : > { %v2494_v4 = vadd.f32 %v2427_v6, %v11322_v63  ;;  %v11481_v60 = vadd.f32 %v9078_v46, %v2496_v44  ;;  %v9083_v2 = vpop.f32.mrf.mxu1  ;;  %v3733_v13 = vsel %vm10812_vm15, %v3731_v11, %v3732_v26 }
 0x1e7   : > { %v9039_v42 = vpop.f32.mrf.mxu0 }
 0x1e8   : > { %v2497_v37 = vadd.f32 %v9039_v42, %v11326_v30  ;;  %v11485_v35 = vadd.f32 %v2661_v28, %v2494_v4  ;;  %v11487_v32 = vpop.f32.mrf.mxu1  ;;  %v3730_v28 = vsel %vm10812_vm15, %v8120_v16, %v3729_v34 }
 0x1e9   : > { %13936 = vst [vmem:[#allocation10_spill] sm:$0xff] %v11487_v32  ;;  %v11490_v58 = vpop.f32.mrf.mxu0  ;;  %v8129_v32 = vcombine.low %v3730_v28, %v3733_v13 }
 0x1ea   : > { %v11492_v63 = vadd.f32 %v9079_v31, %v2497_v37  ;;  %v9086_v46 = vpop.f32.mrf.mxu1 }
 0x1eb   : > { %v9042_v44 = vpop.f32.mrf.mxu0  ;;  %9281 = vmatmul.mubr.msk.bf16.gmra.mxu0 %vm1530_vm3, %v13937_v48 }
 0x1ec   : > { %v2500_v25 = vadd.f32 %v9042_v44, %v11341_v45  ;;  %9284 = vmatprep.mubr.msk.bf16.mxu0 %vm1530_vm3, %v13938_v51  ;;  %v2693_v6 = vpop.f32.mrf.mxu1 }
 0x1ed   : > { %v2443_v4 = vpop.f32.mrf.mxu0 }
 0x1ee   : > { %v2498_v31 = vadd.f32 %v2443_v4, %v11343_v24  ;;  %v11504_v42 = vadd.f32 %v9082_v29, %v2500_v25  ;;  %v9087_v37 = vpop.f32.mrf.mxu1  ;;  %v9744_v25 = vld [vmem:[%s9998_s17 + $0x30] sm:$0xff]  }
 0x1ef   : > { %v9043_v48 = vpop.f32.mrf.mxu0  ;;  %9290 = vmatprep.subr.bf16.mxu1 %v9744_v25 }
 0x1f0   : > { %v2501_v45 = vadd.f32 %v9043_v48, %v11357_v3  ;;  %v11507_v44 = vadd.f32 %v2677_v55, %v2498_v31  ;;  %v11509_v51 = vpop.f32.mrf.mxu1  ;;  %9291 = vmatpush3.bf16.msra.mxu1 %v9744_v25 }
 0x1f1   : > { %13940 = vst [vmem:[#allocation11_spill] sm:$0xff] %v11509_v51  ;;  %v11511_v34 = vpop.f32.mrf.mxu0 }
 0x1f2   : > { %v11513_v16 = vadd.f32 %v9083_v2, %v2501_v45  ;;  %v11515_v11 = vpop.f32.mrf.mxu1 }
 0x1f3   : > { %13941 = vst [vmem:[#allocation12_spill] sm:$0xff] %v11515_v11  ;;  %v9046_v26 = vpop.f32.mrf.mxu0  ;;  %9285 = vmatmul.mubr.msk.bf16.gmra.mxu0 %vm1530_vm3, %v8129_v32 }
 0x1f4   : > { %v2504_v24 = vadd.f32 %v9046_v26, %v11373_v41  ;;  %v11519_v29 = vpop.f32.mrf.mxu1 }
 0x1f5   : > { %13942 = vst [vmem:[#allocation13_spill] sm:$0xff] %v11519_v29  ;;  %v2459_v28 = vpop.f32.mrf.mxu0  ;;  %v9745_v29 = vld [vmem:[%s9998_s17 + $0x28] sm:$0xff]  }
 0x1f6   : > { %v2502_v3 = vadd.f32 %v2459_v28, %v11377_v19  ;;  %v11523_v55 = vadd.f32 %v9086_v46, %v2504_v24  ;;  %v11525_v13 = vpop.f32.mrf.mxu1  ;;  %9292 = vmatprep.subr.bf16.mxu1 %v9745_v29 }
 0x1f7   : > { %13943 = vst [vmem:[#allocation15_spill] sm:$0xff] %v11525_v13  ;;  %v9047_v2 = vpop.f32.mrf.mxu0  ;;  %9293 = vmatpush3.bf16.msra.mxu1 %v9745_v29 }
 0x1f8   : > { %v2505_v4 = vadd.f32 %v9047_v2, %v11379_v10  ;;  %v11528_v31 = vadd.f32 %v2693_v6, %v2502_v3  ;;  %v11530_v32 = vpop.f32.mrf.mxu1 }
 0x1f9   : > { %13944 = vst [vmem:[#allocation17_spill] sm:$0xff] %v11530_v32  ;;  %v11532_v41 = vpop.f32.mrf.mxu0 }
 0x1fa   : > { %v11534_v48 = vadd.f32 %v9087_v37, %v2505_v4  ;;  %v11536_v45 = vpop.f32.mrf.mxu1 }
 0x1fb   : > { %13945 = vst [vmem:[#allocation18_spill] sm:$0xff] %v11536_v45  ;;  %v9098_v19 = vpop.f32.mrf.mxu0 }
 0x1fc   : > { %v11539_v46 = vadd.f32 %v9098_v19, %v11391_v49  ;;  %v11541_v26 = vpop.f32.mrf.mxu1 }
 0x1fd   : > { %13947 = vst [vmem:[#allocation23_spill] sm:$0xff] %v11541_v26  ;;  %v2837_v24 = vpop.f32.mrf.mxu0 }
 0x1fe   : > { %13946 = vst [vmem:[#allocation20_spill] sm:$0xff] %v11539_v46  ;;  %v11544_v25 = vadd.f32 %v2837_v24, %v11394_v40  ;;  %v9143_v10 = vpop.f32.mrf.mxu1 }
 0x1ff   : > { %v9099_v6 = vpop.f32.mrf.mxu0 }
 0x200   : > { %13948 = vst [vmem:[#allocation25_spill] sm:$0xff] %v11544_v25  ;;  %v11547_v28 = vadd.f32 %v9099_v6, %v11400_v0  ;;  %v11549_v3 = vpop.f32.mrf.mxu1 }
 0x201   : > { %13950 = vst [vmem:[#allocation29_spill] sm:$0xff] %v11549_v3  ;;  %v11551_v37 = vpop.f32.mrf.mxu0 }
 0x202   : > { %13949 = vst [vmem:[#allocation26_spill] sm:$0xff] %v11547_v28  ;;  %v9146_v2 = vpop.f32.mrf.mxu1 }
 0x203   : > { %v9102_v4 = vpop.f32.mrf.mxu0 }
 0x204   : > { %v11554_v49 = vadd.f32 %v9102_v4, %v11408_v50  ;;  %v3109_v19 = vpop.f32.mrf.mxu1 }
 0x205   : > { %v2853_v30 = vpop.f32.mrf.mxu0 }
 0x206   : > { %13951 = vst [vmem:[#allocation31_spill] sm:$0xff] %v11554_v49  ;;  %v11557_v40 = vadd.f32 %v2853_v30, %v11411_v18  ;;  %v9147_v24 = vpop.f32.mrf.mxu1 }
 0x207   : > { %v9103_v26 = vpop.f32.mrf.mxu0 }
 0x208   : > { %13952 = vst [vmem:[#allocation32_spill] sm:$0xff] %v11557_v40  ;;  %v2971_v0 = vadd.f32 %v9103_v26, %v11417_v43  ;;  %v11560_v6 = vpop.f32.mrf.mxu1  ;;  %v9746_v43 = vld [vmem:[%s9998_s17 + $0x18] sm:$0xff]  }
 0x209   : > { %13953 = vst [vmem:[#allocation33_spill] sm:$0xff] %v11560_v6  ;;  %v11562_v3 = vpop.f32.mrf.mxu0  ;;  %9328 = vmatprep.subr.bf16.mxu0 %v9746_v43 }
 0x20a   : > { %v11564_v45 = vadd.f32 %v9143_v10, %v2971_v0  ;;  %v9150_v32 = vpop.f32.mrf.mxu1  ;;  %9329 = vmatpush3.bf16.msra.mxu0 %v9746_v43 }
 0x20b   : > { %v9106_v13 = vpop.f32.mrf.mxu0 }
 0x20c   : > { %v2974_v50 = vadd.f32 %v9106_v13, %v11425_v23  ;;  %v3125_v4 = vpop.f32.mrf.mxu1 }
 0x20d   : > { %v2869_v49 = vpop.f32.mrf.mxu0 }
 0x20e   : > { %v2972_v18 = vadd.f32 %v2869_v49, %v11430_v17  ;;  %v11568_v30 = vadd.f32 %v9146_v2, %v2974_v50  ;;  %v9151_v40 = vpop.f32.mrf.mxu1  ;;  %v9747_v2 = vld [vmem:[%s9998_s17 + $0x10] sm:$0xff]  }
 0x20f   : > { %v9107_v26 = vpop.f32.mrf.mxu0  ;;  %9330 = vmatprep.subr.bf16.mxu0 %v9747_v2 }
 0x210   : > { %v2975_v6 = vadd.f32 %v9107_v26, %v11436_v15  ;;  %v11572_v28 = vadd.f32 %v3109_v19, %v2972_v18  ;;  %v11574_v10 = vpop.f32.mrf.mxu1  ;;  %9331 = vmatpush3.bf16.msra.mxu0 %v9747_v2 }
 0x211   : > { %13954 = vst [vmem:[#allocation22_spill] sm:$0xff] %v11574_v10  ;;  %v11576_v0 = vpop.f32.mrf.mxu0 }
 0x212   : > { %13955 = vst [vmem:[#allocation34_spill] sm:$0xff] %v11576_v0  ;;  %v11578_v23 = vadd.f32 %v9147_v24, %v2975_v6  ;;  %v9154_v13 = vpop.f32.mrf.mxu1 }
 0x213   : > { %v9110_v17 = vpop.f32.mrf.mxu0 }
 0x214   : > { %v2978_v49 = vadd.f32 %v9110_v17, %v11444_v61  ;;  %v3141_v50 = vpop.f32.mrf.mxu1 }
 0x215   : > { %v2885_v25 = vpop.f32.mrf.mxu0 }
 0x216   : > { %v2976_v15 = vadd.f32 %v2885_v25, %v11447_v54  ;;  %v11584_v19 = vadd.f32 %v9150_v32, %v2978_v49  ;;  %v9155_v18 = vpop.f32.mrf.mxu1  ;;  %v9749_v54 = vld [vmem:[%s9998_s17 + $0x8] sm:$0xff]  }
 0x217   : > { %v9111_v43 = vpop.f32.mrf.mxu0  ;;  %9332 = vmatprep.subr.bf16.mxu0 %v9749_v54 }
 0x218   : > { %v2979_v24 = vadd.f32 %v9111_v43, %v11454_v57  ;;  %v11587_v6 = vadd.f32 %v3125_v4, %v2976_v15  ;;  %v11589_v61 = vpop.f32.mrf.mxu1  ;;  %9333 = vmatpush3.bf16.msra.mxu0 %v9749_v54  ;;  %v9750_v15 = vld [vmem:[%s9998_s17] sm:$0xff]   ;;  %v4621_v54 = vld [vmem:[#allocation3 + $0x4] sm:$0xf] }
 0x219   : > { %13956 = vst [vmem:[#allocation35_spill] sm:$0xff] %v11589_v61  ;;  %v11591_v26 = vpop.f32.mrf.mxu0  ;;  %9334 = vmatprep.subr.bf16.mxu0 %v9750_v15  ;;  %v4696_v14 = vshrl.u32 %v4621_v54, 16 }
 0x21a   : > { %13957 = vst [vmem:[#allocation36_spill] sm:$0xff] %v11591_v26  ;;  %v11593_v17 = vadd.f32 %v9151_v40, %v2979_v24  ;;  %v9158_v10 = vpop.f32.mrf.mxu1 }
 0x21b   : > { %v9114_v32 = vpop.f32.mrf.mxu0 }
 0x21c   : > { %v2982_v25 = vadd.f32 %v9114_v32, %v11462_v56  ;;  %v3157_v49 = vpop.f32.mrf.mxu1  ;;  %9335 = vmatpush3.bf16.msra.mxu0 %v9750_v15  ;;  %v4620_v56 = vld [vmem:[#allocation3] sm:$0xf]  ;;  %v9748_v15 = vld [vmem:[%s9998_s17 + $0x20] sm:$0xff]  }
 0x21d   : > { %v2901_v2 = vpop.f32.mrf.mxu0  ;;  %9294 = vmatprep.subr.bf16.mxu1 %v9748_v15  ;;  %v4686_v51 = vshll.u32 %v4620_v56, 16 }
 0x21e   : > { %v2980_v57 = vadd.f32 %v2901_v2, %v11465_v9  ;;  %v11598_v29 = vadd.f32 %v9154_v13, %v2982_v25  ;;  %v9159_v4 = vpop.f32.mrf.mxu1  ;;  %v8227_v25 = vcombine.low %v4620_v56, %v4621_v54  ;;  %9295 = vmatpush3.bf16.msra.mxu1 %v9748_v15 }
 0x21f   : > { %v9115_v43 = vpop.f32.mrf.mxu0 }
 0x220   : > { %v2983_v61 = vadd.f32 %v9115_v43, %v11471_v7  ;;  %v11602_v40 = vadd.f32 %v3141_v50, %v2980_v57  ;;  %v11604_v24 = vpop.f32.mrf.mxu1  ;;  %9336 = vmatprep.mubr.msk.bf16.mxu0 %vm1530_vm3, %v8227_v25 }
 0x221   : > { %13958 = vst [vmem:[#allocation37_spill] sm:$0xff] %v11604_v24  ;;  %v11606_v26 = vpop.f32.mrf.mxu0 }
 0x222   : > { %13959 = vst [vmem:[#allocation38_spill] sm:$0xff] %v11606_v26  ;;  %v11608_v32 = vadd.f32 %v9155_v18, %v2983_v61  ;;  %v9162_v9 = vpop.f32.mrf.mxu1 }
 0x223   : > { %v9118_v13 = vpop.f32.mrf.mxu0 }
 0x224   : > { %v2986_v2 = vadd.f32 %v9118_v13, %v11481_v60  ;;  %v3173_v11 = vpop.f32.mrf.mxu1 }
 0x225   : > { %v2917_v7 = vpop.f32.mrf.mxu0 }
 0x226   : > { %v2984_v50 = vadd.f32 %v2917_v7, %v11485_v35  ;;  %v11613_v57 = vadd.f32 %v9158_v10, %v2986_v2  ;;  %v9163_v43 = vpop.f32.mrf.mxu1  ;;  %v4683_v7 = vshrl.u32 %v4620_v56, 16  ;;  %v4698_v56 = vrot.slane %v4696_v14, 4 }
 0x227   : > { %v9119_v24 = vpop.f32.mrf.mxu0 }
 0x228   : > { %v2987_v26 = vadd.f32 %v9119_v24, %v11492_v63  ;;  %v11617_v18 = vadd.f32 %v3157_v49, %v2984_v50  ;;  %v11619_v61 = vpop.f32.mrf.mxu1 }
 0x229   : > { %13960 = vst [vmem:[#allocation39_spill] sm:$0xff] %v11619_v61  ;;  %v11621_v46 = vpop.f32.mrf.mxu0  ;;  %v4692_v61 = vshll.u32 %v4621_v54, 16 }
 0x22a   : > { %13961 = vst [vmem:[#allocation40_spill] sm:$0xff] %v11621_v46  ;;  %v11623_v60 = vadd.f32 %v9159_v4, %v2987_v26  ;;  %v9166_v13 = vpop.f32.mrf.mxu1 }
 0x22b   : > { %v9122_v25 = vpop.f32.mrf.mxu0  ;;  %v4694_v0 = vrot.slane %v4692_v61, 5 }
 0x22c   : > { %v2990_v35 = vadd.f32 %v9122_v25, %v11504_v42  ;;  %v3189_v10 = vpop.f32.mrf.mxu1  ;;  %v4685_v42 = vrot.slane %v4683_v7, 4  ;;  %v4688_v25 = vrot.slane %v4686_v51, 5 }
 0x22d   : > { %v2933_v2 = vpop.f32.mrf.mxu0  ;;  %v4699_v54 = vor.u32 %v4698_v56, %v4694_v0 }
 0x22e   : > { %v2988_v63 = vadd.f32 %v2933_v2, %v11507_v44  ;;  %v11627_v49 = vadd.f32 %v9162_v9, %v2990_v35  ;;  %v9167_v24 = vpop.f32.mrf.mxu1  ;;  %v4622_v9 = vld [vmem:[#allocation3 + $0x8] sm:$0x1]  ;;  %v4689_v2 = vor.u32 %v4688_v25, %v4685_v42 }
 0x22f   : > { %v9123_v50 = vpop.f32.mrf.mxu0  ;;  %v4702_v33 = vshll.u32 %v4622_v9, 16 }
 0x230   : > { %v2991_v26 = vadd.f32 %v9123_v50, %v11513_v16  ;;  %v11630_v4 = vadd.f32 %v3173_v11, %v2988_v63  ;;  %v11632_v15 = vpop.f32.mrf.mxu1  ;;  %v4690_v50 = vrot.slane %v4689_v2, 4  ;;  %v9755_v2 = vld [vmem:[%s9998_s17 + $0x58] sm:$0xff]  }
 0x231   : > { %13962 = vst [vmem:[#allocation41_spill] sm:$0xff] %v11632_v15  ;;  %v11634_v46 = vpop.f32.mrf.mxu0  ;;  %v4700_v15 = vrot.slane %v4699_v54, 4  ;;  %v4704_v7 = vrot.slane %v4702_v33, 5  ;;  %9368 = vmatprep.subr.bf16.mxu1 %v9755_v2 }
 0x232   : > { %v11636_v52 = vadd.f32 %v9163_v43, %v2991_v26  ;;  %v11638_v44 = vpop.f32.mrf.mxu1  ;;  %v4695_v26 = vsel %vm10347_vm9, %v4690_v50, %v4694_v0 }
 0x233   : > { %v9126_v35 = vpop.f32.mrf.mxu0 }
 0x234   : > { %v2994_v16 = vadd.f32 %v9126_v35, %v11523_v55  ;;  %v11641_v11 = vpop.f32.mrf.mxu1  ;;  %v4705_v55 = vsel %vm10347_vm9, %v4700_v15, %v4704_v7 }
 0x235   : > { %v2949_v63 = vpop.f32.mrf.mxu0  ;;  %v8191_v33 = vcombine.low %v4695_v26, %v4705_v55 }
 0x236   : > { %v2992_v51 = vadd.f32 %v2949_v63, %v11528_v31  ;;  %v11644_v14 = vadd.f32 %v9166_v13, %v2994_v16  ;;  %v11646_v43 = vpop.f32.mrf.mxu1 }
 0x237   : > { %v9127_v61 = vpop.f32.mrf.mxu0  ;;  %9296 = vmatprep.mubr.msk.bf16.mxu1 %vm1530_vm3, %v8191_v33 }
 0x238   : > { %v2995_v42 = vadd.f32 %v9127_v61, %v11534_v48  ;;  %v11653_v25 = vadd.f32 %v3189_v10, %v2992_v51  ;;  %v11655_v56 = vpop.f32.mrf.mxu1 }
 0x239   : > { %v11657_v31 = vpop.f32.mrf.mxu0 }
 0x23a   : > { %v11659_v13 = vadd.f32 %v9167_v24, %v2995_v42  ;;  %v11661_v9 = vpop.f32.mrf.mxu1 }
 0x23b   : > { %v11664_v35 = vpop.f32.mrf.mxu0 }
 0x23c   : > { %v11666_v0 = vpop.f32.mrf.mxu1 }
 0x23d   : > { %v11668_v15 = vpop.f32.mrf.mxu0 }
 0x23e   : > { %v11670_v48 = vpop.f32.mrf.mxu1 }
 0x23f   : > { %13963 = vst [vmem:[#allocation42_spill] sm:$0xff] %v11670_v48  ;;  %v11672_v10 = vpop.f32.mrf.mxu0 }
 0x240   : > { %v11675_v54 = vpop.f32.mrf.mxu1 }
 0x241   : > { %13964 = vst [vmem:[#allocation43_spill] sm:$0xff] %v11675_v54  ;;  %v11677_v16 = vpop.f32.mrf.mxu0 }
 0x242   : > { %v11679_v24 = vpop.f32.mrf.mxu1 }
 0x243   : > { %13965 = vst [vmem:[#allocation44_spill] sm:$0xff] %v11679_v24  ;;  %v11681_v63 = vpop.f32.mrf.mxu0 }
 0x244   : > { %v11683_v50 = vpop.f32.mrf.mxu1 }
 0x245   : > { %13966 = vst [vmem:[#allocation45_spill] sm:$0xff] %v11683_v50  ;;  %v11685_v7 = vpop.f32.mrf.mxu0 }
 0x246   : > { %v11687_v51 = vpop.f32.mrf.mxu1 }
 0x247   : > { %13967 = vst [vmem:[#allocation46_spill] sm:$0xff] %v11687_v51  ;;  %v9183_v61 = vpop.f32.mrf.mxu0 }
 0x248   : > { %v11690_v26 = vadd.f32 %v9183_v61, %v11564_v45  ;;  %v11692_v55 = vpop.f32.mrf.mxu1 }
 0x249   : > { %13968 = vst [vmem:[#allocation47_spill] sm:$0xff] %v11692_v55  ;;  %v11694_v42 = vpop.f32.mrf.mxu0 }
 0x24a   : > { %v11696_v33 = vpop.f32.mrf.mxu1 }
 0x24b   : > { %13969 = vst [vmem:[#allocation48_spill] sm:$0xff] %v11696_v33  ;;  %v9186_v2 = vpop.f32.mrf.mxu0 }
 0x24c   : > { %v11699_v1 = vadd.f32 %v9186_v2, %v11568_v30  ;;  %v11701_v24 = vpop.f32.mrf.mxu1 }
 0x24d   : > { %13970 = vst [vmem:[#allocation49_spill] sm:$0xff] %v11701_v24  ;;  %v3343_v50 = vpop.f32.mrf.mxu0 }
 0x24e   : > { %v11704_v54 = vadd.f32 %v3343_v50, %v11572_v28  ;;  %v11706_v51 = vpop.f32.mrf.mxu1 }
 0x24f   : > { %13971 = vst [vmem:[#allocation50_spill] sm:$0xff] %v11706_v51  ;;  %v9187_v45 = vpop.f32.mrf.mxu0 }
 0x250   : > { %v11709_v61 = vadd.f32 %v9187_v45, %v11578_v23  ;;  %v11711_v55 = vpop.f32.mrf.mxu1 }
 0x251   : > { %13973 = vst [vmem:[#allocation52_spill] sm:$0xff] %v11711_v55  ;;  %v11713_v48 = vpop.f32.mrf.mxu0 }
 0x252   : > { %13972 = vst [vmem:[#allocation51_spill] sm:$0xff] %v11709_v61  ;;  %v11715_v33 = vpop.f32.mrf.mxu1 }
 0x253   : > { %13974 = vst [vmem:[#allocation53_spill] sm:$0xff] %v11715_v33  ;;  %v9190_v30 = vpop.f32.mrf.mxu0 }
 0x254   : > { %v11718_v2 = vadd.f32 %v9190_v30, %v11584_v19  ;;  %v11720_v24 = vpop.f32.mrf.mxu1 }
 0x255   : > { %13975 = vst [vmem:[#allocation54_spill] sm:$0xff] %v11720_v24  ;;  %v3359_v28 = vpop.f32.mrf.mxu0 }
 0x256   : > { %v11723_v50 = vadd.f32 %v3359_v28, %v11587_v6  ;;  %v11725_v51 = vpop.f32.mrf.mxu1 }
 0x257   : > { %13977 = vst [vmem:[#allocation56_spill] sm:$0xff] %v11725_v51  ;;  %v9191_v23 = vpop.f32.mrf.mxu0 }
 0x258   : > { %13976 = vst [vmem:[#allocation55_spill] sm:$0xff] %v11723_v50  ;;  %v11728_v45 = vadd.f32 %v9191_v23, %v11593_v17  ;;  %v11730_v55 = vpop.f32.mrf.mxu1 }
 0x259   : > { %13979 = vst [vmem:[#allocation58_spill] sm:$0xff] %v11730_v55  ;;  %v11732_v61 = vpop.f32.mrf.mxu0 }
 0x25a   : > { %13978 = vst [vmem:[#allocation57_spill] sm:$0xff] %v11728_v45  ;;  %v11734_v33 = vpop.f32.mrf.mxu1 }
 0x25b   : > { %13980 = vst [vmem:[#allocation59_spill] sm:$0xff] %v11734_v33  ;;  %v9194_v19 = vpop.f32.mrf.mxu0 }
 0x25c   : > { %v11737_v30 = vadd.f32 %v9194_v19, %v11598_v29  ;;  %v11742_v28 = vpop.f32.mrf.mxu1  ;;  %v13986_v19 = vld [vmem:[#allocation16_spill] sm:$0xff] }
 0x25d   : > { %v3375_v24 = vpop.f32.mrf.mxu0  ;;  %13983 = vst [vmem:[#allocation62_spill] sm:$0xff] %v11742_v28  ;;  %v13988_v28 = vld [vmem:[#allocation21_spill] sm:$0xff] }
 0x25e   : > { %13981 = vst [vmem:[#allocation60_spill] sm:$0xff] %v11737_v30  ;;  %v11740_v6 = vadd.f32 %v3375_v24, %v11602_v40  ;;  %v11749_v55 = vpop.f32.mrf.mxu1  ;;  %v13987_v30 = vld [vmem:[#allocation14_spill] sm:$0xff] }
 0x25f   : > { %v9195_v51 = vpop.f32.mrf.mxu0  ;;  %13985 = vst [vmem:[#allocation64_spill] sm:$0xff] %v11749_v55  ;;  %v1930_v50 = vadd.f32 %v13987_v30, %v13986_v19  ;;  %v1994_v30 = vadd.f32 %v11292_v36, %v11302_v59 }
 0x260   : > { %13982 = vst [vmem:[#allocation61_spill] sm:$0xff] %v11740_v6  ;;  %v11745_v17 = vadd.f32 %v9195_v51, %v11608_v32  ;;  %v11759_v24 = vpop.f32.mrf.mxu1  ;;  %v13989_v32 = vld [vmem:[#allocation19_spill] sm:$0xff] }
 0x261   : > { %v11747_v23 = vpop.f32.mrf.mxu0  ;;  %v1946_v51 = vadd.f32 %v13989_v32, %v13988_v28  ;;  %v2475_v6 = vadd.f32 %v11398_v62, %v1930_v50  ;;  %v2026_v28 = vadd.f32 %v11359_v20, %v11366_v27  ;;  %v2042_v62 = vadd.f32 %v11370_v39, %v11383_v8  ;;  %v13991_v27 = vld [vmem:[#allocation28_spill] sm:$0xff] }
 0x262   : > { %13984 = vst [vmem:[#allocation63_spill] sm:$0xff] %v11745_v17  ;;  %v2717_v39 = vadd.f32 %v13991_v27, %v11434_v53  ;;  %v13998_v53 = vld [vmem:[#allocation9_spill] sm:$0xff]  ;;  %v14006_v27 = vld [vmem:[#allocation15_spill] sm:$0xff] }
 0x263   : > { %v9198_v45 = vpop.f32.mrf.mxu0  ;;  %v2709_v50 = vadd.f32 %v11381_v5, %v2475_v6  ;;  %v2503_v32 = vadd.f32 %v11532_v41, %v2042_v62  ;;  %v13996_v41 = vld [vmem:[#allocation34_spill] sm:$0xff]  ;;  %v14001_v62 = vld [vmem:[#allocation20_spill] sm:$0xff] }
 0x264   : > { %v11752_v33 = vadd.f32 %v9198_v45, %v11613_v57  ;;  %v2479_v57 = vadd.f32 %v11415_v21, %v1946_v51  ;;  %v2491_v21 = vadd.f32 %v11469_v22, %v1994_v30 }
 0x265   : > { %v3391_v29 = vpop.f32.mrf.mxu0  ;;  %v2965_v8 = vadd.f32 %v11551_v37, %v2709_v50 }
 0x266   : > { %v11757_v40 = vadd.f32 %v3391_v29, %v11617_v18  ;;  %v11772_v18 = vpop.f32.mrf.mxu1  ;;  %v13990_v29 = vld [vmem:[#allocation24_spill] sm:$0xff]  ;;  %v2713_v36 = vadd.f32 %v11396_v12, %v2479_v57  ;;  %v2973_v57 = vadd.f32 %v13996_v41, %v2717_v39 }
 0x267   : > { %v9199_v17 = vpop.f32.mrf.mxu0  ;;  %v2010_v19 = vadd.f32 %v13990_v29, %v11334_v38  ;;  %v2499_v38 = vadd.f32 %v11511_v34, %v2026_v28  ;;  %v13995_v34 = vld [vmem:[#allocation8_spill] sm:$0xff]  ;;  %v13999_v29 = vld [vmem:[#allocation10_spill] sm:$0xff] }
 0x268   : > { %v11765_v55 = vadd.f32 %v9199_v17, %v11623_v60  ;;  %v11795_v22 = vpop.f32.mrf.mxu1  ;;  %v2725_v51 = vadd.f32 %v13995_v34, %v2491_v21  ;;  %v14005_v21 = vld [vmem:[#allocation26_spill] sm:$0xff] }
 0x269   : > { %v11768_v45 = vpop.f32.mrf.mxu0  ;;  %v2495_v59 = vadd.f32 %v11490_v58, %v2010_v19  ;;  %13993 = vst [vmem:[#allocation14_spill] sm:$0xff] %v11795_v22  ;;  %v13994_v58 = vld [vmem:[#allocation30_spill] sm:$0xff]  ;;  %v14000_v19 = vld [vmem:[#allocation11_spill] sm:$0xff]  ;;  %v3207_v39 = vadd.f32 %v14006_v27, %v14005_v21  ;;  %v14016_v21 = vld [vmem:[#allocation40_spill] sm:$0xff] }
 0x26a   : > { %v2721_v6 = vadd.f32 %v13994_v58, %v11452_v47  ;;  %v2737_v28 = vadd.f32 %v14000_v19, %v2503_v32  ;;  %v14004_v47 = vld [vmem:[#allocation13_spill] sm:$0xff]  ;;  %v14009_v34 = vld [vmem:[#allocation18_spill] sm:$0xff]  ;;  %v11819_v41 = vpop.f32.mrf.mxu1  ;;  %v14011_v32 = vld [vmem:[#allocation23_spill] sm:$0xff] }
 0x26b   : > { %v9202_v60 = vpop.f32.mrf.mxu0  ;;  %v2729_v37 = vadd.f32 %v13998_v53, %v2495_v59  ;;  %v14007_v58 = vld [vmem:[#allocation17_spill] sm:$0xff] }
 0x26c   : > { %v11783_v17 = vadd.f32 %v9202_v60, %v11627_v49  ;;  %v2969_v49 = vadd.f32 %v11562_v3, %v2713_v36  ;;  %v14002_v60 = vld [vmem:[#allocation12_spill] sm:$0xff]  ;;  %v14003_v36 = vld [vmem:[#allocation25_spill] sm:$0xff] }
 0x26d   : > { %v3407_v20 = vpop.f32.mrf.mxu0  ;;  %v3206_v3 = vadd.f32 %v14002_v60, %v14001_v62  ;;  %v14013_v62 = vld [vmem:[#allocation36_spill] sm:$0xff]  ;;  %v2985_v27 = vadd.f32 %v14016_v21, %v2729_v37  ;;  %v3666_v37 = vpop.f32.mrf.mxu1  ;;  %v14028_v21 = vld [vmem:[#allocation47_spill] sm:$0xff] }
 0x26e   : > { %v11793_v5 = vadd.f32 %v3407_v20, %v11630_v4  ;;  %v2733_v4 = vadd.f32 %v13999_v29, %v2499_v38  ;;  %v3204_v20 = vadd.f32 %v14004_v47, %v14003_v36  ;;  %v14010_v38 = vld [vmem:[#allocation32_spill] sm:$0xff]  ;;  %v14012_v29 = vld [vmem:[#allocation29_spill] sm:$0xff]  ;;  %v2977_v60 = vadd.f32 %v14013_v62, %v2721_v6 }
 0x26f   : > { %v9203_v12 = vpop.f32.mrf.mxu0  ;;  %v3208_v53 = vadd.f32 %v14011_v32, %v14010_v38  ;;  %v3209_v19 = vadd.f32 %v14012_v29, %v2969_v49  ;;  %v14015_v47 = vld [vmem:[#allocation33_spill] sm:$0xff]  ;;  %v3441_v6 = vadd.f32 %v11672_v10, %v3207_v39 }
 0x270   : > { %13992 = vst [vmem:[#allocation16_spill] sm:$0xff] %v11793_v5  ;;  %v11803_v30 = vadd.f32 %v9203_v12, %v11636_v52  ;;  %v3205_v52 = vadd.f32 %v14007_v58, %v2965_v8  ;;  %v14008_v12 = vld [vmem:[#allocation31_spill] sm:$0xff]  ;;  %v3213_v5 = vadd.f32 %v14015_v47, %v2973_v57  ;;  %v2989_v8 = vadd.f32 %v11634_v46, %v2733_v4  ;;  %v14027_v47 = vld [vmem:[#allocation46_spill] sm:$0xff] }
 0x271   : > { %v11810_v50 = vpop.f32.mrf.mxu0  ;;  %v3210_v59 = vadd.f32 %v14009_v34, %v14008_v12  ;;  %v2993_v12 = vadd.f32 %v11657_v31, %v2737_v28  ;;  %v3440_v34 = vadd.f32 %v11664_v35, %v3206_v3  ;;  %v3438_v49 = vadd.f32 %v11668_v15, %v3204_v20  ;;  %v14018_v31 = vld [vmem:[#allocation35_spill] sm:$0xff]  ;;  %v14019_v3 = vld [vmem:[#allocation37_spill] sm:$0xff] }
 0x272   : > { %13997 = vst [vmem:[#allocation21_spill] sm:$0xff] %v11803_v30  ;;  %v14014_v30 = vld [vmem:[#allocation38_spill] sm:$0xff]  ;;  %v3443_v35 = vadd.f32 %v11694_v42, %v3209_v19  ;;  %v3225_v10 = vadd.f32 %v14019_v3, %v2985_v27  ;;  %v14020_v20 = vld [vmem:[#allocation39_spill] sm:$0xff]  ;;  %v14037_v3 = vld [vmem:[#allocation61_spill] sm:$0xff] }
 0x273   : > { %v2981_v22 = vadd.f32 %v14014_v30, %v2725_v51  ;;  %v9206_v36 = vpop.f32.mrf.mxu0  ;;  %v3439_v51 = vadd.f32 %v11677_v16, %v3205_v52  ;;  %v3444_v57 = vadd.f32 %v11681_v63, %v3210_v59  ;;  %v3442_v30 = vadd.f32 %v11685_v7, %v3208_v53  ;;  %v14021_v7 = vld [vmem:[#allocation41_spill] sm:$0xff] }
 0x274   : > { %v11830_v58 = vadd.f32 %v9206_v36, %v11644_v14  ;;  %v14017_v14 = vld [vmem:[#allocation22_spill] sm:$0xff]  ;;  %v3229_v39 = vadd.f32 %v14020_v20, %v2989_v8  ;;  %v3447_v16 = vadd.f32 %v11713_v48, %v3213_v5  ;;  %v3233_v52 = vadd.f32 %v14021_v7, %v2993_v12  ;;  %v14026_v36 = vld [vmem:[#allocation51_spill] sm:$0xff] }
 0x275   : > { %v3423_v38 = vpop.f32.mrf.mxu0  ;;  %v3217_v4 = vadd.f32 %v14017_v14, %v2977_v60  ;;  %v3221_v28 = vadd.f32 %v14018_v31, %v2981_v22  ;;  %v3694_v59 = vadd.f32 %v11641_v11, %v3438_v49  ;;  %v3697_v22 = vadd.f32 %v11646_v43, %v3441_v6  ;;  %v14022_v5 = vld [vmem:[#allocation42_spill] sm:$0xff]  ;;  %v14024_v11 = vld [vmem:[#allocation44_spill] sm:$0xff]  ;;  %v14032_v6 = vld [vmem:[#allocation57_spill] sm:$0xff] }
 0x276   : > { %v11840_v46 = vadd.f32 %v3423_v38, %v11653_v25  ;;  %v3696_v25 = vadd.f32 %v11638_v44, %v3440_v34  ;;  %v3695_v42 = vadd.f32 %v11655_v56, %v3439_v51  ;;  %v3700_v53 = vadd.f32 %v11661_v9, %v3444_v57  ;;  %v14023_v44 = vld [vmem:[#allocation43_spill] sm:$0xff]  ;;  %v11872_v60 = vld [vmem:[%s9984_s8] ss:$0 sm:$0xff]  ;;  %v14031_v34 = vld [vmem:[#allocation49_spill] sm:$0xff] }
 0x277   : > { %v9207_v15 = vpop.f32.mrf.mxu0  ;;  %v11856_v29 = vadd.f32 %v11666_v0, %v3442_v30  ;;  %v3451_v48 = vadd.f32 %v11732_v61, %v3217_v4  ;;  %v11861_v19 = vadd.f32 %v14022_v5, %v11690_v26  ;;  %v11864_v62 = vadd.f32 %v14023_v44, %v3443_v35  ;;  %v14025_v0 = vld [vmem:[#allocation45_spill] sm:$0xff]  ;;  %v14033_v38 = vld [vmem:[#allocation50_spill] sm:$0xff]  ;;  %v14034_v30 = vld [vmem:[#allocation52_spill] sm:$0xff] }
 0x278   : > { %v3469_v63 = vadd.f32 %v9207_v15, %v11659_v13  ;;  %v9246_v13 = vpop.f32.mrf.mxu1  ;;  %v11868_v43 = vadd.f32 %v14024_v11, %v11699_v1  ;;  %v3455_v56 = vadd.f32 %v11747_v23, %v3221_v28  ;;  %v11876_v61 = vadd.f32 %v14025_v0, %v11704_v54  ;;  %v14029_v1 = vld [vmem:[#allocation48_spill] sm:$0xff]  ;;  %v14030_v23 = vld [vmem:[#allocation55_spill] sm:$0xff]  ;;  %v14036_v31 = vld [vmem:[#allocation53_spill] sm:$0xff] }
 0x279   : > { %v3426_v32 = vpop.f32.mrf.mxu0  ;;  %v11880_v26 = vadd.f32 %v14027_v47, %v14026_v36  ;;  %v11883_v27 = vadd.f32 %v14028_v21, %v3447_v16  ;;  %v11887_v12 = vadd.f32 %v14029_v1, %v11718_v2  ;;  %v11891_v49 = vadd.f32 %v14031_v34, %v14030_v23  ;;  %v14035_v4 = vld [vmem:[#allocation60_spill] sm:$0xff]  ;;  %v14038_v20 = vld [vmem:[#allocation54_spill] sm:$0xff]  ;;  %v14039_v7 = vld [vmem:[#allocation63_spill] sm:$0xff] }
 0x27a   : > { %v11895_v54 = vadd.f32 %v14033_v38, %v14032_v6  ;;  %v3459_v51 = vadd.f32 %v11768_v45, %v3225_v10  ;;  %v11899_v14 = vadd.f32 %v14034_v30, %v3451_v48  ;;  %v11903_v28 = vadd.f32 %v14036_v31, %v14035_v4  ;;  %v3679_v2 = vpop.f32.mrf.mxu1  ;;  %v14041_v45 = vld [vmem:[#allocation58_spill] sm:$0xff]  ;;  %v14042_v11 = vld [vmem:[#allocation59_spill] sm:$0xff] }
 0x27b   : > { %v9258_v9 = vpop.f32.mrf.mxu0  ;;  %v11908_v16 = vadd.f32 %v14038_v20, %v14037_v3  ;;  %v11915_v10 = vadd.f32 %v14041_v45, %v3455_v56  ;;  %v3463_v48 = vadd.f32 %v11810_v50, %v3229_v39  ;;  %v14043_v47 = vld [vmem:[#allocation62_spill] sm:$0xff]  ;;  %v11936_v50 = vadd.f32 %v11772_v18, %v11783_v17 }
 0x27c   : > { %v3936_v8 = vadd.f32 %v9258_v9, %v3696_v25  ;;  %v14040_v25 = vld [vmem:[#allocation56_spill] sm:$0xff]  ;;  %v11920_v9 = vadd.f32 %v14042_v11, %v11752_v33  ;;  %v11925_v21 = vadd.f32 %v14043_v47, %v11757_v40  ;;  %v11932_v56 = vadd.f32 %v11759_v24, %v3459_v51  ;;  %v9247_v39 = vpop.f32.mrf.mxu1  ;;  %v14046_v38 = vld [vmem:[#allocation14_spill] sm:$0xff] }
 0x27d   : > { %v3807_v57 = vpop.f32.mrf.mxu0  ;;  %v11912_v5 = vadd.f32 %v14040_v25, %v14039_v7  ;;  %v14045_v40 = vld [vmem:[#allocation16_spill] sm:$0xff]  ;;  %v11947_v24 = vadd.f32 %v3666_v37, %v3463_v48  ;;  %v11950_v18 = vadd.f32 %v9246_v13, %v11830_v58  ;;  %v11953_v51 = vadd.f32 %v3679_v2, %v11840_v46 }
 0x27e   : > { %v3975_v35 = vadd.f32 %v11872_v60, %v3936_v8  ;;  %v3934_v15 = vadd.f32 %v3807_v57, %v3694_v59  ;;  %v14044_v8 = vld [vmem:[#allocation64_spill] sm:$0xff]  ;;  %v11941_v57 = vadd.f32 %v14046_v38, %v14045_v40 }
 0x27f   : > { %v9259_v44 = vpop.f32.mrf.mxu0  ;;  %v11929_v1 = vadd.f32 %v14044_v8, %v11765_v55  ;;  %v14047_v55 = vld [vmem:[#allocation21_spill] sm:$0xff]  ;;  %v4515_v13 = vld [vmem:[#allocation3 + $0x18] sm:$0xf] }
 0x280   : > { %v4007_v0 = vmax.f32 %v3975_v35, 0.0  ;;  %v3973_v59 = vadd.f32 %v11872_v60, %v3934_v15  ;;  %v3937_v36 = vadd.f32 %v9259_v44, %v3697_v22  ;;  %v11945_v30 = vadd.f32 %v11819_v41, %v14047_v55 }
 0x281   : > { %v3810_v33 = vpop.f32.mrf.mxu0  ;;  %v11955_v35 = vadd.f32 %v3426_v32, %v3233_v52  ;;  %v11957_v15 = vadd.f32 %v9247_v39, %v3469_v63 }
 0x282   : > { %v8538_v23 = vpack.c.bf16 %v4007_v0, %v4007_v0  ;;  %v4005_v34 = vmax.f32 %v3973_v59, 0.0  ;;  %v3976_v22 = vadd.f32 %v11872_v60, %v3937_v36  ;;  %v3935_v6 = vadd.f32 %v3810_v33, %v3695_v42  ;;  %v4508_v0 = vld [vmem:[#allocation3 + $0xc] sm:$0xf] }
 0x283   : > { %v9262_v17 = vpop.f32.mrf.mxu0 }
 0x284   : > { %v4205_v4 = vshrl.u32 %v8538_v23, 16  ;;  %v8536_v31 = vpack.c.bf16 %v4005_v34, %v4005_v34  ;;  %v4008_v42 = vmax.f32 %v3976_v22, 0.0  ;;  %v3974_v3 = vadd.f32 %v11872_v60, %v3935_v6 }
 0x285   : > { %v3940_v41 = vadd.f32 %v9262_v17, %v3700_v53  ;;  %v3823_v20 = vpop.f32.mrf.mxu0  ;;  %v4208_v7 = vshll.u32 %v8538_v23, 16 }
 0x286   : > { %v4207_v37 = vrot.slane %v4205_v4, 7  ;;  %v4188_v25 = vshrl.u32 %v8536_v31, 16  ;;  %v8539_v58 = vpack.c.bf16 %v4008_v42, %v4008_v42  ;;  %v4191_v45 = vshll.u32 %v8536_v31, 16 }
 0x287   : > { %v4006_v48 = vmax.f32 %v3974_v3, 0.0  ;;  %v3979_v46 = vadd.f32 %v11872_v60, %v3940_v41  ;;  %v3938_v2 = vadd.f32 %v3823_v20, %v11856_v29  ;;  %v9263_v44 = vpop.f32.mrf.mxu0  ;;  %v4519_v29 = vld [vmem:[#allocation3 + $0x20] sm:$0x1] }
 0x288   : > { %v4210_v52 = vor.u32 %v4208_v7, %v4207_v37  ;;  %v4211_v32 = vrot.slane %v4207_v37, 4  ;;  %v4190_v63 = vrot.slane %v4188_v25, 7  ;;  %v4213_v11 = vshrl.u32 %v8539_v58, 16  ;;  %v11969_v41 = vld [vmem:[%s9998_s17 + $0x78] sm:$0xff]  }
 0x289   : > { %v4216_v59 = vshll.u32 %v8539_v58, 16  ;;  %v8537_v53 = vpack.c.bf16 %v4006_v48, %v4006_v48  ;;  %v4011_v36 = vmax.f32 %v3979_v46, 0.0  ;;  %v3977_v47 = vadd.f32 %v11872_v60, %v3938_v2  ;;  %v3826_v8 = vpop.f32.mrf.mxu0  ;;  %v4512_v2 = vld [vmem:[#allocation3 + $0x14] sm:$0x1]  ;;  %9408 = vmatprep.subr.bf16.mxu0 %v11969_v41 }
 0x28a   : > { %v4516_v39 = vsel %vm10365_vm11, %v4210_v52, %v4515_v13  ;;  %v4193_v23 = vor.u32 %v4191_v45, %v4190_v63  ;;  %v4194_v34 = vrot.slane %v4190_v63, 4  ;;  %v4215_v22 = vrot.slane %v4213_v11, 7 }
 0x28b   : > { %4517 = vst [vmem:[#allocation3 + $0x18] sm:$0xf] %v4516_v39  ;;  %v4196_v6 = vshrl.u32 %v8537_v53, 16  ;;  %v4199_v40 = vshll.u32 %v8537_v53, 16  ;;  %v8542_v38 = vpack.c.bf16 %v4011_v36, %v4011_v36  ;;  %v4009_v55 = vmax.f32 %v3977_v47, 0.0  ;;  %v9266_v17 = vpop.f32.mrf.mxu0 }
 0x28c   : > { %v4509_v4 = vsel %vm10365_vm11, %v4193_v23, %v4508_v0  ;;  %v4218_v31 = vor.u32 %v4216_v59, %v4215_v22  ;;  %v4220_v42 = vrot.slane %v4215_v22, 4  ;;  %v3941_v3 = vadd.f32 %v9263_v44, %v11861_v19  ;;  %v4529_v53 = vld [vmem:[#allocation3 + $0x30] sm:$0xf] }
 0x28d   : > { %4510 = vst [vmem:[#allocation3 + $0xc] sm:$0xf] %v4509_v4  ;;  %v4198_v20 = vrot.slane %v4196_v6, 7  ;;  %v4239_v37 = vshrl.u32 %v8542_v38, 16  ;;  %v4242_v7 = vshll.u32 %v8542_v38, 16  ;;  %v8540_v25 = vpack.c.bf16 %v4009_v55, %v4009_v55  ;;  %v3839_v58 = vpop.f32.mrf.mxu0 }
 0x28e   : > { %v4219_v45 = vsel %vm10355_vm10, %v4211_v32, %v4218_v31  ;;  %v4520_v46 = vsel %vm10372_vm12, %v4220_v42, %v4519_v29  ;;  %v3980_v52 = vadd.f32 %v11872_v60, %v3941_v3  ;;  %v3939_v63 = vadd.f32 %v3826_v8, %v11864_v62 }
 0x28f   : > { %4518 = vst.msk [vmem:[#allocation3 + $0x1c] sm:$0xf] %vm423_vm1, %v4219_v45  ;;  %4521 = vst [vmem:[#allocation3 + $0x20] sm:$0x1] %v4520_v46  ;;  %v4201_v19 = vor.u32 %v4199_v40, %v4198_v20  ;;  %v4203_v44 = vrot.slane %v4198_v20, 4  ;;  %v4241_v11 = vrot.slane %v4239_v37, 7  ;;  %v9267_v59 = vpop.f32.mrf.mxu0  ;;  %v3944_v39 = vadd.f32 %v9266_v17, %v11868_v43 }
 0x290   : > { %v4222_v0 = vshrl.u32 %v8540_v25, 16  ;;  %v4225_v32 = vshll.u32 %v8540_v25, 16  ;;  %v4012_v36 = vmax.f32 %v3980_v52, 0.0  ;;  %v3978_v47 = vadd.f32 %v11872_v60, %v3939_v63  ;;  %v4522_v17 = vld [vmem:[#allocation3 + $0x24] sm:$0xf] }
 0x291   : > { %v4202_v62 = vsel %vm10355_vm10, %v4194_v34, %v4201_v19  ;;  %v4513_v8 = vsel %vm10372_vm12, %v4203_v44, %v4512_v2  ;;  %v4244_v23 = vor.u32 %v4242_v7, %v4241_v11  ;;  %v4245_v22 = vrot.slane %v4241_v11, 4  ;;  %v3842_v29 = vpop.f32.mrf.mxu0  ;;  %v4533_v63 = vld [vmem:[#allocation3 + $0x38] sm:$0x1] }
 0x292   : > { %4511 = vst.msk [vmem:[#allocation3 + $0x10] sm:$0xf] %vm423_vm1, %v4202_v62  ;;  %4514 = vst [vmem:[#allocation3 + $0x14] sm:$0x1] %v4513_v8  ;;  %v4224_v6 = vrot.slane %v4222_v0, 7  ;;  %v8543_v40 = vpack.c.bf16 %v4012_v36, %v4012_v36  ;;  %v4010_v38 = vmax.f32 %v3978_v47, 0.0  ;;  %v3983_v55 = vadd.f32 %v11872_v60, %v3944_v39 }
 0x293   : > { %v4530_v43 = vsel %vm10365_vm11, %v4244_v23, %v4529_v53  ;;  %v3942_v34 = vadd.f32 %v3839_v58, %v11876_v61  ;;  %v3945_v4 = vadd.f32 %v9267_v59, %v11880_v26  ;;  %v3943_v31 = vadd.f32 %v3842_v29, %v11883_v27  ;;  %v9270_v42 = vpop.f32.mrf.mxu0 }
 0x294   : > { %4531 = vst [vmem:[#allocation3 + $0x30] sm:$0xf] %v4530_v43  ;;  %v4227_v3 = vor.u32 %v4225_v32, %v4224_v6  ;;  %v4228_v20 = vrot.slane %v4224_v6, 4  ;;  %v4247_v37 = vshrl.u32 %v8543_v40, 16  ;;  %v4250_v7 = vshll.u32 %v8543_v40, 16 }
 0x295   : > { %v8541_v25 = vpack.c.bf16 %v4010_v38, %v4010_v38  ;;  %v4015_v45 = vmax.f32 %v3983_v55, 0.0  ;;  %v3981_v46 = vadd.f32 %v11872_v60, %v3942_v34  ;;  %v3984_v2 = vadd.f32 %v11872_v60, %v3945_v4  ;;  %v3855_v52 = vpop.f32.mrf.mxu0  ;;  %v4526_v40 = vld [vmem:[#allocation3 + $0x2c] sm:$0x1] }
 0x296   : > { %v4523_v61 = vsel %vm10365_vm11, %v4227_v3, %v4522_v17  ;;  %v4249_v58 = vrot.slane %v4247_v37, 7  ;;  %v3982_v26 = vadd.f32 %v11872_v60, %v3943_v31  ;;  %v3948_v27 = vadd.f32 %v9270_v42, %v11887_v12  ;;  %v4543_v31 = vld [vmem:[#allocation3 + $0x48] sm:$0xf] }
 0x297   : > { %4524 = vst [vmem:[#allocation3 + $0x24] sm:$0xf] %v4523_v61  ;;  %v4230_v19 = vshrl.u32 %v8541_v25, 16  ;;  %v4233_v44 = vshll.u32 %v8541_v25, 16  ;;  %v8546_v11 = vpack.c.bf16 %v4015_v45, %v4015_v45  ;;  %v4013_v0 = vmax.f32 %v3981_v46, 0.0  ;;  %v9271_v59 = vpop.f32.mrf.mxu0 }
 0x298   : > { %v4252_v53 = vor.u32 %v4250_v7, %v4249_v58  ;;  %v4254_v32 = vrot.slane %v4249_v58, 4  ;;  %v4016_v36 = vmax.f32 %v3984_v2, 0.0  ;;  %v4014_v47 = vmax.f32 %v3982_v26, 0.0 }
 0x299   : > { %v4232_v39 = vrot.slane %v4230_v19, 7  ;;  %v4273_v62 = vshrl.u32 %v8546_v11, 16  ;;  %v4276_v8 = vshll.u32 %v8546_v11, 16  ;;  %v8544_v23 = vpack.c.bf16 %v4013_v0, %v4013_v0  ;;  %v3858_v29 = vpop.f32.mrf.mxu0  ;;  %v4547_v11 = vld [vmem:[#allocation3 + $0x50] sm:$0x1] }
 0x29a   : > { %v4253_v6 = vsel %vm10355_vm10, %v4245_v22, %v4252_v53  ;;  %v4534_v12 = vsel %vm10372_vm12, %v4254_v32, %v4533_v63  ;;  %v8547_v38 = vpack.c.bf16 %v4016_v36, %v4016_v36  ;;  %v8545_v55 = vpack.c.bf16 %v4014_v47, %v4014_v47 }
 0x29b   : > { %4532 = vst.msk [vmem:[#allocation3 + $0x34] sm:$0xf] %vm423_vm1, %v4253_v6  ;;  %4535 = vst [vmem:[#allocation3 + $0x38] sm:$0x1] %v4534_v12  ;;  %v4235_v43 = vor.u32 %v4233_v44, %v4232_v39  ;;  %v4237_v17 = vrot.slane %v4232_v39, 4  ;;  %v4275_v34 = vrot.slane %v4273_v62, 7  ;;  %v9274_v25 = vpop.f32.mrf.mxu0  ;;  %v3987_v0 = vadd.f32 %v11872_v60, %v3948_v27 }
 0x29c   : > { %v4256_v4 = vshrl.u32 %v8544_v23, 16  ;;  %v4259_v42 = vshll.u32 %v8544_v23, 16  ;;  %v4281_v3 = vshrl.u32 %v8547_v38, 16  ;;  %v4284_v37 = vshll.u32 %v8547_v38, 16  ;;  %v4536_v44 = vld [vmem:[#allocation3 + $0x3c] sm:$0xf]  ;;  %v3682_v23 = vpop.f32.mrf.mxu1 }
 0x29d   : > { %v4264_v7 = vshrl.u32 %v8545_v55, 16  ;;  %v4236_v22 = vsel %vm10355_vm10, %v4228_v20, %v4235_v43  ;;  %v4527_v45 = vsel %vm10372_vm12, %v4237_v17, %v4526_v40  ;;  %v4278_v46 = vor.u32 %v4276_v8, %v4275_v34  ;;  %v4540_v62 = vld [vmem:[#allocation3 + $0x44] sm:$0x1]  ;;  %v12013_v8 = vpop.f32.mrf.mxu0 }
 0x29e   : > { %v4279_v2 = vrot.slane %v4275_v34, 4  ;;  %4525 = vst.msk [vmem:[#allocation3 + $0x28] sm:$0xf] %vm423_vm1, %v4236_v22  ;;  %4528 = vst [vmem:[#allocation3 + $0x2c] sm:$0x1] %v4527_v45  ;;  %v4258_v61 = vrot.slane %v4256_v4, 7  ;;  %v3946_v20 = vadd.f32 %v3855_v52, %v11891_v49  ;;  %v3949_v53 = vadd.f32 %v9271_v59, %v11895_v54 }
 0x29f   : > { %v4283_v58 = vrot.slane %v4281_v3, 7  ;;  %v4266_v26 = vrot.slane %v4264_v7, 7  ;;  %v4267_v63 = vshll.u32 %v8545_v55, 16  ;;  %v4544_v19 = vsel %vm10365_vm11, %v4278_v46, %v4543_v31  ;;  %v12023_v59 = vld [vmem:[#allocation3 + $0xc] sm:$0xf]  ;;  %v9275_v7 = vpop.f32.mrf.mxu0 }
 0x2a0   : > { %4545 = vst [vmem:[#allocation3 + $0x48] sm:$0xf] %v4544_v19  ;;  %v4261_v32 = vor.u32 %v4259_v42, %v4258_v61  ;;  %v4262_v36 = vrot.slane %v4258_v61, 4  ;;  %v4019_v40 = vmax.f32 %v3987_v0, 0.0  ;;  %v3985_v38 = vadd.f32 %v11872_v60, %v3946_v20  ;;  %v9770_v19 = vld [vmem:[%s9998_s17 + $0x70] sm:$0xff]  }
 0x2a1   : > { %v4286_v47 = vor.u32 %v4284_v37, %v4283_v58  ;;  %v4288_v39 = vrot.slane %v4283_v58, 4  ;;  %v4269_v6 = vor.u32 %v4267_v63, %v4266_v26  ;;  %v4271_v12 = vrot.slane %v4266_v26, 4  ;;  %v12036_v37 = vld [vmem:[#allocation3 + $0x10] sm:$0xf] }
 0x2a2   : > { %v4537_v27 = vsel %vm10365_vm11, %v4261_v32, %v4536_v44  ;;  %v3988_v52 = vadd.f32 %v11872_v60, %v3949_v53  ;;  %v8550_v17 = vpack.c.bf16 %v4019_v40, %v4019_v40  ;;  %v4017_v34 = vmax.f32 %v3985_v38, 0.0  ;;  %v4557_v44 = vld [vmem:[#allocation3 + $0x60] sm:$0xf]  ;;  %v3874_v32 = vpop.f32.mrf.mxu0  ;;  %v12052_v38 = vld [vmem:[#allocation3 + $0x1c] sm:$0xf] }
 0x2a3   : > { %v4287_v49 = vsel %vm10355_vm10, %v4279_v2, %v4286_v47  ;;  %v4548_v54 = vsel %vm10372_vm12, %v4288_v39, %v4547_v11  ;;  %4538 = vst [vmem:[#allocation3 + $0x3c] sm:$0xf] %v4537_v27  ;;  %v4270_v55 = vsel %vm10355_vm10, %v4262_v36, %v4269_v6  ;;  %v4541_v43 = vsel %vm10372_vm12, %v4271_v12, %v4540_v62 }
 0x2a4   : > { %4546 = vst.msk [vmem:[#allocation3 + $0x4c] sm:$0xf] %vm423_vm1, %v4287_v49  ;;  %4549 = vst [vmem:[#allocation3 + $0x50] sm:$0x1] %v4548_v54  ;;  %v12031_v4 = vadd.f32 %v3682_v23, %v11955_v35  ;;  %v4020_v31 = vmax.f32 %v3988_v52, 0.0  ;;  %v3947_v42 = vadd.f32 %v3858_v29, %v11899_v14  ;;  %v3952_v3 = vadd.f32 %v9274_v25, %v11903_v28 }
 0x2a5   : > { %4539 = vst.msk [vmem:[#allocation3 + $0x40] sm:$0xf] %vm423_vm1, %v4270_v55  ;;  %4542 = vst [vmem:[#allocation3 + $0x44] sm:$0x1] %v4541_v43  ;;  %v4307_v22 = vshrl.u32 %v8550_v17, 16  ;;  %v4310_v45 = vshll.u32 %v8550_v17, 16  ;;  %v8548_v46 = vpack.c.bf16 %v4017_v34, %v4017_v34  ;;  %v12045_v29 = vcombine.low %v12023_v59, %v12036_v37 }
 0x2a6   : > { %v4707_v2 = vshrl.u32 %v12023_v59, 16  ;;  %v8551_v61 = vpack.c.bf16 %v4020_v31, %v4020_v31  ;;  %v3986_v35 = vadd.f32 %v11872_v60, %v3947_v42  ;;  %v3991_v58 = vadd.f32 %v11872_v60, %v3952_v3  ;;  %v12047_v25 = vld [vmem:[#allocation3 + $0x18] sm:$0xf]  ;;  %v4550_v23 = vld [vmem:[#allocation3 + $0x54] sm:$0xf] }
 0x2a7   : > { %v4710_v26 = vshll.u32 %v12023_v59, 16  ;;  %v4309_v63 = vrot.slane %v4307_v22, 7  ;;  %v4290_v14 = vshrl.u32 %v8548_v46, 16  ;;  %v4720_v28 = vshrl.u32 %v12036_v37, 16  ;;  %9337 = vmatmul.mubr.msk.bf16.vlgmr.msra.gmra.mxu0 %vm1530_vm3, %v12045_v29  ;;  %v4561_v55 = vld [vmem:[#allocation3 + $0x68] sm:$0x1]  ;;  %v9278_v22 = vpop.f32.mrf.mxu0 }
 0x2a8   : > { %v4293_v11 = vshll.u32 %v8548_v46, 16  ;;  %v4315_v0 = vshrl.u32 %v8551_v61, 16  ;;  %v4018_v20 = vmax.f32 %v3986_v35, 0.0  ;;  %v4023_v53 = vmax.f32 %v3991_v58, 0.0  ;;  %9409 = vmatpush3.bf16.msra.mxu0 %v11969_v41  ;;  %v9773_v17 = vld [vmem:[%s9998_s17 + $0x68] sm:$0xff]  }
 0x2a9   : > { %v4312_v36 = vor.u32 %v4310_v45, %v4309_v63  ;;  %v4313_v47 = vrot.slane %v4309_v63, 4  ;;  %v4292_v39 = vrot.slane %v4290_v14, 7  ;;  %v4318_v62 = vshll.u32 %v8551_v61, 16  ;;  %9410 = vmatprep.subr.bf16.mxu0 %v9770_v19 }
 0x2aa   : > { %v4317_v6 = vrot.slane %v4315_v0, 7  ;;  %v8549_v12 = vpack.c.bf16 %v4018_v20, %v4018_v20  ;;  %v8554_v40 = vpack.c.bf16 %v4023_v53, %v4023_v53  ;;  %v4731_v27 = vshrl.u32 %v12047_v25, 16 }
 0x2ab   : > { %v4558_v49 = vsel %vm10365_vm11, %v4312_v36, %v4557_v44  ;;  %v4295_v54 = vor.u32 %v4293_v11, %v4292_v39  ;;  %v4296_v52 = vrot.slane %v4292_v39, 4  ;;  %v4734_v43 = vshll.u32 %v12047_v25, 16  ;;  %v12072_v44 = vld [vmem:[#allocation3 + $0x24] sm:$0xf]  ;;  %v4554_v11 = vld [vmem:[#allocation3 + $0x5c] sm:$0x1] }
 0x2ac   : > { %4559 = vst [vmem:[#allocation3 + $0x60] sm:$0xf] %v4558_v49  ;;  %v4320_v34 = vor.u32 %v4318_v62, %v4317_v6  ;;  %v4322_v31 = vrot.slane %v4317_v6, 4  ;;  %v4298_v42 = vshrl.u32 %v8549_v12, 16  ;;  %v4301_v3 = vshll.u32 %v8549_v12, 16  ;;  %9411 = vmatpush3.bf16.msra.mxu0 %v9770_v19 }
 0x2ad   : > { %v4551_v45 = vsel %vm10365_vm11, %v4295_v54, %v4550_v23  ;;  %v4341_v41 = vshrl.u32 %v8554_v40, 16  ;;  %v4344_v46 = vshll.u32 %v8554_v40, 16  ;;  %v12064_v61 = vcombine.low %v12047_v25, %v12052_v38  ;;  %9412 = vmatprep.subr.bf16.mxu0 %v9773_v17  ;;  %v4571_v19 = vld [vmem:[#allocation3 + $0x78] sm:$0xf] }
 0x2ae   : > { %4552 = vst [vmem:[#allocation3 + $0x54] sm:$0xf] %v4551_v45  ;;  %v4321_v35 = vsel %vm10355_vm10, %v4313_v47, %v4320_v34  ;;  %v4562_v58 = vsel %vm10372_vm12, %v4322_v31, %v4561_v55  ;;  %v4300_v63 = vrot.slane %v4298_v42, 7  ;;  %v3950_v14 = vadd.f32 %v12013_v8, %v11908_v16  ;;  %v9774_v16 = vld [vmem:[%s9998_s17 + $0x60] sm:$0xff]  }
 0x2af   : > { %4560 = vst.msk [vmem:[#allocation3 + $0x64] sm:$0xf] %vm423_vm1, %v4321_v35  ;;  %4563 = vst [vmem:[#allocation3 + $0x68] sm:$0x1] %v4562_v58  ;;  %v12075_v0 = vrot.slane %v4341_v41, 7  ;;  %9340 = vmatprep.mubr.msk.bf16.mxu0 %vm1530_vm3, %v12064_v61  ;;  %v3953_v20 = vadd.f32 %v9275_v7, %v11912_v5  ;;  %v3951_v53 = vadd.f32 %v3874_v32, %v11915_v10  ;;  %v4744_v39 = vshrl.u32 %v12052_v38, 16 }
 0x2b0   : > { %v3956_v36 = vadd.f32 %v9278_v22, %v11920_v9  ;;  %v4303_v8 = vor.u32 %v4301_v3, %v4300_v63  ;;  %v4305_v47 = vrot.slane %v4300_v63, 4  ;;  %v3989_v62 = vadd.f32 %v11872_v60, %v3950_v14  ;;  %v12088_v5 = vld [vmem:[#allocation3 + $0x28] sm:$0xf]  ;;  %9413 = vmatpush3.bf16.msra.mxu0 %v9773_v17 }
 0x2b1   : > { %v4346_v23 = vor.u32 %v4344_v46, %v12075_v0  ;;  %v3992_v6 = vadd.f32 %v11872_v60, %v3953_v20  ;;  %v3990_v12 = vadd.f32 %v11872_v60, %v3951_v53  ;;  %v4755_v10 = vshrl.u32 %v12072_v44, 16  ;;  %9414 = vmatprep.subr.bf16.mxu0 %v9774_v16  ;;  %v3887_v46 = vpop.f32.mrf.mxu0 }
 0x2b2   : > { %v4304_v9 = vsel %vm10355_vm10, %v4296_v52, %v4303_v8  ;;  %v4555_v7 = vsel %vm10372_vm12, %v4305_v47, %v4554_v11  ;;  %v4021_v32 = vmax.f32 %v3989_v62, 0.0  ;;  %v3995_v40 = vadd.f32 %v11872_v60, %v3956_v36  ;;  %v4564_v8 = vld [vmem:[#allocation3 + $0x6c] sm:$0xf] }
 0x2b3   : > { %4553 = vst.msk [vmem:[#allocation3 + $0x58] sm:$0xf] %vm423_vm1, %v4304_v9  ;;  %4556 = vst [vmem:[#allocation3 + $0x5c] sm:$0x1] %v4555_v7  ;;  %v4347_v49 = vrot.slane %v12075_v0, 4  ;;  %v4572_v54 = vsel %vm10365_vm11, %v4346_v23, %v4571_v19  ;;  %v4024_v55 = vmax.f32 %v3992_v6, 0.0  ;;  %v12103_v3 = vcombine.low %v12072_v44, %v12088_v5 }
 0x2b4   : > { %v4022_v34 = vmax.f32 %v3990_v12, 0.0  ;;  %4573 = vst [vmem:[#allocation3 + $0x78] sm:$0xf] %v4572_v54  ;;  %v8552_v52 = vpack.c.bf16 %v4021_v32, %v4021_v32  ;;  %v4027_v31 = vmax.f32 %v3995_v40, 0.0  ;;  %v4758_v42 = vshll.u32 %v12072_v44, 16  ;;  %9415 = vmatpush3.bf16.msra.mxu0 %v9774_v16  ;;  %v9279_v12 = vpop.f32.mrf.mxu0  ;;  %v9772_v44 = vld [vmem:[%s9998_s17 + $0x40] sm:$0xff]  }
 0x2b5   : > { %v8555_v17 = vpack.c.bf16 %v4024_v55, %v4024_v55  ;;  %v4709_v45 = vrot.slane %v4707_v2, 4  ;;  %v4712_v41 = vrot.slane %v4710_v26, 5  ;;  %9341 = vmatmul.mubr.msk.bf16.gmra.mxu0 %vm1530_vm3, %v12103_v3  ;;  %v4716_v14 = vshll.u32 %v12036_v37, 16  ;;  %v4575_v19 = vld [vmem:[#allocation3 + $0x80] sm:$0x1] }
 0x2b6   : > { %v8553_v22 = vpack.c.bf16 %v4022_v34, %v4022_v34  ;;  %v4324_v35 = vshrl.u32 %v8552_v52, 16  ;;  %v4327_v58 = vshll.u32 %v8552_v52, 16  ;;  %v8558_v63 = vpack.c.bf16 %v4027_v31, %v4027_v31  ;;  %v4568_v32 = vld [vmem:[#allocation3 + $0x74] sm:$0x1]  ;;  %v4585_v31 = vld [vmem:[#allocation3 + $0x90] sm:$0xf] }
 0x2b7   : > { %v4349_v11 = vshrl.u32 %v8555_v17, 16  ;;  %v4352_v0 = vshll.u32 %v8555_v17, 16  ;;  %v4713_v59 = vor.u32 %v4712_v41, %v4709_v45  ;;  %v4718_v23 = vrot.slane %v4716_v14, 5  ;;  %v4625_v17 = vld [vmem:[#allocation3 + $0x14] sm:$0x1] }
 0x2b8   : > { %v4332_v20 = vshrl.u32 %v8553_v22, 16  ;;  %v4335_v53 = vshll.u32 %v8553_v22, 16  ;;  %v4326_v36 = vrot.slane %v4324_v35, 7  ;;  %v4375_v2 = vshrl.u32 %v8558_v63, 16  ;;  %v12121_v41 = vld [vmem:[#allocation3 + $0x30] sm:$0xf] }
 0x2b9   : > { %v4378_v47 = vshll.u32 %v8558_v63, 16  ;;  %v4351_v26 = vrot.slane %v4349_v11, 7  ;;  %v4722_v6 = vrot.slane %v4720_v28, 4  ;;  %v4714_v54 = vrot.slane %v4713_v59, 4  ;;  %v12123_v35 = vld [vmem:[#allocation3 + $0x34] sm:$0xf] }
 0x2ba   : > { %v4334_v62 = vrot.slane %v4332_v20, 7  ;;  %v4329_v9 = vor.u32 %v4327_v58, %v4326_v36  ;;  %v4330_v7 = vrot.slane %v4326_v36, 4  ;;  %v12114_v40 = vrot.slane %v4375_v2, 7  ;;  %v12139_v2 = vld [vmem:[#allocation3 + $0x20] sm:$0x1] }
 0x2bb   : > { %v4354_v16 = vor.u32 %v4352_v0, %v4351_v26  ;;  %v4356_v55 = vrot.slane %v4351_v26, 4  ;;  %v4768_v28 = vshrl.u32 %v12088_v5, 16  ;;  %v3890_v0 = vpop.f32.mrf.mxu0  ;;  %v4723_v36 = vor.u32 %v4722_v6, %v4718_v23  ;;  %v12413_v33 = vld [vmem:[#allocation3 + $0x68] sm:$0x1] }
 0x2bc   : > { %v4337_v34 = vor.u32 %v4335_v53, %v4334_v62  ;;  %v4339_v52 = vrot.slane %v4334_v62, 4  ;;  %v4565_v22 = vsel %vm10365_vm11, %v4329_v9, %v4564_v8  ;;  %v4380_v45 = vor.u32 %v4378_v47, %v12114_v40  ;;  %14064 = vst [vmem:[#allocation12_spill] sm:$0xff] %v12413_v33 }
 0x2bd   : > { %v4381_v37 = vrot.slane %v12114_v40, 4  ;;  %4566 = vst [vmem:[#allocation3 + $0x6c] sm:$0xf] %v4565_v22  ;;  %v4355_v58 = vsel %vm10355_vm10, %v4347_v49, %v4354_v16  ;;  %v4576_v63 = vsel %vm10372_vm12, %v4356_v55, %v4575_v19  ;;  %v4719_v53 = vsel %vm10347_vm9, %v4714_v54, %v4718_v23  ;;  %v12163_v55 = vld [vmem:[#allocation3 + $0x3c] sm:$0xf] }
 0x2be   : > { %v4338_v14 = vsel %vm10355_vm10, %v4330_v7, %v4337_v34  ;;  %v4569_v11 = vsel %vm10372_vm12, %v4339_v52, %v4568_v32  ;;  %4574 = vst.msk [vmem:[#allocation3 + $0x7c] sm:$0xf] %vm423_vm1, %v4355_v58  ;;  %4577 = vst [vmem:[#allocation3 + $0x80] sm:$0x1] %v4576_v63  ;;  %v4586_v20 = vsel %vm10365_vm11, %v4380_v45, %v4585_v31  ;;  %v4726_v8 = vshll.u32 %v4625_v17, 16  ;;  %v9760_v31 = vld [vmem:[%s9998_s17 + $0x50] sm:$0xff]  }
 0x2bf   : > { %4567 = vst.msk [vmem:[#allocation3 + $0x70] sm:$0xf] %vm423_vm1, %v4338_v14  ;;  %4570 = vst [vmem:[#allocation3 + $0x74] sm:$0x1] %v4569_v11  ;;  %v4779_v47 = vshrl.u32 %v12121_v41, 16  ;;  %v4782_v59 = vshll.u32 %v12121_v41, 16  ;;  %v12145_v26 = vcombine.low %v12121_v41, %v12123_v35  ;;  %v3954_v19 = vadd.f32 %v3887_v46, %v11925_v21  ;;  %v9282_v46 = vpop.f32.mrf.mxu0 }
 0x2c0   : > { %4587 = vst [vmem:[#allocation3 + $0x90] sm:$0xf] %v4586_v20  ;;  %v4724_v62 = vrot.slane %v4723_v36, 4  ;;  %v4728_v9 = vrot.slane %v4726_v8, 5  ;;  %v4733_v7 = vrot.slane %v4731_v27, 4  ;;  %v4736_v23 = vrot.slane %v4734_v43, 5 }
 0x2c1   : > { %9344 = vmatprep.mubr.msk.bf16.mxu0 %vm1530_vm3, %v12145_v26  ;;  %v3993_v6 = vadd.f32 %v11872_v60, %v3954_v19  ;;  %v4740_v32 = vshll.u32 %v12052_v38, 16  ;;  %v4746_v54 = vrot.slane %v4744_v39, 4  ;;  %v4750_v21 = vshll.u32 %v12139_v2, 16  ;;  %v12174_v63 = vld [vmem:[#allocation3 + $0x40] sm:$0xf] }
 0x2c2   : > { %v4729_v27 = vsel %vm10347_vm9, %v4724_v62, %v4728_v9  ;;  %v4737_v16 = vor.u32 %v4736_v23, %v4733_v7  ;;  %v3957_v25 = vadd.f32 %v9279_v12, %v11929_v1  ;;  %v3955_v43 = vadd.f32 %v3890_v0, %v11932_v56  ;;  %v9825_v11 = vld [vmem:[%s9998_s17 + $0x58] sm:$0xff]   ;;  %v9765_v9 = vld [vmem:[%s9998_s17 + $0x48] sm:$0xff]  }
 0x2c3   : > { %v12165_v34 = vcombine.low %v4719_v53, %v4729_v27  ;;  %v4792_v52 = vshrl.u32 %v12123_v35, 16  ;;  %v4025_v38 = vmax.f32 %v3993_v6, 0.0  ;;  %v4742_v39 = vrot.slane %v4740_v32, 5 }
 0x2c4   : > { %v4738_v17 = vrot.slane %v4737_v16, 4  ;;  %v3996_v22 = vadd.f32 %v11872_v60, %v3957_v25  ;;  %v3994_v45 = vadd.f32 %v11872_v60, %v3955_v43  ;;  %v3960_v58 = vadd.f32 %v9282_v46, %v11936_v50  ;;  %v4578_v25 = vld [vmem:[#allocation3 + $0x84] sm:$0xf] }
 0x2c5   : > { %14052 = vst [vmem:[#allocation19_spill] sm:$0xff] %v12165_v34  ;;  %9297 = vmatmul.mubr.msk.bf16.vlgmr.msra.gmra.mxu1 %vm1530_vm3, %v12165_v34  ;;  %v8556_v1 = vpack.c.bf16 %v4025_v38, %v4025_v38  ;;  %v4747_v56 = vor.u32 %v4746_v54, %v4742_v39  ;;  %v4752_v12 = vrot.slane %v4750_v21, 5  ;;  %v4803_v14 = vshrl.u32 %v12163_v55, 16  ;;  %v12187_v54 = vpop.f32.mrf.mxu0 }
 0x2c6   : > { %9369 = vmatpush3.bf16.msra.mxu1 %v9825_v11  ;;  %v4028_v0 = vmax.f32 %v3996_v22, 0.0  ;;  %v4026_v20 = vmax.f32 %v3994_v45, 0.0  ;;  %v3999_v53 = vadd.f32 %v11872_v60, %v3960_v58  ;;  %v4806_v36 = vshll.u32 %v12163_v55, 16  ;;  %v12200_v22 = vld [vmem:[%s9998_s17 + $0xb8] sm:$0xff]   ;;  %v12205_v11 = vld [vmem:[#allocation3 + $0x2c] sm:$0x1] }
 0x2c7   : > { %v4358_v50 = vshrl.u32 %v8556_v1, 16  ;;  %v4361_v8 = vshll.u32 %v8556_v1, 16  ;;  %v4743_v19 = vsel %vm10347_vm9, %v4738_v17, %v4742_v39  ;;  %v4748_v62 = vrot.slane %v4747_v56, 4  ;;  %9370 = vmatprep.subr.bf16.mxu1 %v9760_v31  ;;  %v4589_v1 = vld [vmem:[#allocation3 + $0x98] sm:$0x1]  ;;  %9488 = vmatprep.subr.bf16.mxu0 %v12200_v22 }
 0x2c8   : > { %v8559_v7 = vpack.c.bf16 %v4028_v0, %v4028_v0  ;;  %v8557_v23 = vpack.c.bf16 %v4026_v20, %v4026_v20  ;;  %v4031_v6 = vmax.f32 %v3999_v53, 0.0  ;;  %v12185_v32 = vcombine.low %v12163_v55, %v12174_v63  ;;  %v9283_v20 = vpop.f32.mrf.mxu0 }
 0x2c9   : > { %v4360_v21 = vrot.slane %v4358_v50, 7  ;;  %v4753_v46 = vsel %vm10347_vm9, %v4748_v62, %v4752_v12  ;;  %v4757_v27 = vrot.slane %v4755_v10, 4  ;;  %v4760_v16 = vrot.slane %v4758_v42, 5  ;;  %v4582_v50 = vld [vmem:[#allocation3 + $0x8c] sm:$0x1] }
 0x2ca   : > { %v12195_v43 = vcombine.low %v4743_v19, %v4753_v46  ;;  %v4383_v38 = vshrl.u32 %v8559_v7, 16  ;;  %v4386_v39 = vshll.u32 %v8559_v7, 16  ;;  %v4366_v17 = vshrl.u32 %v8557_v23, 16  ;;  %9345 = vmatmul.mubr.msk.bf16.gmra.mxu0 %vm1530_vm3, %v12185_v32  ;;  %9371 = vmatpush3.bf16.msra.mxu1 %v9760_v31  ;;  %v12214_v46 = vld [vmem:[%s9998_s17 + $0x98] sm:$0xff]  }
 0x2cb   : > { %v4363_v45 = vor.u32 %v4361_v8, %v4360_v21  ;;  %v4364_v58 = vrot.slane %v4360_v21, 4  ;;  %v4369_v10 = vshll.u32 %v8557_v23, 16  ;;  %v8562_v56 = vpack.c.bf16 %v4031_v6, %v4031_v6  ;;  %9372 = vmatprep.subr.bf16.mxu1 %v9765_v9 }
 0x2cc   : > { %14053 = vst [vmem:[#allocation24_spill] sm:$0xff] %v12195_v43  ;;  %9300 = vmatprep.mubr.msk.bf16.mxu1 %vm1530_vm3, %v12195_v43  ;;  %v4385_v42 = vrot.slane %v4383_v38, 7  ;;  %v4368_v12 = vrot.slane %v4366_v17, 7  ;;  %v4761_v0 = vor.u32 %v4760_v16, %v4757_v27  ;;  %v4764_v31 = vshll.u32 %v12088_v5, 16  ;;  %v12219_v17 = vld [vmem:[#allocation3 + $0x48] sm:$0xf] }
 0x2cd   : > { %v4579_v53 = vsel %vm10365_vm11, %v4363_v45, %v4578_v25  ;;  %v4409_v8 = vshrl.u32 %v8562_v56, 16  ;;  %v4412_v19 = vshll.u32 %v8562_v56, 16  ;;  %v4770_v62 = vrot.slane %v4768_v28, 4  ;;  %v4599_v45 = vld [vmem:[#allocation3 + $0xa8] sm:$0xf]  ;;  %v3906_v56 = vpop.f32.mrf.mxu0 }
 0x2ce   : > { %4580 = vst [vmem:[#allocation3 + $0x84] sm:$0xf] %v4579_v53  ;;  %v4388_v7 = vor.u32 %v4386_v39, %v4385_v42  ;;  %v4390_v23 = vrot.slane %v4385_v42, 4  ;;  %v4371_v6 = vor.u32 %v4369_v10, %v4368_v12  ;;  %v4373_v21 = vrot.slane %v4368_v12, 4  ;;  %9373 = vmatpush3.bf16.msra.mxu1 %v9765_v9  ;;  %v12231_v10 = vld [vmem:[#allocation3 + $0x4c] sm:$0xf] }
 0x2cf   : > { %v12216_v27 = vrot.slane %v4409_v8, 7  ;;  %v4762_v16 = vrot.slane %v4761_v0, 4  ;;  %v4766_v38 = vrot.slane %v4764_v31, 5  ;;  %v4774_v25 = vshll.u32 %v12205_v11, 16  ;;  %9374 = vmatprep.subr.bf16.mxu1 %v9772_v44  ;;  %v12242_v53 = vld [vmem:[#allocation3 + $0x38] sm:$0x1] }
 0x2d0   : > { %v4389_v5 = vsel %vm10355_vm10, %v4381_v37, %v4388_v7  ;;  %v4590_v28 = vsel %vm10372_vm12, %v4390_v23, %v4589_v1  ;;  %v4372_v9 = vsel %vm10355_vm10, %v4364_v58, %v4371_v6  ;;  %v4583_v39 = vsel %vm10372_vm12, %v4373_v21, %v4582_v50  ;;  %v9286_v21 = vpop.f32.mrf.mxu0 }
 0x2d1   : > { %4588 = vst.msk [vmem:[#allocation3 + $0x94] sm:$0xf] %vm423_vm1, %v4389_v5  ;;  %4591 = vst [vmem:[#allocation3 + $0x98] sm:$0x1] %v4590_v28  ;;  %v4414_v40 = vor.u32 %v4412_v19, %v12216_v27  ;;  %v4415_v37 = vrot.slane %v12216_v27, 4  ;;  %v4816_v1 = vshrl.u32 %v12174_v63, 16  ;;  %v4771_v58 = vor.u32 %v4770_v62, %v4766_v38 }
 0x2d2   : > { %4581 = vst.msk [vmem:[#allocation3 + $0x88] sm:$0xf] %vm423_vm1, %v4372_v9  ;;  %4584 = vst [vmem:[#allocation3 + $0x8c] sm:$0x1] %v4583_v39  ;;  %v4767_v42 = vsel %vm10347_vm9, %v4762_v16, %v4766_v38  ;;  %v4776_v12 = vrot.slane %v4774_v25, 5  ;;  %v4827_v0 = vshrl.u32 %v12219_v17, 16  ;;  %9375 = vmatpush3.bf16.msra.mxu1 %v9772_v44  ;;  %v12248_v19 = vcombine.low %v12219_v17, %v12231_v10 }
 0x2d3   : > { %v4830_v31 = vshll.u32 %v12219_v17, 16  ;;  %v4600_v50 = vsel %vm10365_vm11, %v4414_v40, %v4599_v45  ;;  %v4772_v8 = vrot.slane %v4771_v58, 4  ;;  %v3958_v62 = vadd.f32 %v12187_v54, %v11941_v57  ;;  %9448 = vmatprep.subr.bf16.mxu1 %v12214_v46  ;;  %v12278_v45 = vld [vmem:[%s9984_s8] ss:$0 sm:$0xff] }
 0x2d4   : > { %4601 = vst [vmem:[#allocation3 + $0xa8] sm:$0xf] %v4600_v50  ;;  %v4781_v7 = vrot.slane %v4779_v47, 4  ;;  %v4784_v44 = vrot.slane %v4782_v59, 5  ;;  %v4788_v23 = vshll.u32 %v12123_v35, 16  ;;  %v4794_v6 = vrot.slane %v4792_v52, 4  ;;  %9348 = vmatprep.mubr.msk.bf16.mxu0 %vm1530_vm3, %v12248_v19 }
 0x2d5   : > { %v4777_v16 = vsel %vm10347_vm9, %v4772_v8, %v4776_v12  ;;  %v3997_v57 = vadd.f32 %v11872_v60, %v3958_v62  ;;  %v4798_v47 = vshll.u32 %v12242_v53, 16  ;;  %v3961_v41 = vadd.f32 %v9283_v20, %v11945_v30  ;;  %v12270_v52 = vld [vmem:[#allocation3 + $0x54] sm:$0xf]  ;;  %v4613_v8 = vld [vmem:[#allocation3 + $0xc0] sm:$0xf] }
 0x2d6   : > { %v12267_v59 = vcombine.low %v4767_v42, %v4777_v16  ;;  %v4785_v54 = vor.u32 %v4784_v44, %v4781_v7  ;;  %v4790_v38 = vrot.slane %v4788_v23, 5  ;;  %v3959_v35 = vadd.f32 %v3906_v56, %v11947_v24  ;;  %14055 = vst [vmem:[#allocation30_spill] sm:$0xff] %v12270_v52  ;;  %v12282_v42 = vld [vmem:[#allocation3 + $0x58] sm:$0xf] }
 0x2d7   : > { %v4840_v25 = vshrl.u32 %v12231_v10, 16  ;;  %v4029_v5 = vmax.f32 %v3997_v57, 0.0  ;;  %v4000_v28 = vadd.f32 %v11872_v60, %v3961_v41  ;;  %v3964_v9 = vadd.f32 %v9286_v21, %v11950_v18 }
 0x2d8   : > { %14054 = vst [vmem:[#allocation28_spill] sm:$0xff] %v12267_v59  ;;  %9301 = vmatmul.mubr.msk.bf16.gmra.mxu1 %vm1530_vm3, %v12267_v59  ;;  %v4786_v39 = vrot.slane %v4785_v54, 4  ;;  %v4795_v30 = vor.u32 %v4794_v6, %v4790_v38  ;;  %v4800_v20 = vrot.slane %v4798_v47, 5  ;;  %v3998_v40 = vadd.f32 %v12278_v45, %v3959_v35  ;;  %v4592_v35 = vld [vmem:[#allocation3 + $0x9c] sm:$0xf] }
 0x2d9   : > { %v8560_v24 = vpack.c.bf16 %v4029_v5, %v4029_v5  ;;  %v4032_v56 = vmax.f32 %v4000_v28, 0.0  ;;  %v4003_v58 = vadd.f32 %v12278_v45, %v3964_v9  ;;  %v12292_v16 = vcombine.low %v12270_v52, %v12282_v42  ;;  %v12475_v59 = vld [vmem:[#allocation3 + $0x80] sm:$0x1] }
 0x2da   : > { %v4791_v18 = vsel %vm10347_vm9, %v4786_v39, %v4790_v38  ;;  %v4796_v12 = vrot.slane %v4795_v30, 4  ;;  %v4030_v50 = vmax.f32 %v3998_v40, 0.0  ;;  %v4805_v57 = vrot.slane %v4803_v14, 4  ;;  %v3919_v30 = vpop.f32.mrf.mxu0 }
 0x2db   : > { %v4392_v62 = vshrl.u32 %v8560_v24, 16  ;;  %v4395_v7 = vshll.u32 %v8560_v24, 16  ;;  %v8563_v44 = vpack.c.bf16 %v4032_v56, %v4032_v56  ;;  %v4035_v23 = vmax.f32 %v4003_v58, 0.0  ;;  %9349 = vmatmul.mubr.msk.bf16.gmra.mxu0 %vm1530_vm3, %v12292_v16  ;;  %v4603_v24 = vld [vmem:[#allocation3 + $0xb0] sm:$0x1] }
 0x2dc   : > { %v4801_v6 = vsel %vm10347_vm9, %v4796_v12, %v4800_v20  ;;  %v8561_v21 = vpack.c.bf16 %v4030_v50, %v4030_v50  ;;  %v4808_v39 = vrot.slane %v4806_v36, 5  ;;  %v4812_v56 = vshll.u32 %v12174_v63, 16  ;;  %v12305_v50 = vld [vmem:[#allocation3 + $0x44] sm:$0x1] }
 0x2dd   : > { %v4394_v47 = vrot.slane %v4392_v62, 7  ;;  %v12296_v41 = vcombine.low %v4791_v18, %v4801_v6  ;;  %v4417_v54 = vshrl.u32 %v8563_v44, 16  ;;  %v4420_v38 = vshll.u32 %v8563_v44, 16 }
 0x2de   : > { %v4400_v5 = vshrl.u32 %v8561_v21, 16  ;;  %v4403_v28 = vshll.u32 %v8561_v21, 16  ;;  %v8566_v9 = vpack.c.bf16 %v4035_v23, %v4035_v23  ;;  %v4809_v62 = vor.u32 %v4808_v39, %v4805_v57  ;;  %v12322_v39 = vld [vmem:[#allocation3 + $0x64] sm:$0xf] }
 0x2df   : > { %14056 = vst [vmem:[#allocation8_spill] sm:$0xff] %v12296_v41  ;;  %v4397_v20 = vor.u32 %v4395_v7, %v4394_v47  ;;  %v4398_v40 = vrot.slane %v4394_v47, 4  ;;  %9304 = vmatprep.mubr.msk.bf16.mxu1 %vm1530_vm3, %v12296_v41  ;;  %v4419_v14 = vrot.slane %v4417_v54, 7  ;;  %v4596_v7 = vld [vmem:[#allocation3 + $0xa4] sm:$0x1]  ;;  %v4814_v6 = vrot.slane %v4812_v56, 5 }
 0x2e0   : > { %v4402_v58 = vrot.slane %v4400_v5, 7  ;;  %v4443_v18 = vshrl.u32 %v8566_v9, 16  ;;  %v4446_v12 = vshll.u32 %v8566_v9, 16  ;;  %v4810_v60 = vrot.slane %v4809_v62, 4  ;;  %v9287_v5 = vpop.f32.mrf.mxu0  ;;  %v12405_v62 = vld [vmem:[#allocation3 + $0x7c] sm:$0xf] }
 0x2e1   : > { %v4593_v44 = vsel %vm10365_vm11, %v4397_v20, %v4592_v35  ;;  %v4422_v36 = vor.u32 %v4420_v38, %v4419_v14  ;;  %v4424_v23 = vrot.slane %v4419_v14, 4  ;;  %v4818_v38 = vrot.slane %v4816_v1, 4 }
 0x2e2   : > { %4594 = vst [vmem:[#allocation3 + $0x9c] sm:$0xf] %v4593_v44  ;;  %v4405_v21 = vor.u32 %v4403_v28, %v4402_v58  ;;  %v4407_v47 = vrot.slane %v4402_v58, 4  ;;  %v12309_v54 = vrot.slane %v4443_v18, 7  ;;  %v4822_v9 = vshll.u32 %v12305_v50, 16 }
 0x2e3   : > { %v4423_v57 = vsel %vm10355_vm10, %v4415_v37, %v4422_v36  ;;  %v4604_v35 = vsel %vm10372_vm12, %v4424_v23, %v4603_v24  ;;  %v12320_v28 = vld [vmem:[#allocation3 + $0x60] sm:$0xf]  ;;  %v4864_v14 = vshrl.u32 %v12282_v42, 16  ;;  %v4815_v24 = vsel %vm10347_vm9, %v4810_v60, %v4814_v6  ;;  %v12335_v18 = vld [vmem:[#allocation3 + $0x50] sm:$0x1]  ;;  %v3922_v36 = vpop.f32.mrf.mxu0 }
 0x2e4   : > { %14057 = vst [vmem:[#allocation34_spill] sm:$0xff] %v12320_v28  ;;  %4602 = vst.msk [vmem:[#allocation3 + $0xac] sm:$0xf] %vm423_vm1, %v4423_v57  ;;  %v4406_v27 = vsel %vm10355_vm10, %v4398_v40, %v4405_v21  ;;  %v4597_v37 = vsel %vm10372_vm12, %v4407_v47, %v4596_v7  ;;  %v4448_v20 = vor.u32 %v4446_v12, %v12309_v54  ;;  %v4449_v1 = vrot.slane %v12309_v54, 4 }
 0x2e5   : > { %4605 = vst [vmem:[#allocation3 + $0xb0] sm:$0x1] %v4604_v35  ;;  %4595 = vst.msk [vmem:[#allocation3 + $0xa0] sm:$0xf] %vm423_vm1, %v4406_v27  ;;  %v4819_v56 = vor.u32 %v4818_v38, %v4814_v6  ;;  %v4824_v58 = vrot.slane %v4822_v9, 5  ;;  %v12343_v44 = vcombine.low %v12320_v28, %v12322_v39  ;;  %v3962_v60 = vadd.f32 %v3919_v30, %v11953_v51 }
 0x2e6   : > { %4598 = vst [vmem:[#allocation3 + $0xa4] sm:$0x1] %v4597_v37  ;;  %v4614_v40 = vsel %vm10365_vm11, %v4448_v20, %v4613_v8  ;;  %v4829_v7 = vrot.slane %v4827_v0, 4  ;;  %v4832_v6 = vrot.slane %v4830_v31, 5  ;;  %v4836_v8 = vshll.u32 %v12231_v10, 16 }
 0x2e7   : > { %4615 = vst [vmem:[#allocation3 + $0xc0] sm:$0xf] %v4614_v40  ;;  %v4820_v23 = vrot.slane %v4819_v56, 4  ;;  %9352 = vmatprep.mubr.msk.bf16.mxu0 %vm1530_vm3, %v12343_v44  ;;  %v4842_v21 = vrot.slane %v4840_v25, 4  ;;  %v4846_v47 = vshll.u32 %v12335_v18, 16  ;;  %v3965_v57 = vadd.f32 %v9287_v5, %v11957_v15 }
 0x2e8   : > { %v4001_v0 = vadd.f32 %v12278_v45, %v3962_v60  ;;  %v4833_v30 = vor.u32 %v4832_v6, %v4829_v7  ;;  %v3963_v31 = vadd.f32 %v3922_v36, %v12031_v4  ;;  %v12361_v35 = vld [vmem:[#allocation3 + $0x6c] sm:$0xf]  ;;  %v4838_v27 = vrot.slane %v4836_v8, 5  ;;  %v12367_v37 = vld [vmem:[#allocation3 + $0x70] sm:$0xf] }
 0x2e9   : > { %v4825_v51 = vsel %vm10347_vm9, %v4820_v23, %v4824_v58  ;;  %v4004_v25 = vadd.f32 %v12278_v45, %v3965_v57  ;;  %v4848_v20 = vrot.slane %v4846_v47, 5  ;;  %v12377_v7 = vcombine.low %v12361_v35, %v12367_v37  ;;  %v12482_v34 = vld [vmem:[#allocation3 + $0x9c] sm:$0xf] }
 0x2ea   : > { %v12363_v38 = vcombine.low %v4815_v24, %v4825_v51  ;;  %v4033_v15 = vmax.f32 %v4001_v0, 0.0  ;;  %v4834_v5 = vrot.slane %v4833_v30, 4  ;;  %v4002_v56 = vadd.f32 %v12278_v45, %v3963_v31  ;;  %14075 = vst [vmem:[#allocation17_spill] sm:$0xff] %v12482_v34 }
 0x2eb   : > { %v4843_v4 = vor.u32 %v4842_v21, %v4838_v27  ;;  %v4036_v58 = vmax.f32 %v4004_v25, 0.0  ;;  %14059 = vst [vmem:[#allocation10_spill] sm:$0xff] %v12377_v7  ;;  %v14060_v45 = vshrl.u32 %v12270_v52, 16  ;;  %v14061_v21 = vshll.u32 %v12270_v52, 16  ;;  %9353 = vmatmul.mubr.msk.bf16.gmra.mxu0 %vm1530_vm3, %v12377_v7 }
 0x2ec   : > { %14058 = vst [vmem:[#allocation9_spill] sm:$0xff] %v12363_v38  ;;  %9305 = vmatmul.mubr.msk.bf16.gmra.mxu1 %vm1530_vm3, %v12363_v38  ;;  %v8564_v36 = vpack.c.bf16 %v4033_v15, %v4033_v15  ;;  %v4034_v23 = vmax.f32 %v4002_v56, 0.0  ;;  %v4839_v0 = vsel %vm10347_vm9, %v4834_v5, %v4838_v27  ;;  %v4860_v31 = vshll.u32 %v12282_v42, 16  ;;  %v4606_v27 = vld [vmem:[#allocation3 + $0xb4] sm:$0xf] }
 0x2ed   : > { %v4844_v6 = vrot.slane %v4843_v4, 4  ;;  %v8567_v8 = vpack.c.bf16 %v4036_v58, %v4036_v58  ;;  %v4853_v47 = vrot.slane %v14060_v45, 4  ;;  %v4856_v57 = vrot.slane %v14061_v21, 5  ;;  %v12390_v4 = vld [vmem:[#allocation3 + $0x5c] sm:$0x1] }
 0x2ee   : > { %v4426_v51 = vshrl.u32 %v8564_v36, 16  ;;  %v8565_v30 = vpack.c.bf16 %v4034_v23, %v4034_v23  ;;  %v4429_v25 = vshll.u32 %v8564_v36, 16  ;;  %14062 = vst [vmem:[#allocation11_spill] sm:$0xff] %v12390_v4  ;;  %v4862_v24 = vrot.slane %v4860_v31, 5 }
 0x2ef   : > { %v4849_v15 = vsel %vm10347_vm9, %v4844_v6, %v4848_v20  ;;  %v4451_v56 = vshrl.u32 %v8567_v8, 16  ;;  %v4857_v58 = vor.u32 %v4856_v57, %v4853_v47  ;;  %v4454_v60 = vshll.u32 %v8567_v8, 16  ;;  %v4617_v20 = vld [vmem:[#allocation3 + $0xc8] sm:$0x1] }
 0x2f0   : > { %v4428_v45 = vrot.slane %v4426_v51, 7  ;;  %v12392_v21 = vcombine.low %v4839_v0, %v4849_v15  ;;  %v4434_v40 = vshrl.u32 %v8565_v30, 16  ;;  %v4866_v9 = vrot.slane %v4864_v14, 4  ;;  %v4610_v0 = vld [vmem:[#allocation3 + $0xbc] sm:$0x1] }
 0x2f1   : > { %v4453_v5 = vrot.slane %v4451_v56, 7  ;;  %v4858_v23 = vrot.slane %v4857_v58, 4  ;;  %v4437_v12 = vshll.u32 %v8565_v30, 16  ;;  %v4870_v47 = vshll.u32 %v12390_v4, 16  ;;  %v12399_v56 = vld [vmem:[#allocation3 + $0x78] sm:$0xf] }
 0x2f2   : > { %14063 = vst [vmem:[#allocation20_spill] sm:$0xff] %v12392_v21  ;;  %v4431_v36 = vor.u32 %v4429_v25, %v4428_v45  ;;  %9308 = vmatprep.mubr.msk.bf16.mxu1 %vm1530_vm3, %v12392_v21  ;;  %v4436_v6 = vrot.slane %v4434_v40, 7  ;;  %v4432_v57 = vrot.slane %v4428_v45, 4  ;;  %v4867_v15 = vor.u32 %v4866_v9, %v4862_v24  ;;  %v12422_v45 = vld [vmem:[#allocation3 + $0x84] sm:$0xf] }
 0x2f3   : > { %v4456_v51 = vor.u32 %v4454_v60, %v4453_v5  ;;  %v4458_v8 = vrot.slane %v4453_v5, 4  ;;  %v4863_v58 = vsel %vm10347_vm9, %v4858_v23, %v4862_v24  ;;  %v4872_v30 = vrot.slane %v4870_v47, 5 }
 0x2f4   : > { %v4607_v31 = vsel %vm10365_vm11, %v4431_v36, %v4606_v27  ;;  %v4439_v14 = vor.u32 %v4437_v12, %v4436_v6  ;;  %v4441_v25 = vrot.slane %v4436_v6, 4  ;;  %v4868_v60 = vrot.slane %v4867_v15, 4 }
 0x2f5   : > { %4608 = vst [vmem:[#allocation3 + $0xb4] sm:$0xf] %v4607_v31  ;;  %v4457_v40 = vsel %vm10355_vm10, %v4449_v1, %v4456_v51  ;;  %v4618_v9 = vsel %vm10372_vm12, %v4458_v8, %v4617_v20  ;;  %v4923_v54 = vshrl.u32 %v12399_v56, 16  ;;  %v4926_v1 = vshll.u32 %v12399_v56, 16  ;;  %v12435_v20 = vld [vmem:[#allocation3 + $0x88] sm:$0xf] }
 0x2f6   : > { %4616 = vst.msk [vmem:[#allocation3 + $0xc4] sm:$0xf] %vm423_vm1, %v4457_v40  ;;  %4619 = vst [vmem:[#allocation3 + $0xc8] sm:$0x1] %v4618_v9  ;;  %v4440_v12 = vsel %vm10355_vm10, %v4432_v57, %v4439_v14  ;;  %v4611_v24 = vsel %vm10372_vm12, %v4441_v25, %v4610_v0  ;;  %v4873_v27 = vsel %vm10347_vm9, %v4868_v60, %v4872_v30  ;;  %v14066_v13 = vshrl.u32 %v12320_v28, 16 }
 0x2f7   : > { %4609 = vst.msk [vmem:[#allocation3 + $0xb8] sm:$0xf] %vm423_vm1, %v4440_v12  ;;  %4612 = vst [vmem:[#allocation3 + $0xbc] sm:$0x1] %v4611_v24  ;;  %v12429_v5 = vcombine.low %v12399_v56, %v12405_v62  ;;  %v14067_v23 = vshll.u32 %v12320_v28, 16  ;;  %v12437_v6 = vcombine.low %v4863_v58, %v4873_v27  ;;  %v4884_v47 = vshll.u32 %v12322_v39, 16 }
 0x2f8   : > { %v4877_v48 = vrot.slane %v14066_v13, 4  ;;  %v14069_v57 = vshrl.u32 %v12322_v39, 16  ;;  %v4894_v8 = vshll.u32 %v12413_v33, 16  ;;  %v12443_v0 = vld [vmem:[#allocation3 + $0x74] sm:$0x1]  ;;  %v4936_v15 = vshrl.u32 %v12405_v62, 16 }
 0x2f9   : > { %14065 = vst [vmem:[#allocation25_spill] sm:$0xff] %v12429_v5  ;;  %v4880_v36 = vrot.slane %v14067_v23, 5  ;;  %14068 = vst [vmem:[#allocation13_spill] sm:$0xff] %v12437_v6  ;;  %9356 = vmatprep.mubr.msk.bf16.mxu0 %vm1530_vm3, %v12429_v5  ;;  %v4947_v14 = vshrl.u32 %v12422_v45, 16  ;;  %v4950_v25 = vshll.u32 %v12422_v45, 16  ;;  %9309 = vmatmul.mubr.msk.bf16.gmra.mxu1 %vm1530_vm3, %v12437_v6  ;;  %v4886_v40 = vrot.slane %v4884_v47, 5 }
 0x2fa   : > { %v4890_v51 = vrot.slane %v14069_v57, 4  ;;  %v12450_v58 = vld [vmem:[#allocation3 + $0x90] sm:$0xf]  ;;  %v4960_v9 = vshrl.u32 %v12435_v20, 16  ;;  %v12457_v60 = vcombine.low %v12422_v45, %v12435_v20  ;;  %v14071_v30 = vshrl.u32 %v12361_v35, 16 }
 0x2fb   : > { %v4881_v31 = vor.u32 %v4880_v36, %v4877_v48  ;;  %v14072_v27 = vshll.u32 %v12361_v35, 16  ;;  %v4908_v48 = vshll.u32 %v12367_v37, 16  ;;  %v14073_v23 = vshrl.u32 %v12367_v37, 16  ;;  %v12466_v57 = vld [vmem:[#allocation3 + $0x94] sm:$0xf] }
 0x2fc   : > { %14070 = vst [vmem:[#allocation26_spill] sm:$0xff] %v12457_v60  ;;  %v4901_v12 = vrot.slane %v14071_v30, 4  ;;  %v4891_v47 = vor.u32 %v4890_v51, %v4886_v40  ;;  %v4896_v6 = vrot.slane %v4894_v8, 5  ;;  %9357 = vmatmul.mubr.msk.bf16.gmra.mxu0 %vm1530_vm3, %v12457_v60  ;;  %v4918_v21 = vshll.u32 %v12443_v0, 16 }
 0x2fd   : > { %v4882_v24 = vrot.slane %v4881_v31, 4  ;;  %v4904_v13 = vrot.slane %v14072_v27, 5  ;;  %v4914_v36 = vrot.slane %v14073_v23, 4  ;;  %v4971_v30 = vshrl.u32 %v12450_v58, 16 }
 0x2fe   : > { %v4910_v38 = vrot.slane %v4908_v48, 5  ;;  %v4974_v41 = vshll.u32 %v12450_v58, 16  ;;  %v4892_v23 = vrot.slane %v4891_v47, 4  ;;  %v4984_v51 = vshrl.u32 %v12466_v57, 16  ;;  %v12490_v47 = vld [vmem:[#allocation3 + $0xa0] sm:$0xf] }
 0x2ff   : > { %v4887_v31 = vsel %vm10347_vm9, %v4882_v24, %v4886_v40  ;;  %v4905_v27 = vor.u32 %v4904_v13, %v4901_v12  ;;  %v12480_v8 = vcombine.low %v12450_v58, %v12466_v57  ;;  %v4925_v43 = vrot.slane %v4923_v54, 4 }
 0x300   : > { %v4915_v52 = vor.u32 %v4914_v36, %v4910_v38  ;;  %v4928_v33 = vrot.slane %v4926_v1, 5  ;;  %v4932_v40 = vshll.u32 %v12405_v62, 16  ;;  %v4897_v12 = vsel %vm10347_vm9, %v4892_v23, %v4896_v6  ;;  %v12498_v23 = vld [vmem:[#allocation3 + $0x8c] sm:$0x1] }
 0x301   : > { %14074 = vst [vmem:[#allocation15_spill] sm:$0xff] %v12480_v8  ;;  %v4906_v28 = vrot.slane %v4905_v27, 4  ;;  %v4920_v24 = vrot.slane %v4918_v21, 5  ;;  %9360 = vmatprep.mubr.msk.bf16.mxu0 %vm1530_vm3, %v12480_v8  ;;  %v4938_v13 = vrot.slane %v4936_v15, 4  ;;  %v4942_v48 = vshll.u32 %v12475_v59, 16 }
 0x302   : > { %v12492_v54 = vcombine.low %v4887_v31, %v4897_v12  ;;  %v4916_v4 = vrot.slane %v4915_v52, 4  ;;  %v4929_v27 = vor.u32 %v4928_v33, %v4925_v43  ;;  %v4995_v1 = vshrl.u32 %v12482_v34, 16  ;;  %v12508_v33 = vld [vmem:[#allocation3 + $0xa8] sm:$0xf] }
 0x303   : > { %v4911_v36 = vsel %vm10347_vm9, %v4906_v28, %v4910_v38  ;;  %v4934_v60 = vrot.slane %v4932_v40, 5  ;;  %v4944_v6 = vrot.slane %v4942_v48, 5  ;;  %v4998_v21 = vshll.u32 %v12482_v34, 16  ;;  %14078 = vst [vmem:[#allocation32_spill] sm:$0xff] %v12508_v33  ;;  %v12513_v48 = vld [vmem:[#allocation3 + $0xac] sm:$0xf] }
 0x304   : > { %14076 = vst [vmem:[#allocation31_spill] sm:$0xff] %v12492_v54  ;;  %9312 = vmatprep.mubr.msk.bf16.mxu1 %vm1530_vm3, %v12492_v54  ;;  %v4921_v15 = vsel %vm10347_vm9, %v4916_v4, %v4920_v24  ;;  %v4930_v31 = vrot.slane %v4929_v27, 4  ;;  %v12506_v43 = vcombine.low %v12482_v34, %v12490_v47  ;;  %v4949_v52 = vrot.slane %v4947_v14, 4  ;;  %14080 = vst [vmem:[#allocation29_spill] sm:$0xff] %v12513_v48  ;;  %v12541_v34 = vld [vmem:[#allocation3 + $0xb8] sm:$0xf] }
 0x305   : > { %v12510_v28 = vcombine.low %v4911_v36, %v4921_v15  ;;  %v4939_v38 = vor.u32 %v4938_v13, %v4934_v60  ;;  %v4952_v40 = vrot.slane %v4950_v25, 5  ;;  %v4956_v12 = vshll.u32 %v12435_v20, 16  ;;  %v12524_v15 = vld [vmem:[#allocation3 + $0x98] sm:$0x1] }
 0x306   : > { %14077 = vst [vmem:[#allocation18_spill] sm:$0xff] %v12506_v43  ;;  %v4935_v54 = vsel %vm10347_vm9, %v4930_v31, %v4934_v60  ;;  %v5008_v4 = vshrl.u32 %v12490_v47, 16  ;;  %9361 = vmatmul.mubr.msk.bf16.gmra.mxu0 %vm1530_vm3, %v12506_v43  ;;  %v4962_v24 = vrot.slane %v4960_v9, 4  ;;  %v4966_v14 = vshll.u32 %v12498_v23, 16 }
 0x307   : > { %14079 = vst [vmem:[#allocation23_spill] sm:$0xff] %v12510_v28  ;;  %9313 = vmatmul.mubr.msk.bf16.gmra.mxu1 %vm1530_vm3, %v12510_v28  ;;  %v4940_v13 = vrot.slane %v4939_v38, 4  ;;  %v4953_v25 = vor.u32 %v4952_v40, %v4949_v52  ;;  %v4958_v27 = vrot.slane %v4956_v12, 5  ;;  %v5019_v36 = vshrl.u32 %v12508_v33, 16  ;;  %v12533_v52 = vld [vmem:[#allocation3 + $0xb4] sm:$0xf] }
 0x308   : > { %v4968_v8 = vrot.slane %v4966_v14, 5  ;;  %v5022_v60 = vshll.u32 %v12508_v33, 16  ;;  %v12529_v31 = vcombine.low %v12508_v33, %v12513_v48  ;;  %v4973_v9 = vrot.slane %v4971_v30, 4  ;;  %14082 = vst [vmem:[#allocation38_spill] sm:$0xff] %v12533_v52 }
 0x309   : > { %v4945_v43 = vsel %vm10347_vm9, %v4940_v13, %v4944_v6  ;;  %v4954_v5 = vrot.slane %v4953_v25, 4  ;;  %v4963_v28 = vor.u32 %v4962_v24, %v4958_v27  ;;  %v4976_v38 = vrot.slane %v4974_v41, 5  ;;  %v12550_v25 = vld [vmem:[#allocation3 + $0xa4] sm:$0x1] }
 0x30a   : > { %14081 = vst [vmem:[#allocation36_spill] sm:$0xff] %v12529_v31  ;;  %v12535_v40 = vcombine.low %v4935_v54, %v4945_v43  ;;  %9364 = vmatprep.mubr.msk.bf16.mxu0 %vm1530_vm3, %v12529_v31  ;;  %v4980_v12 = vshll.u32 %v12466_v57, 16  ;;  %v4986_v14 = vrot.slane %v4984_v51, 4  ;;  %v4990_v33 = vshll.u32 %v12524_v15, 16  ;;  %14084 = vst [vmem:[#allocation40_spill] sm:$0xff] %v12550_v25 }
 0x30b   : > { %v4959_v30 = vsel %vm10347_vm9, %v4954_v5, %v4958_v27  ;;  %v4964_v6 = vrot.slane %v4963_v28, 4  ;;  %v5032_v41 = vshrl.u32 %v12513_v48, 16  ;;  %v4977_v24 = vor.u32 %v4976_v38, %v4973_v9 }
 0x30c   : > { %14083 = vst [vmem:[#allocation33_spill] sm:$0xff] %v12535_v40  ;;  %9316 = vmatprep.mubr.msk.bf16.mxu1 %vm1530_vm3, %v12535_v40  ;;  %v4982_v54 = vrot.slane %v4980_v12, 5  ;;  %v4992_v43 = vrot.slane %v4990_v33, 5  ;;  %v5043_v13 = vshrl.u32 %v12533_v52, 16  ;;  %v5046_v51 = vshll.u32 %v12533_v52, 16 }
 0x30d   : > { %v4969_v31 = vsel %vm10347_vm9, %v4964_v6, %v4968_v8  ;;  %v4978_v7 = vrot.slane %v4977_v24, 4  ;;  %v12556_v5 = vcombine.low %v12533_v52, %v12541_v34  ;;  %v4997_v28 = vrot.slane %v4995_v1, 4  ;;  %v12561_v12 = vld [vmem:[#allocation3 + $0xb0] sm:$0x1] }
 0x30e   : > { %v12558_v27 = vcombine.low %v4959_v30, %v4969_v31  ;;  %v4987_v9 = vor.u32 %v4986_v14, %v4982_v54  ;;  %v5000_v38 = vrot.slane %v4998_v21, 5  ;;  %v5004_v33 = vshll.u32 %v12490_v47, 16  ;;  %14087 = vst [vmem:[#allocation37_spill] sm:$0xff] %v12561_v12 }
 0x30f   : > { %14085 = vst [vmem:[#allocation22_spill] sm:$0xff] %v12556_v5  ;;  %v5056_v40 = vshrl.u32 %v12541_v34, 16  ;;  %9365 = vmatmul.mubr.msk.bf16.gmra.mxu0 %vm1530_vm3, %v12556_v5  ;;  %v5010_v8 = vrot.slane %v5008_v4, 4  ;;  %v5014_v6 = vshll.u32 %v12550_v25, 16  ;;  %v5021_v24 = vrot.slane %v5019_v36, 4 }
 0x310   : > { %14086 = vst [vmem:[#allocation35_spill] sm:$0xff] %v12558_v27  ;;  %9317 = vmatmul.mubr.msk.bf16.gmra.mxu1 %vm1530_vm3, %v12558_v27  ;;  %v4988_v1 = vrot.slane %v4987_v9, 4  ;;  %v5001_v31 = vor.u32 %v5000_v38, %v4997_v28  ;;  %v5006_v14 = vrot.slane %v5004_v33, 5  ;;  %9416 = vmatprep.mubr.msk.bf16.mxu0 %vm1530_vm3, %v12045_v29  ;;  %v5024_v21 = vrot.slane %v5022_v60, 5  ;;  %v12579_v29 = vld [vmem:[#allocation3 + $0xbc] sm:$0x1] }
 0x311   : > { %v4983_v30 = vsel %vm10347_vm9, %v4978_v7, %v4982_v54  ;;  %v5028_v52 = vshll.u32 %v12513_v48, 16  ;;  %v5034_v5 = vrot.slane %v5032_v41, 4  ;;  %v5038_v4 = vshll.u32 %v12561_v12, 16 }
 0x312   : > { %v4993_v36 = vsel %vm10347_vm9, %v4988_v1, %v4992_v43  ;;  %v5002_v25 = vrot.slane %v5001_v31, 4  ;;  %v5011_v9 = vor.u32 %v5010_v8, %v5006_v14  ;;  %v5025_v28 = vor.u32 %v5024_v21, %v5021_v24  ;;  %v9779_v8 = vld [vmem:[%s9998_s17 + $0xb0] sm:$0xff]   ;;  %v9827_v21 = vld [vmem:[#allocation3] sm:$0xf] }
 0x313   : > { %v12577_v38 = vcombine.low %v4983_v30, %v4993_v36  ;;  %v5030_v33 = vrot.slane %v5028_v52, 5  ;;  %v5045_v60 = vrot.slane %v5043_v13, 4  ;;  %v5016_v7 = vrot.slane %v5014_v6, 5 }
 0x314   : > { %v5012_v27 = vrot.slane %v5011_v9, 4  ;;  %v5026_v54 = vrot.slane %v5025_v28, 4  ;;  %v5048_v48 = vrot.slane %v5046_v51, 5  ;;  %v5040_v12 = vrot.slane %v5038_v4, 5  ;;  %v9830_v28 = vld [vmem:[#allocation3 + $0x10] sm:$0xf] }
 0x315   : > { %9320 = vmatprep.mubr.msk.bf16.mxu1 %vm1530_vm3, %v12577_v38  ;;  %v5035_v41 = vor.u32 %v5034_v5, %v5030_v33  ;;  %v5052_v43 = vshll.u32 %v12541_v34, 16  ;;  %v5058_v1 = vrot.slane %v5056_v40, 4  ;;  %v5007_v24 = vsel %vm10347_vm9, %v5002_v25, %v5006_v14  ;;  %v9828_v25 = vld [vmem:[#allocation3 + $0x4] sm:$0xf] }
 0x316   : > { %v5017_v52 = vsel %vm10347_vm9, %v5012_v27, %v5016_v7  ;;  %v5049_v13 = vor.u32 %v5048_v48, %v5045_v60  ;;  %v5062_v6 = vshll.u32 %v12579_v29, 16  ;;  %v8263_v40 = vrot.slane %v9827_v21, 9  ;;  %v9829_v27 = vld [vmem:[#allocation3 + $0x8] sm:$0x1] }
 0x317   : > { %v12590_v31 = vcombine.low %v5007_v24, %v5017_v52  ;;  %v5036_v51 = vrot.slane %v5035_v41, 4  ;;  %9417 = vmatmul.mubr.msk.bf16.vlgmr.msra.gmra.mxu0 %vm1530_vm3, %v12064_v61  ;;  %v5054_v5 = vrot.slane %v5052_v43, 5  ;;  %v5031_v30 = vsel %vm10347_vm9, %v5026_v54, %v5030_v33  ;;  %v9782_v33 = vld [vmem:[%s9998_s17 + $0xa8] sm:$0xff]  }
 0x318   : > { %9420 = vmatprep.mubr.msk.bf16.mxu0 %vm1530_vm3, %v12103_v3  ;;  %v5687_v48 = vrot.slane %v9828_v25, 5  ;;  %v5690_v14 = vrot.slane %v9829_v27, 5  ;;  %9489 = vmatpush3.bf16.msra.mxu0 %v12200_v22  ;;  %v5050_v36 = vrot.slane %v5049_v13, 4  ;;  %v5694_v60 = vrot.slane %v9830_v28, 5  ;;  %v9833_v27 = vld [vmem:[#allocation3 + $0x14] sm:$0x1] }
 0x319   : > { %9321 = vmatmul.mubr.msk.bf16.gmra.mxu1 %vm1530_vm3, %v12590_v31  ;;  %v5041_v4 = vsel %vm10347_vm9, %v5036_v51, %v5040_v12  ;;  %v5059_v9 = vor.u32 %v5058_v1, %v5054_v5  ;;  %9490 = vmatprep.subr.bf16.mxu0 %v9779_v8  ;;  %v5064_v43 = vrot.slane %v5062_v6, 5  ;;  %v9831_v1 = vld [vmem:[#allocation3 + $0x1c] sm:$0xf]  ;;  %v9832_v6 = vld [vmem:[#allocation3 + $0x28] sm:$0xf] }
 0x31a   : > { %v12604_v7 = vcombine.low %v5031_v30, %v5041_v4  ;;  %v5689_v54 = vrot.slane %v5687_v48, 4  ;;  %v5688_v22 = vsel %vm10812_vm15, %v8263_v40, %v5687_v48  ;;  %v5701_v52 = vrot.slane %v9831_v1, 5  ;;  %v9783_v40 = vld [vmem:[%s9998_s17 + $0xa0] sm:$0xff]  }
 0x31b   : > { %v5060_v41 = vrot.slane %v5059_v9, 4  ;;  %v5055_v13 = vsel %vm10347_vm9, %v5050_v36, %v5054_v5  ;;  %v5696_v21 = vrot.slane %v5694_v60, 4  ;;  %v5708_v30 = vrot.slane %v9832_v6, 5  ;;  %v9834_v4 = vld [vmem:[#allocation3 + $0xc] sm:$0xf] }
 0x31c   : > { %9324 = vmatprep.mubr.msk.bf16.mxu1 %vm1530_vm3, %v12604_v7  ;;  %v5691_v12 = vsel %vm10812_vm15, %v5689_v54, %v5690_v14  ;;  %9491 = vmatpush3.bf16.msra.mxu0 %v9779_v8  ;;  %v5697_v8 = vrot.slane %v9833_v27, 5  ;;  %v5703_v14 = vrot.slane %v5701_v52, 4  ;;  %v8264_v5 = vrot.slane %v9834_v4, 9  ;;  %v9835_v9 = vld [vmem:[#allocation3 + $0x34] sm:$0xf] }
 0x31d   : > { %v5065_v51 = vsel %vm10347_vm9, %v5060_v41, %v5064_v43  ;;  %9492 = vmatprep.subr.bf16.mxu0 %v9782_v33  ;;  %v8287_v48 = vcombine.low %v5688_v22, %v5691_v12  ;;  %v5710_v36 = vrot.slane %v5708_v30, 4  ;;  %v5715_v28 = vrot.slane %v9835_v9, 5  ;;  %v12629_v43 = vld [vmem:[%s9998_s17 + $0xf8] sm:$0xff]  }
 0x31e   : > { %v12617_v25 = vcombine.low %v5055_v13, %v5065_v51  ;;  %v5698_v54 = vsel %vm10812_vm15, %v5696_v21, %v5697_v8  ;;  %v5704_v41 = vrot.slane %v12139_v2, 5  ;;  %v5695_v22 = vsel %vm10812_vm15, %v8264_v5, %v5694_v60  ;;  %v9837_v6 = vld [vmem:[#allocation3 + $0x24] sm:$0xf] }
 0x31f   : > { %9421 = vmatmul.mubr.msk.bf16.gmra.mxu0 %vm1530_vm3, %v12145_v26  ;;  %v5711_v12 = vrot.slane %v12205_v11, 5  ;;  %v5717_v1 = vrot.slane %v5715_v28, 4  ;;  %v8266_v21 = vrot.slane %v9837_v6, 9  ;;  %v5722_v2 = vrot.slane %v12174_v63, 5 }
 0x320   : > { %9424 = vmatprep.mubr.msk.bf16.mxu0 %vm1530_vm3, %v12185_v32  ;;  %9493 = vmatpush3.bf16.msra.mxu0 %v9782_v33  ;;  %v9836_v33 = vld [vmem:[#allocation3 + $0x18] sm:$0xf]  ;;  %v5705_v51 = vsel %vm10812_vm15, %v5703_v14, %v5704_v41  ;;  %v12638_v27 = vcombine.low %v5695_v22, %v5698_v54  ;;  %v5718_v60 = vrot.slane %v12242_v53, 5  ;;  %v9838_v14 = vld [vmem:[#allocation3 + $0x30] sm:$0xf]  ;;  %v5729_v5 = vrot.slane %v12231_v10, 5 }
 0x321   : > { %9325 = vmatmul.mubr.msk.bf16.gmra.mxu1 %vm1530_vm3, %v12617_v25  ;;  %9494 = vmatprep.subr.bf16.mxu0 %v9783_v40  ;;  %v8265_v13 = vrot.slane %v9836_v33, 9  ;;  %v5709_v8 = vsel %vm10812_vm15, %v8266_v21, %v5708_v30  ;;  %v8267_v4 = vrot.slane %v9838_v14, 9  ;;  %v8268_v53 = vrot.slane %v12163_v55, 9  ;;  %v9776_v10 = vld [vmem:[%s9998_s17 + $0x90] sm:$0xff]  }
 0x322   : > { %9376 = vmatprep.mubr.msk.bf16.mxu1 %vm1530_vm3, %v8287_v48  ;;  %v5712_v48 = vsel %vm10812_vm15, %v5710_v36, %v5711_v12  ;;  %v5719_v36 = vsel %vm10812_vm15, %v5717_v1, %v5718_v60  ;;  %v5724_v9 = vrot.slane %v5722_v2, 4  ;;  %v8269_v54 = vrot.slane %v12219_v17, 9 }
 0x323   : > { %v5702_v11 = vsel %vm10812_vm15, %v8265_v13, %v5701_v52  ;;  %v12657_v52 = vcombine.low %v5709_v8, %v5712_v48  ;;  %v5716_v30 = vsel %vm10812_vm15, %v8267_v4, %v5715_v28  ;;  %v12667_v55 = vsel %vm10812_vm15, %v8268_v53, %v5722_v2  ;;  %v12702_v8 = vld [vmem:[#allocation3 + $0xc0] sm:$0xf] }
 0x324   : > { %9495 = vmatpush3.bf16.msra.mxu0 %v9783_v40  ;;  %v12649_v63 = vcombine.low %v5702_v11, %v5705_v51  ;;  %v5725_v40 = vrot.slane %v12305_v50, 5  ;;  %v5732_v50 = vrot.slane %v12335_v18, 5  ;;  %v8272_v41 = vrot.slane %v12361_v35, 9  ;;  %v9777_v51 = vld [vmem:[%s9998_s17 + $0x88] sm:$0xff]  }
 0x325   : > { %9568 = vmatprep.subr.bf16.mxu0 %v12629_v43  ;;  %v5750_v22 = vrot.slane %v12367_v37, 5  ;;  %v12674_v28 = vcombine.low %v5716_v30, %v5719_v36  ;;  %v5731_v17 = vrot.slane %v5729_v5, 4  ;;  %v5736_v12 = vrot.slane %v12282_v42, 5  ;;  %v14089_v30 = vld [vmem:[#allocation10_spill] sm:$0xff] }
 0x326   : > { %v5753_v1 = vrot.slane %v12443_v0, 5  ;;  %v8273_v37 = vrot.slane %v12399_v56, 9  ;;  %v5757_v33 = vrot.slane %v12405_v62, 5  ;;  %v5726_v13 = vsel %vm10812_vm15, %v5724_v9, %v5725_v40  ;;  %v9781_v40 = vld [vmem:[%s9998_s17 + $0x80] sm:$0xff]  }
 0x327   : > { %9425 = vmatmul.mubr.msk.bf16.gmra.mxu0 %vm1530_vm3, %v12248_v19  ;;  %v5751_v18 = vsel %vm10812_vm15, %v8272_v41, %v5750_v22  ;;  %v5752_v35 = vrot.slane %v5750_v22, 4  ;;  %v5730_v0 = vsel %vm10812_vm15, %v8269_v54, %v5729_v5  ;;  %v5764_v6 = vrot.slane %v12435_v20, 5  ;;  %v12728_v54 = vld [vmem:[#allocation3 + $0xc4] sm:$0xf] }
 0x328   : > { %9428 = vmatprep.mubr.msk.bf16.mxu0 %vm1530_vm3, %v12292_v16  ;;  %v5758_v56 = vsel %vm10812_vm15, %v8273_v37, %v5757_v33  ;;  %v5759_v2 = vrot.slane %v5757_v33, 4  ;;  %v5760_v62 = vrot.slane %v12475_v59, 5  ;;  %v5733_v20 = vsel %vm10812_vm15, %v5731_v17, %v5732_v50  ;;  %v14090_v50 = vld [vmem:[#allocation17_spill] sm:$0xff]  ;;  %v14091_v17 = vld [vmem:[#allocation40_spill] sm:$0xff] }
 0x329   : > { %9377 = vmatmul.mubr.msk.bf16.vlgmr.msra.gmra.mxu1 %vm1530_vm3, %v12638_v27  ;;  %v5754_v21 = vsel %vm10812_vm15, %v5752_v35, %v5753_v1  ;;  %v5766_v11 = vrot.slane %v5764_v6, 4  ;;  %v8275_v59 = vrot.slane %v12450_v58, 9  ;;  %v5771_v4 = vrot.slane %v12466_v57, 5  ;;  %v14092_v35 = vld [vmem:[#allocation32_spill] sm:$0xff]  ;;  %v14093_v33 = vld [vmem:[#allocation29_spill] sm:$0xff] }
 0x32a   : > { %9449 = vmatpush3.bf16.msra.mxu1 %v12214_v46  ;;  %9380 = vmatprep.mubr.msk.bf16.mxu1 %vm1530_vm3, %v12649_v63  ;;  %v8274_v46 = vrot.slane %v12422_v45, 9  ;;  %v12697_v48 = vcombine.low %v5751_v18, %v5754_v21  ;;  %v5767_v45 = vrot.slane %v12498_v23, 5  ;;  %v5761_v14 = vsel %vm10812_vm15, %v5759_v2, %v5760_v62 }
 0x32b   : > { %9450 = vmatprep.subr.bf16.mxu1 %v9776_v10  ;;  %v5743_v5 = vrot.slane %v12322_v39, 5  ;;  %v12713_v23 = vcombine.low %v5758_v56, %v5761_v14  ;;  %v5774_v53 = vrot.slane %v12524_v15, 5  ;;  %v5772_v57 = vsel %vm10812_vm15, %v8275_v59, %v5771_v4  ;;  %v14096_v14 = vld [vmem:[#allocation37_spill] sm:$0xff]  ;;  %v14108_v39 = vld [vmem:[#allocation36_spill] sm:$0xff] }
 0x32c   : > { %v5765_v60 = vsel %vm10812_vm15, %v8274_v46, %v5764_v6  ;;  %v5768_v36 = vsel %vm10812_vm15, %v5766_v11, %v5767_v45  ;;  %v6354_v9 = vshrl.u32 %v12702_v8, 16  ;;  %v6357_v15 = vshll.u32 %v12702_v8, 16  ;;  %v14094_v6 = vld [vmem:[#allocation38_spill] sm:$0xff] }
 0x32d   : > { %v12721_v58 = vcombine.low %v5765_v60, %v5768_v36  ;;  %v8276_v41 = vrot.slane %v14090_v50, 9  ;;  %v5778_v22 = vrot.slane %v12490_v47, 5  ;;  %v5781_v1 = vrot.slane %v14091_v17, 5  ;;  %v12747_v60 = vld [vmem:[%s9998_s17 + $0xd8] sm:$0xff]  }
 0x32e   : > { %9451 = vmatpush3.bf16.msra.mxu1 %v9776_v10  ;;  %v5773_v10 = vrot.slane %v5771_v4, 4  ;;  %v8277_v37 = vrot.slane %v14092_v35, 9  ;;  %v5785_v46 = vrot.slane %v14093_v33, 5  ;;  %v8278_v21 = vrot.slane %v14094_v6, 9  ;;  %v14098_v17 = vld [vmem:[#allocation25_spill] sm:$0xff] }
 0x32f   : > { %9429 = vmatmul.mubr.msk.bf16.gmra.mxu0 %vm1530_vm3, %v12343_v44  ;;  %9452 = vmatprep.subr.bf16.mxu1 %v9777_v51  ;;  %v5779_v47 = vsel %vm10812_vm15, %v8276_v41, %v5778_v22  ;;  %v5780_v2 = vrot.slane %v5778_v22, 4  ;;  %v5792_v62 = vrot.slane %v12541_v34, 5  ;;  %v5788_v59 = vrot.slane %v14096_v14, 5  ;;  %v14105_v14 = vld [vmem:[#allocation34_spill] sm:$0xff] }
 0x330   : > { %9432 = vmatprep.mubr.msk.bf16.mxu0 %vm1530_vm3, %v14089_v30  ;;  %v5775_v18 = vsel %vm10812_vm15, %v5773_v10, %v5774_v53  ;;  %v5786_v11 = vsel %vm10812_vm15, %v8277_v37, %v5785_v46  ;;  %v5787_v45 = vrot.slane %v5785_v46, 4  ;;  %v12759_v34 = vcombine.low %v12667_v55, %v5726_v13  ;;  %v12776_v55 = vld [vmem:[#allocation3 + $0xc8] sm:$0x1]  ;;  %v14102_v37 = vld [vmem:[#allocation11_spill] sm:$0xff] }
 0x331   : > { %9381 = vmatmul.mubr.msk.bf16.gmra.mxu1 %vm1530_vm3, %v12657_v52  ;;  %v12741_v56 = vcombine.low %v5772_v57, %v5775_v18  ;;  %v5782_v4 = vsel %vm10812_vm15, %v5780_v2, %v5781_v1  ;;  %v5793_v36 = vsel %vm10812_vm15, %v8278_v21, %v5792_v62  ;;  %v5794_v53 = vrot.slane %v5792_v62, 4  ;;  %v14100_v13 = vld [vmem:[#allocation26_spill] sm:$0xff] }
 0x332   : > { %9384 = vmatprep.mubr.msk.bf16.mxu1 %vm1530_vm3, %v12674_v28  ;;  %9453 = vmatpush3.bf16.msra.mxu1 %v9777_v51  ;;  %v6367_v51 = vshrl.u32 %v12728_v54, 16  ;;  %v5795_v57 = vrot.slane %v12579_v29, 5  ;;  %v12761_v10 = vcombine.low %v5779_v47, %v5782_v4  ;;  %v5789_v50 = vsel %vm10812_vm15, %v5787_v45, %v5788_v59  ;;  %v14103_v47 = vld [vmem:[#allocation12_spill] sm:$0xff]  ;;  %v14104_v2 = vld [vmem:[#allocation30_spill] sm:$0xff] }
 0x333   : > { %14095 = vst [vmem:[#allocation39_spill] sm:$0xff] %v12741_v56  ;;  %9454 = vmatprep.subr.bf16.mxu1 %v9781_v40  ;;  %v6356_v41 = vrot.slane %v6354_v9, 4  ;;  %v12765_v22 = vcombine.low %v5730_v0, %v5733_v20  ;;  %v5738_v1 = vrot.slane %v5736_v12, 4  ;;  %v12771_v18 = vcombine.low %v5786_v11, %v5789_v50 }
 0x334   : > { %14097 = vst [vmem:[#allocation41_spill] sm:$0xff] %v12761_v10  ;;  %v5796_v29 = vsel %vm10812_vm15, %v5794_v53, %v5795_v57  ;;  %v6359_v20 = vrot.slane %v6357_v15, 5  ;;  %v6369_v9 = vrot.slane %v6367_v51, 4  ;;  %v5745_v35 = vrot.slane %v5743_v5, 4 }
 0x335   : > { %14099 = vst [vmem:[#allocation42_spill] sm:$0xff] %v12771_v18  ;;  %v12780_v0 = vcombine.low %v5793_v36, %v5796_v29  ;;  %v5739_v33 = vrot.slane %v14102_v37, 5  ;;  %v6373_v21 = vshll.u32 %v12776_v55, 16  ;;  %v5746_v15 = vrot.slane %v14103_v47, 5  ;;  %v14106_v29 = vld [vmem:[#allocation15_spill] sm:$0xff]  ;;  %v9791_v37 = vld [vmem:[%s9998_s17 + $0xe0] sm:$0xff]  }
 0x336   : > { %9455 = vmatpush3.bf16.msra.mxu1 %v9781_v40  ;;  %v6363_v40 = vshll.u32 %v12728_v54, 16  ;;  %v6360_v46 = vor.u32 %v6359_v20, %v6356_v41  ;;  %v8270_v62 = vrot.slane %v14104_v2, 9  ;;  %v8271_v59 = vrot.slane %v14105_v14, 9  ;;  %v14107_v20 = vld [vmem:[#allocation18_spill] sm:$0xff]  ;;  %v14113_v2 = vld [vmem:[#allocation8_spill] sm:$0xff]  ;;  %v14116_v14 = vld [vmem:[#allocation13_spill] sm:$0xff] }
 0x337   : > { %9433 = vmatmul.mubr.msk.bf16.gmra.mxu0 %vm1530_vm3, %v14098_v17  ;;  %9528 = vmatprep.subr.bf16.mxu1 %v12747_v60  ;;  %14101 = vst [vmem:[#allocation43_spill] sm:$0xff] %v12780_v0  ;;  %v5740_v51 = vsel %vm10812_vm15, %v5738_v1, %v5739_v33  ;;  %v5747_v4 = vsel %vm10812_vm15, %v5745_v35, %v5746_v15  ;;  %v6375_v50 = vrot.slane %v6373_v21, 5  ;;  %v9788_v35 = vld [vmem:[%s9998_s17 + $0xf0] sm:$0xff]   ;;  %v9786_v21 = vld [vmem:[%s9998_s17 + $0xc8] sm:$0xff]   ;;  %v9789_v47 = vld [vmem:[%s9998_s17 + $0xc0] sm:$0xff]  }
 0x338   : > { %9436 = vmatprep.mubr.msk.bf16.mxu0 %vm1530_vm3, %v14100_v13  ;;  %v6365_v6 = vrot.slane %v6363_v40, 5  ;;  %v6361_v11 = vrot.slane %v6360_v46, 4  ;;  %v5737_v36 = vsel %vm10812_vm15, %v8270_v62, %v5736_v12  ;;  %v5744_v1 = vsel %vm10812_vm15, %v8271_v59, %v5743_v5  ;;  %v14109_v5 = vld [vmem:[#allocation22_spill] sm:$0xff]  ;;  %v9785_v33 = vld [vmem:[%s9998_s17 + $0xd0] sm:$0xff]   ;;  %v14114_v62 = vld [vmem:[#allocation9_spill] sm:$0xff] }
 0x339   : > { %9385 = vmatmul.mubr.msk.bf16.gmra.mxu1 %vm1530_vm3, %v12759_v34  ;;  %v12804_v41 = vcombine.low %v5737_v36, %v5740_v51  ;;  %v12812_v42 = vcombine.low %v5744_v1, %v5747_v4  ;;  %v14111_v46 = vld [vmem:[#allocation24_spill] sm:$0xff]  ;;  %v12885_v51 = vld [vmem:[%s9998_s17 + $0x118] sm:$0xff]   ;;  %v14117_v36 = vld [vmem:[#allocation31_spill] sm:$0xff] }
 0x33a   : > { %9388 = vmatprep.mubr.msk.bf16.mxu1 %vm1530_vm3, %v12765_v22  ;;  %v6370_v45 = vor.u32 %v6369_v9, %v6365_v6  ;;  %v6366_v53 = vsel %vm10347_vm9, %v6361_v11, %v6365_v6  ;;  %v12834_v9 = vcombine.low %v12702_v8, %v12728_v54  ;;  %v14112_v6 = vld [vmem:[#allocation28_spill] sm:$0xff] }
 0x33c   : > { %v6371_v57 = vrot.slane %v6370_v45, 4  ;;  %v14115_v45 = vld [vmem:[#allocation20_spill] sm:$0xff] }
 0x33e   : > { %v6376_v12 = vsel %vm10347_vm9, %v6371_v57, %v6375_v50  ;;  %v6612_v57 = vrot.slane %v12728_v54, 5 }
 0x33f   : > { %9437 = vmatmul.mubr.msk.bf16.gmra.mxu0 %vm1530_vm3, %v14106_v29  ;;  %v12820_v40 = vcombine.low %v6366_v53, %v6376_v12  ;;  %v14118_v53 = vld [vmem:[#allocation23_spill] sm:$0xff] }
 0x340   : > { %9440 = vmatprep.mubr.msk.bf16.mxu0 %vm1530_vm3, %v14107_v20  ;;  %v6614_v12 = vrot.slane %v6612_v57, 4 }
 0x341   : > { %9389 = vmatmul.mubr.msk.bf16.gmra.mxu1 %vm1530_vm3, %v12804_v41 }
 0x342   : > { %9392 = vmatprep.mubr.msk.bf16.mxu1 %vm1530_vm3, %v12812_v42 }
 0x347   : > { %9441 = vmatmul.mubr.msk.bf16.gmra.mxu0 %vm1530_vm3, %v14108_v39 }
 0x348   : > { %9444 = vmatprep.mubr.msk.bf16.mxu0 %vm1530_vm3, %v14109_v5 }
 0x349   : > { %9393 = vmatmul.mubr.msk.bf16.gmra.mxu1 %vm1530_vm3, %v12697_v48 }
 0x34a   : > { %9396 = vmatprep.mubr.msk.bf16.mxu1 %vm1530_vm3, %v12713_v23 }
 0x34f   : > { %9445 = vmatmul.mubr.msk.bf16.gmra.mxu0 %vm1530_vm3, %v12834_v9 }
 0x350   : > { %9496 = vmatprep.mubr.msk.bf16.mxu0 %vm1530_vm3, %v12638_v27  ;;  %v9790_v27 = vld [vmem:[%s9998_s17 + $0xe8] sm:$0xff]  }
 0x351   : > { %9397 = vmatmul.mubr.msk.bf16.gmra.mxu1 %vm1530_vm3, %v12721_v58 }
 0x352   : > { %9400 = vmatprep.mubr.msk.bf16.mxu1 %vm1530_vm3, %v12741_v56 }
 0x357   : > { %9497 = vmatmul.mubr.msk.bf16.vlgmr.msra.gmra.mxu0 %vm1530_vm3, %v12649_v63 }
 0x358   : > { %9500 = vmatprep.mubr.msk.bf16.mxu0 %vm1530_vm3, %v12657_v52  ;;  %9569 = vmatpush3.bf16.msra.mxu0 %v12629_v43  ;;  %v14110_v43 = vld [vmem:[#allocation19_spill] sm:$0xff] }
 0x359   : > { %9401 = vmatmul.mubr.msk.bf16.gmra.mxu1 %vm1530_vm3, %v12761_v10  ;;  %9570 = vmatprep.subr.bf16.mxu0 %v9788_v35 }
 0x35a   : > { %9404 = vmatprep.mubr.msk.bf16.mxu1 %vm1530_vm3, %v12771_v18 }
 0x35c   : > { %9571 = vmatpush3.bf16.msra.mxu0 %v9788_v35 }
 0x35d   : > { %9572 = vmatprep.subr.bf16.mxu0 %v9790_v27 }
 0x35f   : > { %9501 = vmatmul.mubr.msk.bf16.gmra.mxu0 %vm1530_vm3, %v12674_v28 }
 0x360   : > { %9504 = vmatprep.mubr.msk.bf16.mxu0 %vm1530_vm3, %v12759_v34  ;;  %9573 = vmatpush3.bf16.msra.mxu0 %v9790_v27 }
 0x361   : > { %9405 = vmatmul.mubr.msk.bf16.gmra.mxu1 %vm1530_vm3, %v12780_v0  ;;  %9574 = vmatprep.subr.bf16.mxu0 %v9791_v37 }
 0x362   : > { %9456 = vmatprep.mubr.msk.bf16.mxu1 %vm1530_vm3, %v14110_v43  ;;  %v6615_v43 = vrot.slane %v12776_v55, 5 }
 0x364   : > { %9575 = vmatpush3.bf16.msra.mxu0 %v9791_v37 }
 0x367   : > { %9505 = vmatmul.mubr.msk.bf16.gmra.mxu0 %vm1530_vm3, %v12765_v22  ;;  %v9338_v15 = vpop.f32.mrf.mxu0 }
 0x368   : > { %9508 = vmatprep.mubr.msk.bf16.mxu0 %vm1530_vm3, %v12804_v41 }
 0x369   : > { %9457 = vmatmul.mubr.msk.bf16.vlgmr.msra.gmra.mxu1 %vm1530_vm3, %v14111_v46 }
 0x36a   : > { %9529 = vmatpush3.bf16.msra.mxu1 %v12747_v60  ;;  %9460 = vmatprep.mubr.msk.bf16.mxu1 %vm1530_vm3, %v14112_v6  ;;  %v5542_v60 = vpop.f32.mrf.mxu0 }
 0x36b   : > { %9530 = vmatprep.subr.bf16.mxu1 %v9785_v33 }
 0x36c   : > { %v9339_v11 = vpop.f32.mrf.mxu0 }
 0x36e   : > { %9531 = vmatpush3.bf16.msra.mxu1 %v9785_v33  ;;  %v12896_v59 = vpop.f32.mrf.mxu0 }
 0x36f   : > { %9509 = vmatmul.mubr.msk.bf16.gmra.mxu0 %vm1530_vm3, %v12812_v42  ;;  %9532 = vmatprep.subr.bf16.mxu1 %v9786_v21 }
 0x370   : > { %9512 = vmatprep.mubr.msk.bf16.mxu0 %vm1530_vm3, %v12697_v48 }
 0x371   : > { %9461 = vmatmul.mubr.msk.bf16.gmra.mxu1 %vm1530_vm3, %v14113_v2 }
 0x372   : > { %9464 = vmatprep.mubr.msk.bf16.mxu1 %vm1530_vm3, %v14114_v62  ;;  %9533 = vmatpush3.bf16.msra.mxu1 %v9786_v21  ;;  %v14119_v21 = vld [vmem:[#allocation33_spill] sm:$0xff] }
 0x373   : > { %9534 = vmatprep.subr.bf16.mxu1 %v9789_v47 }
 0x375   : > { %v9342_v4 = vpop.f32.mrf.mxu0 }
 0x376   : > { %9535 = vmatpush3.bf16.msra.mxu1 %v9789_v47  ;;  %v14120_v47 = vld [vmem:[#allocation35_spill] sm:$0xff] }
 0x377   : > { %9513 = vmatmul.mubr.msk.bf16.gmra.mxu0 %vm1530_vm3, %v12713_v23  ;;  %9608 = vmatprep.subr.bf16.mxu1 %v12885_v51  ;;  %v5558_v50 = vpop.f32.mrf.mxu0 }
 0x378   : > { %9516 = vmatprep.mubr.msk.bf16.mxu0 %vm1530_vm3, %v12721_v58 }
 0x379   : > { %9465 = vmatmul.mubr.msk.bf16.gmra.mxu1 %vm1530_vm3, %v14115_v45  ;;  %v9343_v37 = vpop.f32.mrf.mxu0 }
 0x37a   : > { %9468 = vmatprep.mubr.msk.bf16.mxu1 %vm1530_vm3, %v14116_v14 }
 0x37f   : > { %9517 = vmatmul.mubr.msk.bf16.gmra.mxu0 %vm1530_vm3, %v12741_v56 }
 0x380   : > { %9520 = vmatprep.mubr.msk.bf16.mxu0 %vm1530_vm3, %v12761_v10  ;;  %v5561_v10 = vpop.f32.mrf.mxu0 }
 0x381   : > { %9469 = vmatmul.mubr.msk.bf16.gmra.mxu1 %vm1530_vm3, %v14117_v36 }
 0x382   : > { %9472 = vmatprep.mubr.msk.bf16.mxu1 %vm1530_vm3, %v14118_v53 }
 0x385   : > { %v9298_v1 = vpop.f32.mrf.mxu1 }
 0x386   : > { %v12907_v35 = vadd.f32 %v9338_v15, %v9298_v1  ;;  %v8381_v15 = vrot.slane %v12702_v8, 9  ;;  %v6616_v1 = vsel %vm10812_vm15, %v6614_v12, %v6615_v43 }
 0x387   : > { %9521 = vmatmul.mubr.msk.bf16.gmra.mxu0 %vm1530_vm3, %v12771_v18  ;;  %v5229_v27 = vpop.f32.mrf.mxu1 }
 0x388   : > { %9524 = vmatprep.mubr.msk.bf16.mxu0 %vm1530_vm3, %v12780_v0  ;;  %v12914_v33 = vadd.f32 %v5542_v60, %v5229_v27  ;;  %v6613_v55 = vsel %vm10812_vm15, %v8381_v15, %v6612_v57 }
 0x389   : > { %9473 = vmatmul.mubr.msk.bf16.gmra.mxu1 %vm1530_vm3, %v14119_v21  ;;  %v9299_v54 = vpop.f32.mrf.mxu1  ;;  %v12927_v60 = vcombine.low %v6613_v55, %v6616_v1 }
 0x38a   : > { %9476 = vmatprep.mubr.msk.bf16.mxu1 %vm1530_vm3, %v14120_v47  ;;  %v12923_v18 = vadd.f32 %v9339_v11, %v9299_v54  ;;  %v9346_v27 = vpop.f32.mrf.mxu0 }
 0x38b   : > { %14121 = vst [vmem:[#allocation44_spill] sm:$0xff] %v12927_v60  ;;  %v12937_v11 = vpop.f32.mrf.mxu1 }
 0x38c   : > { %v5574_v8 = vpop.f32.mrf.mxu0 }
 0x38e   : > { %v9347_v57 = vpop.f32.mrf.mxu0 }
 0x38f   : > { %9525 = vmatmul.mubr.msk.bf16.gmra.mxu0 %vm1530_vm3, %v12927_v60 }
 0x390   : > { %9576 = vmatprep.mubr.msk.bf16.mxu0 %vm1530_vm3, %v14111_v46  ;;  %v5577_v15 = vpop.f32.mrf.mxu0 }
 0x391   : > { %9477 = vmatmul.mubr.msk.bf16.gmra.mxu1 %vm1530_vm3, %v12577_v38 }
 0x392   : > { %9480 = vmatprep.mubr.msk.bf16.mxu1 %vm1530_vm3, %v12590_v31 }
 0x397   : > { %9577 = vmatmul.mubr.msk.bf16.vlgmr.msra.gmra.mxu0 %vm1530_vm3, %v14112_v6 }
 0x398   : > { %9580 = vmatprep.mubr.msk.bf16.mxu0 %vm1530_vm3, %v14113_v2  ;;  %v9302_v12 = vpop.f32.mrf.mxu1 }
 0x399   : > { %9481 = vmatmul.mubr.msk.bf16.gmra.mxu1 %vm1530_vm3, %v12604_v7  ;;  %v12945_v46 = vadd.f32 %v9342_v4, %v9302_v12  ;;  %v12961_v4 = vld [vmem:[#allocation3 + $0xcc] sm:$0xf] }
 0x39a   : > { %9484 = vmatprep.mubr.msk.bf16.mxu1 %vm1530_vm3, %v12617_v25  ;;  %v5245_v43 = vpop.f32.mrf.mxu1 }
 0x39b   : > { %v12949_v54 = vadd.f32 %v5558_v50, %v5245_v43  ;;  %v9350_v60 = vpop.f32.mrf.mxu0  ;;  %v12963_v50 = vld [vmem:[#allocation3 + $0xd0] sm:$0xf] }
 0x39c   : > { %v9303_v1 = vpop.f32.mrf.mxu1 }
 0x39d   : > { %v12951_v55 = vadd.f32 %v9343_v37, %v9303_v1  ;;  %v12965_v37 = vld [vmem:[#allocation3 + $0xd4] sm:$0x1] }
 0x39e   : > { %v5248_v6 = vpop.f32.mrf.mxu1  ;;  %v7345_v12 = vrot.slane %v12965_v37, 5 }
 0x39f   : > { %9581 = vmatmul.mubr.msk.bf16.gmra.mxu0 %vm1530_vm3, %v14114_v62  ;;  %v12955_v2 = vadd.f32 %v5561_v10, %v5248_v6  ;;  %v8469_v10 = vrot.slane %v12961_v4, 9  ;;  %v7342_v62 = vrot.slane %v12963_v50, 5 }
 0x3a0   : > { %9584 = vmatprep.mubr.msk.bf16.mxu0 %vm1530_vm3, %v14115_v45  ;;  %v5590_v45 = vpop.f32.mrf.mxu0 }
 0x3a1   : > { %9485 = vmatmul.mubr.msk.bf16.gmra.mxu1 %vm1530_vm3, %v12820_v40  ;;  %v12974_v43 = vsel %vm10812_vm15, %v8469_v10, %v7342_v62  ;;  %v7344_v1 = vrot.slane %v7342_v62, 4 }
 0x3a2   : > { %9536 = vmatprep.mubr.msk.bf16.mxu1 %vm1530_vm3, %v12064_v61  ;;  %14122 = vst [vmem:[#allocation45_spill] sm:$0xff] %v12974_v43  ;;  %v9793_v61 = vld [vmem:[%s9998_s17 + $0x110] sm:$0xff]   ;;  %v9351_v0 = vpop.f32.mrf.mxu0 }
 0x3a3   : > { %v12978_v6 = vsel %vm10812_vm15, %v7344_v1, %v7345_v12 }
 0x3a4   : > { %14123 = vst [vmem:[#allocation51_spill] sm:$0xff] %v12978_v6  ;;  %v5593_v24 = vpop.f32.mrf.mxu0 }
 0x3a7   : > { %9585 = vmatmul.mubr.msk.bf16.gmra.mxu0 %vm1530_vm3, %v14116_v14  ;;  %v9794_v14 = vld [vmem:[%s9998_s17 + $0x108] sm:$0xff]  }
 0x3a8   : > { %9588 = vmatprep.mubr.msk.bf16.mxu0 %vm1530_vm3, %v14117_v36 }
 0x3a9   : > { %9537 = vmatmul.mubr.msk.bf16.vlgmr.msra.gmra.mxu1 %vm1530_vm3, %v12103_v3  ;;  %v9795_v3 = vld [vmem:[%s9998_s17 + $0x100] sm:$0xff]  }
 0x3aa   : > { %9609 = vmatpush3.bf16.msra.mxu1 %v12885_v51  ;;  %9540 = vmatprep.mubr.msk.bf16.mxu1 %vm1530_vm3, %v12145_v26 }
 0x3ab   : > { %9610 = vmatprep.subr.bf16.mxu1 %v9793_v61  ;;  %v9354_v1 = vpop.f32.mrf.mxu0 }
 0x3ac   : > { %v9306_v10 = vpop.f32.mrf.mxu1 }
 0x3ad   : > { %v12993_v62 = vadd.f32 %v9346_v27, %v9306_v10  ;;  %v5606_v27 = vpop.f32.mrf.mxu0 }
 0x3ae   : > { %9611 = vmatpush3.bf16.msra.mxu1 %v9793_v61  ;;  %v5261_v12 = vpop.f32.mrf.mxu1 }
 0x3af   : > { %9589 = vmatmul.mubr.msk.bf16.gmra.mxu0 %vm1530_vm3, %v14118_v53  ;;  %v12997_v36 = vadd.f32 %v5574_v8, %v5261_v12  ;;  %9612 = vmatprep.subr.bf16.mxu1 %v9794_v14  ;;  %v9355_v8 = vpop.f32.mrf.mxu0 }
 0x3b0   : > { %9592 = vmatprep.mubr.msk.bf16.mxu0 %vm1530_vm3, %v14119_v21  ;;  %v9307_v26 = vpop.f32.mrf.mxu1  ;;  %v7084_v21 = vshrl.u32 %v12961_v4, 16 }
 0x3b1   : > { %9541 = vmatmul.mubr.msk.bf16.gmra.mxu1 %vm1530_vm3, %v12185_v32  ;;  %v13004_v51 = vadd.f32 %v9347_v57, %v9307_v26  ;;  %v7087_v32 = vshll.u32 %v12961_v4, 16  ;;  %v7097_v57 = vshrl.u32 %v12963_v50, 16 }
 0x3b2   : > { %9544 = vmatprep.mubr.msk.bf16.mxu1 %vm1530_vm3, %v12248_v19  ;;  %v5264_v61 = vpop.f32.mrf.mxu1  ;;  %9613 = vmatpush3.bf16.msra.mxu1 %v9794_v14  ;;  %v7093_v19 = vshll.u32 %v12963_v50, 16 }
 0x3b3   : > { %v13008_v53 = vadd.f32 %v5577_v15, %v5264_v61  ;;  %9614 = vmatprep.subr.bf16.mxu1 %v9795_v3  ;;  %v5609_v15 = vpop.f32.mrf.mxu0  ;;  %v7089_v12 = vrot.slane %v7087_v32, 5 }
 0x3b6   : > { %9615 = vmatpush3.bf16.msra.mxu1 %v9795_v3  ;;  %v7095_v3 = vrot.slane %v7093_v19, 5 }
 0x3b7   : > { %9593 = vmatmul.mubr.msk.bf16.gmra.mxu0 %vm1530_vm3, %v14120_v47  ;;  %v7086_v47 = vrot.slane %v7084_v21, 4  ;;  %v7103_v21 = vshll.u32 %v12965_v37, 16 }
 0x3b8   : > { %9596 = vmatprep.mubr.msk.bf16.mxu0 %vm1530_vm3, %v12577_v38  ;;  %v7099_v38 = vrot.slane %v7097_v57, 4 }
 0x3b9   : > { %9545 = vmatmul.mubr.msk.bf16.gmra.mxu1 %vm1530_vm3, %v12292_v16  ;;  %v9310_v14 = vpop.f32.mrf.mxu1  ;;  %v7105_v19 = vrot.slane %v7103_v21, 5 }
 0x3ba   : > { %9548 = vmatprep.mubr.msk.bf16.mxu1 %vm1530_vm3, %v12343_v44  ;;  %v13022_v10 = vadd.f32 %v9350_v60, %v9310_v14  ;;  %v7090_v44 = vor.u32 %v7089_v12, %v7086_v47  ;;  %v7100_v60 = vor.u32 %v7099_v38, %v7095_v3 }
 0x3bb   : > { %v5277_v26 = vpop.f32.mrf.mxu1 }
 0x3bc   : > { %v9358_v61 = vpop.f32.mrf.mxu0  ;;  %v13024_v56 = vadd.f32 %v5590_v45, %v5277_v26 }
 0x3bd   : > { %v9311_v6 = vpop.f32.mrf.mxu1 }
 0x3be   : > { %v5622_v16 = vpop.f32.mrf.mxu0  ;;  %v13028_v43 = vadd.f32 %v9351_v0, %v9311_v6  ;;  %v7091_v0 = vrot.slane %v7090_v44, 4  ;;  %v7101_v6 = vrot.slane %v7100_v60, 4 }
 0x3bf   : > { %9597 = vmatmul.mubr.msk.bf16.gmra.mxu0 %vm1530_vm3, %v12590_v31  ;;  %v5280_v32 = vpop.f32.mrf.mxu1 }
 0x3c0   : > { %9600 = vmatprep.mubr.msk.bf16.mxu0 %vm1530_vm3, %v12604_v7  ;;  %v9359_v45 = vpop.f32.mrf.mxu0  ;;  %v13037_v57 = vadd.f32 %v5593_v24, %v5280_v32  ;;  %v7106_v24 = vsel %vm10347_vm9, %v7101_v6, %v7105_v19 }
 0x3c1   : > { %9549 = vmatmul.mubr.msk.bf16.gmra.mxu1 %vm1530_vm3, %v14089_v30 }
 0x3c2   : > { %9552 = vmatprep.mubr.msk.bf16.mxu1 %vm1530_vm3, %v14098_v17  ;;  %v5625_v31 = vpop.f32.mrf.mxu0  ;;  %v7096_v17 = vsel %vm10347_vm9, %v7091_v0, %v7095_v3 }
 0x3c3   : > { %v8448_v38 = vcombine.low %v7096_v17, %v7106_v24 }
 0x3c6   : > { %v9362_v14 = vpop.f32.mrf.mxu0 }
 0x3c7   : > { %v9314_v7 = vpop.f32.mrf.mxu1  ;;  %9601 = vmatmul.mubr.msk.bf16.gmra.mxu0 %vm1530_vm3, %v12617_v25 }
 0x3c8   : > { %v13041_v37 = vadd.f32 %v9354_v1, %v9314_v7  ;;  %9604 = vmatprep.mubr.msk.bf16.mxu0 %vm1530_vm3, %v12820_v40  ;;  %v5638_v30 = vpop.f32.mrf.mxu0 }
 0x3c9   : > { %9553 = vmatmul.mubr.msk.bf16.gmra.mxu1 %vm1530_vm3, %v14100_v13  ;;  %v5293_v47 = vpop.f32.mrf.mxu1 }
 0x3ca   : > { %9556 = vmatprep.mubr.msk.bf16.mxu1 %vm1530_vm3, %v14106_v29  ;;  %v13053_v25 = vadd.f32 %v5606_v27, %v5293_v47  ;;  %v9363_v1 = vpop.f32.mrf.mxu0 }
 0x3cb   : > { %v9315_v12 = vpop.f32.mrf.mxu1 }
 0x3cc   : > { %v13055_v40 = vadd.f32 %v9355_v8, %v9315_v12  ;;  %v5641_v26 = vpop.f32.mrf.mxu0 }
 0x3cd   : > { %v5296_v44 = vpop.f32.mrf.mxu1 }
 0x3ce   : > { %v13057_v3 = vadd.f32 %v5609_v15, %v5296_v44 }
 0x3cf   : > { %v9366_v49 = vpop.f32.mrf.mxu0  ;;  %9605 = vmatmul.mubr.msk.bf16.gmra.mxu0 %vm1530_vm3, %v8448_v38 }
 0x3d0   : > { %v9318_v60 = vpop.f32.mrf.mxu1 }
 0x3d1   : > { %v13060_v13 = vadd.f32 %v9358_v61, %v9318_v60  ;;  %9557 = vmatmul.mubr.msk.bf16.gmra.mxu1 %vm1530_vm3, %v14107_v20  ;;  %v5654_v29 = vpop.f32.mrf.mxu0 }
 0x3d2   : > { %9560 = vmatprep.mubr.msk.bf16.mxu1 %vm1530_vm3, %v14108_v39  ;;  %v5309_v27 = vpop.f32.mrf.mxu1 }
 0x3d3   : > { %v13066_v8 = vadd.f32 %v5622_v16, %v5309_v27  ;;  %v9367_v21 = vpop.f32.mrf.mxu0 }
 0x3d4   : > { %v9319_v32 = vpop.f32.mrf.mxu1 }
 0x3d5   : > { %v13068_v15 = vadd.f32 %v9359_v45, %v9319_v32  ;;  %v5657_v0 = vpop.f32.mrf.mxu0 }
 0x3d6   : > { %v5312_v6 = vpop.f32.mrf.mxu1 }
 0x3d7   : > { %v13070_v19 = vadd.f32 %v5625_v31, %v5312_v6  ;;  %v9418_v61 = vpop.f32.mrf.mxu0  ;;  %v8419_v31 = vcombine.low %v12961_v4, %v12963_v50 }
 0x3d9   : > { %v9322_v7 = vpop.f32.mrf.mxu1  ;;  %9561 = vmatmul.mubr.msk.bf16.gmra.mxu1 %vm1530_vm3, %v14109_v5  ;;  %v6194_v20 = vpop.f32.mrf.mxu0 }
 0x3da   : > { %v13074_v17 = vadd.f32 %v9362_v14, %v9322_v7  ;;  %9564 = vmatprep.mubr.msk.bf16.mxu1 %vm1530_vm3, %v12834_v9 }
 0x3db   : > { %v5325_v39 = vpop.f32.mrf.mxu1  ;;  %v9419_v16 = vpop.f32.mrf.mxu0 }
 0x3dc   : > { %v13078_v24 = vadd.f32 %v5638_v30, %v5325_v39 }
 0x3dd   : > { %v9323_v45 = vpop.f32.mrf.mxu1  ;;  %v6197_v47 = vpop.f32.mrf.mxu0 }
 0x3de   : > { %v13082_v12 = vadd.f32 %v9363_v1, %v9323_v45 }
 0x3df   : > { %v5328_v38 = vpop.f32.mrf.mxu1  ;;  %v9422_v44 = vpop.f32.mrf.mxu0 }
 0x3e0   : > { %v13084_v5 = vadd.f32 %v5641_v26, %v5328_v38 }
 0x3e1   : > { %v9326_v14 = vpop.f32.mrf.mxu1  ;;  %9565 = vmatmul.mubr.msk.bf16.gmra.mxu1 %vm1530_vm3, %v8419_v31  ;;  %v6210_v60 = vpop.f32.mrf.mxu0 }
 0x3e2   : > { %v13087_v9 = vadd.f32 %v9366_v49, %v9326_v14  ;;  %9616 = vmatprep.mubr.msk.bf16.mxu1 %vm1530_vm3, %v12649_v63 }
 0x3e3   : > { %v5341_v30 = vpop.f32.mrf.mxu1  ;;  %v9423_v27 = vpop.f32.mrf.mxu0 }
 0x3e4   : > { %v13091_v32 = vadd.f32 %v5654_v29, %v5341_v30 }
 0x3e5   : > { %v9327_v4 = vpop.f32.mrf.mxu1  ;;  %v6213_v50 = vpop.f32.mrf.mxu0 }
 0x3e6   : > { %v13093_v1 = vadd.f32 %v9367_v21, %v9327_v4 }
 0x3e7   : > { %v5344_v6 = vpop.f32.mrf.mxu1  ;;  %v9426_v26 = vpop.f32.mrf.mxu0 }
 0x3e8   : > { %v13095_v7 = vadd.f32 %v5657_v0, %v5344_v6  ;;  %v5546_v0 = vadd.f32 %v12896_v59, %v12937_v11 }
 0x3e9   : > { %v9378_v39 = vpop.f32.mrf.mxu1  ;;  %9617 = vmatmul.mubr.msk.bf16.vlgmr.msra.gmra.mxu1 %vm1530_vm3, %v12657_v52  ;;  %v6226_v49 = vpop.f32.mrf.mxu0 }
 0x3ea   : > { %v6089_v45 = vadd.f32 %v9378_v39, %v12907_v35  ;;  %9620 = vmatprep.mubr.msk.bf16.mxu1 %vm1530_vm3, %v12674_v28 }
 0x3eb   : > { %v5960_v63 = vpop.f32.mrf.mxu1  ;;  %v9427_v29 = vpop.f32.mrf.mxu0 }
 0x3ec   : > { %v6087_v31 = vadd.f32 %v5960_v63, %v12914_v33  ;;  %v13103_v21 = vadd.f32 %v9418_v61, %v6089_v45 }
 0x3ed   : > { %v9379_v38 = vpop.f32.mrf.mxu1  ;;  %v6229_v14 = vpop.f32.mrf.mxu0 }
 0x3ee   : > { %v6090_v30 = vadd.f32 %v9379_v38, %v12923_v18  ;;  %v13108_v52 = vadd.f32 %v6194_v20, %v6087_v31 }
 0x3ef   : > { %v5963_v4 = vpop.f32.mrf.mxu1  ;;  %v9430_v35 = vpop.f32.mrf.mxu0 }
 0x3f0   : > { %v6088_v6 = vadd.f32 %v5963_v4, %v5546_v0  ;;  %v13110_v39 = vadd.f32 %v9419_v16, %v6090_v30 }
 0x3f1   : > { %v9382_v28 = vpop.f32.mrf.mxu1  ;;  %9621 = vmatmul.mubr.msk.bf16.gmra.mxu1 %vm1530_vm3, %v12759_v34  ;;  %v6242_v33 = vpop.f32.mrf.mxu0 }
 0x3f2   : > { %v6093_v61 = vadd.f32 %v9382_v28, %v12945_v46  ;;  %9624 = vmatprep.mubr.msk.bf16.mxu1 %vm1530_vm3, %v12765_v22  ;;  %v13117_v59 = vadd.f32 %v6197_v47, %v6088_v6 }
 0x3f3   : > { %v5976_v18 = vpop.f32.mrf.mxu1  ;;  %v9431_v11 = vpop.f32.mrf.mxu0 }
 0x3f4   : > { %v6091_v20 = vadd.f32 %v5976_v18, %v12949_v54  ;;  %v13120_v45 = vadd.f32 %v9422_v44, %v6093_v61 }
 0x3f5   : > { %v9383_v16 = vpop.f32.mrf.mxu1  ;;  %v6245_v63 = vpop.f32.mrf.mxu0 }
 0x3f6   : > { %v6094_v31 = vadd.f32 %v9383_v16, %v12951_v55  ;;  %v13123_v38 = vadd.f32 %v6210_v60, %v6091_v20 }
 0x3f7   : > { %v5979_v34 = vpop.f32.mrf.mxu1  ;;  %v9434_v0 = vpop.f32.mrf.mxu0 }
 0x3f8   : > { %v6092_v46 = vadd.f32 %v5979_v34, %v12955_v2  ;;  %v13126_v30 = vadd.f32 %v9423_v27, %v6094_v31 }
 0x3f9   : > { %v9386_v22 = vpop.f32.mrf.mxu1  ;;  %9625 = vmatmul.mubr.msk.bf16.gmra.mxu1 %vm1530_vm3, %v12804_v41  ;;  %v6258_v47 = vpop.f32.mrf.mxu0 }
 0x3fa   : > { %v6097_v54 = vadd.f32 %v9386_v22, %v12993_v62  ;;  %9628 = vmatprep.mubr.msk.bf16.mxu1 %vm1530_vm3, %v12812_v42  ;;  %v13133_v44 = vadd.f32 %v6213_v50, %v6092_v46 }
 0x3fb   : > { %v5992_v55 = vpop.f32.mrf.mxu1  ;;  %v9435_v60 = vpop.f32.mrf.mxu0 }
 0x3fc   : > { %v6095_v4 = vadd.f32 %v5992_v55, %v12997_v36  ;;  %v13136_v6 = vadd.f32 %v9426_v26, %v6097_v54 }
 0x3fd   : > { %v9387_v2 = vpop.f32.mrf.mxu1  ;;  %v6261_v27 = vpop.f32.mrf.mxu0 }
 0x3fe   : > { %v6098_v28 = vadd.f32 %v9387_v2, %v13004_v51  ;;  %v13139_v61 = vadd.f32 %v6226_v49, %v6095_v4 }
 0x3ff   : > { %v5995_v41 = vpop.f32.mrf.mxu1  ;;  %v9438_v18 = vpop.f32.mrf.mxu0 }
 0x400   : > { %v6096_v62 = vadd.f32 %v5995_v41, %v13008_v53  ;;  %v13142_v20 = vadd.f32 %v9427_v29, %v6098_v28 }
 0x401   : > { %v9390_v42 = vpop.f32.mrf.mxu1  ;;  %9629 = vmatmul.mubr.msk.bf16.gmra.mxu1 %vm1530_vm3, %v12697_v48  ;;  %v6274_v50 = vpop.f32.mrf.mxu0 }
 0x402   : > { %v6101_v36 = vadd.f32 %v9390_v42, %v13022_v10  ;;  %9632 = vmatprep.mubr.msk.bf16.mxu1 %vm1530_vm3, %v12713_v23  ;;  %v13149_v26 = vadd.f32 %v6229_v14, %v6096_v62 }
 0x403   : > { %v6008_v51 = vpop.f32.mrf.mxu1  ;;  %v9439_v49 = vpop.f32.mrf.mxu0 }
 0x404   : > { %v6099_v16 = vadd.f32 %v6008_v51, %v13024_v56  ;;  %v13152_v31 = vadd.f32 %v9430_v35, %v6101_v36  ;;  %v14124_v35 = vld [vmem:[#allocation39_spill] sm:$0xff]  ;;  %v14125_v36 = vld [vmem:[#allocation41_spill] sm:$0xff] }
 0x405   : > { %v9391_v53 = vpop.f32.mrf.mxu1  ;;  %v6277_v29 = vpop.f32.mrf.mxu0 }
 0x406   : > { %v6102_v34 = vadd.f32 %v9391_v53, %v13028_v43  ;;  %v13155_v46 = vadd.f32 %v6242_v33, %v6099_v16 }
 0x407   : > { %v6011_v48 = vpop.f32.mrf.mxu1  ;;  %v9442_v22 = vpop.f32.mrf.mxu0 }
 0x408   : > { %v6100_v10 = vadd.f32 %v6011_v48, %v13037_v57  ;;  %v13158_v54 = vadd.f32 %v9431_v11, %v6102_v34 }
 0x409   : > { %v9394_v23 = vpop.f32.mrf.mxu1  ;;  %9633 = vmatmul.mubr.msk.bf16.gmra.mxu1 %vm1530_vm3, %v12721_v58  ;;  %v6290_v14 = vpop.f32.mrf.mxu0 }
 0x40a   : > { %v6105_v56 = vadd.f32 %v9394_v23, %v13041_v37  ;;  %9636 = vmatprep.mubr.msk.bf16.mxu1 %vm1530_vm3, %v14124_v35  ;;  %v13165_v55 = vadd.f32 %v6245_v63, %v6100_v10 }
 0x40b   : > { %v6024_v43 = vpop.f32.mrf.mxu1  ;;  %v9443_v33 = vpop.f32.mrf.mxu0 }
 0x40c   : > { %v6103_v4 = vadd.f32 %v6024_v43, %v13053_v25  ;;  %v13168_v2 = vadd.f32 %v9434_v0, %v6105_v56  ;;  %v14126_v0 = vld [vmem:[#allocation42_spill] sm:$0xff]  ;;  %v14127_v43 = vld [vmem:[#allocation43_spill] sm:$0xff] }
 0x40d   : > { %v9395_v57 = vpop.f32.mrf.mxu1  ;;  %v6293_v11 = vpop.f32.mrf.mxu0 }
 0x40e   : > { %v6106_v28 = vadd.f32 %v9395_v57, %v13055_v40  ;;  %v13171_v41 = vadd.f32 %v6258_v47, %v6103_v4  ;;  %v14128_v4 = vld [vmem:[#allocation44_spill] sm:$0xff] }
 0x40f   : > { %v6027_v58 = vpop.f32.mrf.mxu1  ;;  %v9446_v62 = vpop.f32.mrf.mxu0 }
 0x410   : > { %v6104_v37 = vadd.f32 %v6027_v58, %v13057_v3  ;;  %v13174_v42 = vadd.f32 %v9435_v60, %v6106_v28 }
 0x411   : > { %v9398_v63 = vpop.f32.mrf.mxu1  ;;  %9637 = vmatmul.mubr.msk.bf16.gmra.mxu1 %vm1530_vm3, %v14125_v36  ;;  %v6306_v51 = vpop.f32.mrf.mxu0 }
 0x412   : > { %v6109_v25 = vadd.f32 %v9398_v63, %v13060_v13  ;;  %9640 = vmatprep.mubr.msk.bf16.mxu1 %vm1530_vm3, %v14126_v0  ;;  %v13181_v16 = vadd.f32 %v6261_v27, %v6104_v37 }
 0x413   : > { %v6040_v40 = vpop.f32.mrf.mxu1  ;;  %v9447_v47 = vpop.f32.mrf.mxu0 }
 0x414   : > { %v6107_v53 = vadd.f32 %v6040_v40, %v13066_v8  ;;  %v13184_v34 = vadd.f32 %v9438_v18, %v6109_v25  ;;  %v14129_v40 = vld [vmem:[#allocation45_spill] sm:$0xff] }
 0x415   : > { %v9399_v3 = vpop.f32.mrf.mxu1  ;;  %v6309_v60 = vpop.f32.mrf.mxu0 }
 0x416   : > { %v6110_v48 = vadd.f32 %v9399_v3, %v13068_v15  ;;  %v13187_v10 = vadd.f32 %v6274_v50, %v6107_v53  ;;  %v14130_v53 = vld [vmem:[#allocation51_spill] sm:$0xff] }
 0x417   : > { %v6043_v23 = vpop.f32.mrf.mxu1  ;;  %v13189_v56 = vpop.f32.mrf.mxu0 }
 0x418   : > { %v6108_v13 = vadd.f32 %v6043_v23, %v13070_v19  ;;  %v13192_v35 = vadd.f32 %v9439_v49, %v6110_v48 }
 0x419   : > { %v9402_v27 = vpop.f32.mrf.mxu1  ;;  %9641 = vmatmul.mubr.msk.bf16.gmra.mxu1 %vm1530_vm3, %v14127_v43  ;;  %v13196_v8 = vpop.f32.mrf.mxu0 }
 0x41a   : > { %v6113_v18 = vadd.f32 %v9402_v27, %v13074_v17  ;;  %9644 = vmatprep.mubr.msk.bf16.mxu1 %vm1530_vm3, %v14128_v4  ;;  %v13201_v15 = vadd.f32 %v6277_v29, %v6108_v13 }
 0x41b   : > { %v6056_v50 = vpop.f32.mrf.mxu1  ;;  %v13203_v57 = vpop.f32.mrf.mxu0 }
 0x41c   : > { %v6111_v19 = vadd.f32 %v6056_v50, %v13078_v24  ;;  %v13206_v49 = vadd.f32 %v9442_v22, %v6113_v18  ;;  %v14131_v24 = vcombine.low %v14129_v40, %v14130_v53 }
 0x41d   : > { %v9403_v28 = vpop.f32.mrf.mxu1  ;;  %v13208_v58 = vpop.f32.mrf.mxu0 }
 0x41e   : > { %v6114_v37 = vadd.f32 %v9403_v28, %v13082_v12  ;;  %v13211_v63 = vadd.f32 %v6290_v14, %v6111_v19 }
 0x41f   : > { %v6059_v17 = vpop.f32.mrf.mxu1  ;;  %v13213_v36 = vpop.f32.mrf.mxu0 }
 0x420   : > { %v6112_v29 = vadd.f32 %v6059_v17, %v13084_v5  ;;  %v13216_v25 = vadd.f32 %v9443_v33, %v6114_v37 }
 0x421   : > { %v9406_v0 = vpop.f32.mrf.mxu1  ;;  %9645 = vmatmul.mubr.msk.bf16.gmra.mxu1 %vm1530_vm3, %v14131_v24  ;;  %v13222_v22 = vpop.f32.mrf.mxu0 }
 0x422   : > { %v6117_v3 = vadd.f32 %v9406_v0, %v13087_v9  ;;  %v13225_v12 = vadd.f32 %v6293_v11, %v6112_v29 }
 0x423   : > { %v6072_v14 = vpop.f32.mrf.mxu1  ;;  %v13227_v48 = vpop.f32.mrf.mxu0 }
 0x424   : > { %v6115_v23 = vadd.f32 %v6072_v14, %v13091_v32  ;;  %v13230_v5 = vadd.f32 %v9446_v62, %v6117_v3 }
 0x425   : > { %v9407_v33 = vpop.f32.mrf.mxu1  ;;  %v13232_v13 = vpop.f32.mrf.mxu0 }
 0x426   : > { %v6118_v27 = vadd.f32 %v9407_v33, %v13093_v1  ;;  %v13235_v43 = vadd.f32 %v6306_v51, %v6115_v23 }
 0x427   : > { %v6075_v18 = vpop.f32.mrf.mxu1  ;;  %v13237_v4 = vpop.f32.mrf.mxu0 }
 0x428   : > { %v6116_v9 = vadd.f32 %v6075_v18, %v13095_v7  ;;  %v13240_v11 = vadd.f32 %v9447_v47, %v6118_v27 }
 0x429   : > { %v9458_v50 = vpop.f32.mrf.mxu1  ;;  %v13242_v19 = vpop.f32.mrf.mxu0 }
 0x42a   : > { %v13245_v32 = vadd.f32 %v9458_v50, %v13103_v21  ;;  %v13247_v62 = vadd.f32 %v6309_v60, %v6116_v9 }
 0x42b   : > { %v6450_v28 = vpop.f32.mrf.mxu1  ;;  %v13249_v37 = vpop.f32.mrf.mxu0 }
 0x42c   : > { %v13252_v1 = vadd.f32 %v6450_v28, %v13108_v52 }
 0x42d   : > { %v9459_v51 = vpop.f32.mrf.mxu1  ;;  %v13254_v17 = vpop.f32.mrf.mxu0 }
 0x42e   : > { %v13257_v7 = vadd.f32 %v9459_v51, %v13110_v39 }
 0x42f   : > { %v6453_v47 = vpop.f32.mrf.mxu1  ;;  %v13259_v29 = vpop.f32.mrf.mxu0 }
 0x430   : > { %v13262_v21 = vadd.f32 %v6453_v47, %v13117_v59 }
 0x431   : > { %v9462_v60 = vpop.f32.mrf.mxu1  ;;  %v13264_v0 = vpop.f32.mrf.mxu0 }
 0x432   : > { %v13267_v40 = vadd.f32 %v9462_v60, %v13120_v45 }
 0x433   : > { %v6466_v52 = vpop.f32.mrf.mxu1  ;;  %v13269_v53 = vpop.f32.mrf.mxu0 }
 0x434   : > { %14132 = vst [vmem:[#allocation46_spill] sm:$0xff] %v13269_v53  ;;  %v13272_v24 = vadd.f32 %v6466_v52, %v13123_v38 }
 0x435   : > { %v9463_v39 = vpop.f32.mrf.mxu1  ;;  %v13274_v3 = vpop.f32.mrf.mxu0 }
 0x436   : > { %14133 = vst [vmem:[#allocation47_spill] sm:$0xff] %v13274_v3  ;;  %v13277_v14 = vadd.f32 %v9463_v39, %v13126_v30 }
 0x437   : > { %v6469_v59 = vpop.f32.mrf.mxu1  ;;  %v13279_v23 = vpop.f32.mrf.mxu0 }
 0x438   : > { %14134 = vst [vmem:[#allocation48_spill] sm:$0xff] %v13279_v23  ;;  %v13282_v33 = vadd.f32 %v6469_v59, %v13133_v44 }
 0x439   : > { %v9466_v45 = vpop.f32.mrf.mxu1  ;;  %v13284_v27 = vpop.f32.mrf.mxu0 }
 0x43a   : > { %14135 = vst [vmem:[#allocation55_spill] sm:$0xff] %v13284_v27  ;;  %v13287_v18 = vadd.f32 %v9466_v45, %v13136_v6 }
 0x43b   : > { %v6482_v38 = vpop.f32.mrf.mxu1  ;;  %v13289_v9 = vpop.f32.mrf.mxu0 }
 0x43c   : > { %14136 = vst [vmem:[#allocation49_spill] sm:$0xff] %v13289_v9  ;;  %v13292_v50 = vadd.f32 %v6482_v38, %v13139_v61 }
 0x43d   : > { %v9467_v30 = vpop.f32.mrf.mxu1  ;;  %v13294_v28 = vpop.f32.mrf.mxu0 }
 0x43e   : > { %14137 = vst [vmem:[#allocation57_spill] sm:$0xff] %v13294_v28  ;;  %v13297_v51 = vadd.f32 %v9467_v30, %v13142_v20 }
 0x43f   : > { %v6485_v44 = vpop.f32.mrf.mxu1  ;;  %v13299_v47 = vpop.f32.mrf.mxu0 }
 0x440   : > { %14138 = vst [vmem:[#allocation50_spill] sm:$0xff] %v13299_v47  ;;  %v13302_v60 = vadd.f32 %v6485_v44, %v13149_v26 }
 0x441   : > { %v9470_v6 = vpop.f32.mrf.mxu1  ;;  %v13304_v52 = vpop.f32.mrf.mxu0 }
 0x442   : > { %14139 = vst [vmem:[#allocation52_spill] sm:$0xff] %v13304_v52  ;;  %v13307_v39 = vadd.f32 %v9470_v6, %v13152_v31 }
 0x443   : > { %v6498_v61 = vpop.f32.mrf.mxu1  ;;  %v13309_v59 = vpop.f32.mrf.mxu0 }
 0x444   : > { %14140 = vst [vmem:[#allocation60_spill] sm:$0xff] %v13309_v59  ;;  %v13312_v45 = vadd.f32 %v6498_v61, %v13155_v46 }
 0x445   : > { %v9471_v20 = vpop.f32.mrf.mxu1  ;;  %v13314_v38 = vpop.f32.mrf.mxu0 }
 0x446   : > { %14141 = vst [vmem:[#allocation53_spill] sm:$0xff] %v13314_v38  ;;  %v13317_v30 = vadd.f32 %v9471_v20, %v13158_v54 }
 0x447   : > { %v6501_v26 = vpop.f32.mrf.mxu1  ;;  %v13322_v47 = vpop.f32.mrf.mxu0 }
 0x448   : > { %14142 = vst [vmem:[#allocation61_spill] sm:$0xff] %v13317_v30  ;;  %v13320_v44 = vadd.f32 %v6501_v26, %v13165_v55  ;;  %14144 = vst [vmem:[#allocation63_spill] sm:$0xff] %v13322_v47 }
 0x449   : > { %v9474_v52 = vpop.f32.mrf.mxu1  ;;  %v13330_v59 = vpop.f32.mrf.mxu0 }
 0x44a   : > { %14143 = vst [vmem:[#allocation54_spill] sm:$0xff] %v13320_v44  ;;  %v13325_v31 = vadd.f32 %v9474_v52, %v13168_v2  ;;  %14147 = vst [vmem:[#allocation59_spill] sm:$0xff] %v13330_v59 }
 0x44b   : > { %v6514_v6 = vpop.f32.mrf.mxu1  ;;  %v13338_v38 = vpop.f32.mrf.mxu0 }
 0x44c   : > { %14145 = vst [vmem:[#allocation56_spill] sm:$0xff] %v13325_v31  ;;  %v13328_v46 = vadd.f32 %v6514_v6, %v13171_v41  ;;  %14150 = vst [vmem:[#allocation16_spill] sm:$0xff] %v13338_v38 }
 0x44d   : > { %v9475_v61 = vpop.f32.mrf.mxu1  ;;  %v13346_v47 = vpop.f32.mrf.mxu0 }
 0x44e   : > { %14146 = vst [vmem:[#allocation58_spill] sm:$0xff] %v13328_v46  ;;  %v13333_v54 = vadd.f32 %v9475_v61, %v13174_v42  ;;  %14153 = vst [vmem:[#allocation6_spill] sm:$0xff] %v13346_v47 }
 0x44f   : > { %v6517_v20 = vpop.f32.mrf.mxu1 }
 0x450   : > { %14148 = vst [vmem:[#allocation62_spill] sm:$0xff] %v13333_v54  ;;  %v13336_v55 = vadd.f32 %v6517_v20, %v13181_v16  ;;  %v13354_v20 = vpop.f32.mrf.mxu0 }
 0x451   : > { %v9478_v26 = vpop.f32.mrf.mxu1  ;;  %14156 = vst [vmem:[#allocation4_spill] sm:$0xff] %v13354_v20 }
 0x452   : > { %14149 = vst [vmem:[#allocation64_spill] sm:$0xff] %v13336_v55  ;;  %v13341_v2 = vadd.f32 %v9478_v26, %v13184_v34 }
 0x453   : > { %v6530_v52 = vpop.f32.mrf.mxu1 }
 0x454   : > { %14151 = vst [vmem:[#allocation14_spill] sm:$0xff] %v13341_v2  ;;  %v13344_v41 = vadd.f32 %v6530_v52, %v13187_v10  ;;  %v13362_v52 = vpop.f32.mrf.mxu0 }
 0x455   : > { %v9479_v6 = vpop.f32.mrf.mxu1  ;;  %14159 = vst [vmem:[#allocation17_spill] sm:$0xff] %v13362_v52 }
 0x456   : > { %14152 = vst [vmem:[#allocation21_spill] sm:$0xff] %v13344_v41  ;;  %v13349_v42 = vadd.f32 %v9479_v6, %v13192_v35 }
 0x457   : > { %v6533_v61 = vpop.f32.mrf.mxu1 }
 0x458   : > { %14154 = vst [vmem:[#allocation5_spill] sm:$0xff] %v13349_v42  ;;  %v13352_v16 = vadd.f32 %v6533_v61, %v13201_v15  ;;  %v13370_v61 = vpop.f32.mrf.mxu0 }
 0x459   : > { %v9482_v38 = vpop.f32.mrf.mxu1  ;;  %14162 = vst [vmem:[#allocation29_spill] sm:$0xff] %v13370_v61 }
 0x45a   : > { %14155 = vst [vmem:[#allocation7_spill] sm:$0xff] %v13352_v16  ;;  %v13357_v34 = vadd.f32 %v9482_v38, %v13206_v49 }
 0x45b   : > { %v6546_v26 = vpop.f32.mrf.mxu1 }
 0x45c   : > { %14157 = vst [vmem:[#allocation27_spill] sm:$0xff] %v13357_v34  ;;  %v13360_v10 = vadd.f32 %v6546_v26, %v13211_v63  ;;  %v13378_v26 = vpop.f32.mrf.mxu0 }
 0x45d   : > { %v9483_v47 = vpop.f32.mrf.mxu1  ;;  %14165 = vst [vmem:[#allocation25_spill] sm:$0xff] %v13378_v26 }
 0x45e   : > { %14158 = vst [vmem:[#allocation10_spill] sm:$0xff] %v13360_v10  ;;  %v13365_v35 = vadd.f32 %v9483_v47, %v13216_v25 }
 0x45f   : > { %v6549_v6 = vpop.f32.mrf.mxu1 }
 0x460   : > { %14160 = vst [vmem:[#allocation40_spill] sm:$0xff] %v13365_v35  ;;  %v13368_v15 = vadd.f32 %v6549_v6, %v13225_v12  ;;  %v9578_v6 = vpop.f32.mrf.mxu0 }
 0x461   : > { %v9486_v20 = vpop.f32.mrf.mxu1 }
 0x462   : > { %14161 = vst [vmem:[#allocation32_spill] sm:$0xff] %v13368_v15  ;;  %v13373_v49 = vadd.f32 %v9486_v20, %v13230_v5  ;;  %v7180_v35 = vpop.f32.mrf.mxu0 }
 0x463   : > { %v6562_v38 = vpop.f32.mrf.mxu1 }
 0x464   : > { %14163 = vst [vmem:[#allocation38_spill] sm:$0xff] %v13373_v49  ;;  %v13376_v63 = vadd.f32 %v6562_v38, %v13235_v43  ;;  %v9579_v49 = vpop.f32.mrf.mxu0 }
 0x465   : > { %v9487_v52 = vpop.f32.mrf.mxu1 }
 0x466   : > { %14164 = vst [vmem:[#allocation37_spill] sm:$0xff] %v13376_v63  ;;  %v13381_v25 = vadd.f32 %v9487_v52, %v13240_v11  ;;  %v13386_v38 = vpop.f32.mrf.mxu0 }
 0x467   : > { %v6565_v47 = vpop.f32.mrf.mxu1 }
 0x468   : > { %14166 = vst [vmem:[#allocation26_spill] sm:$0xff] %v13381_v25  ;;  %v13384_v12 = vadd.f32 %v6565_v47, %v13247_v62  ;;  %v13392_v11 = vpop.f32.mrf.mxu0 }
 0x469   : > { %v9538_v61 = vpop.f32.mrf.mxu1 }
 0x46a   : > { %14167 = vst [vmem:[#allocation11_spill] sm:$0xff] %v13384_v12  ;;  %v13398_v47 = vpop.f32.mrf.mxu0 }
 0x46b   : > { %v6924_v15 = vpop.f32.mrf.mxu1 }
 0x46c   : > { %v13404_v10 = vpop.f32.mrf.mxu0 }
 0x46d   : > { %v9539_v5 = vpop.f32.mrf.mxu1 }
 0x46e   : > { %v13410_v42 = vpop.f32.mrf.mxu0 }
 0x46f   : > { %v6927_v20 = vpop.f32.mrf.mxu1 }
 0x470   : > { %v13416_v28 = vpop.f32.mrf.mxu0 }
 0x471   : > { %v9542_v59 = vpop.f32.mrf.mxu1 }
 0x472   : > { %v13422_v54 = vpop.f32.mrf.mxu0 }
 0x473   : > { %v6940_v43 = vpop.f32.mrf.mxu1 }
 0x474   : > { %v13428_v23 = vpop.f32.mrf.mxu0 }
 0x475   : > { %v13388_v26 = vpop.f32.mrf.mxu1 }
 0x477   : > { %v13390_v63 = vpop.f32.mrf.mxu1 }
 0x479   : > { %v13394_v52 = vpop.f32.mrf.mxu1 }
 0x47b   : > { %v13396_v62 = vpop.f32.mrf.mxu1 }
 0x47d   : > { %v13400_v12 = vpop.f32.mrf.mxu1 }
 0x47f   : > { %v13402_v25 = vpop.f32.mrf.mxu1 }
 0x481   : > { %v13406_v34 = vpop.f32.mrf.mxu1 }
 0x483   : > { %v13408_v16 = vpop.f32.mrf.mxu1 }
 0x485   : > { %v13412_v41 = vpop.f32.mrf.mxu1 }
 0x486   : > { %14168 = vst [vmem:[#allocation12_spill] sm:$0xff] %v13412_v41  ;;  %v13434_v41 = vpop.f32.mrf.mxu0 }
 0x487   : > { %v13414_v2 = vpop.f32.mrf.mxu1 }
 0x488   : > { %14169 = vst [vmem:[#allocation30_spill] sm:$0xff] %v13414_v2 }
 0x489   : > { %v13418_v55 = vpop.f32.mrf.mxu1 }
 0x48a   : > { %14170 = vst [vmem:[#allocation34_spill] sm:$0xff] %v13418_v55  ;;  %v13440_v55 = vpop.f32.mrf.mxu0 }
 0x48b   : > { %v13420_v9 = vpop.f32.mrf.mxu1  ;;  %14178 = vst [vmem:[#allocation8_spill] sm:$0xff] %v13440_v55 }
 0x48c   : > { %14171 = vst [vmem:[#allocation15_spill] sm:$0xff] %v13420_v9 }
 0x48d   : > { %v13424_v27 = vpop.f32.mrf.mxu1 }
 0x48e   : > { %14172 = vst [vmem:[#allocation18_spill] sm:$0xff] %v13424_v27  ;;  %v13446_v27 = vpop.f32.mrf.mxu0 }
 0x48f   : > { %v13426_v46 = vpop.f32.mrf.mxu1  ;;  %14181 = vst [vmem:[#allocation13_spill] sm:$0xff] %v13446_v27 }
 0x490   : > { %14173 = vst [vmem:[#allocation36_spill] sm:$0xff] %v13426_v46 }
 0x491   : > { %v13430_v31 = vpop.f32.mrf.mxu1 }
 0x492   : > { %14174 = vst [vmem:[#allocation22_spill] sm:$0xff] %v13430_v31  ;;  %v13452_v31 = vpop.f32.mrf.mxu0 }
 0x493   : > { %v13432_v3 = vpop.f32.mrf.mxu1  ;;  %14184 = vst [vmem:[#allocation33_spill] sm:$0xff] %v13452_v31 }
 0x494   : > { %14175 = vst [vmem:[#allocation19_spill] sm:$0xff] %v13432_v3 }
 0x495   : > { %v13436_v2 = vpop.f32.mrf.mxu1 }
 0x496   : > { %14176 = vst [vmem:[#allocation24_spill] sm:$0xff] %v13436_v2 }
 0x497   : > { %v13438_v44 = vpop.f32.mrf.mxu1 }
 0x498   : > { %14177 = vst [vmem:[#allocation28_spill] sm:$0xff] %v13438_v44  ;;  %v6819_v44 = vadd.f32 %v13189_v56, %v13245_v32  ;;  %v6818_v56 = vadd.f32 %v13208_v58, %v13262_v21  ;;  %v6821_v58 = vadd.f32 %v13222_v22, %v13272_v24  ;;  %v6822_v24 = vadd.f32 %v13232_v13, %v13282_v33 }
 0x499   : > { %v13442_v9 = vpop.f32.mrf.mxu1 }
 0x49a   : > { %14179 = vst [vmem:[#allocation9_spill] sm:$0xff] %v13442_v9  ;;  %v7053_v55 = vadd.f32 %v9538_v61, %v6819_v44  ;;  %v13462_v9 = vpop.f32.mrf.mxu0  ;;  %v6823_v44 = vadd.f32 %v13213_v36, %v13267_v40 }
 0x49b   : > { %v13444_v53 = vpop.f32.mrf.mxu1 }
 0x49c   : > { %14180 = vst [vmem:[#allocation20_spill] sm:$0xff] %v13444_v53  ;;  %v6817_v53 = vadd.f32 %v13196_v8, %v13252_v1  ;;  %v7309_v32 = vadd.f32 %v9578_v6, %v7053_v55  ;;  %v13474_v61 = vpop.f32.mrf.mxu0  ;;  %v13481_v1 = vld [vmem:[%s299_s11] ss:$0 sm:$0xff]  ;;  %v6824_v6 = vadd.f32 %v13227_v48, %v13277_v14 }
 0x49d   : > { %v13448_v46 = vpop.f32.mrf.mxu1  ;;  %v9840_v14 = vld [vmem:[%s10003_s28] sm:$0xff] }
 0x49e   : > { %14182 = vst [vmem:[#allocation31_spill] sm:$0xff] %v13448_v46  ;;  %v7051_v46 = vadd.f32 %v6924_v15, %v6817_v53  ;;  %v7055_v15 = vadd.f32 %v6940_v43, %v6821_v58  ;;  %v7058_v48 = vadd.f32 %v13388_v26, %v6824_v6  ;;  %v9841_v26 = vld [vmem:[%s10003_s28 + $0x18] sm:$0xff] }
 0x49f   : > { %v13450_v30 = vpop.f32.mrf.mxu1 }
 0x4a0   : > { %14183 = vst [vmem:[#allocation23_spill] sm:$0xff] %v13450_v30  ;;  %v6820_v30 = vadd.f32 %v13203_v57, %v13257_v7  ;;  %v7052_v57 = vadd.f32 %v6927_v20, %v6818_v56  ;;  %v7307_v53 = vadd.f32 %v7180_v35, %v7051_v46  ;;  %v9839_v56 = vld [vmem:[%s10003_s28 + $0x10] sm:$0xff]  ;;  %v7311_v33 = vadd.f32 %v13398_v47, %v7055_v15  ;;  %v9842_v47 = vld [vmem:[%s10003_s28 + $0x8] sm:$0xff] }
 0x4a1   : > { %v13454_v3 = vpop.f32.mrf.mxu1 }
 0x4a2   : > { %14185 = vst [vmem:[#allocation35_spill] sm:$0xff] %v13454_v3  ;;  %v7054_v3 = vadd.f32 %v9539_v5, %v6820_v30  ;;  %v7057_v30 = vadd.f32 %v9542_v59, %v6823_v44  ;;  %v13488_v5 = vpop.f32.mrf.mxu0  ;;  %v7308_v22 = vadd.f32 %v13386_v38, %v7052_v57  ;;  %v6827_v38 = vadd.f32 %v13237_v4, %v13287_v18 }
 0x4a3   : > { %v13458_v2 = vpop.f32.mrf.mxu1  ;;  %v6825_v4 = vadd.f32 %v13242_v19, %v13292_v50  ;;  %v9843_v50 = vld [vmem:[%s10003_s28 + $0x30] sm:$0xff] }
 0x4a4   : > { %v7310_v55 = vadd.f32 %v9579_v49, %v7054_v3  ;;  %v7313_v49 = vadd.f32 %v13392_v11, %v7057_v30  ;;  %v7056_v11 = vadd.f32 %v13390_v63, %v6822_v24  ;;  %v7061_v30 = vadd.f32 %v13394_v52, %v6827_v38 }
 0x4a5   : > { %v13464_v27 = vpop.f32.mrf.mxu1  ;;  %v6828_v52 = vadd.f32 %v13249_v37, %v13297_v51 }
 0x4a6   : > { %v7317_v37 = vadd.f32 %v13416_v28, %v7061_v30  ;;  %v14189_v30 = vld [vmem:[#allocation47_spill] sm:$0xff] }
 0x4a7   : > { %v13468_v31 = vpop.f32.mrf.mxu1  ;;  %v7062_v51 = vadd.f32 %v13400_v12, %v6828_v52  ;;  %v9845_v12 = vld [vmem:[%s10003_s28 + $0x38] sm:$0xff] }
 0x4a9   : > { %v9618_v8 = vpop.f32.mrf.mxu1 }
 0x4aa   : > { %v7549_v7 = vadd.f32 %v9618_v8, %v7309_v32  ;;  %v13503_v8 = vpop.f32.mrf.mxu0 }
 0x4ab   : > { %v7420_v21 = vpop.f32.mrf.mxu1 }
 0x4ac   : > { %v7588_v36 = vadd.f32 %v13481_v1, %v7549_v7  ;;  %v7547_v40 = vadd.f32 %v7420_v21, %v7307_v53 }
 0x4ad   : > { %v9619_v20 = vpop.f32.mrf.mxu1 }
 0x4ae   : > { %v7620_v46 = vadd.f32 %v9839_v56, %v7588_v36  ;;  %v7586_v59 = vadd.f32 %v13481_v1, %v7547_v40  ;;  %v7550_v35 = vadd.f32 %v9619_v20, %v7310_v55  ;;  %v7314_v36 = vadd.f32 %v13404_v10, %v7058_v48  ;;  %v13522_v55 = vpop.f32.mrf.mxu0 }
 0x4af   : > { %v7423_v3 = vpop.f32.mrf.mxu1  ;;  %v7059_v40 = vadd.f32 %v13396_v62, %v6825_v4  ;;  %v7312_v56 = vadd.f32 %v13410_v42, %v7056_v11  ;;  %v6826_v10 = vadd.f32 %v13254_v17, %v13302_v60  ;;  %v6831_v42 = vadd.f32 %v13259_v29, %v13307_v39 }
 0x4b0   : > { %7652 = vst.msk [vmem:[%s10003_s28 + $0x10] sm:$0xff] %vm1530_vm3, %v7620_v46  ;;  %v7618_v43 = vadd.f32 %v9840_v14, %v7586_v59  ;;  %v7589_v32 = vadd.f32 %v13481_v1, %v7550_v35  ;;  %v7548_v44 = vadd.f32 %v7423_v3, %v7308_v22  ;;  %v9844_v46 = vld [vmem:[%s10003_s28 + $0x20] sm:$0xff]  ;;  %v13539_v24 = vpop.f32.mrf.mxu0  ;;  %v6829_v29 = vadd.f32 %v13264_v0, %v13312_v45  ;;  %v9847_v45 = vld [vmem:[%s10003_s28 + $0x50] sm:$0xff] }
 0x4b1   : > { %v9622_v13 = vpop.f32.mrf.mxu1  ;;  %v7315_v60 = vadd.f32 %v13422_v54, %v7059_v40  ;;  %v7060_v28 = vadd.f32 %v13402_v25, %v6826_v10  ;;  %v7065_v14 = vadd.f32 %v13406_v34, %v6831_v42  ;;  %v9846_v54 = vld [vmem:[%s10003_s28 + $0x28] sm:$0xff]  ;;  %v14195_v10 = vld [vmem:[#allocation30_spill] sm:$0xff] }
 0x4b2   : > { %7650 = vst.msk [vmem:[%s10003_s28] sm:$0xff] %vm1530_vm3, %v7618_v43  ;;  %v7621_v57 = vadd.f32 %v9841_v26, %v7589_v32  ;;  %v7587_v7 = vadd.f32 %v13481_v1, %v7548_v44  ;;  %v7553_v53 = vadd.f32 %v9622_v13, %v7313_v49  ;;  %v7318_v44 = vadd.f32 %v13428_v23, %v7062_v51  ;;  %v14186_v13 = vld [vmem:[#allocation61_spill] sm:$0xff]  ;;  %v13558_v11 = vpop.f32.mrf.mxu0  ;;  %v14188_v23 = vld [vmem:[#allocation54_spill] sm:$0xff] }
 0x4b3   : > { %v7436_v18 = vpop.f32.mrf.mxu1  ;;  %v7063_v38 = vadd.f32 %v13408_v16, %v6829_v29  ;;  %v6830_v16 = vadd.f32 %v14189_v30, %v14188_v23  ;;  %v14197_v42 = vld [vmem:[#allocation58_spill] sm:$0xff] }
 0x4b4   : > { %7653 = vst.msk [vmem:[%s10003_s28 + $0x18] sm:$0xff] %vm1530_vm3, %v7621_v57  ;;  %v7619_v58 = vadd.f32 %v9842_v47, %v7587_v7  ;;  %v7592_v63 = vadd.f32 %v13481_v1, %v7553_v53  ;;  %v7551_v21 = vadd.f32 %v7436_v18, %v7311_v33  ;;  %v14187_v33 = vld [vmem:[#allocation46_spill] sm:$0xff]  ;;  %v7316_v53 = vadd.f32 %v13434_v41, %v7060_v28  ;;  %v14190_v18 = vld [vmem:[#allocation8_spill] sm:$0xff] }
 0x4b5   : > { %v9623_v19 = vpop.f32.mrf.mxu1  ;;  %v6832_v34 = vadd.f32 %v14187_v33, %v14186_v13  ;;  %v7321_v47 = vadd.f32 %v14190_v18, %v7065_v14  ;;  %v14193_v41 = vld [vmem:[#allocation48_spill] sm:$0xff]  ;;  %v14199_v14 = vld [vmem:[#allocation33_spill] sm:$0xff]  ;;  %v14205_v30 = vld [vmem:[#allocation18_spill] sm:$0xff] }
 0x4b6   : > { %7651 = vst.msk [vmem:[%s10003_s28 + $0x8] sm:$0xff] %vm1530_vm3, %v7619_v58  ;;  %v7624_v15 = vadd.f32 %v9843_v50, %v7592_v63  ;;  %v7590_v6 = vadd.f32 %v13481_v1, %v7551_v21  ;;  %v7554_v20 = vadd.f32 %v9623_v19, %v7314_v36  ;;  %v14191_v58 = vld [vmem:[#allocation12_spill] sm:$0xff]  ;;  %v9848_v21 = vld [vmem:[%s10003_s28 + $0x40] sm:$0xff] }
 0x4b7   : > { %v7439_v62 = vpop.f32.mrf.mxu1  ;;  %v7066_v63 = vadd.f32 %v14191_v58, %v6832_v34  ;;  %v14192_v19 = vld [vmem:[#allocation56_spill] sm:$0xff] }
 0x4b8   : > { %7656 = vst.msk [vmem:[%s10003_s28 + $0x30] sm:$0xff] %vm1530_vm3, %v7624_v15  ;;  %v7622_v59 = vadd.f32 %v9844_v46, %v7590_v6  ;;  %v7593_v35 = vadd.f32 %v13481_v1, %v7554_v20  ;;  %v7552_v22 = vadd.f32 %v7439_v62, %v7312_v56  ;;  %v6835_v50 = vadd.f32 %v14193_v41, %v14192_v19  ;;  %v13575_v15 = vpop.f32.mrf.mxu0  ;;  %v14194_v20 = vld [vmem:[#allocation13_spill] sm:$0xff]  ;;  %v9851_v13 = vld [vmem:[%s10003_s28 + $0x70] sm:$0xff] }
 0x4b9   : > { %v9626_v17 = vpop.f32.mrf.mxu1  ;;  %v7319_v56 = vadd.f32 %v14194_v20, %v7063_v38  ;;  %v7064_v62 = vadd.f32 %v14195_v10, %v6830_v16  ;;  %v7322_v29 = vadd.f32 %v14199_v14, %v7066_v63  ;;  %v9853_v41 = vld [vmem:[%s10003_s28 + $0x78] sm:$0xff]  ;;  %v9855_v14 = vld [vmem:[%s10003_s28 + $0x90] sm:$0xff] }
 0x4ba   : > { %7654 = vst.msk [vmem:[%s10003_s28 + $0x20] sm:$0xff] %vm1530_vm3, %v7622_v59  ;;  %v7625_v3 = vadd.f32 %v9845_v12, %v7593_v35  ;;  %v7591_v49 = vadd.f32 %v13481_v1, %v7552_v22  ;;  %v7557_v48 = vadd.f32 %v9626_v17, %v7317_v37  ;;  %v9849_v37 = vld [vmem:[%s10003_s28 + $0x58] sm:$0xff]  ;;  %v14196_v35 = vld [vmem:[#allocation34_spill] sm:$0xff]  ;;  %v14198_v17 = vld [vmem:[#allocation55_spill] sm:$0xff] }
 0x4bb   : > { %v7452_v39 = vpop.f32.mrf.mxu1  ;;  %v7069_v22 = vadd.f32 %v14196_v35, %v6835_v50  ;;  %v9850_v12 = vld [vmem:[%s10003_s28 + $0x48] sm:$0xff] }
 0x4bc   : > { %7657 = vst.msk [vmem:[%s10003_s28 + $0x38] sm:$0xff] %vm1530_vm3, %v7625_v3  ;;  %v7623_v43 = vadd.f32 %v9846_v54, %v7591_v49  ;;  %v7596_v25 = vadd.f32 %v13481_v1, %v7557_v48  ;;  %v7555_v32 = vadd.f32 %v7452_v39, %v7315_v60  ;;  %v6833_v60 = vadd.f32 %v14198_v17, %v14197_v42  ;;  %v14200_v39 = vld [vmem:[#allocation15_spill] sm:$0xff] }
 0x4bd   : > { %v9627_v0 = vpop.f32.mrf.mxu1  ;;  %v7325_v23 = vadd.f32 %v13474_v61, %v7069_v22  ;;  %v14208_v61 = vld [vmem:[#allocation36_spill] sm:$0xff] }
 0x4be   : > { %7655 = vst.msk [vmem:[%s10003_s28 + $0x28] sm:$0xff] %vm1530_vm3, %v7623_v43  ;;  %v7628_v26 = vadd.f32 %v9847_v45, %v7596_v25  ;;  %v7594_v57 = vadd.f32 %v13481_v1, %v7555_v32  ;;  %v7558_v7 = vadd.f32 %v9627_v0, %v7318_v44  ;;  %v7067_v54 = vadd.f32 %v14200_v39, %v6833_v60  ;;  %v14201_v43 = vld [vmem:[#allocation62_spill] sm:$0xff]  ;;  %v14202_v25 = vld [vmem:[#allocation49_spill] sm:$0xff]  ;;  %v13594_v44 = vpop.f32.mrf.mxu0  ;;  %v14212_v60 = vld [vmem:[#allocation19_spill] sm:$0xff] }
 0x4bf   : > { %v7455_v4 = vpop.f32.mrf.mxu1  ;;  %v6836_v32 = vadd.f32 %v14202_v25, %v14201_v43  ;;  %v7320_v45 = vadd.f32 %v13462_v9, %v7064_v62  ;;  %v14206_v9 = vld [vmem:[#allocation14_spill] sm:$0xff]  ;;  %v14210_v62 = vld [vmem:[#allocation21_spill] sm:$0xff]  ;;  %v14215_v25 = vld [vmem:[#allocation7_spill] sm:$0xff] }
 0x4c0   : > { %7660 = vst.msk [vmem:[%s10003_s28 + $0x50] sm:$0xff] %vm1530_vm3, %v7628_v26  ;;  %v7626_v36 = vadd.f32 %v9848_v21, %v7594_v57  ;;  %v7597_v40 = vadd.f32 %v13481_v1, %v7558_v7  ;;  %v7556_v52 = vadd.f32 %v7455_v4, %v7316_v53  ;;  %v14203_v26 = vld [vmem:[#allocation64_spill] sm:$0xff]  ;;  %v14204_v57 = vld [vmem:[#allocation57_spill] sm:$0xff]  ;;  %v9852_v4 = vld [vmem:[%s10003_s28 + $0x60] sm:$0xff]  ;;  %v13609_v63 = vpop.f32.mrf.mxu0 }
 0x4c1   : > { %v9630_v6 = vpop.f32.mrf.mxu1  ;;  %v6834_v7 = vadd.f32 %v14204_v57, %v14203_v26  ;;  %v7070_v16 = vadd.f32 %v14205_v30, %v6836_v32  ;;  %v14207_v21 = vld [vmem:[#allocation50_spill] sm:$0xff] }
 0x4c2   : > { %7658 = vst.msk [vmem:[%s10003_s28 + $0x40] sm:$0xff] %vm1530_vm3, %v7626_v36  ;;  %v7629_v51 = vadd.f32 %v9849_v37, %v7597_v40  ;;  %v7595_v46 = vadd.f32 %v13481_v1, %v7556_v52  ;;  %v7561_v59 = vadd.f32 %v9630_v6, %v7321_v47  ;;  %v6839_v36 = vadd.f32 %v14207_v21, %v14206_v9  ;;  %v14211_v37 = vld [vmem:[#allocation52_spill] sm:$0xff]  ;;  %v7276_v17 = vpop.f32.mrf.mxu0  ;;  %v14221_v21 = vld [vmem:[#allocation9_spill] sm:$0xff] }
 0x4c3   : > { %v7468_v28 = vpop.f32.mrf.mxu1  ;;  %v7323_v52 = vadd.f32 %v13488_v5, %v7067_v54  ;;  %v7068_v19 = vadd.f32 %v14208_v61, %v6834_v7  ;;  %v9854_v5 = vld [vmem:[%s10003_s28 + $0x68] sm:$0xff]  ;;  %v7326_v42 = vadd.f32 %v13503_v8, %v7070_v16  ;;  %v14216_v8 = vld [vmem:[#allocation53_spill] sm:$0xff] }
 0x4c4   : > { %7661 = vst.msk [vmem:[%s10003_s28 + $0x58] sm:$0xff] %vm1530_vm3, %v7629_v51  ;;  %v7627_v3 = vadd.f32 %v9850_v12, %v7595_v46  ;;  %v7600_v49 = vadd.f32 %v13481_v1, %v7561_v59  ;;  %v7559_v48 = vadd.f32 %v7468_v28, %v7319_v56  ;;  %v14209_v56 = vld [vmem:[#allocation22_spill] sm:$0xff]  ;;  %v6837_v51 = vadd.f32 %v14211_v37, %v14210_v62  ;;  %v14213_v12 = vld [vmem:[#allocation5_spill] sm:$0xff]  ;;  %v9603_v7 = vpop.f32.mrf.mxu0  ;;  %v14225_v37 = vld [vmem:[#allocation40_spill] sm:$0xff] }
 0x4c5   : > { %v9631_v38 = vpop.f32.mrf.mxu1  ;;  %v7073_v10 = vadd.f32 %v14209_v56, %v6839_v36  ;;  %v7324_v43 = vadd.f32 %v13522_v55, %v7068_v19  ;;  %v6838_v32 = vadd.f32 %v14216_v8, %v14215_v25  ;;  %v14218_v55 = vld [vmem:[#allocation27_spill] sm:$0xff]  ;;  %v14231_v8 = vld [vmem:[#allocation4_spill] sm:$0xff] }
 0x4c6   : > { %7659 = vst.msk [vmem:[%s10003_s28 + $0x48] sm:$0xff] %vm1530_vm3, %v7627_v3  ;;  %v7632_v33 = vadd.f32 %v9851_v13, %v7600_v49  ;;  %v7598_v34 = vadd.f32 %v13481_v1, %v7559_v48  ;;  %v7562_v0 = vadd.f32 %v9631_v38, %v7322_v29  ;;  %v7071_v28 = vadd.f32 %v14212_v60, %v6837_v51  ;;  %v14214_v3 = vld [vmem:[#allocation60_spill] sm:$0xff]  ;;  %v7279_v56 = vpop.f32.mrf.mxu0 }
 0x4c7   : > { %v7471_v53 = vpop.f32.mrf.mxu1  ;;  %v6840_v49 = vadd.f32 %v14214_v3, %v14213_v12  ;;  %v7329_v13 = vadd.f32 %v13539_v24, %v7073_v10  ;;  %v14224_v10 = vld [vmem:[#allocation20_spill] sm:$0xff] }
 0x4c8   : > { %7664 = vst.msk [vmem:[%s10003_s28 + $0x70] sm:$0xff] %vm1530_vm3, %v7632_v33  ;;  %v7630_v18 = vadd.f32 %v9852_v4, %v7598_v34  ;;  %v7601_v47 = vadd.f32 %v13481_v1, %v7562_v0  ;;  %v7560_v58 = vadd.f32 %v7471_v53, %v7320_v45  ;;  %v14217_v33 = vld [vmem:[#allocation24_spill] sm:$0xff]  ;;  %v9856_v0 = vld [vmem:[%s10003_s28 + $0x80] sm:$0xff]  ;;  %v14219_v53 = vld [vmem:[#allocation63_spill] sm:$0xff]  ;;  %v7327_v16 = vadd.f32 %v13558_v11, %v7071_v28  ;;  %v9606_v3 = vpop.f32.mrf.mxu0 }
 0x4c9   : > { %v9634_v40 = vpop.f32.mrf.mxu1  ;;  %v7074_v34 = vadd.f32 %v14217_v33, %v6840_v49  ;;  %v14220_v4 = vld [vmem:[#allocation28_spill] sm:$0xff]  ;;  %v9858_v11 = vld [vmem:[%s10003_s28 + $0x88] sm:$0xff]  ;;  %v14228_v28 = vld [vmem:[#allocation6_spill] sm:$0xff] }
 0x4ca   : > { %7662 = vst.msk [vmem:[%s10003_s28 + $0x60] sm:$0xff] %vm1530_vm3, %v7630_v18  ;;  %v7633_v50 = vadd.f32 %v9853_v41, %v7601_v47  ;;  %v7599_v6 = vadd.f32 %v13481_v1, %v7560_v58  ;;  %v7565_v20 = vadd.f32 %v9634_v40, %v7325_v23  ;;  %v6843_v23 = vadd.f32 %v14219_v53, %v14218_v55  ;;  %v9857_v18 = vld [vmem:[%s10003_s28 + $0x98] sm:$0xff]  ;;  %v14222_v40 = vld [vmem:[#allocation10_spill] sm:$0xff]  ;;  %v14226_v51 = vld [vmem:[#allocation16_spill] sm:$0xff] }
 0x4cb   : > { %v7484_v46 = vpop.f32.mrf.mxu1  ;;  %v7072_v24 = vadd.f32 %v14220_v4, %v6838_v32  ;;  %v14232_v33 = vld [vmem:[#allocation23_spill] sm:$0xff]  ;;  %v14234_v53 = vld [vmem:[#allocation37_spill] sm:$0xff] }
 0x4cc   : > { %7665 = vst.msk [vmem:[%s10003_s28 + $0x78] sm:$0xff] %vm1530_vm3, %v7633_v50  ;;  %v7631_v59 = vadd.f32 %v9854_v5, %v7599_v6  ;;  %v7604_v35 = vadd.f32 %v13481_v1, %v7565_v20  ;;  %v7563_v22 = vadd.f32 %v7484_v46, %v7323_v52  ;;  %v7077_v36 = vadd.f32 %v14221_v21, %v6843_v23  ;;  %v14223_v52 = vld [vmem:[#allocation59_spill] sm:$0xff]  ;;  %v14235_v23 = vld [vmem:[#allocation17_spill] sm:$0xff]  ;;  %v14236_v21 = vld [vmem:[#allocation26_spill] sm:$0xff] }
 0x4cd   : > { %v9635_v48 = vpop.f32.mrf.mxu1  ;;  %v6841_v61 = vadd.f32 %v14223_v52, %v14222_v40  ;;  %v7330_v20 = vadd.f32 %v13575_v15, %v7074_v34  ;;  %v6844_v46 = vadd.f32 %v14226_v51, %v14225_v37  ;;  %v7328_v60 = vadd.f32 %v13594_v44, %v7072_v24  ;;  %v14227_v15 = vld [vmem:[#allocation32_spill] sm:$0xff]  ;;  %v14230_v44 = vld [vmem:[#allocation38_spill] sm:$0xff] }
 0x4ce   : > { %7663 = vst.msk [vmem:[%s10003_s28 + $0x68] sm:$0xff] %vm1530_vm3, %v7631_v59  ;;  %v7636_v29 = vadd.f32 %v9855_v14, %v7604_v35  ;;  %v7602_v39 = vadd.f32 %v13481_v1, %v7563_v22  ;;  %v7566_v54 = vadd.f32 %v9635_v48, %v7326_v42  ;;  %v9859_v59 = vld [vmem:[%s10003_s28 + $0xb0] sm:$0xff]  ;;  %v6842_v12 = vadd.f32 %v14228_v28, %v14227_v15  ;;  %v14229_v14 = vld [vmem:[#allocation31_spill] sm:$0xff]  ;;  %v9864_v51 = vld [vmem:[%s10003_s28 + $0xc0] sm:$0xff] }
 0x4cf   : > { %v7487_v38 = vpop.f32.mrf.mxu1  ;;  %v7075_v62 = vadd.f32 %v14224_v10, %v6841_v61  ;;  %v7333_v48 = vadd.f32 %v13609_v63, %v7077_v36  ;;  %v6847_v32 = vadd.f32 %v14231_v8, %v14230_v44  ;;  %v9861_v63 = vld [vmem:[%s10003_s28 + $0xb8] sm:$0xff]  ;;  %v9863_v61 = vld [vmem:[%s10003_s28 + $0xd0] sm:$0xff] }
 0x4d0   : > { %7668 = vst.msk [vmem:[%s10003_s28 + $0x90] sm:$0xff] %vm1530_vm3, %v7636_v29  ;;  %v7634_v45 = vadd.f32 %v9856_v0, %v7602_v39  ;;  %v7605_v26 = vadd.f32 %v13481_v1, %v7566_v54  ;;  %v7564_v57 = vadd.f32 %v7487_v38, %v7324_v43  ;;  %v7078_v29 = vadd.f32 %v14229_v14, %v6844_v46  ;;  %v9860_v39 = vld [vmem:[%s10003_s28 + $0xa0] sm:$0xff]  ;;  %v14237_v36 = vld [vmem:[#allocation29_spill] sm:$0xff] }
 0x4d1   : > { %v9638_v30 = vpop.f32.mrf.mxu1  ;;  %v7076_v34 = vadd.f32 %v14232_v33, %v6842_v12  ;;  %v6848_v40 = vadd.f32 %v14237_v36, %v14236_v21 }
 0x4d2   : > { %7666 = vst.msk [vmem:[%s10003_s28 + $0x80] sm:$0xff] %vm1530_vm3, %v7634_v45  ;;  %v7637_v47 = vadd.f32 %v9857_v18, %v7605_v26  ;;  %v7603_v58 = vadd.f32 %v13481_v1, %v7564_v57  ;;  %v7569_v9 = vadd.f32 %v9638_v30, %v7329_v13  ;;  %v7331_v13 = vadd.f32 %v7276_v17, %v7075_v62  ;;  %v14233_v57 = vld [vmem:[#allocation35_spill] sm:$0xff] }
 0x4d3   : > { %v7500_v19 = vpop.f32.mrf.mxu1  ;;  %v7081_v55 = vadd.f32 %v14233_v57, %v6847_v32  ;;  %v6845_v30 = vadd.f32 %v14235_v23, %v14234_v53  ;;  %v9862_v17 = vld [vmem:[%s10003_s28 + $0xa8] sm:$0xff]  ;;  %v7082_v37 = vadd.f32 %v13464_v27, %v6848_v40  ;;  %v9868_v32 = vld [vmem:[%s10003_s28 + $0xe0] sm:$0xff] }
 0x4d4   : > { %7669 = vst.msk [vmem:[%s10003_s28 + $0x98] sm:$0xff] %vm1530_vm3, %v7637_v47  ;;  %v7635_v41 = vadd.f32 %v9858_v11, %v7603_v58  ;;  %v7608_v50 = vadd.f32 %v13481_v1, %v7569_v9  ;;  %v7567_v6 = vadd.f32 %v7500_v19, %v7327_v16  ;;  %v7292_v16 = vpop.f32.mrf.mxu0  ;;  %v7334_v58 = vadd.f32 %v9603_v7, %v7078_v29  ;;  %v14239_v7 = vld [vmem:[#allocation25_spill] sm:$0xff] }
 0x4d5   : > { %v9639_v5 = vpop.f32.mrf.mxu1  ;;  %v7079_v9 = vadd.f32 %v13458_v2, %v6845_v30 }
 0x4d6   : > { %7667 = vst.msk [vmem:[%s10003_s28 + $0x88] sm:$0xff] %vm1530_vm3, %v7635_v41  ;;  %v7640_v35 = vadd.f32 %v9859_v59, %v7608_v50  ;;  %v7606_v22 = vadd.f32 %v13481_v1, %v7567_v6  ;;  %v7570_v42 = vadd.f32 %v9639_v5, %v7330_v20  ;;  %v7332_v50 = vadd.f32 %v7279_v56, %v7076_v34  ;;  %v14238_v20 = vld [vmem:[#allocation11_spill] sm:$0xff]  ;;  %v9607_v62 = vpop.f32.mrf.mxu0  ;;  %v9869_v34 = vld [vmem:[%s10003_s28 + $0xf8] sm:$0xff] }
 0x4d7   : > { %v7503_v49 = vpop.f32.mrf.mxu1  ;;  %v7337_v6 = vadd.f32 %v9606_v3, %v7081_v55  ;;  %v6846_v10 = vadd.f32 %v14239_v7, %v14238_v20  ;;  %v7338_v3 = vadd.f32 %v9607_v62, %v7082_v37 }
 0x4d8   : > { %7672 = vst.msk [vmem:[%s10003_s28 + $0xb0] sm:$0xff] %vm1530_vm3, %v7640_v35  ;;  %v7638_v54 = vadd.f32 %v9860_v39, %v7606_v22  ;;  %v7609_v43 = vadd.f32 %v13481_v1, %v7570_v42  ;;  %v7568_v25 = vadd.f32 %v7503_v49, %v7328_v60  ;;  %v7335_v35 = vadd.f32 %v7292_v16, %v7079_v9  ;;  %v9865_v42 = vld [vmem:[%s10003_s28 + $0xd8] sm:$0xff]  ;;  %v7295_v28 = vpop.f32.mrf.mxu0  ;;  %v9866_v49 = vld [vmem:[%s10003_s28 + $0xc8] sm:$0xff] }
 0x4d9   : > { %v9642_v38 = vpop.f32.mrf.mxu1  ;;  %v7080_v56 = vadd.f32 %v13468_v31, %v6846_v10 }
 0x4da   : > { %7670 = vst.msk [vmem:[%s10003_s28 + $0xa0] sm:$0xff] %vm1530_vm3, %v7638_v54  ;;  %v7641_v0 = vadd.f32 %v9861_v63, %v7609_v43  ;;  %v7607_v45 = vadd.f32 %v13481_v1, %v7568_v25  ;;  %v7573_v26 = vadd.f32 %v9642_v38, %v7333_v48  ;;  %v9867_v54 = vld [vmem:[%s10003_s28 + $0xf0] sm:$0xff] }
 0x4db   : > { %v7516_v4 = vpop.f32.mrf.mxu1  ;;  %v7336_v39 = vadd.f32 %v7295_v28, %v7080_v56 }
 0x4dc   : > { %7673 = vst.msk [vmem:[%s10003_s28 + $0xb8] sm:$0xff] %vm1530_vm3, %v7641_v0  ;;  %v7639_v24 = vadd.f32 %v9862_v17, %v7607_v45  ;;  %v7612_v18 = vadd.f32 %v13481_v1, %v7573_v26  ;;  %v7571_v47 = vadd.f32 %v7516_v4, %v7331_v13  ;;  %v9870_v45 = vld [vmem:[%s10003_s28 + $0xe8] sm:$0xff] }
 0x4dd   : > { %v9643_v52 = vpop.f32.mrf.mxu1 }
 0x4de   : > { %7671 = vst.msk [vmem:[%s10003_s28 + $0xa8] sm:$0xff] %vm1530_vm3, %v7639_v24  ;;  %v7644_v19 = vadd.f32 %v9863_v61, %v7612_v18  ;;  %v7610_v11 = vadd.f32 %v13481_v1, %v7571_v47  ;;  %v7574_v41 = vadd.f32 %v9643_v52, %v7334_v58 }
 0x4df   : > { %v7519_v2 = vpop.f32.mrf.mxu1 }
 0x4e0   : > { %7676 = vst.msk [vmem:[%s10003_s28 + $0xd0] sm:$0xff] %vm1530_vm3, %v7644_v19  ;;  %v7642_v46 = vadd.f32 %v9864_v51, %v7610_v11  ;;  %v7613_v5 = vadd.f32 %v13481_v1, %v7574_v41  ;;  %v7572_v59 = vadd.f32 %v7519_v2, %v7332_v50 }
 0x4e1   : > { %v9646_v22 = vpop.f32.mrf.mxu1 }
 0x4e2   : > { %7674 = vst.msk [vmem:[%s10003_s28 + $0xc0] sm:$0xff] %vm1530_vm3, %v7642_v46  ;;  %v7645_v60 = vadd.f32 %v9865_v42, %v7613_v5  ;;  %v7611_v27 = vadd.f32 %v13481_v1, %v7572_v59  ;;  %v7577_v15 = vadd.f32 %v9646_v22, %v7337_v6 }
 0x4e3   : > { %v7532_v12 = vpop.f32.mrf.mxu1 }
 0x4e4   : > { %7677 = vst.msk [vmem:[%s10003_s28 + $0xd8] sm:$0xff] %vm1530_vm3, %v7645_v60  ;;  %v7643_v48 = vadd.f32 %v9866_v49, %v7611_v27  ;;  %v7616_v31 = vadd.f32 %v13481_v1, %v7577_v15  ;;  %v7575_v14 = vadd.f32 %v7532_v12, %v7335_v35 }
 0x4e5   : > { %v9647_v29 = vpop.f32.mrf.mxu1 }
 0x4e6   : > { %7675 = vst.msk [vmem:[%s10003_s28 + $0xc8] sm:$0xff] %vm1530_vm3, %v7643_v48  ;;  %v7648_v43 = vadd.f32 %v9867_v54, %v7616_v31  ;;  %v7614_v25 = vadd.f32 %v13481_v1, %v7575_v14  ;;  %v7578_v44 = vadd.f32 %v9647_v29, %v7338_v3 }
 0x4e7   : > { %v7535_v8 = vpop.f32.mrf.mxu1 }
 0x4e8   : > { %7680 = vst.msk [vmem:[%s10003_s28 + $0xf0] sm:$0xff] %vm1530_vm3, %v7648_v43  ;;  %v7646_v38 = vadd.f32 %v9868_v32, %v7614_v25  ;;  %v7617_v13 = vadd.f32 %v13481_v1, %v7578_v44  ;;  %v7576_v33 = vadd.f32 %v7535_v8, %v7336_v39 }
 0x4ea   : > { %7678 = vst.msk [vmem:[%s10003_s28 + $0xe0] sm:$0xff] %vm1530_vm3, %v7646_v38  ;;  %v7649_v63 = vadd.f32 %v9869_v34, %v7617_v13  ;;  %v7615_v0 = vadd.f32 %v13481_v1, %v7576_v33 }
 0x4ec   : > { %7681 = vst.msk [vmem:[%s10003_s28 + $0xf8] sm:$0xff] %vm1530_vm3, %v7649_v63  ;;  %v7647_v26 = vadd.f32 %v9870_v45, %v7615_v0 }
 0x4ee   : > { %7679 = vst.msk [vmem:[%s10003_s28 + $0xe8] sm:$0xff] %vm1530_vm3, %v7647_v26 }
 0x4ef PF: > { %s15_s22 = sadd.s32 1, %s9909_s22   ;;  %s14240_s18 = smov %s9901_s20 }
 0x4f0   : > { %p12_p8 = scmp.ge.s32.totalorder %s15_s22, 8   ;;  %s14241_s19 = smov %s9905_s21 }
 0x4f1   : > { %s14242_s20 = smov %s14245_s23  ;;  %s14243_s21 = smov %s14249_s24 }
 0x4f2   :  { %14 = sbr.rel (!%p12_p8) target bundleno = 3 (0x3), region = 104 }

</bundles_post_ra>
